<compile_context>
chip_gen: v5e
topology: v5e:2x2
jax: 0.10.0
libtpu: 0.0.40
codegen_flags: <defaults>
</compile_context>

<pallas_src>
import math

import jax
import jax.numpy as jnp
from jax.experimental import pallas as pl
from jax.experimental.pallas import tpu as pltpu

# ---------------- configuration (small, consistent with the module) ----------
IMG = 16           # img_size
PATCH = 4          # patch_size
C_IN = 3           # in_channels
NUM_CLASSES = 10
EMBED = 32         # embed_dim
DEPTH = 3
HEADS = 4
MLP_HIDDEN = 64
BATCH = 2

N_PATCHES = (IMG // PATCH) ** 2          # 16
SEQ = N_PATCHES + 1                      # 17 real tokens
SEQ_PAD = 24                             # next multiple of 8 (sublane aligned)
HEAD_DIM = EMBED // HEADS
LN_EPS = 1e-5


# ---------------- in-kernel math helpers -------------------------------------
def _layernorm(x, g, b):
    mu = jnp.mean(x, axis=-1, keepdims=True)
    xc = x - mu
    var = jnp.mean(xc * xc, axis=-1, keepdims=True)
    return xc * jax.lax.rsqrt(var + LN_EPS) * g + b


def _softmax(x):
    m = jnp.max(x, axis=-1, keepdims=True)
    e = jnp.exp(x - m)
    # EUP approximate reciprocal instead of a VALU divide.
    return e * pl.reciprocal(jnp.sum(e, axis=-1, keepdims=True), approx=True)


def _erf(x):
    # Abramowitz & Stegun 7.1.26 rational approximation.
    a1, a2, a3, a4, a5 = 0.254829592, -0.284496736, 1.421413741, -1.453152027, 1.061405429
    p = 0.3275911
    ax = jnp.abs(x)
    # divide routed to the EUP slot (approx reciprocal) per perf review.
    t = pl.reciprocal(1.0 + p * ax, approx=True)
    poly = ((((a5 * t + a4) * t + a3) * t + a2) * t + a1) * t
    y = 1.0 - poly * jnp.exp(-ax * ax)
    return jnp.where(x >= 0, y, -y)


def _gelu(x):
    # exact GELU (PyTorch nn.GELU default), erf via approximation above
    return 0.5 * x * (1.0 + _erf(x * 0.7071067811865476))


# ---------------- the single fused kernel ------------------------------------
def vit_kernel(
    patches_ref, proj_w_ref, add_ref, hmask_ref, kmask_ref,
    ln1g_ref, ln1b_ref, wqkv_ref, bqkv_ref, wo_ref, bo_ref,
    ln2g_ref, ln2b_ref, w1_ref, b1_ref, w2_ref, b2_ref,
    lnfg_ref, lnfb_ref, headw_ref, headb_ref,
    o_ref,
):
    f32 = jnp.float32
    E = EMBED
    S = SEQ_PAD

    masks = [hmask_ref[h] for h in range(HEADS)]     # each (1, E), 0/1 lane mask
    kmask = kmask_ref[...]                           # (1, S_PAD): 0 real / -1e30 pad

    # ---- patch embedding + cls + positional embedding, fully batch-fused ----
    # patches_padded: (B*S_PAD, K) with zero rows for cls/pad positions.
    # add_ref already contains proj_b + pos on token rows, cls+pos[0] on the cls
    # row, and 0 on pad rows -> one matmul, no scatter.
    x = jnp.dot(patches_ref[...], proj_w_ref[...],
                preferred_element_type=f32) + add_ref[...]            # (B*S, E)

    # ---- transformer blocks --------------------------------------------------
    for d in range(DEPTH):
        ln1g, ln1b = ln1g_ref[d], ln1b_ref[d]
        wqkv, bqkv = wqkv_ref[d], bqkv_ref[d]        # 1/sqrt(head_dim) folded in q part
        wo, bo = wo_ref[d], bo_ref[d]
        ln2g, ln2b = ln2g_ref[d], ln2b_ref[d]
        w1, b1 = w1_ref[d], b1_ref[d]
        w2, b2 = w2_ref[d], b2_ref[d]

        xn = _layernorm(x, ln1g, ln1b)                                 # (B*S, E)
        qkv = jnp.dot(xn, wqkv, preferred_element_type=f32) + bqkv     # (B*S, 3E)
        q = qkv[:, 0:E]
        k = qkv[:, E:2 * E]
        v = qkv[:, 2 * E:3 * E]

        ctxs = []
        for b in range(BATCH):                       # scores/PV stay per-batch
            qb = q[b * S:(b + 1) * S, :]             # (S, E) — 8-aligned slices
            kb = k[b * S:(b + 1) * S, :]
            vb = v[b * S:(b + 1) * S, :]
            # head-stacked queries: block h = q_b * mask_h  -> (H*S, E)
            q_stack = jnp.concatenate([qb * masks[h] for h in range(HEADS)], axis=0)
            # (q*m_h) . k^T == q_h . k_h^T  (masked lanes drop out of contraction)
            s = jax.lax.dot_general(
                q_stack, kb, dimension_numbers=(((1,), (1,)), ((), ())),
                preferred_element_type=f32)                            # (H*S, S)
            p = _softmax(s + kmask)        # attn dropout: eval mode -> identity
            ctx_stack = jnp.dot(p, vb, preferred_element_type=f32)     # (H*S, E)
            ctx_b = masks[0] * ctx_stack[0:S, :]
            for h in range(1, HEADS):
                ctx_b = ctx_b + masks[h] * ctx_stack[h * S:(h + 1) * S, :]
            ctxs.append(ctx_b)
        ctx = jnp.concatenate(ctxs, axis=0)                            # (B*S, E)

        x = x + jnp.dot(ctx, wo, preferred_element_type=f32) + bo      # residual 1

        xn2 = _layernorm(x, ln2g, ln2b)
        h1 = _gelu(jnp.dot(xn2, w1, preferred_element_type=f32) + b1)  # (B*S, HM)
        x = x + jnp.dot(h1, w2, preferred_element_type=f32) + b2       # residual 2

    # ---- final LayerNorm + classification head on both CLS rows at once -----
    cls = jnp.concatenate(
        [x[b * S + N_PATCHES: b * S + N_PATCHES + 1, :] for b in range(BATCH)],
        axis=0)                                                        # (B, E)
    logits = jnp.dot(_layernorm(cls, lnfg_ref[...], lnfb_ref[...]), headw_ref[...],
                     preferred_element_type=f32) + headb_ref[...]      # (B, NC)
    o_ref[...] = logits


# ---------------- wrapper ------------------------------------------------------
def vit_forward(x, params):
    B = x.shape[0]
    p = PATCH
    ph = IMG // p
    K = C_IN * p * p
    # Conv2d(kernel=stride=PATCH) == patch extraction + linear projection.
    patches = (
        x.reshape(B, C_IN, ph, p, ph, p)
        .transpose(0, 2, 4, 1, 3, 5)
        .reshape(B, N_PATCHES, K)
    )
    pad = jnp.zeros((B, SEQ_PAD - N_PATCHES, K), patches.dtype)
    patches_padded = jnp.concatenate([patches, pad], axis=1).reshape(B * SEQ_PAD, K)

    inputs = [
        patches_padded, params["proj_w_t"], params["add_slab"],
        params["head_mask"], params["key_mask"],
        params["ln1_g"], params["ln1_b"], params["wqkv"], params["bqkv"],
        params["wo"], params["bo"], params["ln2_g"], params["ln2_b"],
        params["w1"], params["b1"], params["w2"], params["b2"],
        params["ln_g"], params["ln_b"], params["head_w_t"], params["head_b"],
    ]

    out = pl.pallas_call(
        vit_kernel,
        out_shape=jax.ShapeDtypeStruct((B, NUM_CLASSES), jnp.float32),
        grid=(1,),
        in_specs=[pl.BlockSpec(a.shape, lambda i, n=a.ndim: (0,) * n) for a in inputs],
        out_specs=pl.BlockSpec((B, NUM_CLASSES), lambda i: (0, 0)),
        compiler_params=pltpu.CompilerParams(dimension_semantics=("arbitrary",)),
    )(*inputs)
    return out


# ---------------- deterministic parameter init --------------------------------
def init_params(key):
    E, H, HD, HM = EMBED, HEADS, HEAD_DIM, MLP_HIDDEN
    K = C_IN * PATCH * PATCH
    keys = iter(jax.random.split(key, 8 + DEPTH * 8))

    def nrm(shape, scale=0.02):
        return (scale * jax.random.normal(next(keys), shape)).astype(jnp.float32)

    params = {}
    proj_w = nrm((E, C_IN, PATCH, PATCH))            # Conv2d weight (E, C, p, p)
    params["proj_w_t"] = proj_w.reshape(E, K).T      # (K, E)
    proj_b = nrm((1, E))
    cls = nrm((1, 1, E))
    pos = nrm((1, SEQ, E))

    # additive slab per batch segment: [proj_b+pos[1:], cls+pos[0], zeros(pad)]
    add_one = jnp.concatenate(
        [proj_b + pos[0, 1:, :],
         cls[0] + pos[0, 0:1, :],
         jnp.zeros((SEQ_PAD - SEQ, E), jnp.float32)], axis=0)          # (S_PAD, E)
    params["add_slab"] = jnp.tile(add_one, (BATCH, 1))                 # (B*S_PAD, E)

    lane = jnp.arange(E)
    params["head_mask"] = (
        (lane[None, None, :] // HD) == jnp.arange(H)[:, None, None]
    ).astype(jnp.float32)                            # (H, 1, E)

    params["key_mask"] = jnp.where(
        jnp.arange(SEQ_PAD) < SEQ, 0.0, -1e30
    ).astype(jnp.float32).reshape(1, SEQ_PAD)        # (1, S_PAD)

    names = ("ln1_g", "ln1_b", "wqkv", "bqkv", "wo", "bo",
             "ln2_g", "ln2_b", "w1", "b1", "w2", "b2")
    per = {n: [] for n in names}
    inv = 1.0 / math.sqrt(HD)
    for _ in range(DEPTH):
        in_w = nrm((3 * E, E))                       # MultiheadAttention in_proj_weight
        in_b = nrm((3 * E,))
        out_w = nrm((E, E))                          # out_proj
        out_b = nrm((E,))
        fc1_w = nrm((HM, E))
        fc1_b = nrm((HM,))
        fc2_w = nrm((E, HM))
        fc2_b = nrm((E,))

        per["ln1_g"].append(jnp.ones((1, E), jnp.float32))
        per["ln1_b"].append(jnp.zeros((1, E), jnp.float32))
        # fused QKV weight (E, 3E); 1/sqrt(head_dim) folded into the q columns/bias
        per["wqkv"].append(jnp.concatenate(
            [in_w[:E].T * inv, in_w[E:2 * E].T, in_w[2 * E:].T], axis=1))
        per["bqkv"].append(jnp.concatenate(
            [in_b[:E] * inv, in_b[E:2 * E], in_b[2 * E:]], axis=0).reshape(1, 3 * E))
        per["wo"].append(out_w.T)
        per["bo"].append(out_b.reshape(1, E))
        per["ln2_g"].append(jnp.ones((1, E), jnp.float32))
        per["ln2_b"].append(jnp.zeros((1, E), jnp.float32))
        per["w1"].append(fc1_w.T)
        per["b1"].append(fc1_b.reshape(1, HM))
        per["w2"].append(fc2_w.T)
        per["b2"].append(fc2_b.reshape(1, E))

    for n in names:
        params[n] = jnp.stack(per[n], axis=0)        # leading DEPTH axis

    params["ln_g"] = jnp.ones((1, E), jnp.float32)
    params["ln_b"] = jnp.zeros((1, E), jnp.float32)
    params["head_w_t"] = nrm((NUM_CLASSES, E)).T     # (E, num_classes)
    params["head_b"] = nrm((1, NUM_CLASSES))
    return params


# ---------------- main ---------------------------------------------------------
if __name__ == "__main__":
    key = jax.random.PRNGKey(0)
    pkey, xkey = jax.random.split(key)
    params = init_params(pkey)
    x = jax.random.normal(xkey, (BATCH, C_IN, IMG, IMG), dtype=jnp.float32)

    logits = jax.jit(lambda inp: vit_forward(inp, params))(x)
    jax.block_until_ready(logits)
    assert logits.shape == (BATCH, NUM_CLASSES), logits.shape
    assert bool(jnp.all(jnp.isfinite(logits)))
    print("KERNEL_OK")
</pallas_src>

<mosaic_0001>
module attributes {stable_mosaic.version = 11 : i64} {
  func.func @vit_kernel(%arg0: i32, %arg1: memref<48x48xf32, #tpu.memory_space<vmem>>, %arg2: memref<48x32xf32, #tpu.memory_space<vmem>>, %arg3: memref<48x32xf32, #tpu.memory_space<vmem>>, %arg4: memref<4x1x32xf32, #tpu.memory_space<vmem>>, %arg5: memref<1x24xf32, #tpu.memory_space<vmem>>, %arg6: memref<3x1x32xf32, #tpu.memory_space<vmem>>, %arg7: memref<3x1x32xf32, #tpu.memory_space<vmem>>, %arg8: memref<3x32x96xf32, #tpu.memory_space<vmem>>, %arg9: memref<3x1x96xf32, #tpu.memory_space<vmem>>, %arg10: memref<3x32x32xf32, #tpu.memory_space<vmem>>, %arg11: memref<3x1x32xf32, #tpu.memory_space<vmem>>, %arg12: memref<3x1x32xf32, #tpu.memory_space<vmem>>, %arg13: memref<3x1x32xf32, #tpu.memory_space<vmem>>, %arg14: memref<3x32x64xf32, #tpu.memory_space<vmem>>, %arg15: memref<3x1x64xf32, #tpu.memory_space<vmem>>, %arg16: memref<3x64x32xf32, #tpu.memory_space<vmem>>, %arg17: memref<3x1x32xf32, #tpu.memory_space<vmem>>, %arg18: memref<1x32xf32, #tpu.memory_space<vmem>>, %arg19: memref<1x32xf32, #tpu.memory_space<vmem>>, %arg20: memref<32x10xf32, #tpu.memory_space<vmem>>, %arg21: memref<1x10xf32, #tpu.memory_space<vmem>>, %arg22: memref<2x10xf32, #tpu.memory_space<vmem>>) attributes {dimension_semantics = [#tpu.dimension_semantics<arbitrary>], iteration_bounds = array<i64: 1>, scalar_prefetch = 0 : i64, scratch_operands = 0 : i64, tpu.core_type = #tpu.core_type<tc>, window_params = [{pipeline_mode = #tpu.pipeline_mode<synchronous>, transform_indices = @transform_0, window_bounds = array<i64: 48, 48>}, {pipeline_mode = #tpu.pipeline_mode<synchronous>, transform_indices = @transform_1, window_bounds = array<i64: 48, 32>}, {pipeline_mode = #tpu.pipeline_mode<synchronous>, transform_indices = @transform_2, window_bounds = array<i64: 48, 32>}, {pipeline_mode = #tpu.pipeline_mode<synchronous>, transform_indices = @transform_3, window_bounds = array<i64: 4, 1, 32>}, {pipeline_mode = #tpu.pipeline_mode<synchronous>, transform_indices = @transform_4, window_bounds = array<i64: 1, 24>}, {pipeline_mode = #tpu.pipeline_mode<synchronous>, transform_indices = @transform_5, window_bounds = array<i64: 3, 1, 32>}, {pipeline_mode = #tpu.pipeline_mode<synchronous>, transform_indices = @transform_6, window_bounds = array<i64: 3, 1, 32>}, {pipeline_mode = #tpu.pipeline_mode<synchronous>, transform_indices = @transform_7, window_bounds = array<i64: 3, 32, 96>}, {pipeline_mode = #tpu.pipeline_mode<synchronous>, transform_indices = @transform_8, window_bounds = array<i64: 3, 1, 96>}, {pipeline_mode = #tpu.pipeline_mode<synchronous>, transform_indices = @transform_9, window_bounds = array<i64: 3, 32, 32>}, {pipeline_mode = #tpu.pipeline_mode<synchronous>, transform_indices = @transform_10, window_bounds = array<i64: 3, 1, 32>}, {pipeline_mode = #tpu.pipeline_mode<synchronous>, transform_indices = @transform_11, window_bounds = array<i64: 3, 1, 32>}, {pipeline_mode = #tpu.pipeline_mode<synchronous>, transform_indices = @transform_12, window_bounds = array<i64: 3, 1, 32>}, {pipeline_mode = #tpu.pipeline_mode<synchronous>, transform_indices = @transform_13, window_bounds = array<i64: 3, 32, 64>}, {pipeline_mode = #tpu.pipeline_mode<synchronous>, transform_indices = @transform_14, window_bounds = array<i64: 3, 1, 64>}, {pipeline_mode = #tpu.pipeline_mode<synchronous>, transform_indices = @transform_15, window_bounds = array<i64: 3, 64, 32>}, {pipeline_mode = #tpu.pipeline_mode<synchronous>, transform_indices = @transform_16, window_bounds = array<i64: 3, 1, 32>}, {pipeline_mode = #tpu.pipeline_mode<synchronous>, transform_indices = @transform_17, window_bounds = array<i64: 1, 32>}, {pipeline_mode = #tpu.pipeline_mode<synchronous>, transform_indices = @transform_18, window_bounds = array<i64: 1, 32>}, {pipeline_mode = #tpu.pipeline_mode<synchronous>, transform_indices = @transform_19, window_bounds = array<i64: 32, 10>}, {pipeline_mode = #tpu.pipeline_mode<synchronous>, transform_indices = @transform_20, window_bounds = array<i64: 1, 10>}, {pipeline_mode = #tpu.pipeline_mode<synchronous>, transform_indices = @transform_21, window_bounds = array<i64: 2, 10>}]} {
    %c0 = arith.constant 0 : index
    %c0_0 = arith.constant 0 : index
    %c0_1 = arith.constant 0 : index
    %0 = vector.load %arg4[%c0, %c0_0, %c0_1] : memref<4x1x32xf32, #tpu.memory_space<vmem>>, vector<1x1x32xf32>
    %1 = vector.shape_cast %0 : vector<1x1x32xf32> to vector<1x32xf32>
    %c1 = arith.constant 1 : index
    %c0_2 = arith.constant 0 : index
    %c0_3 = arith.constant 0 : index
    %2 = vector.load %arg4[%c1, %c0_2, %c0_3] : memref<4x1x32xf32, #tpu.memory_space<vmem>>, vector<1x1x32xf32>
    %3 = vector.shape_cast %2 : vector<1x1x32xf32> to vector<1x32xf32>
    %c2 = arith.constant 2 : index
    %c0_4 = arith.constant 0 : index
    %c0_5 = arith.constant 0 : index
    %4 = vector.load %arg4[%c2, %c0_4, %c0_5] : memref<4x1x32xf32, #tpu.memory_space<vmem>>, vector<1x1x32xf32>
    %5 = vector.shape_cast %4 : vector<1x1x32xf32> to vector<1x32xf32>
    %c3 = arith.constant 3 : index
    %c0_6 = arith.constant 0 : index
    %c0_7 = arith.constant 0 : index
    %6 = vector.load %arg4[%c3, %c0_6, %c0_7] : memref<4x1x32xf32, #tpu.memory_space<vmem>>, vector<1x1x32xf32>
    %7 = vector.shape_cast %6 : vector<1x1x32xf32> to vector<1x32xf32>
    %c0_8 = arith.constant 0 : index
    %c0_9 = arith.constant 0 : index
    %8 = vector.load %arg5[%c0_8, %c0_9] : memref<1x24xf32, #tpu.memory_space<vmem>>, vector<1x24xf32>
    %c0_10 = arith.constant 0 : index
    %c0_11 = arith.constant 0 : index
    %9 = vector.load %arg1[%c0_10, %c0_11] : memref<48x48xf32, #tpu.memory_space<vmem>>, vector<48x48xf32>
    %c0_12 = arith.constant 0 : index
    %c0_13 = arith.constant 0 : index
    %10 = vector.load %arg2[%c0_12, %c0_13] : memref<48x32xf32, #tpu.memory_space<vmem>>, vector<48x32xf32>
    %cst = arith.constant dense<0.000000e+00> : vector<48x32xf32>
    %11 = tpu.matmul %9, %10, %cst {dimension_numbers = #tpu.dot_dimension_numbers<[1], [0], [0], [1], [0, 0, 1, 1], [], []>} : vector<48x48xf32>, vector<48x32xf32>, vector<48x32xf32> -> vector<48x32xf32>
    %c0_14 = arith.constant 0 : index
    %c0_15 = arith.constant 0 : index
    %12 = vector.load %arg3[%c0_14, %c0_15] : memref<48x32xf32, #tpu.memory_space<vmem>>, vector<48x32xf32>
    %13 = arith.addf %11, %12 : vector<48x32xf32>
    %c0_16 = arith.constant 0 : index
    %c0_17 = arith.constant 0 : index
    %c0_18 = arith.constant 0 : index
    %14 = vector.load %arg6[%c0_16, %c0_17, %c0_18] : memref<3x1x32xf32, #tpu.memory_space<vmem>>, vector<1x1x32xf32>
    %15 = vector.shape_cast %14 : vector<1x1x32xf32> to vector<1x32xf32>
    %c0_19 = arith.constant 0 : index
    %c0_20 = arith.constant 0 : index
    %c0_21 = arith.constant 0 : index
    %16 = vector.load %arg7[%c0_19, %c0_20, %c0_21] : memref<3x1x32xf32, #tpu.memory_space<vmem>>, vector<1x1x32xf32>
    %17 = vector.shape_cast %16 : vector<1x1x32xf32> to vector<1x32xf32>
    %c0_22 = arith.constant 0 : index
    %c0_23 = arith.constant 0 : index
    %c0_24 = arith.constant 0 : index
    %18 = vector.load %arg8[%c0_22, %c0_23, %c0_24] : memref<3x32x96xf32, #tpu.memory_space<vmem>>, vector<1x32x96xf32>
    %19 = vector.shape_cast %18 : vector<1x32x96xf32> to vector<32x96xf32>
    %c0_25 = arith.constant 0 : index
    %c0_26 = arith.constant 0 : index
    %c0_27 = arith.constant 0 : index
    %20 = vector.load %arg9[%c0_25, %c0_26, %c0_27] : memref<3x1x96xf32, #tpu.memory_space<vmem>>, vector<1x1x96xf32>
    %21 = vector.shape_cast %20 : vector<1x1x96xf32> to vector<1x96xf32>
    %c0_28 = arith.constant 0 : index
    %c0_29 = arith.constant 0 : index
    %c0_30 = arith.constant 0 : index
    %22 = vector.load %arg10[%c0_28, %c0_29, %c0_30] : memref<3x32x32xf32, #tpu.memory_space<vmem>>, vector<1x32x32xf32>
    %23 = vector.shape_cast %22 : vector<1x32x32xf32> to vector<32x32xf32>
    %c0_31 = arith.constant 0 : index
    %c0_32 = arith.constant 0 : index
    %c0_33 = arith.constant 0 : index
    %24 = vector.load %arg11[%c0_31, %c0_32, %c0_33] : memref<3x1x32xf32, #tpu.memory_space<vmem>>, vector<1x1x32xf32>
    %25 = vector.shape_cast %24 : vector<1x1x32xf32> to vector<1x32xf32>
    %c0_34 = arith.constant 0 : index
    %c0_35 = arith.constant 0 : index
    %c0_36 = arith.constant 0 : index
    %26 = vector.load %arg12[%c0_34, %c0_35, %c0_36] : memref<3x1x32xf32, #tpu.memory_space<vmem>>, vector<1x1x32xf32>
    %27 = vector.shape_cast %26 : vector<1x1x32xf32> to vector<1x32xf32>
    %c0_37 = arith.constant 0 : index
    %c0_38 = arith.constant 0 : index
    %c0_39 = arith.constant 0 : index
    %28 = vector.load %arg13[%c0_37, %c0_38, %c0_39] : memref<3x1x32xf32, #tpu.memory_space<vmem>>, vector<1x1x32xf32>
    %29 = vector.shape_cast %28 : vector<1x1x32xf32> to vector<1x32xf32>
    %c0_40 = arith.constant 0 : index
    %c0_41 = arith.constant 0 : index
    %c0_42 = arith.constant 0 : index
    %30 = vector.load %arg14[%c0_40, %c0_41, %c0_42] : memref<3x32x64xf32, #tpu.memory_space<vmem>>, vector<1x32x64xf32>
    %31 = vector.shape_cast %30 : vector<1x32x64xf32> to vector<32x64xf32>
    %c0_43 = arith.constant 0 : index
    %c0_44 = arith.constant 0 : index
    %c0_45 = arith.constant 0 : index
    %32 = vector.load %arg15[%c0_43, %c0_44, %c0_45] : memref<3x1x64xf32, #tpu.memory_space<vmem>>, vector<1x1x64xf32>
    %33 = vector.shape_cast %32 : vector<1x1x64xf32> to vector<1x64xf32>
    %c0_46 = arith.constant 0 : index
    %c0_47 = arith.constant 0 : index
    %c0_48 = arith.constant 0 : index
    %34 = vector.load %arg16[%c0_46, %c0_47, %c0_48] : memref<3x64x32xf32, #tpu.memory_space<vmem>>, vector<1x64x32xf32>
    %35 = vector.shape_cast %34 : vector<1x64x32xf32> to vector<64x32xf32>
    %c0_49 = arith.constant 0 : index
    %c0_50 = arith.constant 0 : index
    %c0_51 = arith.constant 0 : index
    %36 = vector.load %arg17[%c0_49, %c0_50, %c0_51] : memref<3x1x32xf32, #tpu.memory_space<vmem>>, vector<1x1x32xf32>
    %37 = vector.shape_cast %36 : vector<1x1x32xf32> to vector<1x32xf32>
    %cst_52 = arith.constant dense<0.000000e+00> : vector<48xf32>
    %38 = vector.multi_reduction <add>, %13, %cst_52 [1] : vector<48x32xf32> to vector<48xf32>
    %39 = vector.shape_cast %38 : vector<48xf32> to vector<48x1xf32>
    %cst_53 = arith.constant 3.200000e+01 : f32
    %40 = vector.broadcast %cst_53 : f32 to vector<48x1xf32>
    %41 = arith.divf %39, %40 : vector<48x1xf32>
    %42 = vector.broadcast %41 : vector<48x1xf32> to vector<48x32xf32>
    %43 = arith.subf %13, %42 : vector<48x32xf32>
    %44 = arith.mulf %43, %43 : vector<48x32xf32>
    %cst_54 = arith.constant dense<0.000000e+00> : vector<48xf32>
    %45 = vector.multi_reduction <add>, %44, %cst_54 [1] : vector<48x32xf32> to vector<48xf32>
    %46 = vector.shape_cast %45 : vector<48xf32> to vector<48x1xf32>
    %cst_55 = arith.constant 3.200000e+01 : f32
    %47 = vector.broadcast %cst_55 : f32 to vector<48x1xf32>
    %48 = arith.divf %46, %47 : vector<48x1xf32>
    %cst_56 = arith.constant 9.99999974E-6 : f32
    %49 = vector.broadcast %cst_56 : f32 to vector<48x1xf32>
    %50 = arith.addf %48, %49 : vector<48x1xf32>
    %51 = math.rsqrt %50 : vector<48x1xf32>
    %52 = vector.broadcast %51 : vector<48x1xf32> to vector<48x32xf32>
    %53 = arith.mulf %43, %52 : vector<48x32xf32>
    %54 = vector.broadcast %15 : vector<1x32xf32> to vector<48x32xf32>
    %55 = arith.mulf %53, %54 : vector<48x32xf32>
    %56 = vector.broadcast %17 : vector<1x32xf32> to vector<48x32xf32>
    %57 = arith.addf %55, %56 : vector<48x32xf32>
    %cst_57 = arith.constant dense<0.000000e+00> : vector<48x96xf32>
    %58 = tpu.matmul %57, %19, %cst_57 {dimension_numbers = #tpu.dot_dimension_numbers<[1], [0], [0], [1], [0, 0, 1, 1], [], []>} : vector<48x32xf32>, vector<32x96xf32>, vector<48x96xf32> -> vector<48x96xf32>
    %59 = vector.broadcast %21 : vector<1x96xf32> to vector<48x96xf32>
    %60 = arith.addf %58, %59 : vector<48x96xf32>
    %61 = vector.extract_strided_slice %60 {offsets = [0, 0], sizes = [48, 32], strides = [1, 1]} : vector<48x96xf32> to vector<48x32xf32>
    %62 = vector.extract_strided_slice %60 {offsets = [0, 32], sizes = [48, 32], strides = [1, 1]} : vector<48x96xf32> to vector<48x32xf32>
    %63 = vector.extract_strided_slice %60 {offsets = [0, 64], sizes = [48, 32], strides = [1, 1]} : vector<48x96xf32> to vector<48x32xf32>
    %64 = vector.extract_strided_slice %61 {offsets = [0, 0], sizes = [24, 32], strides = [1, 1]} : vector<48x32xf32> to vector<24x32xf32>
    %65 = vector.extract_strided_slice %62 {offsets = [0, 0], sizes = [24, 32], strides = [1, 1]} : vector<48x32xf32> to vector<24x32xf32>
    %66 = vector.extract_strided_slice %63 {offsets = [0, 0], sizes = [24, 32], strides = [1, 1]} : vector<48x32xf32> to vector<24x32xf32>
    %67 = vector.broadcast %1 : vector<1x32xf32> to vector<24x32xf32>
    %68 = arith.mulf %64, %67 : vector<24x32xf32>
    %69 = vector.broadcast %3 : vector<1x32xf32> to vector<24x32xf32>
    %70 = arith.mulf %64, %69 : vector<24x32xf32>
    %71 = vector.broadcast %5 : vector<1x32xf32> to vector<24x32xf32>
    %72 = arith.mulf %64, %71 : vector<24x32xf32>
    %73 = vector.broadcast %7 : vector<1x32xf32> to vector<24x32xf32>
    %74 = arith.mulf %64, %73 : vector<24x32xf32>
    %75 = tpu.concatenate %68, %70, %72, %74 in 0 : vector<24x32xf32>, vector<24x32xf32>, vector<24x32xf32>, vector<24x32xf32> -> vector<96x32xf32>
    %cst_58 = arith.constant dense<0.000000e+00> : vector<96x24xf32>
    %76 = tpu.matmul %75, %65, %cst_58 {dimension_numbers = #tpu.dot_dimension_numbers<[1], [1], [0], [0], [0, 0, 1, 0], [], []>} : vector<96x32xf32>, vector<24x32xf32>, vector<96x24xf32> -> vector<96x24xf32>
    %77 = vector.broadcast %8 : vector<1x24xf32> to vector<96x24xf32>
    %78 = arith.addf %76, %77 : vector<96x24xf32>
    %cst_59 = arith.constant dense<0xFF800000> : vector<96xf32>
    %79 = vector.multi_reduction <maximumf>, %78, %cst_59 [1] : vector<96x24xf32> to vector<96xf32>
    %80 = vector.shape_cast %79 : vector<96xf32> to vector<96x1xf32>
    %81 = vector.broadcast %80 : vector<96x1xf32> to vector<96x24xf32>
    %82 = arith.subf %78, %81 : vector<96x24xf32>
    %83 = math.exp %82 : vector<96x24xf32>
    %cst_60 = arith.constant dense<0.000000e+00> : vector<96xf32>
    %84 = vector.multi_reduction <add>, %83, %cst_60 [1] : vector<96x24xf32> to vector<96xf32>
    %85 = vector.shape_cast %84 : vector<96xf32> to vector<96x1xf32>
    %86 = tpu.reciprocal %85 {approx = true} : vector<96x1xf32> -> vector<96x1xf32>
    %87 = vector.broadcast %86 : vector<96x1xf32> to vector<96x24xf32>
    %88 = arith.mulf %83, %87 : vector<96x24xf32>
    %cst_61 = arith.constant dense<0.000000e+00> : vector<96x32xf32>
    %89 = tpu.matmul %88, %66, %cst_61 {dimension_numbers = #tpu.dot_dimension_numbers<[1], [0], [0], [1], [0, 0, 1, 1], [], []>} : vector<96x24xf32>, vector<24x32xf32>, vector<96x32xf32> -> vector<96x32xf32>
    %90 = vector.extract_strided_slice %89 {offsets = [0, 0], sizes = [24, 32], strides = [1, 1]} : vector<96x32xf32> to vector<24x32xf32>
    %91 = vector.broadcast %1 : vector<1x32xf32> to vector<24x32xf32>
    %92 = arith.mulf %91, %90 : vector<24x32xf32>
    %93 = vector.extract_strided_slice %89 {offsets = [24, 0], sizes = [24, 32], strides = [1, 1]} : vector<96x32xf32> to vector<24x32xf32>
    %94 = vector.broadcast %3 : vector<1x32xf32> to vector<24x32xf32>
    %95 = arith.mulf %94, %93 : vector<24x32xf32>
    %96 = arith.addf %92, %95 : vector<24x32xf32>
    %97 = vector.extract_strided_slice %89 {offsets = [48, 0], sizes = [24, 32], strides = [1, 1]} : vector<96x32xf32> to vector<24x32xf32>
    %98 = vector.broadcast %5 : vector<1x32xf32> to vector<24x32xf32>
    %99 = arith.mulf %98, %97 : vector<24x32xf32>
    %100 = arith.addf %96, %99 : vector<24x32xf32>
    %101 = vector.extract_strided_slice %89 {offsets = [72, 0], sizes = [24, 32], strides = [1, 1]} : vector<96x32xf32> to vector<24x32xf32>
    %102 = vector.broadcast %7 : vector<1x32xf32> to vector<24x32xf32>
    %103 = arith.mulf %102, %101 : vector<24x32xf32>
    %104 = arith.addf %100, %103 : vector<24x32xf32>
    %105 = vector.extract_strided_slice %61 {offsets = [24, 0], sizes = [24, 32], strides = [1, 1]} : vector<48x32xf32> to vector<24x32xf32>
    %106 = vector.extract_strided_slice %62 {offsets = [24, 0], sizes = [24, 32], strides = [1, 1]} : vector<48x32xf32> to vector<24x32xf32>
    %107 = vector.extract_strided_slice %63 {offsets = [24, 0], sizes = [24, 32], strides = [1, 1]} : vector<48x32xf32> to vector<24x32xf32>
    %108 = vector.broadcast %1 : vector<1x32xf32> to vector<24x32xf32>
    %109 = arith.mulf %105, %108 : vector<24x32xf32>
    %110 = vector.broadcast %3 : vector<1x32xf32> to vector<24x32xf32>
    %111 = arith.mulf %105, %110 : vector<24x32xf32>
    %112 = vector.broadcast %5 : vector<1x32xf32> to vector<24x32xf32>
    %113 = arith.mulf %105, %112 : vector<24x32xf32>
    %114 = vector.broadcast %7 : vector<1x32xf32> to vector<24x32xf32>
    %115 = arith.mulf %105, %114 : vector<24x32xf32>
    %116 = tpu.concatenate %109, %111, %113, %115 in 0 : vector<24x32xf32>, vector<24x32xf32>, vector<24x32xf32>, vector<24x32xf32> -> vector<96x32xf32>
    %cst_62 = arith.constant dense<0.000000e+00> : vector<96x24xf32>
    %117 = tpu.matmul %116, %106, %cst_62 {dimension_numbers = #tpu.dot_dimension_numbers<[1], [1], [0], [0], [0, 0, 1, 0], [], []>} : vector<96x32xf32>, vector<24x32xf32>, vector<96x24xf32> -> vector<96x24xf32>
    %118 = vector.broadcast %8 : vector<1x24xf32> to vector<96x24xf32>
    %119 = arith.addf %117, %118 : vector<96x24xf32>
    %cst_63 = arith.constant dense<0xFF800000> : vector<96xf32>
    %120 = vector.multi_reduction <maximumf>, %119, %cst_63 [1] : vector<96x24xf32> to vector<96xf32>
    %121 = vector.shape_cast %120 : vector<96xf32> to vector<96x1xf32>
    %122 = vector.broadcast %121 : vector<96x1xf32> to vector<96x24xf32>
    %123 = arith.subf %119, %122 : vector<96x24xf32>
    %124 = math.exp %123 : vector<96x24xf32>
    %cst_64 = arith.constant dense<0.000000e+00> : vector<96xf32>
    %125 = vector.multi_reduction <add>, %124, %cst_64 [1] : vector<96x24xf32> to vector<96xf32>
    %126 = vector.shape_cast %125 : vector<96xf32> to vector<96x1xf32>
    %127 = tpu.reciprocal %126 {approx = true} : vector<96x1xf32> -> vector<96x1xf32>
    %128 = vector.broadcast %127 : vector<96x1xf32> to vector<96x24xf32>
    %129 = arith.mulf %124, %128 : vector<96x24xf32>
    %cst_65 = arith.constant dense<0.000000e+00> : vector<96x32xf32>
    %130 = tpu.matmul %129, %107, %cst_65 {dimension_numbers = #tpu.dot_dimension_numbers<[1], [0], [0], [1], [0, 0, 1, 1], [], []>} : vector<96x24xf32>, vector<24x32xf32>, vector<96x32xf32> -> vector<96x32xf32>
    %131 = vector.extract_strided_slice %130 {offsets = [0, 0], sizes = [24, 32], strides = [1, 1]} : vector<96x32xf32> to vector<24x32xf32>
    %132 = vector.broadcast %1 : vector<1x32xf32> to vector<24x32xf32>
    %133 = arith.mulf %132, %131 : vector<24x32xf32>
    %134 = vector.extract_strided_slice %130 {offsets = [24, 0], sizes = [24, 32], strides = [1, 1]} : vector<96x32xf32> to vector<24x32xf32>
    %135 = vector.broadcast %3 : vector<1x32xf32> to vector<24x32xf32>
    %136 = arith.mulf %135, %134 : vector<24x32xf32>
    %137 = arith.addf %133, %136 : vector<24x32xf32>
    %138 = vector.extract_strided_slice %130 {offsets = [48, 0], sizes = [24, 32], strides = [1, 1]} : vector<96x32xf32> to vector<24x32xf32>
    %139 = vector.broadcast %5 : vector<1x32xf32> to vector<24x32xf32>
    %140 = arith.mulf %139, %138 : vector<24x32xf32>
    %141 = arith.addf %137, %140 : vector<24x32xf32>
    %142 = vector.extract_strided_slice %130 {offsets = [72, 0], sizes = [24, 32], strides = [1, 1]} : vector<96x32xf32> to vector<24x32xf32>
    %143 = vector.broadcast %7 : vector<1x32xf32> to vector<24x32xf32>
    %144 = arith.mulf %143, %142 : vector<24x32xf32>
    %145 = arith.addf %141, %144 : vector<24x32xf32>
    %146 = tpu.concatenate %104, %145 in 0 : vector<24x32xf32>, vector<24x32xf32> -> vector<48x32xf32>
    %cst_66 = arith.constant dense<0.000000e+00> : vector<48x32xf32>
    %147 = tpu.matmul %146, %23, %cst_66 {dimension_numbers = #tpu.dot_dimension_numbers<[1], [0], [0], [1], [0, 0, 1, 1], [], []>} : vector<48x32xf32>, vector<32x32xf32>, vector<48x32xf32> -> vector<48x32xf32>
    %148 = arith.addf %13, %147 : vector<48x32xf32>
    %149 = vector.broadcast %25 : vector<1x32xf32> to vector<48x32xf32>
    %150 = arith.addf %148, %149 : vector<48x32xf32>
    %cst_67 = arith.constant dense<0.000000e+00> : vector<48xf32>
    %151 = vector.multi_reduction <add>, %150, %cst_67 [1] : vector<48x32xf32> to vector<48xf32>
    %152 = vector.shape_cast %151 : vector<48xf32> to vector<48x1xf32>
    %cst_68 = arith.constant 3.200000e+01 : f32
    %153 = vector.broadcast %cst_68 : f32 to vector<48x1xf32>
    %154 = arith.divf %152, %153 : vector<48x1xf32>
    %155 = vector.broadcast %154 : vector<48x1xf32> to vector<48x32xf32>
    %156 = arith.subf %150, %155 : vector<48x32xf32>
    %157 = arith.mulf %156, %156 : vector<48x32xf32>
    %cst_69 = arith.constant dense<0.000000e+00> : vector<48xf32>
    %158 = vector.multi_reduction <add>, %157, %cst_69 [1] : vector<48x32xf32> to vector<48xf32>
    %159 = vector.shape_cast %158 : vector<48xf32> to vector<48x1xf32>
    %cst_70 = arith.constant 3.200000e+01 : f32
    %160 = vector.broadcast %cst_70 : f32 to vector<48x1xf32>
    %161 = arith.divf %159, %160 : vector<48x1xf32>
    %cst_71 = arith.constant 9.99999974E-6 : f32
    %162 = vector.broadcast %cst_71 : f32 to vector<48x1xf32>
    %163 = arith.addf %161, %162 : vector<48x1xf32>
    %164 = math.rsqrt %163 : vector<48x1xf32>
    %165 = vector.broadcast %164 : vector<48x1xf32> to vector<48x32xf32>
    %166 = arith.mulf %156, %165 : vector<48x32xf32>
    %167 = vector.broadcast %27 : vector<1x32xf32> to vector<48x32xf32>
    %168 = arith.mulf %166, %167 : vector<48x32xf32>
    %169 = vector.broadcast %29 : vector<1x32xf32> to vector<48x32xf32>
    %170 = arith.addf %168, %169 : vector<48x32xf32>
    %cst_72 = arith.constant dense<0.000000e+00> : vector<48x64xf32>
    %171 = tpu.matmul %170, %31, %cst_72 {dimension_numbers = #tpu.dot_dimension_numbers<[1], [0], [0], [1], [0, 0, 1, 1], [], []>} : vector<48x32xf32>, vector<32x64xf32>, vector<48x64xf32> -> vector<48x64xf32>
    %172 = vector.broadcast %33 : vector<1x64xf32> to vector<48x64xf32>
    %173 = arith.addf %171, %172 : vector<48x64xf32>
    %cst_73 = arith.constant 5.000000e-01 : f32
    %174 = vector.broadcast %cst_73 : f32 to vector<48x64xf32>
    %175 = arith.mulf %174, %173 : vector<48x64xf32>
    %cst_74 = arith.constant 0.707106769 : f32
    %176 = vector.broadcast %cst_74 : f32 to vector<48x64xf32>
    %177 = arith.mulf %173, %176 : vector<48x64xf32>
    %178 = math.absf %177 : vector<48x64xf32>
    %cst_75 = arith.constant 0.327591091 : f32
    %179 = vector.broadcast %cst_75 : f32 to vector<48x64xf32>
    %180 = arith.mulf %179, %178 : vector<48x64xf32>
    %cst_76 = arith.constant 1.000000e+00 : f32
    %181 = vector.broadcast %cst_76 : f32 to vector<48x64xf32>
    %182 = arith.addf %181, %180 : vector<48x64xf32>
    %183 = tpu.reciprocal %182 {approx = true} : vector<48x64xf32> -> vector<48x64xf32>
    %cst_77 = arith.constant 1.06140542 : f32
    %184 = vector.broadcast %cst_77 : f32 to vector<48x64xf32>
    %185 = arith.mulf %184, %183 : vector<48x64xf32>
    %cst_78 = arith.constant -1.45315206 : f32
    %186 = vector.broadcast %cst_78 : f32 to vector<48x64xf32>
    %187 = arith.addf %185, %186 : vector<48x64xf32>
    %188 = arith.mulf %187, %183 : vector<48x64xf32>
    %cst_79 = arith.constant 1.42141378 : f32
    %189 = vector.broadcast %cst_79 : f32 to vector<48x64xf32>
    %190 = arith.addf %188, %189 : vector<48x64xf32>
    %191 = arith.mulf %190, %183 : vector<48x64xf32>
    %cst_80 = arith.constant -0.284496725 : f32
    %192 = vector.broadcast %cst_80 : f32 to vector<48x64xf32>
    %193 = arith.addf %191, %192 : vector<48x64xf32>
    %194 = arith.mulf %193, %183 : vector<48x64xf32>
    %cst_81 = arith.constant 0.254829586 : f32
    %195 = vector.broadcast %cst_81 : f32 to vector<48x64xf32>
    %196 = arith.addf %194, %195 : vector<48x64xf32>
    %197 = arith.mulf %196, %183 : vector<48x64xf32>
    %cst_82 = arith.constant 0.000000e+00 : f32
    %198 = vector.broadcast %cst_82 : f32 to vector<48x64xf32>
    %199 = arith.subf %198, %178 : vector<48x64xf32>
    %200 = arith.mulf %199, %178 : vector<48x64xf32>
    %201 = math.exp %200 : vector<48x64xf32>
    %202 = arith.mulf %197, %201 : vector<48x64xf32>
    %cst_83 = arith.constant 1.000000e+00 : f32
    %203 = vector.broadcast %cst_83 : f32 to vector<48x64xf32>
    %204 = arith.subf %203, %202 : vector<48x64xf32>
    %cst_84 = arith.constant 0.000000e+00 : f32
    %205 = vector.broadcast %cst_84 : f32 to vector<48x64xf32>
    %206 = arith.cmpf oge, %177, %205 : vector<48x64xf32>
    %cst_85 = arith.constant 0.000000e+00 : f32
    %207 = vector.broadcast %cst_85 : f32 to vector<48x64xf32>
    %208 = arith.subf %207, %204 : vector<48x64xf32>
    %209 = arith.select %206, %204, %208 : vector<48x64xi1>, vector<48x64xf32>
    %cst_86 = arith.constant 1.000000e+00 : f32
    %210 = vector.broadcast %cst_86 : f32 to vector<48x64xf32>
    %211 = arith.addf %210, %209 : vector<48x64xf32>
    %212 = arith.mulf %175, %211 : vector<48x64xf32>
    %cst_87 = arith.constant dense<0.000000e+00> : vector<48x32xf32>
    %213 = tpu.matmul %212, %35, %cst_87 {dimension_numbers = #tpu.dot_dimension_numbers<[1], [0], [0], [1], [0, 0, 1, 1], [], []>} : vector<48x64xf32>, vector<64x32xf32>, vector<48x32xf32> -> vector<48x32xf32>
    %214 = arith.addf %150, %213 : vector<48x32xf32>
    %215 = vector.broadcast %37 : vector<1x32xf32> to vector<48x32xf32>
    %216 = arith.addf %214, %215 : vector<48x32xf32>
    %c1_88 = arith.constant 1 : index
    %c0_89 = arith.constant 0 : index
    %c0_90 = arith.constant 0 : index
    %217 = vector.load %arg6[%c1_88, %c0_89, %c0_90] : memref<3x1x32xf32, #tpu.memory_space<vmem>>, vector<1x1x32xf32>
    %218 = vector.shape_cast %217 : vector<1x1x32xf32> to vector<1x32xf32>
    %c1_91 = arith.constant 1 : index
    %c0_92 = arith.constant 0 : index
    %c0_93 = arith.constant 0 : index
    %219 = vector.load %arg7[%c1_91, %c0_92, %c0_93] : memref<3x1x32xf32, #tpu.memory_space<vmem>>, vector<1x1x32xf32>
    %220 = vector.shape_cast %219 : vector<1x1x32xf32> to vector<1x32xf32>
    %c1_94 = arith.constant 1 : index
    %c0_95 = arith.constant 0 : index
    %c0_96 = arith.constant 0 : index
    %221 = vector.load %arg8[%c1_94, %c0_95, %c0_96] : memref<3x32x96xf32, #tpu.memory_space<vmem>>, vector<1x32x96xf32>
    %222 = vector.shape_cast %221 : vector<1x32x96xf32> to vector<32x96xf32>
    %c1_97 = arith.constant 1 : index
    %c0_98 = arith.constant 0 : index
    %c0_99 = arith.constant 0 : index
    %223 = vector.load %arg9[%c1_97, %c0_98, %c0_99] : memref<3x1x96xf32, #tpu.memory_space<vmem>>, vector<1x1x96xf32>
    %224 = vector.shape_cast %223 : vector<1x1x96xf32> to vector<1x96xf32>
    %c1_100 = arith.constant 1 : index
    %c0_101 = arith.constant 0 : index
    %c0_102 = arith.constant 0 : index
    %225 = vector.load %arg10[%c1_100, %c0_101, %c0_102] : memref<3x32x32xf32, #tpu.memory_space<vmem>>, vector<1x32x32xf32>
    %226 = vector.shape_cast %225 : vector<1x32x32xf32> to vector<32x32xf32>
    %c1_103 = arith.constant 1 : index
    %c0_104 = arith.constant 0 : index
    %c0_105 = arith.constant 0 : index
    %227 = vector.load %arg11[%c1_103, %c0_104, %c0_105] : memref<3x1x32xf32, #tpu.memory_space<vmem>>, vector<1x1x32xf32>
    %228 = vector.shape_cast %227 : vector<1x1x32xf32> to vector<1x32xf32>
    %c1_106 = arith.constant 1 : index
    %c0_107 = arith.constant 0 : index
    %c0_108 = arith.constant 0 : index
    %229 = vector.load %arg12[%c1_106, %c0_107, %c0_108] : memref<3x1x32xf32, #tpu.memory_space<vmem>>, vector<1x1x32xf32>
    %230 = vector.shape_cast %229 : vector<1x1x32xf32> to vector<1x32xf32>
    %c1_109 = arith.constant 1 : index
    %c0_110 = arith.constant 0 : index
    %c0_111 = arith.constant 0 : index
    %231 = vector.load %arg13[%c1_109, %c0_110, %c0_111] : memref<3x1x32xf32, #tpu.memory_space<vmem>>, vector<1x1x32xf32>
    %232 = vector.shape_cast %231 : vector<1x1x32xf32> to vector<1x32xf32>
    %c1_112 = arith.constant 1 : index
    %c0_113 = arith.constant 0 : index
    %c0_114 = arith.constant 0 : index
    %233 = vector.load %arg14[%c1_112, %c0_113, %c0_114] : memref<3x32x64xf32, #tpu.memory_space<vmem>>, vector<1x32x64xf32>
    %234 = vector.shape_cast %233 : vector<1x32x64xf32> to vector<32x64xf32>
    %c1_115 = arith.constant 1 : index
    %c0_116 = arith.constant 0 : index
    %c0_117 = arith.constant 0 : index
    %235 = vector.load %arg15[%c1_115, %c0_116, %c0_117] : memref<3x1x64xf32, #tpu.memory_space<vmem>>, vector<1x1x64xf32>
    %236 = vector.shape_cast %235 : vector<1x1x64xf32> to vector<1x64xf32>
    %c1_118 = arith.constant 1 : index
    %c0_119 = arith.constant 0 : index
    %c0_120 = arith.constant 0 : index
    %237 = vector.load %arg16[%c1_118, %c0_119, %c0_120] : memref<3x64x32xf32, #tpu.memory_space<vmem>>, vector<1x64x32xf32>
    %238 = vector.shape_cast %237 : vector<1x64x32xf32> to vector<64x32xf32>
    %c1_121 = arith.constant 1 : index
    %c0_122 = arith.constant 0 : index
    %c0_123 = arith.constant 0 : index
    %239 = vector.load %arg17[%c1_121, %c0_122, %c0_123] : memref<3x1x32xf32, #tpu.memory_space<vmem>>, vector<1x1x32xf32>
    %240 = vector.shape_cast %239 : vector<1x1x32xf32> to vector<1x32xf32>
    %cst_124 = arith.constant dense<0.000000e+00> : vector<48xf32>
    %241 = vector.multi_reduction <add>, %216, %cst_124 [1] : vector<48x32xf32> to vector<48xf32>
    %242 = vector.shape_cast %241 : vector<48xf32> to vector<48x1xf32>
    %cst_125 = arith.constant 3.200000e+01 : f32
    %243 = vector.broadcast %cst_125 : f32 to vector<48x1xf32>
    %244 = arith.divf %242, %243 : vector<48x1xf32>
    %245 = vector.broadcast %244 : vector<48x1xf32> to vector<48x32xf32>
    %246 = arith.subf %216, %245 : vector<48x32xf32>
    %247 = arith.mulf %246, %246 : vector<48x32xf32>
    %cst_126 = arith.constant dense<0.000000e+00> : vector<48xf32>
    %248 = vector.multi_reduction <add>, %247, %cst_126 [1] : vector<48x32xf32> to vector<48xf32>
    %249 = vector.shape_cast %248 : vector<48xf32> to vector<48x1xf32>
    %cst_127 = arith.constant 3.200000e+01 : f32
    %250 = vector.broadcast %cst_127 : f32 to vector<48x1xf32>
    %251 = arith.divf %249, %250 : vector<48x1xf32>
    %cst_128 = arith.constant 9.99999974E-6 : f32
    %252 = vector.broadcast %cst_128 : f32 to vector<48x1xf32>
    %253 = arith.addf %251, %252 : vector<48x1xf32>
    %254 = math.rsqrt %253 : vector<48x1xf32>
    %255 = vector.broadcast %254 : vector<48x1xf32> to vector<48x32xf32>
    %256 = arith.mulf %246, %255 : vector<48x32xf32>
    %257 = vector.broadcast %218 : vector<1x32xf32> to vector<48x32xf32>
    %258 = arith.mulf %256, %257 : vector<48x32xf32>
    %259 = vector.broadcast %220 : vector<1x32xf32> to vector<48x32xf32>
    %260 = arith.addf %258, %259 : vector<48x32xf32>
    %cst_129 = arith.constant dense<0.000000e+00> : vector<48x96xf32>
    %261 = tpu.matmul %260, %222, %cst_129 {dimension_numbers = #tpu.dot_dimension_numbers<[1], [0], [0], [1], [0, 0, 1, 1], [], []>} : vector<48x32xf32>, vector<32x96xf32>, vector<48x96xf32> -> vector<48x96xf32>
    %262 = vector.broadcast %224 : vector<1x96xf32> to vector<48x96xf32>
    %263 = arith.addf %261, %262 : vector<48x96xf32>
    %264 = vector.extract_strided_slice %263 {offsets = [0, 0], sizes = [48, 32], strides = [1, 1]} : vector<48x96xf32> to vector<48x32xf32>
    %265 = vector.extract_strided_slice %263 {offsets = [0, 32], sizes = [48, 32], strides = [1, 1]} : vector<48x96xf32> to vector<48x32xf32>
    %266 = vector.extract_strided_slice %263 {offsets = [0, 64], sizes = [48, 32], strides = [1, 1]} : vector<48x96xf32> to vector<48x32xf32>
    %267 = vector.extract_strided_slice %264 {offsets = [0, 0], sizes = [24, 32], strides = [1, 1]} : vector<48x32xf32> to vector<24x32xf32>
    %268 = vector.extract_strided_slice %265 {offsets = [0, 0], sizes = [24, 32], strides = [1, 1]} : vector<48x32xf32> to vector<24x32xf32>
    %269 = vector.extract_strided_slice %266 {offsets = [0, 0], sizes = [24, 32], strides = [1, 1]} : vector<48x32xf32> to vector<24x32xf32>
    %270 = vector.broadcast %1 : vector<1x32xf32> to vector<24x32xf32>
    %271 = arith.mulf %267, %270 : vector<24x32xf32>
    %272 = vector.broadcast %3 : vector<1x32xf32> to vector<24x32xf32>
    %273 = arith.mulf %267, %272 : vector<24x32xf32>
    %274 = vector.broadcast %5 : vector<1x32xf32> to vector<24x32xf32>
    %275 = arith.mulf %267, %274 : vector<24x32xf32>
    %276 = vector.broadcast %7 : vector<1x32xf32> to vector<24x32xf32>
    %277 = arith.mulf %267, %276 : vector<24x32xf32>
    %278 = tpu.concatenate %271, %273, %275, %277 in 0 : vector<24x32xf32>, vector<24x32xf32>, vector<24x32xf32>, vector<24x32xf32> -> vector<96x32xf32>
    %cst_130 = arith.constant dense<0.000000e+00> : vector<96x24xf32>
    %279 = tpu.matmul %278, %268, %cst_130 {dimension_numbers = #tpu.dot_dimension_numbers<[1], [1], [0], [0], [0, 0, 1, 0], [], []>} : vector<96x32xf32>, vector<24x32xf32>, vector<96x24xf32> -> vector<96x24xf32>
    %280 = vector.broadcast %8 : vector<1x24xf32> to vector<96x24xf32>
    %281 = arith.addf %279, %280 : vector<96x24xf32>
    %cst_131 = arith.constant dense<0xFF800000> : vector<96xf32>
    %282 = vector.multi_reduction <maximumf>, %281, %cst_131 [1] : vector<96x24xf32> to vector<96xf32>
    %283 = vector.shape_cast %282 : vector<96xf32> to vector<96x1xf32>
    %284 = vector.broadcast %283 : vector<96x1xf32> to vector<96x24xf32>
    %285 = arith.subf %281, %284 : vector<96x24xf32>
    %286 = math.exp %285 : vector<96x24xf32>
    %cst_132 = arith.constant dense<0.000000e+00> : vector<96xf32>
    %287 = vector.multi_reduction <add>, %286, %cst_132 [1] : vector<96x24xf32> to vector<96xf32>
    %288 = vector.shape_cast %287 : vector<96xf32> to vector<96x1xf32>
    %289 = tpu.reciprocal %288 {approx = true} : vector<96x1xf32> -> vector<96x1xf32>
    %290 = vector.broadcast %289 : vector<96x1xf32> to vector<96x24xf32>
    %291 = arith.mulf %286, %290 : vector<96x24xf32>
    %cst_133 = arith.constant dense<0.000000e+00> : vector<96x32xf32>
    %292 = tpu.matmul %291, %269, %cst_133 {dimension_numbers = #tpu.dot_dimension_numbers<[1], [0], [0], [1], [0, 0, 1, 1], [], []>} : vector<96x24xf32>, vector<24x32xf32>, vector<96x32xf32> -> vector<96x32xf32>
    %293 = vector.extract_strided_slice %292 {offsets = [0, 0], sizes = [24, 32], strides = [1, 1]} : vector<96x32xf32> to vector<24x32xf32>
    %294 = vector.broadcast %1 : vector<1x32xf32> to vector<24x32xf32>
    %295 = arith.mulf %294, %293 : vector<24x32xf32>
    %296 = vector.extract_strided_slice %292 {offsets = [24, 0], sizes = [24, 32], strides = [1, 1]} : vector<96x32xf32> to vector<24x32xf32>
    %297 = vector.broadcast %3 : vector<1x32xf32> to vector<24x32xf32>
    %298 = arith.mulf %297, %296 : vector<24x32xf32>
    %299 = arith.addf %295, %298 : vector<24x32xf32>
    %300 = vector.extract_strided_slice %292 {offsets = [48, 0], sizes = [24, 32], strides = [1, 1]} : vector<96x32xf32> to vector<24x32xf32>
    %301 = vector.broadcast %5 : vector<1x32xf32> to vector<24x32xf32>
    %302 = arith.mulf %301, %300 : vector<24x32xf32>
    %303 = arith.addf %299, %302 : vector<24x32xf32>
    %304 = vector.extract_strided_slice %292 {offsets = [72, 0], sizes = [24, 32], strides = [1, 1]} : vector<96x32xf32> to vector<24x32xf32>
    %305 = vector.broadcast %7 : vector<1x32xf32> to vector<24x32xf32>
    %306 = arith.mulf %305, %304 : vector<24x32xf32>
    %307 = arith.addf %303, %306 : vector<24x32xf32>
    %308 = vector.extract_strided_slice %264 {offsets = [24, 0], sizes = [24, 32], strides = [1, 1]} : vector<48x32xf32> to vector<24x32xf32>
    %309 = vector.extract_strided_slice %265 {offsets = [24, 0], sizes = [24, 32], strides = [1, 1]} : vector<48x32xf32> to vector<24x32xf32>
    %310 = vector.extract_strided_slice %266 {offsets = [24, 0], sizes = [24, 32], strides = [1, 1]} : vector<48x32xf32> to vector<24x32xf32>
    %311 = vector.broadcast %1 : vector<1x32xf32> to vector<24x32xf32>
    %312 = arith.mulf %308, %311 : vector<24x32xf32>
    %313 = vector.broadcast %3 : vector<1x32xf32> to vector<24x32xf32>
    %314 = arith.mulf %308, %313 : vector<24x32xf32>
    %315 = vector.broadcast %5 : vector<1x32xf32> to vector<24x32xf32>
    %316 = arith.mulf %308, %315 : vector<24x32xf32>
    %317 = vector.broadcast %7 : vector<1x32xf32> to vector<24x32xf32>
    %318 = arith.mulf %308, %317 : vector<24x32xf32>
    %319 = tpu.concatenate %312, %314, %316, %318 in 0 : vector<24x32xf32>, vector<24x32xf32>, vector<24x32xf32>, vector<24x32xf32> -> vector<96x32xf32>
    %cst_134 = arith.constant dense<0.000000e+00> : vector<96x24xf32>
    %320 = tpu.matmul %319, %309, %cst_134 {dimension_numbers = #tpu.dot_dimension_numbers<[1], [1], [0], [0], [0, 0, 1, 0], [], []>} : vector<96x32xf32>, vector<24x32xf32>, vector<96x24xf32> -> vector<96x24xf32>
    %321 = vector.broadcast %8 : vector<1x24xf32> to vector<96x24xf32>
    %322 = arith.addf %320, %321 : vector<96x24xf32>
    %cst_135 = arith.constant dense<0xFF800000> : vector<96xf32>
    %323 = vector.multi_reduction <maximumf>, %322, %cst_135 [1] : vector<96x24xf32> to vector<96xf32>
    %324 = vector.shape_cast %323 : vector<96xf32> to vector<96x1xf32>
    %325 = vector.broadcast %324 : vector<96x1xf32> to vector<96x24xf32>
    %326 = arith.subf %322, %325 : vector<96x24xf32>
    %327 = math.exp %326 : vector<96x24xf32>
    %cst_136 = arith.constant dense<0.000000e+00> : vector<96xf32>
    %328 = vector.multi_reduction <add>, %327, %cst_136 [1] : vector<96x24xf32> to vector<96xf32>
    %329 = vector.shape_cast %328 : vector<96xf32> to vector<96x1xf32>
    %330 = tpu.reciprocal %329 {approx = true} : vector<96x1xf32> -> vector<96x1xf32>
    %331 = vector.broadcast %330 : vector<96x1xf32> to vector<96x24xf32>
    %332 = arith.mulf %327, %331 : vector<96x24xf32>
    %cst_137 = arith.constant dense<0.000000e+00> : vector<96x32xf32>
    %333 = tpu.matmul %332, %310, %cst_137 {dimension_numbers = #tpu.dot_dimension_numbers<[1], [0], [0], [1], [0, 0, 1, 1], [], []>} : vector<96x24xf32>, vector<24x32xf32>, vector<96x32xf32> -> vector<96x32xf32>
    %334 = vector.extract_strided_slice %333 {offsets = [0, 0], sizes = [24, 32], strides = [1, 1]} : vector<96x32xf32> to vector<24x32xf32>
    %335 = vector.broadcast %1 : vector<1x32xf32> to vector<24x32xf32>
    %336 = arith.mulf %335, %334 : vector<24x32xf32>
    %337 = vector.extract_strided_slice %333 {offsets = [24, 0], sizes = [24, 32], strides = [1, 1]} : vector<96x32xf32> to vector<24x32xf32>
    %338 = vector.broadcast %3 : vector<1x32xf32> to vector<24x32xf32>
    %339 = arith.mulf %338, %337 : vector<24x32xf32>
    %340 = arith.addf %336, %339 : vector<24x32xf32>
    %341 = vector.extract_strided_slice %333 {offsets = [48, 0], sizes = [24, 32], strides = [1, 1]} : vector<96x32xf32> to vector<24x32xf32>
    %342 = vector.broadcast %5 : vector<1x32xf32> to vector<24x32xf32>
    %343 = arith.mulf %342, %341 : vector<24x32xf32>
    %344 = arith.addf %340, %343 : vector<24x32xf32>
    %345 = vector.extract_strided_slice %333 {offsets = [72, 0], sizes = [24, 32], strides = [1, 1]} : vector<96x32xf32> to vector<24x32xf32>
    %346 = vector.broadcast %7 : vector<1x32xf32> to vector<24x32xf32>
    %347 = arith.mulf %346, %345 : vector<24x32xf32>
    %348 = arith.addf %344, %347 : vector<24x32xf32>
    %349 = tpu.concatenate %307, %348 in 0 : vector<24x32xf32>, vector<24x32xf32> -> vector<48x32xf32>
    %cst_138 = arith.constant dense<0.000000e+00> : vector<48x32xf32>
    %350 = tpu.matmul %349, %226, %cst_138 {dimension_numbers = #tpu.dot_dimension_numbers<[1], [0], [0], [1], [0, 0, 1, 1], [], []>} : vector<48x32xf32>, vector<32x32xf32>, vector<48x32xf32> -> vector<48x32xf32>
    %351 = arith.addf %216, %350 : vector<48x32xf32>
    %352 = vector.broadcast %228 : vector<1x32xf32> to vector<48x32xf32>
    %353 = arith.addf %351, %352 : vector<48x32xf32>
    %cst_139 = arith.constant dense<0.000000e+00> : vector<48xf32>
    %354 = vector.multi_reduction <add>, %353, %cst_139 [1] : vector<48x32xf32> to vector<48xf32>
    %355 = vector.shape_cast %354 : vector<48xf32> to vector<48x1xf32>
    %cst_140 = arith.constant 3.200000e+01 : f32
    %356 = vector.broadcast %cst_140 : f32 to vector<48x1xf32>
    %357 = arith.divf %355, %356 : vector<48x1xf32>
    %358 = vector.broadcast %357 : vector<48x1xf32> to vector<48x32xf32>
    %359 = arith.subf %353, %358 : vector<48x32xf32>
    %360 = arith.mulf %359, %359 : vector<48x32xf32>
    %cst_141 = arith.constant dense<0.000000e+00> : vector<48xf32>
    %361 = vector.multi_reduction <add>, %360, %cst_141 [1] : vector<48x32xf32> to vector<48xf32>
    %362 = vector.shape_cast %361 : vector<48xf32> to vector<48x1xf32>
    %cst_142 = arith.constant 3.200000e+01 : f32
    %363 = vector.broadcast %cst_142 : f32 to vector<48x1xf32>
    %364 = arith.divf %362, %363 : vector<48x1xf32>
    %cst_143 = arith.constant 9.99999974E-6 : f32
    %365 = vector.broadcast %cst_143 : f32 to vector<48x1xf32>
    %366 = arith.addf %364, %365 : vector<48x1xf32>
    %367 = math.rsqrt %366 : vector<48x1xf32>
    %368 = vector.broadcast %367 : vector<48x1xf32> to vector<48x32xf32>
    %369 = arith.mulf %359, %368 : vector<48x32xf32>
    %370 = vector.broadcast %230 : vector<1x32xf32> to vector<48x32xf32>
    %371 = arith.mulf %369, %370 : vector<48x32xf32>
    %372 = vector.broadcast %232 : vector<1x32xf32> to vector<48x32xf32>
    %373 = arith.addf %371, %372 : vector<48x32xf32>
    %cst_144 = arith.constant dense<0.000000e+00> : vector<48x64xf32>
    %374 = tpu.matmul %373, %234, %cst_144 {dimension_numbers = #tpu.dot_dimension_numbers<[1], [0], [0], [1], [0, 0, 1, 1], [], []>} : vector<48x32xf32>, vector<32x64xf32>, vector<48x64xf32> -> vector<48x64xf32>
    %375 = vector.broadcast %236 : vector<1x64xf32> to vector<48x64xf32>
    %376 = arith.addf %374, %375 : vector<48x64xf32>
    %cst_145 = arith.constant 5.000000e-01 : f32
    %377 = vector.broadcast %cst_145 : f32 to vector<48x64xf32>
    %378 = arith.mulf %377, %376 : vector<48x64xf32>
    %cst_146 = arith.constant 0.707106769 : f32
    %379 = vector.broadcast %cst_146 : f32 to vector<48x64xf32>
    %380 = arith.mulf %376, %379 : vector<48x64xf32>
    %381 = math.absf %380 : vector<48x64xf32>
    %cst_147 = arith.constant 0.327591091 : f32
    %382 = vector.broadcast %cst_147 : f32 to vector<48x64xf32>
    %383 = arith.mulf %382, %381 : vector<48x64xf32>
    %cst_148 = arith.constant 1.000000e+00 : f32
    %384 = vector.broadcast %cst_148 : f32 to vector<48x64xf32>
    %385 = arith.addf %384, %383 : vector<48x64xf32>
    %386 = tpu.reciprocal %385 {approx = true} : vector<48x64xf32> -> vector<48x64xf32>
    %cst_149 = arith.constant 1.06140542 : f32
    %387 = vector.broadcast %cst_149 : f32 to vector<48x64xf32>
    %388 = arith.mulf %387, %386 : vector<48x64xf32>
    %cst_150 = arith.constant -1.45315206 : f32
    %389 = vector.broadcast %cst_150 : f32 to vector<48x64xf32>
    %390 = arith.addf %388, %389 : vector<48x64xf32>
    %391 = arith.mulf %390, %386 : vector<48x64xf32>
    %cst_151 = arith.constant 1.42141378 : f32
    %392 = vector.broadcast %cst_151 : f32 to vector<48x64xf32>
    %393 = arith.addf %391, %392 : vector<48x64xf32>
    %394 = arith.mulf %393, %386 : vector<48x64xf32>
    %cst_152 = arith.constant -0.284496725 : f32
    %395 = vector.broadcast %cst_152 : f32 to vector<48x64xf32>
    %396 = arith.addf %394, %395 : vector<48x64xf32>
    %397 = arith.mulf %396, %386 : vector<48x64xf32>
    %cst_153 = arith.constant 0.254829586 : f32
    %398 = vector.broadcast %cst_153 : f32 to vector<48x64xf32>
    %399 = arith.addf %397, %398 : vector<48x64xf32>
    %400 = arith.mulf %399, %386 : vector<48x64xf32>
    %cst_154 = arith.constant 0.000000e+00 : f32
    %401 = vector.broadcast %cst_154 : f32 to vector<48x64xf32>
    %402 = arith.subf %401, %381 : vector<48x64xf32>
    %403 = arith.mulf %402, %381 : vector<48x64xf32>
    %404 = math.exp %403 : vector<48x64xf32>
    %405 = arith.mulf %400, %404 : vector<48x64xf32>
    %cst_155 = arith.constant 1.000000e+00 : f32
    %406 = vector.broadcast %cst_155 : f32 to vector<48x64xf32>
    %407 = arith.subf %406, %405 : vector<48x64xf32>
    %cst_156 = arith.constant 0.000000e+00 : f32
    %408 = vector.broadcast %cst_156 : f32 to vector<48x64xf32>
    %409 = arith.cmpf oge, %380, %408 : vector<48x64xf32>
    %cst_157 = arith.constant 0.000000e+00 : f32
    %410 = vector.broadcast %cst_157 : f32 to vector<48x64xf32>
    %411 = arith.subf %410, %407 : vector<48x64xf32>
    %412 = arith.select %409, %407, %411 : vector<48x64xi1>, vector<48x64xf32>
    %cst_158 = arith.constant 1.000000e+00 : f32
    %413 = vector.broadcast %cst_158 : f32 to vector<48x64xf32>
    %414 = arith.addf %413, %412 : vector<48x64xf32>
    %415 = arith.mulf %378, %414 : vector<48x64xf32>
    %cst_159 = arith.constant dense<0.000000e+00> : vector<48x32xf32>
    %416 = tpu.matmul %415, %238, %cst_159 {dimension_numbers = #tpu.dot_dimension_numbers<[1], [0], [0], [1], [0, 0, 1, 1], [], []>} : vector<48x64xf32>, vector<64x32xf32>, vector<48x32xf32> -> vector<48x32xf32>
    %417 = arith.addf %353, %416 : vector<48x32xf32>
    %418 = vector.broadcast %240 : vector<1x32xf32> to vector<48x32xf32>
    %419 = arith.addf %417, %418 : vector<48x32xf32>
    %c2_160 = arith.constant 2 : index
    %c0_161 = arith.constant 0 : index
    %c0_162 = arith.constant 0 : index
    %420 = vector.load %arg6[%c2_160, %c0_161, %c0_162] : memref<3x1x32xf32, #tpu.memory_space<vmem>>, vector<1x1x32xf32>
    %421 = vector.shape_cast %420 : vector<1x1x32xf32> to vector<1x32xf32>
    %c2_163 = arith.constant 2 : index
    %c0_164 = arith.constant 0 : index
    %c0_165 = arith.constant 0 : index
    %422 = vector.load %arg7[%c2_163, %c0_164, %c0_165] : memref<3x1x32xf32, #tpu.memory_space<vmem>>, vector<1x1x32xf32>
    %423 = vector.shape_cast %422 : vector<1x1x32xf32> to vector<1x32xf32>
    %c2_166 = arith.constant 2 : index
    %c0_167 = arith.constant 0 : index
    %c0_168 = arith.constant 0 : index
    %424 = vector.load %arg8[%c2_166, %c0_167, %c0_168] : memref<3x32x96xf32, #tpu.memory_space<vmem>>, vector<1x32x96xf32>
    %425 = vector.shape_cast %424 : vector<1x32x96xf32> to vector<32x96xf32>
    %c2_169 = arith.constant 2 : index
    %c0_170 = arith.constant 0 : index
    %c0_171 = arith.constant 0 : index
    %426 = vector.load %arg9[%c2_169, %c0_170, %c0_171] : memref<3x1x96xf32, #tpu.memory_space<vmem>>, vector<1x1x96xf32>
    %427 = vector.shape_cast %426 : vector<1x1x96xf32> to vector<1x96xf32>
    %c2_172 = arith.constant 2 : index
    %c0_173 = arith.constant 0 : index
    %c0_174 = arith.constant 0 : index
    %428 = vector.load %arg10[%c2_172, %c0_173, %c0_174] : memref<3x32x32xf32, #tpu.memory_space<vmem>>, vector<1x32x32xf32>
    %429 = vector.shape_cast %428 : vector<1x32x32xf32> to vector<32x32xf32>
    %c2_175 = arith.constant 2 : index
    %c0_176 = arith.constant 0 : index
    %c0_177 = arith.constant 0 : index
    %430 = vector.load %arg11[%c2_175, %c0_176, %c0_177] : memref<3x1x32xf32, #tpu.memory_space<vmem>>, vector<1x1x32xf32>
    %431 = vector.shape_cast %430 : vector<1x1x32xf32> to vector<1x32xf32>
    %c2_178 = arith.constant 2 : index
    %c0_179 = arith.constant 0 : index
    %c0_180 = arith.constant 0 : index
    %432 = vector.load %arg12[%c2_178, %c0_179, %c0_180] : memref<3x1x32xf32, #tpu.memory_space<vmem>>, vector<1x1x32xf32>
    %433 = vector.shape_cast %432 : vector<1x1x32xf32> to vector<1x32xf32>
    %c2_181 = arith.constant 2 : index
    %c0_182 = arith.constant 0 : index
    %c0_183 = arith.constant 0 : index
    %434 = vector.load %arg13[%c2_181, %c0_182, %c0_183] : memref<3x1x32xf32, #tpu.memory_space<vmem>>, vector<1x1x32xf32>
    %435 = vector.shape_cast %434 : vector<1x1x32xf32> to vector<1x32xf32>
    %c2_184 = arith.constant 2 : index
    %c0_185 = arith.constant 0 : index
    %c0_186 = arith.constant 0 : index
    %436 = vector.load %arg14[%c2_184, %c0_185, %c0_186] : memref<3x32x64xf32, #tpu.memory_space<vmem>>, vector<1x32x64xf32>
    %437 = vector.shape_cast %436 : vector<1x32x64xf32> to vector<32x64xf32>
    %c2_187 = arith.constant 2 : index
    %c0_188 = arith.constant 0 : index
    %c0_189 = arith.constant 0 : index
    %438 = vector.load %arg15[%c2_187, %c0_188, %c0_189] : memref<3x1x64xf32, #tpu.memory_space<vmem>>, vector<1x1x64xf32>
    %439 = vector.shape_cast %438 : vector<1x1x64xf32> to vector<1x64xf32>
    %c2_190 = arith.constant 2 : index
    %c0_191 = arith.constant 0 : index
    %c0_192 = arith.constant 0 : index
    %440 = vector.load %arg16[%c2_190, %c0_191, %c0_192] : memref<3x64x32xf32, #tpu.memory_space<vmem>>, vector<1x64x32xf32>
    %441 = vector.shape_cast %440 : vector<1x64x32xf32> to vector<64x32xf32>
    %c2_193 = arith.constant 2 : index
    %c0_194 = arith.constant 0 : index
    %c0_195 = arith.constant 0 : index
    %442 = vector.load %arg17[%c2_193, %c0_194, %c0_195] : memref<3x1x32xf32, #tpu.memory_space<vmem>>, vector<1x1x32xf32>
    %443 = vector.shape_cast %442 : vector<1x1x32xf32> to vector<1x32xf32>
    %cst_196 = arith.constant dense<0.000000e+00> : vector<48xf32>
    %444 = vector.multi_reduction <add>, %419, %cst_196 [1] : vector<48x32xf32> to vector<48xf32>
    %445 = vector.shape_cast %444 : vector<48xf32> to vector<48x1xf32>
    %cst_197 = arith.constant 3.200000e+01 : f32
    %446 = vector.broadcast %cst_197 : f32 to vector<48x1xf32>
    %447 = arith.divf %445, %446 : vector<48x1xf32>
    %448 = vector.broadcast %447 : vector<48x1xf32> to vector<48x32xf32>
    %449 = arith.subf %419, %448 : vector<48x32xf32>
    %450 = arith.mulf %449, %449 : vector<48x32xf32>
    %cst_198 = arith.constant dense<0.000000e+00> : vector<48xf32>
    %451 = vector.multi_reduction <add>, %450, %cst_198 [1] : vector<48x32xf32> to vector<48xf32>
    %452 = vector.shape_cast %451 : vector<48xf32> to vector<48x1xf32>
    %cst_199 = arith.constant 3.200000e+01 : f32
    %453 = vector.broadcast %cst_199 : f32 to vector<48x1xf32>
    %454 = arith.divf %452, %453 : vector<48x1xf32>
    %cst_200 = arith.constant 9.99999974E-6 : f32
    %455 = vector.broadcast %cst_200 : f32 to vector<48x1xf32>
    %456 = arith.addf %454, %455 : vector<48x1xf32>
    %457 = math.rsqrt %456 : vector<48x1xf32>
    %458 = vector.broadcast %457 : vector<48x1xf32> to vector<48x32xf32>
    %459 = arith.mulf %449, %458 : vector<48x32xf32>
    %460 = vector.broadcast %421 : vector<1x32xf32> to vector<48x32xf32>
    %461 = arith.mulf %459, %460 : vector<48x32xf32>
    %462 = vector.broadcast %423 : vector<1x32xf32> to vector<48x32xf32>
    %463 = arith.addf %461, %462 : vector<48x32xf32>
    %cst_201 = arith.constant dense<0.000000e+00> : vector<48x96xf32>
    %464 = tpu.matmul %463, %425, %cst_201 {dimension_numbers = #tpu.dot_dimension_numbers<[1], [0], [0], [1], [0, 0, 1, 1], [], []>} : vector<48x32xf32>, vector<32x96xf32>, vector<48x96xf32> -> vector<48x96xf32>
    %465 = vector.broadcast %427 : vector<1x96xf32> to vector<48x96xf32>
    %466 = arith.addf %464, %465 : vector<48x96xf32>
    %467 = vector.extract_strided_slice %466 {offsets = [0, 0], sizes = [48, 32], strides = [1, 1]} : vector<48x96xf32> to vector<48x32xf32>
    %468 = vector.extract_strided_slice %466 {offsets = [0, 32], sizes = [48, 32], strides = [1, 1]} : vector<48x96xf32> to vector<48x32xf32>
    %469 = vector.extract_strided_slice %466 {offsets = [0, 64], sizes = [48, 32], strides = [1, 1]} : vector<48x96xf32> to vector<48x32xf32>
    %470 = vector.extract_strided_slice %467 {offsets = [0, 0], sizes = [24, 32], strides = [1, 1]} : vector<48x32xf32> to vector<24x32xf32>
    %471 = vector.extract_strided_slice %468 {offsets = [0, 0], sizes = [24, 32], strides = [1, 1]} : vector<48x32xf32> to vector<24x32xf32>
    %472 = vector.extract_strided_slice %469 {offsets = [0, 0], sizes = [24, 32], strides = [1, 1]} : vector<48x32xf32> to vector<24x32xf32>
    %473 = vector.broadcast %1 : vector<1x32xf32> to vector<24x32xf32>
    %474 = arith.mulf %470, %473 : vector<24x32xf32>
    %475 = vector.broadcast %3 : vector<1x32xf32> to vector<24x32xf32>
    %476 = arith.mulf %470, %475 : vector<24x32xf32>
    %477 = vector.broadcast %5 : vector<1x32xf32> to vector<24x32xf32>
    %478 = arith.mulf %470, %477 : vector<24x32xf32>
    %479 = vector.broadcast %7 : vector<1x32xf32> to vector<24x32xf32>
    %480 = arith.mulf %470, %479 : vector<24x32xf32>
    %481 = tpu.concatenate %474, %476, %478, %480 in 0 : vector<24x32xf32>, vector<24x32xf32>, vector<24x32xf32>, vector<24x32xf32> -> vector<96x32xf32>
    %cst_202 = arith.constant dense<0.000000e+00> : vector<96x24xf32>
    %482 = tpu.matmul %481, %471, %cst_202 {dimension_numbers = #tpu.dot_dimension_numbers<[1], [1], [0], [0], [0, 0, 1, 0], [], []>} : vector<96x32xf32>, vector<24x32xf32>, vector<96x24xf32> -> vector<96x24xf32>
    %483 = vector.broadcast %8 : vector<1x24xf32> to vector<96x24xf32>
    %484 = arith.addf %482, %483 : vector<96x24xf32>
    %cst_203 = arith.constant dense<0xFF800000> : vector<96xf32>
    %485 = vector.multi_reduction <maximumf>, %484, %cst_203 [1] : vector<96x24xf32> to vector<96xf32>
    %486 = vector.shape_cast %485 : vector<96xf32> to vector<96x1xf32>
    %487 = vector.broadcast %486 : vector<96x1xf32> to vector<96x24xf32>
    %488 = arith.subf %484, %487 : vector<96x24xf32>
    %489 = math.exp %488 : vector<96x24xf32>
    %cst_204 = arith.constant dense<0.000000e+00> : vector<96xf32>
    %490 = vector.multi_reduction <add>, %489, %cst_204 [1] : vector<96x24xf32> to vector<96xf32>
    %491 = vector.shape_cast %490 : vector<96xf32> to vector<96x1xf32>
    %492 = tpu.reciprocal %491 {approx = true} : vector<96x1xf32> -> vector<96x1xf32>
    %493 = vector.broadcast %492 : vector<96x1xf32> to vector<96x24xf32>
    %494 = arith.mulf %489, %493 : vector<96x24xf32>
    %cst_205 = arith.constant dense<0.000000e+00> : vector<96x32xf32>
    %495 = tpu.matmul %494, %472, %cst_205 {dimension_numbers = #tpu.dot_dimension_numbers<[1], [0], [0], [1], [0, 0, 1, 1], [], []>} : vector<96x24xf32>, vector<24x32xf32>, vector<96x32xf32> -> vector<96x32xf32>
    %496 = vector.extract_strided_slice %495 {offsets = [0, 0], sizes = [24, 32], strides = [1, 1]} : vector<96x32xf32> to vector<24x32xf32>
    %497 = vector.broadcast %1 : vector<1x32xf32> to vector<24x32xf32>
    %498 = arith.mulf %497, %496 : vector<24x32xf32>
    %499 = vector.extract_strided_slice %495 {offsets = [24, 0], sizes = [24, 32], strides = [1, 1]} : vector<96x32xf32> to vector<24x32xf32>
    %500 = vector.broadcast %3 : vector<1x32xf32> to vector<24x32xf32>
    %501 = arith.mulf %500, %499 : vector<24x32xf32>
    %502 = arith.addf %498, %501 : vector<24x32xf32>
    %503 = vector.extract_strided_slice %495 {offsets = [48, 0], sizes = [24, 32], strides = [1, 1]} : vector<96x32xf32> to vector<24x32xf32>
    %504 = vector.broadcast %5 : vector<1x32xf32> to vector<24x32xf32>
    %505 = arith.mulf %504, %503 : vector<24x32xf32>
    %506 = arith.addf %502, %505 : vector<24x32xf32>
    %507 = vector.extract_strided_slice %495 {offsets = [72, 0], sizes = [24, 32], strides = [1, 1]} : vector<96x32xf32> to vector<24x32xf32>
    %508 = vector.broadcast %7 : vector<1x32xf32> to vector<24x32xf32>
    %509 = arith.mulf %508, %507 : vector<24x32xf32>
    %510 = arith.addf %506, %509 : vector<24x32xf32>
    %511 = vector.extract_strided_slice %467 {offsets = [24, 0], sizes = [24, 32], strides = [1, 1]} : vector<48x32xf32> to vector<24x32xf32>
    %512 = vector.extract_strided_slice %468 {offsets = [24, 0], sizes = [24, 32], strides = [1, 1]} : vector<48x32xf32> to vector<24x32xf32>
    %513 = vector.extract_strided_slice %469 {offsets = [24, 0], sizes = [24, 32], strides = [1, 1]} : vector<48x32xf32> to vector<24x32xf32>
    %514 = vector.broadcast %1 : vector<1x32xf32> to vector<24x32xf32>
    %515 = arith.mulf %511, %514 : vector<24x32xf32>
    %516 = vector.broadcast %3 : vector<1x32xf32> to vector<24x32xf32>
    %517 = arith.mulf %511, %516 : vector<24x32xf32>
    %518 = vector.broadcast %5 : vector<1x32xf32> to vector<24x32xf32>
    %519 = arith.mulf %511, %518 : vector<24x32xf32>
    %520 = vector.broadcast %7 : vector<1x32xf32> to vector<24x32xf32>
    %521 = arith.mulf %511, %520 : vector<24x32xf32>
    %522 = tpu.concatenate %515, %517, %519, %521 in 0 : vector<24x32xf32>, vector<24x32xf32>, vector<24x32xf32>, vector<24x32xf32> -> vector<96x32xf32>
    %cst_206 = arith.constant dense<0.000000e+00> : vector<96x24xf32>
    %523 = tpu.matmul %522, %512, %cst_206 {dimension_numbers = #tpu.dot_dimension_numbers<[1], [1], [0], [0], [0, 0, 1, 0], [], []>} : vector<96x32xf32>, vector<24x32xf32>, vector<96x24xf32> -> vector<96x24xf32>
    %524 = vector.broadcast %8 : vector<1x24xf32> to vector<96x24xf32>
    %525 = arith.addf %523, %524 : vector<96x24xf32>
    %cst_207 = arith.constant dense<0xFF800000> : vector<96xf32>
    %526 = vector.multi_reduction <maximumf>, %525, %cst_207 [1] : vector<96x24xf32> to vector<96xf32>
    %527 = vector.shape_cast %526 : vector<96xf32> to vector<96x1xf32>
    %528 = vector.broadcast %527 : vector<96x1xf32> to vector<96x24xf32>
    %529 = arith.subf %525, %528 : vector<96x24xf32>
    %530 = math.exp %529 : vector<96x24xf32>
    %cst_208 = arith.constant dense<0.000000e+00> : vector<96xf32>
    %531 = vector.multi_reduction <add>, %530, %cst_208 [1] : vector<96x24xf32> to vector<96xf32>
    %532 = vector.shape_cast %531 : vector<96xf32> to vector<96x1xf32>
    %533 = tpu.reciprocal %532 {approx = true} : vector<96x1xf32> -> vector<96x1xf32>
    %534 = vector.broadcast %533 : vector<96x1xf32> to vector<96x24xf32>
    %535 = arith.mulf %530, %534 : vector<96x24xf32>
    %cst_209 = arith.constant dense<0.000000e+00> : vector<96x32xf32>
    %536 = tpu.matmul %535, %513, %cst_209 {dimension_numbers = #tpu.dot_dimension_numbers<[1], [0], [0], [1], [0, 0, 1, 1], [], []>} : vector<96x24xf32>, vector<24x32xf32>, vector<96x32xf32> -> vector<96x32xf32>
    %537 = vector.extract_strided_slice %536 {offsets = [0, 0], sizes = [24, 32], strides = [1, 1]} : vector<96x32xf32> to vector<24x32xf32>
    %538 = vector.broadcast %1 : vector<1x32xf32> to vector<24x32xf32>
    %539 = arith.mulf %538, %537 : vector<24x32xf32>
    %540 = vector.extract_strided_slice %536 {offsets = [24, 0], sizes = [24, 32], strides = [1, 1]} : vector<96x32xf32> to vector<24x32xf32>
    %541 = vector.broadcast %3 : vector<1x32xf32> to vector<24x32xf32>
    %542 = arith.mulf %541, %540 : vector<24x32xf32>
    %543 = arith.addf %539, %542 : vector<24x32xf32>
    %544 = vector.extract_strided_slice %536 {offsets = [48, 0], sizes = [24, 32], strides = [1, 1]} : vector<96x32xf32> to vector<24x32xf32>
    %545 = vector.broadcast %5 : vector<1x32xf32> to vector<24x32xf32>
    %546 = arith.mulf %545, %544 : vector<24x32xf32>
    %547 = arith.addf %543, %546 : vector<24x32xf32>
    %548 = vector.extract_strided_slice %536 {offsets = [72, 0], sizes = [24, 32], strides = [1, 1]} : vector<96x32xf32> to vector<24x32xf32>
    %549 = vector.broadcast %7 : vector<1x32xf32> to vector<24x32xf32>
    %550 = arith.mulf %549, %548 : vector<24x32xf32>
    %551 = arith.addf %547, %550 : vector<24x32xf32>
    %552 = tpu.concatenate %510, %551 in 0 : vector<24x32xf32>, vector<24x32xf32> -> vector<48x32xf32>
    %cst_210 = arith.constant dense<0.000000e+00> : vector<48x32xf32>
    %553 = tpu.matmul %552, %429, %cst_210 {dimension_numbers = #tpu.dot_dimension_numbers<[1], [0], [0], [1], [0, 0, 1, 1], [], []>} : vector<48x32xf32>, vector<32x32xf32>, vector<48x32xf32> -> vector<48x32xf32>
    %554 = arith.addf %419, %553 : vector<48x32xf32>
    %555 = vector.broadcast %431 : vector<1x32xf32> to vector<48x32xf32>
    %556 = arith.addf %554, %555 : vector<48x32xf32>
    %cst_211 = arith.constant dense<0.000000e+00> : vector<48xf32>
    %557 = vector.multi_reduction <add>, %556, %cst_211 [1] : vector<48x32xf32> to vector<48xf32>
    %558 = vector.shape_cast %557 : vector<48xf32> to vector<48x1xf32>
    %cst_212 = arith.constant 3.200000e+01 : f32
    %559 = vector.broadcast %cst_212 : f32 to vector<48x1xf32>
    %560 = arith.divf %558, %559 : vector<48x1xf32>
    %561 = vector.broadcast %560 : vector<48x1xf32> to vector<48x32xf32>
    %562 = arith.subf %556, %561 : vector<48x32xf32>
    %563 = arith.mulf %562, %562 : vector<48x32xf32>
    %cst_213 = arith.constant dense<0.000000e+00> : vector<48xf32>
    %564 = vector.multi_reduction <add>, %563, %cst_213 [1] : vector<48x32xf32> to vector<48xf32>
    %565 = vector.shape_cast %564 : vector<48xf32> to vector<48x1xf32>
    %cst_214 = arith.constant 3.200000e+01 : f32
    %566 = vector.broadcast %cst_214 : f32 to vector<48x1xf32>
    %567 = arith.divf %565, %566 : vector<48x1xf32>
    %cst_215 = arith.constant 9.99999974E-6 : f32
    %568 = vector.broadcast %cst_215 : f32 to vector<48x1xf32>
    %569 = arith.addf %567, %568 : vector<48x1xf32>
    %570 = math.rsqrt %569 : vector<48x1xf32>
    %571 = vector.broadcast %570 : vector<48x1xf32> to vector<48x32xf32>
    %572 = arith.mulf %562, %571 : vector<48x32xf32>
    %573 = vector.broadcast %433 : vector<1x32xf32> to vector<48x32xf32>
    %574 = arith.mulf %572, %573 : vector<48x32xf32>
    %575 = vector.broadcast %435 : vector<1x32xf32> to vector<48x32xf32>
    %576 = arith.addf %574, %575 : vector<48x32xf32>
    %cst_216 = arith.constant dense<0.000000e+00> : vector<48x64xf32>
    %577 = tpu.matmul %576, %437, %cst_216 {dimension_numbers = #tpu.dot_dimension_numbers<[1], [0], [0], [1], [0, 0, 1, 1], [], []>} : vector<48x32xf32>, vector<32x64xf32>, vector<48x64xf32> -> vector<48x64xf32>
    %578 = vector.broadcast %439 : vector<1x64xf32> to vector<48x64xf32>
    %579 = arith.addf %577, %578 : vector<48x64xf32>
    %cst_217 = arith.constant 5.000000e-01 : f32
    %580 = vector.broadcast %cst_217 : f32 to vector<48x64xf32>
    %581 = arith.mulf %580, %579 : vector<48x64xf32>
    %cst_218 = arith.constant 0.707106769 : f32
    %582 = vector.broadcast %cst_218 : f32 to vector<48x64xf32>
    %583 = arith.mulf %579, %582 : vector<48x64xf32>
    %584 = math.absf %583 : vector<48x64xf32>
    %cst_219 = arith.constant 0.327591091 : f32
    %585 = vector.broadcast %cst_219 : f32 to vector<48x64xf32>
    %586 = arith.mulf %585, %584 : vector<48x64xf32>
    %cst_220 = arith.constant 1.000000e+00 : f32
    %587 = vector.broadcast %cst_220 : f32 to vector<48x64xf32>
    %588 = arith.addf %587, %586 : vector<48x64xf32>
    %589 = tpu.reciprocal %588 {approx = true} : vector<48x64xf32> -> vector<48x64xf32>
    %cst_221 = arith.constant 1.06140542 : f32
    %590 = vector.broadcast %cst_221 : f32 to vector<48x64xf32>
    %591 = arith.mulf %590, %589 : vector<48x64xf32>
    %cst_222 = arith.constant -1.45315206 : f32
    %592 = vector.broadcast %cst_222 : f32 to vector<48x64xf32>
    %593 = arith.addf %591, %592 : vector<48x64xf32>
    %594 = arith.mulf %593, %589 : vector<48x64xf32>
    %cst_223 = arith.constant 1.42141378 : f32
    %595 = vector.broadcast %cst_223 : f32 to vector<48x64xf32>
    %596 = arith.addf %594, %595 : vector<48x64xf32>
    %597 = arith.mulf %596, %589 : vector<48x64xf32>
    %cst_224 = arith.constant -0.284496725 : f32
    %598 = vector.broadcast %cst_224 : f32 to vector<48x64xf32>
    %599 = arith.addf %597, %598 : vector<48x64xf32>
    %600 = arith.mulf %599, %589 : vector<48x64xf32>
    %cst_225 = arith.constant 0.254829586 : f32
    %601 = vector.broadcast %cst_225 : f32 to vector<48x64xf32>
    %602 = arith.addf %600, %601 : vector<48x64xf32>
    %603 = arith.mulf %602, %589 : vector<48x64xf32>
    %cst_226 = arith.constant 0.000000e+00 : f32
    %604 = vector.broadcast %cst_226 : f32 to vector<48x64xf32>
    %605 = arith.subf %604, %584 : vector<48x64xf32>
    %606 = arith.mulf %605, %584 : vector<48x64xf32>
    %607 = math.exp %606 : vector<48x64xf32>
    %608 = arith.mulf %603, %607 : vector<48x64xf32>
    %cst_227 = arith.constant 1.000000e+00 : f32
    %609 = vector.broadcast %cst_227 : f32 to vector<48x64xf32>
    %610 = arith.subf %609, %608 : vector<48x64xf32>
    %cst_228 = arith.constant 0.000000e+00 : f32
    %611 = vector.broadcast %cst_228 : f32 to vector<48x64xf32>
    %612 = arith.cmpf oge, %583, %611 : vector<48x64xf32>
    %cst_229 = arith.constant 0.000000e+00 : f32
    %613 = vector.broadcast %cst_229 : f32 to vector<48x64xf32>
    %614 = arith.subf %613, %610 : vector<48x64xf32>
    %615 = arith.select %612, %610, %614 : vector<48x64xi1>, vector<48x64xf32>
    %cst_230 = arith.constant 1.000000e+00 : f32
    %616 = vector.broadcast %cst_230 : f32 to vector<48x64xf32>
    %617 = arith.addf %616, %615 : vector<48x64xf32>
    %618 = arith.mulf %581, %617 : vector<48x64xf32>
    %cst_231 = arith.constant dense<0.000000e+00> : vector<48x32xf32>
    %619 = tpu.matmul %618, %441, %cst_231 {dimension_numbers = #tpu.dot_dimension_numbers<[1], [0], [0], [1], [0, 0, 1, 1], [], []>} : vector<48x64xf32>, vector<64x32xf32>, vector<48x32xf32> -> vector<48x32xf32>
    %620 = arith.addf %556, %619 : vector<48x32xf32>
    %621 = vector.broadcast %443 : vector<1x32xf32> to vector<48x32xf32>
    %622 = arith.addf %620, %621 : vector<48x32xf32>
    %623 = vector.extract_strided_slice %622 {offsets = [16, 0], sizes = [1, 32], strides = [1, 1]} : vector<48x32xf32> to vector<1x32xf32>
    %624 = vector.extract_strided_slice %622 {offsets = [40, 0], sizes = [1, 32], strides = [1, 1]} : vector<48x32xf32> to vector<1x32xf32>
    %625 = tpu.concatenate %623, %624 in 0 : vector<1x32xf32>, vector<1x32xf32> -> vector<2x32xf32>
    %c0_232 = arith.constant 0 : index
    %c0_233 = arith.constant 0 : index
    %626 = vector.load %arg18[%c0_232, %c0_233] : memref<1x32xf32, #tpu.memory_space<vmem>>, vector<1x32xf32>
    %c0_234 = arith.constant 0 : index
    %c0_235 = arith.constant 0 : index
    %627 = vector.load %arg19[%c0_234, %c0_235] : memref<1x32xf32, #tpu.memory_space<vmem>>, vector<1x32xf32>
    %cst_236 = arith.constant dense<0.000000e+00> : vector<2xf32>
    %628 = vector.multi_reduction <add>, %625, %cst_236 [1] : vector<2x32xf32> to vector<2xf32>
    %629 = vector.shape_cast %628 : vector<2xf32> to vector<2x1xf32>
    %cst_237 = arith.constant 3.200000e+01 : f32
    %630 = vector.broadcast %cst_237 : f32 to vector<2x1xf32>
    %631 = arith.divf %629, %630 : vector<2x1xf32>
    %632 = vector.broadcast %631 : vector<2x1xf32> to vector<2x32xf32>
    %633 = arith.subf %625, %632 : vector<2x32xf32>
    %634 = arith.mulf %633, %633 : vector<2x32xf32>
    %cst_238 = arith.constant dense<0.000000e+00> : vector<2xf32>
    %635 = vector.multi_reduction <add>, %634, %cst_238 [1] : vector<2x32xf32> to vector<2xf32>
    %636 = vector.shape_cast %635 : vector<2xf32> to vector<2x1xf32>
    %cst_239 = arith.constant 3.200000e+01 : f32
    %637 = vector.broadcast %cst_239 : f32 to vector<2x1xf32>
    %638 = arith.divf %636, %637 : vector<2x1xf32>
    %cst_240 = arith.constant 9.99999974E-6 : f32
    %639 = vector.broadcast %cst_240 : f32 to vector<2x1xf32>
    %640 = arith.addf %638, %639 : vector<2x1xf32>
    %641 = math.rsqrt %640 : vector<2x1xf32>
    %642 = vector.broadcast %641 : vector<2x1xf32> to vector<2x32xf32>
    %643 = arith.mulf %633, %642 : vector<2x32xf32>
    %644 = vector.broadcast %626 : vector<1x32xf32> to vector<2x32xf32>
    %645 = arith.mulf %643, %644 : vector<2x32xf32>
    %646 = vector.broadcast %627 : vector<1x32xf32> to vector<2x32xf32>
    %647 = arith.addf %645, %646 : vector<2x32xf32>
    %c0_241 = arith.constant 0 : index
    %c0_242 = arith.constant 0 : index
    %648 = vector.load %arg20[%c0_241, %c0_242] : memref<32x10xf32, #tpu.memory_space<vmem>>, vector<32x10xf32>
    %cst_243 = arith.constant dense<0.000000e+00> : vector<2x10xf32>
    %649 = tpu.matmul %647, %648, %cst_243 {dimension_numbers = #tpu.dot_dimension_numbers<[1], [0], [0], [1], [0, 0, 1, 1], [], []>} : vector<2x32xf32>, vector<32x10xf32>, vector<2x10xf32> -> vector<2x10xf32>
    %c0_244 = arith.constant 0 : index
    %c0_245 = arith.constant 0 : index
    %650 = vector.load %arg21[%c0_244, %c0_245] : memref<1x10xf32, #tpu.memory_space<vmem>>, vector<1x10xf32>
    %651 = vector.broadcast %650 : vector<1x10xf32> to vector<2x10xf32>
    %652 = arith.addf %649, %651 : vector<2x10xf32>
    %c0_246 = arith.constant 0 : index
    %c0_247 = arith.constant 0 : index
    %653 = vector.load %arg22[%c0_246, %c0_247] : memref<2x10xf32, #tpu.memory_space<vmem>>, vector<2x10xf32>
    tpu.vector_store %arg22[%c0_246, %c0_247], %652 {strides = array<i32>} : memref<2x10xf32, #tpu.memory_space<vmem>>, vector<2x10xf32>,
    return
  }
  func.func @transform_0(%arg0: i32) -> (i32, i32) {
    %c0_i32 = arith.constant 0 : i32
    %c0_i32_0 = arith.constant 0 : i32
    %c0_i32_1 = arith.constant 0 : i32
    return %c0_i32, %c0_i32_0 : i32, i32
  }
  func.func @transform_1(%arg0: i32) -> (i32, i32) {
    %c0_i32 = arith.constant 0 : i32
    %c0_i32_0 = arith.constant 0 : i32
    %c0_i32_1 = arith.constant 0 : i32
    return %c0_i32, %c0_i32_0 : i32, i32
  }
  func.func @transform_2(%arg0: i32) -> (i32, i32) {
    %c0_i32 = arith.constant 0 : i32
    %c0_i32_0 = arith.constant 0 : i32
    %c0_i32_1 = arith.constant 0 : i32
    return %c0_i32, %c0_i32_0 : i32, i32
  }
  func.func @transform_3(%arg0: i32) -> (i32, i32, i32) {
    %c0_i32 = arith.constant 0 : i32
    %c0_i32_0 = arith.constant 0 : i32
    %c0_i32_1 = arith.constant 0 : i32
    %c0_i32_2 = arith.constant 0 : i32
    return %c0_i32, %c0_i32_0, %c0_i32_1 : i32, i32, i32
  }
  func.func @transform_4(%arg0: i32) -> (i32, i32) {
    %c0_i32 = arith.constant 0 : i32
    %c0_i32_0 = arith.constant 0 : i32
    %c0_i32_1 = arith.constant 0 : i32
    return %c0_i32, %c0_i32_0 : i32, i32
  }
  func.func @transform_5(%arg0: i32) -> (i32, i32, i32) {
    %c0_i32 = arith.constant 0 : i32
    %c0_i32_0 = arith.constant 0 : i32
    %c0_i32_1 = arith.constant 0 : i32
    %c0_i32_2 = arith.constant 0 : i32
    return %c0_i32, %c0_i32_0, %c0_i32_1 : i32, i32, i32
  }
  func.func @transform_6(%arg0: i32) -> (i32, i32, i32) {
    %c0_i32 = arith.constant 0 : i32
    %c0_i32_0 = arith.constant 0 : i32
    %c0_i32_1 = arith.constant 0 : i32
    %c0_i32_2 = arith.constant 0 : i32
    return %c0_i32, %c0_i32_0, %c0_i32_1 : i32, i32, i32
  }
  func.func @transform_7(%arg0: i32) -> (i32, i32, i32) {
    %c0_i32 = arith.constant 0 : i32
    %c0_i32_0 = arith.constant 0 : i32
    %c0_i32_1 = arith.constant 0 : i32
    %c0_i32_2 = arith.constant 0 : i32
    return %c0_i32, %c0_i32_0, %c0_i32_1 : i32, i32, i32
  }
  func.func @transform_8(%arg0: i32) -> (i32, i32, i32) {
    %c0_i32 = arith.constant 0 : i32
    %c0_i32_0 = arith.constant 0 : i32
    %c0_i32_1 = arith.constant 0 : i32
    %c0_i32_2 = arith.constant 0 : i32
    return %c0_i32, %c0_i32_0, %c0_i32_1 : i32, i32, i32
  }
  func.func @transform_9(%arg0: i32) -> (i32, i32, i32) {
    %c0_i32 = arith.constant 0 : i32
    %c0_i32_0 = arith.constant 0 : i32
    %c0_i32_1 = arith.constant 0 : i32
    %c0_i32_2 = arith.constant 0 : i32
    return %c0_i32, %c0_i32_0, %c0_i32_1 : i32, i32, i32
  }
  func.func @transform_10(%arg0: i32) -> (i32, i32, i32) {
    %c0_i32 = arith.constant 0 : i32
    %c0_i32_0 = arith.constant 0 : i32
    %c0_i32_1 = arith.constant 0 : i32
    %c0_i32_2 = arith.constant 0 : i32
    return %c0_i32, %c0_i32_0, %c0_i32_1 : i32, i32, i32
  }
  func.func @transform_11(%arg0: i32) -> (i32, i32, i32) {
    %c0_i32 = arith.constant 0 : i32
    %c0_i32_0 = arith.constant 0 : i32
    %c0_i32_1 = arith.constant 0 : i32
    %c0_i32_2 = arith.constant 0 : i32
    return %c0_i32, %c0_i32_0, %c0_i32_1 : i32, i32, i32
  }
  func.func @transform_12(%arg0: i32) -> (i32, i32, i32) {
    %c0_i32 = arith.constant 0 : i32
    %c0_i32_0 = arith.constant 0 : i32
    %c0_i32_1 = arith.constant 0 : i32
    %c0_i32_2 = arith.constant 0 : i32
    return %c0_i32, %c0_i32_0, %c0_i32_1 : i32, i32, i32
  }
  func.func @transform_13(%arg0: i32) -> (i32, i32, i32) {
    %c0_i32 = arith.constant 0 : i32
    %c0_i32_0 = arith.constant 0 : i32
    %c0_i32_1 = arith.constant 0 : i32
    %c0_i32_2 = arith.constant 0 : i32
    return %c0_i32, %c0_i32_0, %c0_i32_1 : i32, i32, i32
  }
  func.func @transform_14(%arg0: i32) -> (i32, i32, i32) {
    %c0_i32 = arith.constant 0 : i32
    %c0_i32_0 = arith.constant 0 : i32
    %c0_i32_1 = arith.constant 0 : i32
    %c0_i32_2 = arith.constant 0 : i32
    return %c0_i32, %c0_i32_0, %c0_i32_1 : i32, i32, i32
  }
  func.func @transform_15(%arg0: i32) -> (i32, i32, i32) {
    %c0_i32 = arith.constant 0 : i32
    %c0_i32_0 = arith.constant 0 : i32
    %c0_i32_1 = arith.constant 0 : i32
    %c0_i32_2 = arith.constant 0 : i32
    return %c0_i32, %c0_i32_0, %c0_i32_1 : i32, i32, i32
  }
  func.func @transform_16(%arg0: i32) -> (i32, i32, i32) {
    %c0_i32 = arith.constant 0 : i32
    %c0_i32_0 = arith.constant 0 : i32
    %c0_i32_1 = arith.constant 0 : i32
    %c0_i32_2 = arith.constant 0 : i32
    return %c0_i32, %c0_i32_0, %c0_i32_1 : i32, i32, i32
  }
  func.func @transform_17(%arg0: i32) -> (i32, i32) {
    %c0_i32 = arith.constant 0 : i32
    %c0_i32_0 = arith.constant 0 : i32
    %c0_i32_1 = arith.constant 0 : i32
    return %c0_i32, %c0_i32_0 : i32, i32
  }
  func.func @transform_18(%arg0: i32) -> (i32, i32) {
    %c0_i32 = arith.constant 0 : i32
    %c0_i32_0 = arith.constant 0 : i32
    %c0_i32_1 = arith.constant 0 : i32
    return %c0_i32, %c0_i32_0 : i32, i32
  }
  func.func @transform_19(%arg0: i32) -> (i32, i32) {
    %c0_i32 = arith.constant 0 : i32
    %c0_i32_0 = arith.constant 0 : i32
    %c0_i32_1 = arith.constant 0 : i32
    return %c0_i32, %c0_i32_0 : i32, i32
  }
  func.func @transform_20(%arg0: i32) -> (i32, i32) {
    %c0_i32 = arith.constant 0 : i32
    %c0_i32_0 = arith.constant 0 : i32
    %c0_i32_1 = arith.constant 0 : i32
    return %c0_i32, %c0_i32_0 : i32, i32
  }
  func.func @transform_21(%arg0: i32) -> (i32, i32) {
    %c0_i32 = arith.constant 0 : i32
    %c0_i32_0 = arith.constant 0 : i32
    %c0_i32_1 = arith.constant 0 : i32
    return %c0_i32, %c0_i32_0 : i32, i32
  }
}

</mosaic_0001>

<bundles_post_ra>
// kernel: _lambda_.1
= control target key start
LH: loop header
LB: loop body
LE: loop exit
PB: predicated region body
PF: predicated region fallthrough
CT: control target
= control target key end

     0   :  { %s8174_s0 = inlined_call_operand.vmem [shape: f32[48,48], index: 0, kind: input, shape index: {}]   ;;  %s8175_s1 = inlined_call_operand.vmem [shape: f32[48,32], index: 1, kind: input, shape index: {}]   ;;  %s8176_s2 = inlined_call_operand.vmem [shape: f32[48,32], index: 2, kind: input, shape index: {}]   ;;  %s8177_s3 = inlined_call_operand.vmem [shape: f32[4,1,32], index: 3, kind: input, shape index: {}]   ;;  %s8178_s4 = inlined_call_operand.vmem [shape: f32[1,24], index: 4, kind: input, shape index: {}]   ;;  %s8179_s5 = inlined_call_operand.vmem [shape: f32[3,1,32], index: 5, kind: input, shape index: {}, may-alias: {5,11}]   ;;  %s8180_s6 = inlined_call_operand.vmem [shape: f32[3,1,32], index: 6, kind: input, shape index: {}, may-alias: {6,12}]   ;;  %s8181_s7 = inlined_call_operand.vmem [shape: f32[3,32,96], index: 7, kind: input, shape index: {}]   ;;  %s8182_s8 = inlined_call_operand.vmem [shape: f32[3,1,96], index: 8, kind: input, shape index: {}]   ;;  %s8183_s9 = inlined_call_operand.vmem [shape: f32[3,32,32], index: 9, kind: input, shape index: {}]   ;;  %s8184_s10 = inlined_call_operand.vmem [shape: f32[3,1,32], index: 10, kind: input, shape index: {}]   ;;  %s8185_s11 = inlined_call_operand.vmem [shape: f32[3,1,32], index: 11, kind: input, shape index: {}, may-alias: {5,11}]   ;;  %s8186_s12 = inlined_call_operand.vmem [shape: f32[3,1,32], index: 12, kind: input, shape index: {}, may-alias: {6,12}]   ;;  %s8187_s13 = inlined_call_operand.vmem [shape: f32[3,32,64], index: 13, kind: input, shape index: {}]   ;;  %s8188_s14 = inlined_call_operand.vmem [shape: f32[3,1,64], index: 14, kind: input, shape index: {}]   ;;  %s8189_s15 = inlined_call_operand.vmem [shape: f32[3,64,32], index: 15, kind: input, shape index: {}]   ;;  %s8190_s16 = inlined_call_operand.vmem [shape: f32[3,1,32], index: 16, kind: input, shape index: {}]   ;;  %s8191_s17 = inlined_call_operand.vmem [shape: f32[1,32], index: 17, kind: input, shape index: {}]   ;;  %s8192_s18 = inlined_call_operand.vmem [shape: f32[1,32], index: 18, kind: input, shape index: {}]   ;;  %s8193_s19 = inlined_call_operand.vmem [shape: f32[32,10], index: 19, kind: input, shape index: {}]   ;;  %s8194_s20 = inlined_call_operand.vmem [shape: f32[1,10], index: 20, kind: input, shape index: {}]   ;;  %s8195_s21 = inlined_call_operand.hbm [shape: f32[2,10], index: 21, kind: output, shape index: {}]  }
   0x1   :  { %8202 = sst [smem:[#allocation5_spill]] %s8174_s0 }
   0x2   :  { %8203 = sst [smem:[#allocation6_spill]] %s8175_s1 }
   0x3   :  { %8204 = sst [smem:[#allocation7_spill]] %s8176_s2 }
   0x4   :  { %8205 = sst [smem:[#allocation8_spill]] %s8177_s3 }
   0x5   :  { %8206 = sst [smem:[#allocation9_spill]] %s8178_s4 }
   0x6   :  { %8207 = sst [smem:[#allocation10_spill]] %s8179_s5 }
   0x7   :  { %s8208_s26 = sld [smem:[#allocation6_spill]]  ;;  %vm95_vm0 = vcmask 392192  }
   0x8   :  { %s8209_s2 = sld [smem:[#allocation5_spill]] }
   0xd   :  { %v88_v0 = vld [vmem:[%s8208_s26 + $0x28] sm:$0xff]  ;;  %v87_v1 = vld [vmem:[%s8208_s26 + $0x20] sm:$0xff]  ;;  %v86_v2 = vld [vmem:[%s8208_s26 + $0x18] sm:$0xff] }
   0xe   :  { %124 = vmatpush.msra.mxu0 %v88_v0  ;;  %4971 = vmatpush.msra.mxu2 %v88_v0  ;;  %v85_v3 = vld [vmem:[%s8208_s26 + $0x10] sm:$0xff]  ;;  %v84_v4 = vld [vmem:[%s8208_s26 + $0x8] sm:$0xff]  ;;  %v83_v5 = vld [vmem:[%s8208_s26] sm:$0xff] }
   0xf   :  { %v77_v6 = vld [vmem:[%s8209_s2] sm:$0xff]  ;;  %v82_v7 = vld [vmem:[%s8209_s2 + $0x28] sm:$0xff] }
  0x10   :  { %125 = vmatpush.msra.mxu0 %v87_v1  ;;  %4972 = vmatpush.msra.mxu2 %v87_v1 }
  0x12   :  { %126 = vmatpush.msra.mxu0 %v86_v2  ;;  %4973 = vmatpush.msra.mxu2 %v86_v2 }
  0x14   :  { %127 = vmatpush.msra.mxu0 %v85_v3  ;;  %4974 = vmatpush.msra.mxu2 %v85_v3 }
  0x16   :  { %128 = vmatpush.msra.mxu0 %v84_v4  ;;  %4975 = vmatpush.msra.mxu2 %v84_v4 }
  0x18   :  { %129 = vmatpush.msra.mxu0 %v83_v5  ;;  %4976 = vmatpush.msra.mxu2 %v83_v5 }
  0x19   :  { %4674 = vmatmul.msk.f32.vlgmr.msra.gmra.mxu0 %vm95_vm0, %v77_v6  ;;  %4679 = vmatmul.msk.f32.vlgmr.msra.gmra.mxu2 %vm95_vm0, %v82_v7 }
  0x1a   :  { %26 = vsyncpa [#allocation3], 0  ;;  %v78_v8 = vld [vmem:[%s8209_s2 + $0x8] sm:$0xff]  ;;  %v79_v9 = vld [vmem:[%s8209_s2 + $0x10] sm:$0xff]  ;;  %s8210_s1 = sld [smem:[#allocation7_spill]]  ;;  %vm177_vm1 = vcmask 261120  }
  0x1b   :  { %v80_v10 = vld [vmem:[%s8209_s2 + $0x18] sm:$0xff]  ;;  %v81_v11 = vld [vmem:[%s8209_s2 + $0x20] sm:$0xff]  ;;  %v5543_v36 = vmov 32.0   ;;  %s8211_s3 = sld [smem:[#allocation10_spill]]  ;;  %s5544_s30 = smov 96  }
  0x1c   :  { %5061 = vrcp.f32 %v5543_v36  ;;  %s8212_s23 = sld [smem:[#allocation8_spill]]  ;;  %s5545_s4 = smov 64  }
  0x1d   :  { %s8213_s0 = sld [smem:[#allocation9_spill]]  ;;  %s5546_s25 = smov [#allocation2]  }
  0x1e   :  { %s4660_s2 = sshll.u32 %s5546_s25, 4  ;;  %s4661_s2 = int_to_ptr.vmem [resolvable:$true] %s4660_s2 }
  0x20   :  { %v89_v12 = vld [vmem:[%s8210_s1] sm:$0xff]  ;;  %v90_v16 = vld [vmem:[%s8210_s1 + $0x8] sm:$0xff]  ;;  %v91_v23 = vld [vmem:[%s8210_s1 + $0x10] sm:$0xff] }
  0x21   :  { %4675 = vmatmul.msk.f32.gmra.mxu0 %vm95_vm0, %v78_v8  ;;  %v94_v19 = vld [vmem:[%s8210_s1 + $0x28] sm:$0xff]  ;;  %v92_v28 = vld [vmem:[%s8210_s1 + $0x18] sm:$0xff]  ;;  %v93_v32 = vld [vmem:[%s8210_s1 + $0x20] sm:$0xff] }
  0x22   :  { %v5062_v37 = vpop.eup %5061  ;;  %v5803_v36 = vld [vmem:[%s8211_s3] ss:$0 sm:$0xff] }
  0x23   :  { %v197_v38 = vmul.f32 32.0, %v5062_v37  ;;  %vm201_vm2 = vweird.f32 %v5062_v37 }
  0x25   :  { %v198_v39 = vsub.f32 1.0, %v197_v38 }
  0x27   :  { %v199_v40 = vmul.f32 %v5062_v37, %v198_v39 }
  0x29   :  { %4676 = vmatmul.msk.f32.gmra.mxu0 %vm95_vm0, %v79_v9  ;;  %v200_v41 = vadd.f32 %v5062_v37, %v199_v40  ;;  %v154_v9 = vld [vmem:[%s8181_s7 + $0x18] sm:$0xff]  ;;  %v5809_v40 = vld [vmem:[%s8180_s6] ss:$0 sm:$0xff] }
  0x2a   :  { %368 = vmatpush.msra.mxu1 %v154_v9 }
  0x2b   :  { %v5741_v42 = vsel %vm201_vm2, %v5062_v37, %v200_v41 }
  0x31   :  { %4677 = vmatmul.msk.f32.gmra.mxu0 %vm95_vm0, %v80_v10  ;;  %v153_v10 = vld [vmem:[%s8181_s7 + $0x10] sm:$0xff] }
  0x32   :  { %369 = vmatpush.msra.mxu1 %v153_v10 }
  0x39   :  { %4678 = vmatmul.msk.f32.gmra.mxu0 %vm95_vm0, %v81_v11  ;;  %v152_v11 = vld [vmem:[%s8181_s7 + $0x8] sm:$0xff] }
  0x3a   :  { %370 = vmatpush.msra.mxu1 %v152_v11 }
  0x96   :  { %v131_v13 = vpop.f32.mrf.mxu0 }
  0x97   :  { %v5702_v14 = vadd.f32 %v131_v13, %v89_v12  ;;  %v151_v12 = vld [vmem:[%s8181_s7] sm:$0xff] }
  0x98   :  { %371 = vmatpush.msra.mxu1 %v151_v12 }
  0x99   :  { %v178_v15 = vsel %vm177_vm1, %v5702_v14, 0.0 }
  0x9a   :  { %179 = vadd.xlane.f32.xlu0 %v178_v15 }
  0x9c   :  { %v146_v20 = vpop.f32.mrf.mxu2 }
  0x9d   :  { %v5716_v22 = vadd.f32 %v146_v20, %v94_v19 }
  0x9e   :  { %v134_v17 = vpop.f32.mrf.mxu0 }
  0x9f   :  { %v5709_v18 = vadd.f32 %v134_v17, %v90_v16  ;;  %v193_v26 = vsel %vm177_vm1, %v5716_v22, 0.0 }
  0xa1   :  { %v181_v21 = vsel %vm177_vm1, %v5709_v18, 0.0 }
  0xa2   :  { %182 = vadd.xlane.f32.xlu0 %v181_v21 }
  0xa6   :  { %v137_v24 = vpop.f32.mrf.mxu0 }
  0xa7   :  { %v5721_v25 = vadd.f32 %v137_v24, %v91_v23 }
  0xa9   :  { %v184_v27 = vsel %vm177_vm1, %v5721_v25, 0.0 }
  0xaa   :  { %185 = vadd.xlane.f32.xlu1 %v184_v27  ;;  %194 = vadd.xlane.f32.xlu0 %v193_v26 }
  0xae   :  { %v140_v29 = vpop.f32.mrf.mxu0 }
  0xaf   :  { %v5730_v30 = vadd.f32 %v140_v29, %v92_v28 }
  0xb1   :  { %v187_v31 = vsel %vm177_vm1, %v5730_v30, 0.0 }
  0xb2   :  { %188 = vadd.xlane.f32.xlu1 %v187_v31 }
  0xb6   :  { %v143_v33 = vpop.f32.mrf.mxu0 }
  0xb7   :  { %v5737_v34 = vadd.f32 %v143_v33, %v93_v32 }
  0xb9   :  { %v190_v35 = vsel %vm177_vm1, %v5737_v34, 0.0 }
  0xba   :  { %191 = vadd.xlane.f32.xlu2 %v190_v35 }
 0x10d   :  { %v180_v43 = vpop.xlane.xlu0 %179 }
 0x10e   :  { %v203_v44 = vmul.f32 %v5741_v42, %v180_v43 }
 0x110   :  { %v5745_v45 = vsub.f32 %v5702_v14, %v203_v44 }
 0x112   :  { %v215_v46 = vmul.f32 %v5745_v45, %v5745_v45 }
 0x114   :  { %v221_v47 = vsel %vm177_vm1, %v215_v46, 0.0 }
 0x115   :  { %222 = vadd.xlane.f32.xlu2 %v221_v47  ;;  %v183_v48 = vpop.xlane.xlu0 %182 }
 0x116   :  { %v204_v49 = vmul.f32 %v5741_v42, %v183_v48 }
 0x118   :  { %v5752_v50 = vsub.f32 %v5709_v18, %v204_v49 }
 0x11a   :  { %v216_v51 = vmul.f32 %v5752_v50, %v5752_v50 }
 0x11c   :  { %v224_v52 = vsel %vm177_vm1, %v216_v51, 0.0 }
 0x11d   :  { %v186_v53 = vpop.xlane.xlu1 %185  ;;  %225 = vadd.xlane.f32.xlu1 %v224_v52  ;;  %v195_v54 = vpop.xlane.xlu0 %194 }
 0x11e   :  { %v205_v55 = vmul.f32 %v5741_v42, %v186_v53  ;;  %v208_v57 = vmul.f32 %v5741_v42, %v195_v54 }
 0x120   :  { %v5759_v56 = vsub.f32 %v5721_v25, %v205_v55  ;;  %v5765_v59 = vsub.f32 %v5716_v22, %v208_v57 }
 0x122   :  { %v217_v58 = vmul.f32 %v5759_v56, %v5759_v56  ;;  %v220_v0 = vmul.f32 %v5765_v59, %v5765_v59 }
 0x124   :  { %v227_v60 = vsel %vm177_vm1, %v217_v58, 0.0  ;;  %v236_v3 = vsel %vm177_vm1, %v220_v0, 0.0 }
 0x125   :  { %v189_v61 = vpop.xlane.xlu1 %188  ;;  %228 = vadd.xlane.f32.xlu2 %v227_v60 }
 0x126   :  { %v206_v62 = vmul.f32 %v5741_v42, %v189_v61 }
 0x128   :  { %v5770_v63 = vsub.f32 %v5730_v30, %v206_v62 }
 0x12a   :  { %v218_v1 = vmul.f32 %v5770_v63, %v5770_v63 }
 0x12c   :  { %v230_v2 = vsel %vm177_vm1, %v218_v1, 0.0 }
 0x12d   :  { %v192_v4 = vpop.xlane.xlu2 %191  ;;  %231 = vadd.xlane.f32.xlu0 %v230_v2  ;;  %237 = vadd.xlane.f32.xlu2 %v236_v3 }
 0x12e   :  { %v207_v5 = vmul.f32 %v5741_v42, %v192_v4 }
 0x130   :  { %v5780_v6 = vsub.f32 %v5737_v34, %v207_v5 }
 0x132   :  { %v219_v7 = vmul.f32 %v5780_v6, %v5780_v6 }
 0x134   :  { %v233_v8 = vsel %vm177_vm1, %v219_v7, 0.0 }
 0x135   :  { %234 = vadd.xlane.f32.xlu1 %v233_v8 }
 0x188   :  { %v223_v13 = vpop.xlane.xlu2 %222 }
 0x189   :  { %v239_v15 = vmul.f32 %v223_v13, %v5741_v42 }
 0x18b   :  { %v245_v16 = vadd.f32 1e-05, %v239_v15 }
 0x18d   :  { %5063 = vrsqrt.f32 %v245_v16  ;;  %vm257_vm4 = vweird.f32 %v245_v16 }
 0x190   :  { %v226_v17 = vpop.xlane.xlu1 %225 }
 0x191   :  { %v240_v19 = vmul.f32 %v226_v17, %v5741_v42 }
 0x193   :  { %v5064_v20 = vpop.eup %5063  ;;  %v246_v21 = vadd.f32 1e-05, %v240_v19 }
 0x194   :  { %v252_v23 = vmul.f32 %v5064_v20, %v245_v16  ;;  %vm258_vm3 = vweird.f32 %v5064_v20 }
 0x195   :  { %5065 = vrsqrt.f32 %v246_v21  ;;  %vm259_vm5 = vmor %vm257_vm4, %vm258_vm3  ;;  %vm267_vm7 = vweird.f32 %v246_v21 }
 0x196   :  { %v253_v24 = vmul.f32 %v5064_v20, %v252_v23 }
 0x198   :  { %v254_v26 = vmul.f32 0.5, %v253_v24  ;;  %v229_v27 = vpop.xlane.xlu2 %228 }
 0x199   :  { %v241_v28 = vmul.f32 %v229_v27, %v5741_v42 }
 0x19a   :  { %v255_v29 = vsub.f32 1.5, %v254_v26 }
 0x19b   :  { %v5066_v31 = vpop.eup %5065  ;;  %v247_v32 = vadd.f32 1e-05, %v241_v28 }
 0x19c   :  { %v256_v33 = vmul.f32 %v5064_v20, %v255_v29  ;;  %v262_v35 = vmul.f32 %v5066_v31, %v246_v21  ;;  %vm268_vm6 = vweird.f32 %v5066_v31 }
 0x19d   :  { %5067 = vrsqrt.f32 %v247_v32  ;;  %vm269_vm8 = vmor %vm267_vm7, %vm268_vm6  ;;  %vm277_vm10 = vweird.f32 %v247_v32  ;;  %vm522_vm6 = vcmask 195584  }
 0x19e   :  { %v263_v37 = vmul.f32 %v5066_v31, %v262_v35  ;;  %v260_v38 = vsel %vm259_vm5, %v5064_v20, %v256_v33 }
 0x19f   :  { %v311_v39 = vmul.f32 %v260_v38, %v5745_v45 }
 0x1a0   :  { %v264_v41 = vmul.f32 0.5, %v263_v37  ;;  %v238_v43 = vpop.xlane.xlu2 %237  ;;  %v232_v44 = vpop.xlane.xlu0 %231 }
 0x1a1   :  { %v244_v46 = vmul.f32 %v238_v43, %v5741_v42  ;;  %v242_v47 = vmul.f32 %v232_v44, %v5741_v42  ;;  %v320_v48 = vmul.f32 %v5803_v36, %v311_v39 }
 0x1a2   :  { %v265_v49 = vsub.f32 1.5, %v264_v41 }
 0x1a3   :  { %v5068_v51 = vpop.eup %5067  ;;  %v5814_v52 = vadd.f32 1e-05, %v244_v46  ;;  %v248_v45 = vadd.f32 1e-05, %v242_v47  ;;  %v329_v53 = vadd.f32 %v5809_v40, %v320_v48 }
 0x1a4   :  { %v266_v54 = vmul.f32 %v5066_v31, %v265_v49  ;;  %v272_v55 = vmul.f32 %v5068_v51, %v247_v32  ;;  %vm278_vm9 = vweird.f32 %v5068_v51 }
 0x1a5   :  { %5069 = vrsqrt.f32 %v5814_v52  ;;  %4680 = vmatmul.msk.f32.vlgmr.msra.gmra.mxu1 %vm177_vm1, %v329_v53  ;;  %vm279_vm11 = vmor %vm277_vm10, %vm278_vm9  ;;  %vm287_vm13 = vweird.f32 %v248_v45  ;;  %vm307_vm4 = vweird.f32 %v5814_v52 }
 0x1a6   :  { %v273_v57 = vmul.f32 %v5068_v51, %v272_v55  ;;  %5071 = vrsqrt.f32 %v248_v45  ;;  %v270_v58 = vsel %vm269_vm8, %v5066_v31, %v266_v54 }
 0x1a7   :  { %v312_v60 = vmul.f32 %v270_v58, %v5752_v50 }
 0x1a8   :  { %v274_v61 = vmul.f32 0.5, %v273_v57  ;;  %v235_v62 = vpop.xlane.xlu1 %234 }
 0x1a9   :  { %v243_v0 = vmul.f32 %v235_v62, %v5741_v42  ;;  %v321_v1 = vmul.f32 %v5803_v36, %v312_v60 }
 0x1aa   :  { %v275_v2 = vsub.f32 1.5, %v274_v61 }
 0x1ab   :  { %v5070_v3 = vpop.eup %5069  ;;  %v249_v4 = vadd.f32 1e-05, %v243_v0  ;;  %v330_v5 = vadd.f32 %v5809_v40, %v321_v1  ;;  %v5880_v1 = vld [vmem:[%s8212_s23] ss:$0 sm:$0xff] }
 0x1ac   :  { %v5072_v7 = vpop.eup %5071  ;;  %v276_v8 = vmul.f32 %v5068_v51, %v275_v2  ;;  %v302_v9 = vmul.f32 %v5070_v3, %v5814_v52  ;;  %vm308_vm2 = vweird.f32 %v5070_v3 }
 0x1ad   :  { %v282_v10 = vmul.f32 %v5072_v7, %v248_v45  ;;  %5073 = vrsqrt.f32 %v249_v4  ;;  %4681 = vmatmul.msk.f32.gmra.mxu1 %vm177_vm1, %v330_v5  ;;  %vm288_vm12 = vweird.f32 %v5072_v7  ;;  %vm297_vm0 = vweird.f32 %v249_v4  ;;  %vm309_vm5 = vmor %vm307_vm4, %vm308_vm2 }
 0x1ae   :  { %v280_v50 = vsel %vm279_vm11, %v5068_v51, %v276_v8  ;;  %v303_v13 = vmul.f32 %v5070_v3, %v302_v9  ;;  %vm289_vm14 = vmor %vm287_vm13, %vm288_vm12  ;;  %v5897_v9 = vld [vmem:[%s8212_s23 + $0x1] ss:$0 sm:$0xff] }
 0x1af   :  { %v283_v11 = vmul.f32 %v5072_v7, %v282_v10  ;;  %v313_v12 = vmul.f32 %v280_v50, %v5759_v56 }
 0x1b0   :  { %v304_v23 = vmul.f32 0.5, %v303_v13 }
 0x1b1   :  { %v284_v15 = vmul.f32 0.5, %v283_v11  ;;  %v322_v16 = vmul.f32 %v5803_v36, %v313_v12 }
 0x1b2   :  { %v305_v29 = vsub.f32 1.5, %v304_v23 }
 0x1b3   :  { %v5074_v17 = vpop.eup %5073  ;;  %v285_v19 = vsub.f32 1.5, %v284_v15  ;;  %v331_v20 = vadd.f32 %v5809_v40, %v322_v16 }
 0x1b4   :  { %v292_v21 = vmul.f32 %v5074_v17, %v249_v4  ;;  %vm298_vm15 = vweird.f32 %v5074_v17  ;;  %v306_v37 = vmul.f32 %v5070_v3, %v305_v29 }
 0x1b5   :  { %v286_v24 = vmul.f32 %v5072_v7, %v285_v19  ;;  %4682 = vmatmul.msk.f32.gmra.mxu1 %vm177_vm1, %v331_v20  ;;  %vm299_vm3 = vmor %vm297_vm0, %vm298_vm15 }
 0x1b6   :  { %v293_v26 = vmul.f32 %v5074_v17, %v292_v21  ;;  %v310_v41 = vsel %vm309_vm5, %v5070_v3, %v306_v37 }
 0x1b7   :  { %v290_v27 = vsel %vm289_vm14, %v5072_v7, %v286_v24  ;;  %v316_v44 = vmul.f32 %v310_v41, %v5765_v59 }
 0x1b8   :  { %v294_v28 = vmul.f32 0.5, %v293_v26  ;;  %v314_v56 = vmul.f32 %v290_v27, %v5770_v63  ;;  %v5944_v27 = vld [vmem:[%s8212_s23 + $0x3] ss:$0 sm:$0xff] }
 0x1b9   :  { %v325_v46 = vmul.f32 %v5803_v36, %v316_v44 }
 0x1ba   :  { %v295_v31 = vsub.f32 1.5, %v294_v28  ;;  %v323_v32 = vmul.f32 %v5803_v36, %v314_v56 }
 0x1bb   :  { %v334_v47 = vadd.f32 %v5809_v40, %v325_v46 }
 0x1bc   :  { %v296_v33 = vmul.f32 %v5074_v17, %v295_v31  ;;  %v332_v35 = vadd.f32 %v5809_v40, %v323_v32 }
 0x1be   :  { %4683 = vmatmul.msk.f32.gmra.mxu1 %vm177_vm1, %v332_v35  ;;  %v300_v38 = vsel %vm299_vm3, %v5074_v17, %v296_v33  ;;  %v5921_v17 = vld [vmem:[%s8212_s23 + $0x2] ss:$0 sm:$0xff] }
 0x1bf   :  { %v315_v39 = vmul.f32 %v300_v38, %v5780_v6  ;;  %v5031_v6 = vld [vmem:[%s8182_s8] ss:$0 sm:$0xff] }
 0x1c1   :  { %v324_v63 = vmul.f32 %v5803_v36, %v315_v39  ;;  %v5976_v39 = vld [vmem:[%s8213_s0] ss:$0 sm:$0xff] }
 0x1c3   :  { %v333_v43 = vadd.f32 %v5809_v40, %v324_v63 }
 0x1c6   :  { %4684 = vmatmul.msk.f32.gmra.mxu1 %vm177_vm1, %v333_v43 }
 0x1ce   :  { %4685 = vmatmul.msk.f32.gmra.mxu1 %vm177_vm1, %v334_v47 }
 0x222   :  { %v373_v48 = vpop.f32.mrf.mxu1 }
 0x223   :  { %v5845_v49 = vadd.f32 %v5031_v6, %v373_v48 }
 0x225   :  { %421 = vrot.lane.b32.xlu2 %v5845_v49, %s5544_s30  ;;  %v394_v3 = vmul.f32 %v5880_v1, %v5845_v49  ;;  %v400_v50 = vmul.f32 %v5897_v9, %v5845_v49  ;;  %v406_v19 = vmul.f32 %v5921_v17, %v5845_v49  ;;  %v412_v28 = vmul.f32 %v5944_v27, %v5845_v49 }
 0x22a   :  { %v376_v59 = vpop.f32.mrf.mxu1 }
 0x22b   :  { %v5849_v51 = vadd.f32 %v5031_v6, %v376_v59 }
 0x22d   :  { %423 = vrot.lane.b32.xlu1 %v5849_v51, %s5544_s30  ;;  %v395_v4 = vmul.f32 %v5880_v1, %v5849_v51  ;;  %v401_v12 = vmul.f32 %v5897_v9, %v5849_v51  ;;  %v407_v21 = vmul.f32 %v5921_v17, %v5849_v51  ;;  %v413_v29 = vmul.f32 %v5944_v27, %v5849_v51 }
 0x232   :  { %v379_v36 = vpop.f32.mrf.mxu1 }
 0x233   :  { %v5853_v40 = vadd.f32 %v5031_v6, %v379_v36 }
 0x235   :  { %425 = vrot.lane.b32.xlu0 %v5853_v40, %s5544_s30  ;;  %v4984_v52 = vpack.i.bf16 %v5849_v51, %v5853_v40  ;;  %v396_v7 = vmul.f32 %v5880_v1, %v5853_v40  ;;  %v402_v15 = vmul.f32 %v5897_v9, %v5853_v40  ;;  %v408_v24 = vmul.f32 %v5921_v17, %v5853_v40 }
 0x236   :  { %v414_v32 = vmul.f32 %v5944_v27, %v5853_v40 }
 0x23b   :  { %v382_v45 = vpop.f32.mrf.mxu1 }
 0x23c   :  { %v5859_v53 = vadd.f32 %v5031_v6, %v382_v45 }
 0x23e   :  { %789 = vrot.lane.b32.xlu1 %v5859_v53, %s5544_s30  ;;  %v774_v11 = vmul.f32 %v5880_v1, %v5859_v53  ;;  %v777_v20 = vmul.f32 %v5897_v9, %v5859_v53  ;;  %v780_v56 = vmul.f32 %v5921_v17, %v5859_v53  ;;  %v783_v35 = vmul.f32 %v5944_v27, %v5859_v53 }
 0x243   :  { %v385_v54 = vpop.f32.mrf.mxu1 }
 0x244   :  { %v5863_v55 = vadd.f32 %v5031_v6, %v385_v54 }
 0x246   :  { %791 = vrot.lane.b32.xlu2 %v5863_v55, %s5544_s30  ;;  %v4994_v57 = vpack.i.bf16 %v5859_v53, %v5863_v55  ;;  %v775_v13 = vmul.f32 %v5880_v1, %v5863_v55  ;;  %v778_v23 = vmul.f32 %v5897_v9, %v5863_v55  ;;  %v781_v31 = vmul.f32 %v5921_v17, %v5863_v55 }
 0x247   :  { %v784_v37 = vmul.f32 %v5944_v27, %v5863_v55 }
 0x24b   :  { %v388_v58 = vpop.f32.mrf.mxu1 }
 0x24c   :  { %v5869_v60 = vadd.f32 %v5031_v6, %v388_v58 }
 0x24e   :  { %793 = vrot.lane.b32.xlu0 %v5869_v60, %s5544_s30  ;;  %v4989_v61 = vpack.i.bf16 %v5869_v60, %v5845_v49  ;;  %v776_v16 = vmul.f32 %v5880_v1, %v5869_v60  ;;  %v779_v26 = vmul.f32 %v5897_v9, %v5869_v60  ;;  %v782_v33 = vmul.f32 %v5921_v17, %v5869_v60 }
 0x24f   :  { %v785_v38 = vmul.f32 %v5944_v27, %v5869_v60 }
 0x27f   :  { %v422_v2 = vpop.permute.xlu2 %421 }
 0x29f   :  { %v424_v0 = vpop.permute.xlu1 %423 }
 0x2a0   :  { %v792_v8 = vpop.permute.xlu2 %791 }
 0x2a7   :  { %v426_v62 = vpop.permute.xlu0 %425 }
 0x2a8   :  { %4686 = vmatpush.xpose.msk.msrb.mxu2 %vm177_vm1, %v426_v62 }
 0x2ac   :  { %4687 = vmatpush.xpose.msk.msrb.mxu2 %vm177_vm1, %v424_v0 }
 0x2b0   :  { %4688 = vmatpush.xpose.msk.msrb.mxu2 %vm177_vm1, %v422_v2  ;;  %v790_v10 = vpop.permute.xlu1 %789 }
 0x2b3   :  { %4689 = vmatmul.msk.f32.vlgmr.msrb.gmra.mxu2 %vm177_vm1, %v394_v3 }
 0x2bb   :  { %4690 = vmatmul.msk.f32.gmra.mxu2 %vm177_vm1, %v395_v4 }
 0x2c0   :  { %v794_v5 = vpop.permute.xlu0 %793 }
 0x2c1   :  { %4713 = vmatpush.xpose.msk.msrb.mxu1 %vm177_vm1, %v794_v5 }
 0x2c3   :  { %4691 = vmatmul.msk.f32.gmra.mxu2 %vm177_vm1, %v396_v7 }
 0x2c5   :  { %4714 = vmatpush.xpose.msk.msrb.mxu1 %vm177_vm1, %v792_v8 }
 0x2c9   :  { %4715 = vmatpush.xpose.msk.msrb.mxu1 %vm177_vm1, %v790_v10 }
 0x2cb   :  { %4692 = vmatmul.msk.f32.gmra.mxu2 %vm177_vm1, %v400_v50 }
 0x2cc   :  { %4716 = vmatmul.msk.f32.vlgmr.msrb.gmra.mxu1 %vm177_vm1, %v774_v11 }
 0x2d3   :  { %4693 = vmatmul.msk.f32.gmra.mxu2 %vm177_vm1, %v401_v12 }
 0x2d4   :  { %4717 = vmatmul.msk.f32.gmra.mxu1 %vm177_vm1, %v775_v13 }
 0x2db   :  { %4694 = vmatmul.msk.f32.gmra.mxu2 %vm177_vm1, %v402_v15 }
 0x2dc   :  { %4718 = vmatmul.msk.f32.gmra.mxu1 %vm177_vm1, %v776_v16 }
 0x2e3   :  { %4695 = vmatmul.msk.f32.gmra.mxu2 %vm177_vm1, %v406_v19 }
 0x2e4   :  { %4719 = vmatmul.msk.f32.gmra.mxu1 %vm177_vm1, %v777_v20 }
 0x2eb   :  { %4696 = vmatmul.msk.f32.gmra.mxu2 %vm177_vm1, %v407_v21 }
 0x2ec   :  { %4720 = vmatmul.msk.f32.gmra.mxu1 %vm177_vm1, %v778_v23 }
 0x2f3   :  { %4697 = vmatmul.msk.f32.gmra.mxu2 %vm177_vm1, %v408_v24 }
 0x2f4   :  { %4721 = vmatmul.msk.f32.gmra.mxu1 %vm177_vm1, %v779_v26 }
 0x2fb   :  { %4698 = vmatmul.msk.f32.gmra.mxu2 %vm177_vm1, %v412_v28 }
 0x2fc   :  { %4722 = vmatmul.msk.f32.gmra.mxu1 %vm177_vm1, %v780_v56 }
 0x303   :  { %4699 = vmatmul.msk.f32.gmra.mxu2 %vm177_vm1, %v413_v29 }
 0x304   :  { %4723 = vmatmul.msk.f32.gmra.mxu1 %vm177_vm1, %v781_v31 }
 0x30b   :  { %4700 = vmatmul.msk.f32.gmra.mxu2 %vm177_vm1, %v414_v32 }
 0x30c   :  { %4724 = vmatmul.msk.f32.gmra.mxu1 %vm177_vm1, %v782_v33 }
 0x314   :  { %4725 = vmatmul.msk.f32.gmra.mxu1 %vm177_vm1, %v783_v35 }
 0x31c   :  { %4726 = vmatmul.msk.f32.gmra.mxu1 %vm177_vm1, %v784_v37 }
 0x324   :  { %4727 = vmatmul.msk.f32.gmra.mxu1 %vm177_vm1, %v785_v38 }
 0x336   :  { %v486_v63 = vpop.f32.mrf.mxu2 }
 0x337   :  { %v5979_v41 = vadd.f32 %v5976_v39, %v486_v63 }
 0x339   :  { %v523_v43 = vsel %vm522_vm6, %v5979_v41, -inf }
 0x33a   :  { %524 = vmax.xlane.f32.xlu0 %v523_v43 }
 0x33e   :  { %v489_v44 = vpop.f32.mrf.mxu2 }
 0x33f   :  { %v5984_v46 = vadd.f32 %v5976_v39, %v489_v44 }
 0x341   :  { %v526_v47 = vsel %vm522_vm6, %v5984_v46, -inf }
 0x342   :  { %527 = vmax.xlane.f32.xlu2 %v526_v47 }
 0x346   :  { %v492_v6 = vpop.f32.mrf.mxu2 }
 0x347   :  { %v5989_v48 = vadd.f32 %v5976_v39, %v492_v6 }
 0x349   :  { %v854_v59 = vpop.f32.mrf.mxu1  ;;  %v529_v36 = vsel %vm522_vm6, %v5989_v48, -inf }
 0x34a   :  { %v5994_v45 = vadd.f32 %v5976_v39, %v854_v59  ;;  %530 = vmax.xlane.f32.xlu1 %v529_v36 }
 0x34c   :  { %v890_v54 = vsel %vm522_vm6, %v5994_v45, -inf }
 0x34d   :  { %891 = vmax.xlane.f32.xlu2 %v890_v54 }
 0x34e   :  { %v495_v58 = vpop.f32.mrf.mxu2 }
 0x34f   :  { %v5999_v62 = vadd.f32 %v5976_v39, %v495_v58 }
 0x351   :  { %v857_v0 = vpop.f32.mrf.mxu1  ;;  %v532_v2 = vsel %vm522_vm6, %v5999_v62, -inf }
 0x352   :  { %533 = vmax.xlane.f32.xlu0 %v532_v2  ;;  %v6004_v3 = vadd.f32 %v5976_v39, %v857_v0 }
 0x354   :  { %v893_v10 = vsel %vm522_vm6, %v6004_v3, -inf }
 0x356   :  { %v498_v4 = vpop.f32.mrf.mxu2 }
 0x357   :  { %v6007_v5 = vadd.f32 %v5976_v39, %v498_v4 }
 0x359   :  { %v860_v7 = vpop.f32.mrf.mxu1  ;;  %v535_v8 = vsel %vm522_vm6, %v6007_v5, -inf }
 0x35a   :  { %536 = vmax.xlane.f32.xlu1 %v535_v8  ;;  %894 = vmax.xlane.f32.xlu0 %v893_v10  ;;  %v6014_v50 = vadd.f32 %v5976_v39, %v860_v7 }
 0x35c   :  { %v896_v15 = vsel %vm522_vm6, %v6014_v50, -inf }
 0x35e   :  { %v501_v11 = vpop.f32.mrf.mxu2 }
 0x35f   :  { %v6017_v12 = vadd.f32 %v5976_v39, %v501_v11 }
 0x361   :  { %v863_v13 = vpop.f32.mrf.mxu1  ;;  %v538_v16 = vsel %vm522_vm6, %v6017_v12, -inf }
 0x362   :  { %897 = vmax.xlane.f32.xlu1 %v896_v15  ;;  %539 = vmax.xlane.f32.xlu2 %v538_v16  ;;  %v6024_v19 = vadd.f32 %v5976_v39, %v863_v13 }
 0x364   :  { %v899_v24 = vsel %vm522_vm6, %v6024_v19, -inf }
 0x366   :  { %v504_v20 = vpop.f32.mrf.mxu2 }
 0x367   :  { %v6027_v21 = vadd.f32 %v5976_v39, %v504_v20 }
 0x369   :  { %v866_v23 = vpop.f32.mrf.mxu1  ;;  %v541_v26 = vsel %vm522_vm6, %v6027_v21, -inf }
 0x36a   :  { %900 = vmax.xlane.f32.xlu2 %v899_v24  ;;  %542 = vmax.xlane.f32.xlu0 %v541_v26  ;;  %v6034_v28 = vadd.f32 %v5976_v39, %v866_v23 }
 0x36c   :  { %v902_v32 = vsel %vm522_vm6, %v6034_v28, -inf }
 0x36e   :  { %v507_v56 = vpop.f32.mrf.mxu2 }
 0x36f   :  { %v6037_v29 = vadd.f32 %v5976_v39, %v507_v56 }
 0x371   :  { %v544_v31 = vsel %vm522_vm6, %v6037_v29, -inf  ;;  %v869_v33 = vpop.f32.mrf.mxu1 }
 0x372   :  { %545 = vmax.xlane.f32.xlu1 %v544_v31  ;;  %903 = vmax.xlane.f32.xlu2 %v902_v32  ;;  %v6044_v35 = vadd.f32 %v5976_v39, %v869_v33 }
 0x374   :  { %v905_v63 = vsel %vm522_vm6, %v6044_v35, -inf }
 0x376   :  { %v510_v37 = vpop.f32.mrf.mxu2 }
 0x377   :  { %v6047_v38 = vadd.f32 %v5976_v39, %v510_v37 }
 0x379   :  { %v547_v43 = vsel %vm522_vm6, %v6047_v38, -inf  ;;  %v6056_v6 = vpop.f32.mrf.mxu1 }
 0x37a   :  { %906 = vmax.xlane.f32.xlu2 %v905_v63  ;;  %548 = vmax.xlane.f32.xlu0 %v547_v43 }
 0x37e   :  { %v513_v44 = vpop.f32.mrf.mxu2 }
 0x37f   :  { %v6054_v47 = vadd.f32 %v5976_v39, %v513_v44 }
 0x381   :  { %v550_v59 = vsel %vm522_vm6, %v6054_v47, -inf  ;;  %v875_v0 = vpop.f32.mrf.mxu1 }
 0x382   :  { %551 = vmax.xlane.f32.xlu2 %v550_v59  ;;  %v6070_v2 = vadd.f32 %v5976_v39, %v875_v0 }
 0x384   :  { %v911_v4 = vsel %vm522_vm6, %v6070_v2, -inf }
 0x386   :  { %v516_v36 = vpop.f32.mrf.mxu2 }
 0x387   :  { %v6061_v54 = vadd.f32 %v5976_v39, %v516_v36 }
 0x389   :  { %v553_v58 = vsel %vm522_vm6, %v6061_v54, -inf }
 0x38a   :  { %554 = vmax.xlane.f32.xlu2 %v553_v58 }
 0x38b   :  { %4985 = vrot.lane.b32.xlu1 %v4984_v52, %s5545_s4 }
 0x38e   :  { %v519_v7 = vpop.f32.mrf.mxu2 }
 0x38f   :  { %v6076_v11 = vadd.f32 %v5976_v39, %v519_v7 }
 0x391   :  { %v556_v51 = vsel %vm522_vm6, %v6076_v11, -inf }
 0x392   :  { %912 = vmax.xlane.f32.xlu2 %v911_v4 }
 0x3ad   :  { %v525_v8 = vpop.xlane.xlu0 %524 }
 0x3ae   :  { %v559_v10 = vsub.f32 %v5979_v41, %v525_v8 }
 0x3b0   :  { %v571_v13 = vmul.f32 1.442695, %v559_v10 }
 0x3b2   :  { %5075 = vpow2.f32 %v571_v13 }
 0x3b5   :  { %557 = vmax.xlane.f32.xlu1 %v556_v51  ;;  %v528_v40 = vpop.xlane.xlu2 %527 }
 0x3b6   :  { %v560_v52 = vsub.f32 %v5984_v46, %v528_v40 }
 0x3b8   :  { %v6081_v15 = vpop.eup %5075  ;;  %v573_v16 = vmul.f32 1.442695, %v560_v52 }
 0x3b9   :  { %v595_v20 = vsel %vm522_vm6, %v6081_v15, 0.0 }
 0x3ba   :  { %5077 = vpow2.f32 %v573_v16  ;;  %596 = vadd.xlane.f32.xlu0 %v595_v20 }
 0x3bd   :  { %v531_v41 = vpop.xlane.xlu1 %530 }
 0x3be   :  { %v561_v23 = vsub.f32 %v5989_v48, %v531_v41 }
 0x3c0   :  { %v6086_v24 = vpop.eup %5077  ;;  %v575_v26 = vmul.f32 1.442695, %v561_v23  ;;  %v892_v56 = vpop.xlane.xlu2 %891 }
 0x3c1   :  { %v926_v31 = vsub.f32 %v5994_v45, %v892_v56  ;;  %v598_v46 = vsel %vm522_vm6, %v6086_v24, 0.0 }
 0x3c2   :  { %5079 = vpow2.f32 %v575_v26  ;;  %599 = vadd.xlane.f32.xlu2 %v598_v46 }
 0x3c3   :  { %v938_v32 = vmul.f32 1.442695, %v926_v31 }
 0x3c5   :  { %5081 = vpow2.f32 %v938_v32  ;;  %v534_v33 = vpop.xlane.xlu0 %533 }
 0x3c6   :  { %v562_v37 = vsub.f32 %v5999_v62, %v534_v33 }
 0x3c8   :  { %v6092_v63 = vpop.eup %5079  ;;  %v577_v43 = vmul.f32 1.442695, %v562_v37  ;;  %v6132_v37 = vadd.f32 %v5976_v39, %v6056_v6 }
 0x3c9   :  { %v601_v48 = vsel %vm522_vm6, %v6092_v63, 0.0 }
 0x3ca   :  { %602 = vadd.xlane.f32.xlu1 %v601_v48  ;;  %5083 = vpow2.f32 %v577_v43 }
 0x3cb   :  { %v6096_v44 = vpop.eup %5081 }
 0x3cc   :  { %v962_v45 = vsel %vm522_vm6, %v6096_v44, 0.0 }
 0x3cd   :  { %963 = vadd.xlane.f32.xlu2 %v962_v45  ;;  %v537_v59 = vpop.xlane.xlu1 %536  ;;  %v895_v51 = vpop.xlane.xlu0 %894 }
 0x3ce   :  { %v563_v36 = vsub.f32 %v6007_v5, %v537_v59  ;;  %4990 = vrot.lane.b32.xlu0 %v4989_v61, %s5545_s4  ;;  %v878_v61 = vpop.f32.mrf.mxu1  ;;  %v927_v31 = vsub.f32 %v6004_v3, %v895_v51 }
 0x3d0   :  { %v579_v62 = vmul.f32 1.442695, %v563_v36  ;;  %v6105_v58 = vpop.eup %5083  ;;  %v940_v43 = vmul.f32 1.442695, %v927_v31 }
 0x3d1   :  { %v604_v0 = vsel %vm522_vm6, %v6105_v58, 0.0 }
 0x3d2   :  { %5085 = vpow2.f32 %v579_v62 }
 0x3d5   :  { %605 = vadd.xlane.f32.xlu2 %v604_v0  ;;  %v898_v4 = vpop.xlane.xlu1 %897  ;;  %v540_v7 = vpop.xlane.xlu2 %539 }
 0x3d6   :  { %v928_v8 = vsub.f32 %v6014_v50, %v898_v4  ;;  %v564_v5 = vsub.f32 %v6017_v12, %v540_v7  ;;  %v881_v20 = vpop.f32.mrf.mxu1 }
 0x3d7   :  { %v6124_v26 = vadd.f32 %v5976_v39, %v881_v20 }
 0x3d8   :  { %v942_v10 = vmul.f32 1.442695, %v928_v8  ;;  %v6111_v13 = vpop.eup %5085  ;;  %v581_v49 = vmul.f32 1.442695, %v564_v5  ;;  %v6156_v5 = vadd.f32 %v5976_v39, %v878_v61 }
 0x3d9   :  { %v607_v60 = vsel %vm522_vm6, %v6111_v13, 0.0  ;;  %v917_v32 = vsel %vm522_vm6, %v6124_v26, -inf }
 0x3da   :  { %5087 = vpow2.f32 %v942_v10 }
 0x3db   :  { %5089 = vpow2.f32 %v581_v49 }
 0x3dc   :  { %5091 = vpow2.f32 %v940_v43 }
 0x3dd   :  { %608 = vadd.xlane.f32.xlu2 %v607_v60  ;;  %v901_v50 = vpop.xlane.xlu2 %900  ;;  %v543_v12 = vpop.xlane.xlu0 %542  ;;  %v914_v60 = vsel %vm522_vm6, %v6156_v5, -inf }
 0x3de   :  { %v884_v33 = vpop.f32.mrf.mxu1  ;;  %v565_v55 = vsub.f32 %v6027_v21, %v543_v12  ;;  %v929_v12 = vsub.f32 %v6024_v19, %v901_v50 }
 0x3df   :  { %v6135_v48 = vadd.f32 %v5976_v39, %v884_v33 }
 0x3e0   :  { %v6115_v40 = vpop.eup %5087  ;;  %v583_v10 = vmul.f32 1.442695, %v565_v55 }
 0x3e1   :  { %v968_v52 = vsel %vm522_vm6, %v6115_v40, 0.0  ;;  %v6119_v16 = vpop.eup %5089  ;;  %v920_v36 = vsel %vm522_vm6, %v6135_v48, -inf }
 0x3e2   :  { %969 = vadd.xlane.f32.xlu1 %v968_v52  ;;  %v610_v41 = vsel %vm522_vm6, %v6119_v16, 0.0  ;;  %v6146_v62 = vpop.eup %5091 }
 0x3e5   :  { %v904_v23 = vpop.xlane.xlu2 %903  ;;  %v546_v45 = vpop.xlane.xlu1 %545 }
 0x3e6   :  { %v930_v21 = vsub.f32 %v6034_v28, %v904_v23  ;;  %v566_v61 = vsub.f32 %v6037_v29, %v546_v45  ;;  %v887_v43 = vpop.f32.mrf.mxu1 }
 0x3e8   :  { %v946_v52 = vmul.f32 1.442695, %v930_v21  ;;  %v585_v23 = vmul.f32 1.442695, %v566_v61 }
 0x3ea   :  { %611 = vadd.xlane.f32.xlu1 %v610_v41  ;;  %v944_v41 = vmul.f32 1.442695, %v929_v12 }
 0x3ed   :  { %v549_v56 = vpop.xlane.xlu0 %548  ;;  %v907_v3 = vpop.xlane.xlu2 %906 }
 0x3ee   :  { %v567_v46 = vsub.f32 %v6047_v38, %v549_v56  ;;  %v908_v38 = vsel %vm522_vm6, %v6132_v37, -inf  ;;  %v931_v6 = vsub.f32 %v6044_v35, %v907_v3 }
 0x3f0   :  { %v587_v59 = vmul.f32 1.442695, %v567_v46  ;;  %v948_v0 = vmul.f32 1.442695, %v931_v6 }
 0x3f2   :  { %918 = vmax.xlane.f32.xlu1 %v917_v32  ;;  %5093 = vpow2.f32 %v587_v59  ;;  %v6185_v59 = vadd.f32 %v5976_v39, %v887_v43 }
 0x3f3   :  { %5095 = vpow2.f32 %v948_v0 }
 0x3f4   :  { %5097 = vpow2.f32 %v583_v10 }
 0x3f5   :  { %4995 = vrot.lane.b32.xlu2 %v4994_v57, %s5545_s4  ;;  %v965_v57 = vsel %vm522_vm6, %v6146_v62, 0.0  ;;  %5099 = vpow2.f32 %v946_v52  ;;  %v552_v50 = vpop.xlane.xlu2 %551 }
 0x3f6   :  { %5101 = vpow2.f32 %v944_v41  ;;  %v568_v32 = vsub.f32 %v6054_v47, %v552_v50 }
 0x3f7   :  { %5103 = vpow2.f32 %v585_v23 }
 0x3f8   :  { %909 = vmax.xlane.f32.xlu0 %v908_v38  ;;  %v6148_v53 = vpop.eup %5093  ;;  %v589_v45 = vmul.f32 1.442695, %v568_v32 }
 0x3f9   :  { %v619_v8 = vsel %vm522_vm6, %v6148_v53, 0.0  ;;  %v6158_v49 = vpop.eup %5095 }
 0x3fa   :  { %921 = vmax.xlane.f32.xlu1 %v920_v36  ;;  %v977_v51 = vsel %vm522_vm6, %v6158_v49, 0.0  ;;  %v6166_v20 = vpop.eup %5097  ;;  %5105 = vpow2.f32 %v589_v45  ;;  %v923_v36 = vsel %vm522_vm6, %v6185_v59, -inf }
 0x3fb   :  { %v613_v28 = vsel %vm522_vm6, %v6166_v20, 0.0  ;;  %v6171_v56 = vpop.eup %5099 }
 0x3fc   :  { %v974_v31 = vsel %vm522_vm6, %v6171_v56, 0.0  ;;  %v6175_v19 = vpop.eup %5101 }
 0x3fd   :  { %v4986_v4 = vpop.permute.xlu1 %4985  ;;  %v6177_v46 = vpop.eup %5103  ;;  %v971_v29 = vsel %vm522_vm6, %v6175_v19, 0.0 }
 0x3fe   :  { %v4987_v7 = vunpack.i.l.bf16 %v4986_v4  ;;  %v4988_v35 = vunpack.i.h.bf16 %v4986_v4  ;;  %v616_v33 = vsel %vm522_vm6, %v6177_v46, 0.0  ;;  %v555_v3 = vpop.xlane.xlu2 %554 }
 0x3ff   :  { %v569_v38 = vsub.f32 %v6061_v54, %v555_v3 }
 0x400   :  { %713 = vmatpush.msrb.mxu0 %v4987_v7  ;;  %4977 = vmatpush.msra.mxu3 %v4987_v7  ;;  %v6191_v7 = vpop.eup %5105 }
 0x401   :  { %966 = vadd.xlane.f32.xlu0 %v965_v57  ;;  %v591_v47 = vmul.f32 1.442695, %v569_v38  ;;  %v622_v39 = vsel %vm522_vm6, %v6191_v7, 0.0 }
 0x402   :  { %714 = vmatpush.msrb.mxu0 %v4988_v35  ;;  %4978 = vmatpush.msra.mxu3 %v4988_v35 }
 0x403   :  { %620 = vadd.xlane.f32.xlu1 %v619_v8 }
 0x406   :  { %v6193_v55 = vpop.xlane.xlu2 %912 }
 0x409   :  { %915 = vmax.xlane.f32.xlu0 %v914_v60 }
 0x40b   :  { %978 = vadd.xlane.f32.xlu1 %v977_v51 }
 0x411   :  { %614 = vadd.xlane.f32.xlu0 %v613_v28 }
 0x419   :  { %975 = vadd.xlane.f32.xlu0 %v974_v31 }
 0x41e   :  { %972 = vadd.xlane.f32.xlu2 %v971_v29 }
 0x421   :  { %617 = vadd.xlane.f32.xlu0 %v616_v33 }
 0x428   :  { %v558_v6 = vpop.xlane.xlu1 %557 }
 0x429   :  { %v570_v0 = vsub.f32 %v6076_v11, %v558_v6  ;;  %924 = vmax.xlane.f32.xlu0 %v923_v36 }
 0x42b   :  { %v593_v4 = vmul.f32 1.442695, %v570_v0 }
 0x42d   :  { %5107 = vpow2.f32 %v593_v4  ;;  %v597_v11 = vpop.xlane.xlu0 %596 }
 0x42e   :  { %5109 = vpow2.f32 %v591_v47 }
 0x42f   :  { %5111 = vrcp.f32 %v597_v11  ;;  %v933_v11 = vsub.f32 %v6070_v2, %v6193_v55 }
 0x431   :  { %623 = vadd.xlane.f32.xlu0 %v622_v39 }
 0x433   :  { %v6197_v54 = vpop.eup %5107 }
 0x434   :  { %v628_v57 = vsel %vm522_vm6, %v6197_v54, 0.0  ;;  %v6201_v35 = vpop.eup %5109 }
 0x435   :  { %629 = vadd.xlane.f32.xlu2 %v628_v57  ;;  %v600_v8 = vpop.xlane.xlu2 %599  ;;  %v625_v10 = vsel %vm522_vm6, %v6201_v35, 0.0  ;;  %v5112_v21 = vpop.eup %5111 }
 0x436   :  { %5113 = vrcp.f32 %v600_v8  ;;  %v643_v61 = vmul.f32 %v5112_v21, %v6081_v15  ;;  %v952_v21 = vmul.f32 1.442695, %v933_v11 }
 0x439   :  { %626 = vadd.xlane.f32.xlu0 %v625_v10 }
 0x43c   :  { %v5114_v28 = vpop.eup %5113 }
 0x43d   :  { %v603_v41 = vpop.xlane.xlu1 %602  ;;  %v644_v31 = vmul.f32 %v5114_v28, %v6086_v24 }
 0x43e   :  { %5115 = vrcp.f32 %v603_v41 }
 0x440   :  { %v964_v60 = vpop.xlane.xlu2 %963  ;;  %v4991_v51 = vpop.permute.xlu0 %4990 }
 0x441   :  { %v4993_v52 = vunpack.i.h.bf16 %v4991_v51  ;;  %v4992_v12 = vunpack.i.l.bf16 %v4991_v51 }
 0x443   :  { %715 = vmatpush.msrb.mxu0 %v4992_v12  ;;  %4979 = vmatpush.msra.mxu3 %v4992_v12 }
 0x444   :  { %4701 = vmatmul.msk.f32.vlgmr.msrb.gmra.mxu0 %vm522_vm6, %v643_v61  ;;  %v5116_v50 = vpop.eup %5115 }
 0x445   :  { %1080 = vmatpush.msra.mxu0 %v4993_v52  ;;  %v645_v15 = vmul.f32 %v5116_v50, %v6092_v63 }
 0x448   :  { %v606_v23 = vpop.xlane.xlu2 %605 }
 0x449   :  { %5117 = vrcp.f32 %v606_v23 }
 0x44c   :  { %4702 = vmatmul.msk.f32.gmra.mxu0 %vm522_vm6, %v644_v31 }
 0x44f   :  { %v5118_v29 = vpop.eup %5117 }
 0x450   :  { %v609_v32 = vpop.xlane.xlu2 %608  ;;  %v646_v33 = vmul.f32 %v5118_v29, %v6105_v58 }
 0x451   :  { %5119 = vrcp.f32 %v609_v32 }
 0x452   :  { %4704 = vmatmul.msk.f32.vlgmr.msra.gmra.mxu3 %vm522_vm6, %v646_v33  ;;  %5121 = vrcp.f32 %v964_v60 }
 0x454   :  { %4703 = vmatmul.msk.f32.gmra.mxu0 %vm522_vm6, %v645_v15 }
 0x455   :  { %v970_v43 = vpop.xlane.xlu1 %969 }
 0x457   :  { %v5120_v45 = vpop.eup %5119 }
 0x458   :  { %v4996_v3 = vpop.permute.xlu2 %4995  ;;  %v647_v24 = vmul.f32 %v5120_v45, %v6111_v13  ;;  %v5122_v38 = vpop.eup %5121 }
 0x459   :  { %v4997_v6 = vunpack.i.l.bf16 %v4996_v3  ;;  %v4998_v36 = vunpack.i.h.bf16 %v4996_v3  ;;  %v1010_v58 = vmul.f32 %v5122_v38, %v6096_v44 }
 0x45a   :  { %4705 = vmatmul.msk.f32.gmra.mxu3 %vm522_vm6, %v647_v24 }
 0x45b   :  { %1081 = vmatpush.msra.mxu0 %v4997_v6 }
 0x45d   :  { %1082 = vmatpush.msra.mxu0 %v4998_v36  ;;  %v612_v0 = vpop.xlane.xlu1 %611 }
 0x45e   :  { %5123 = vrcp.f32 %v612_v0  ;;  %4728 = vmatmul.msk.f32.vlgmr.msra.gmra.mxu0 %vm522_vm6, %v1010_v58 }
 0x464   :  { %v5124_v63 = vpop.eup %5123 }
 0x465   :  { %v919_v47 = vpop.xlane.xlu1 %918  ;;  %v648_v4 = vmul.f32 %v5124_v63, %v6119_v16 }
 0x466   :  { %v935_v16 = vsub.f32 %v6124_v26, %v919_v47 }
 0x467   :  { %4706 = vmatmul.msk.f32.gmra.mxu3 %vm522_vm6, %v648_v4 }
 0x46b   :  { %v910_v13 = vpop.xlane.xlu0 %909 }
 0x46c   :  { %v932_v39 = vsub.f32 %v6132_v37, %v910_v13 }
 0x46d   :  { %v922_v57 = vpop.xlane.xlu1 %921 }
 0x46e   :  { %v950_v8 = vmul.f32 1.442695, %v932_v39  ;;  %v936_v44 = vsub.f32 %v6135_v48, %v922_v57  ;;  %v956_v48 = vmul.f32 1.442695, %v935_v16 }
 0x470   :  { %5125 = vpow2.f32 %v950_v8  ;;  %v958_v10 = vmul.f32 1.442695, %v936_v44 }
 0x472   :  { %5127 = vpow2.f32 %v958_v10 }
 0x474   :  { %v967_v60 = vpop.xlane.xlu0 %966 }
 0x475   :  { %5129 = vrcp.f32 %v967_v60 }
 0x476   :  { %v6223_v51 = vpop.eup %5125  ;;  %5131 = vpow2.f32 %v952_v21  ;;  %v621_v3 = vpop.xlane.xlu1 %620 }
 0x477   :  { %v980_v37 = vsel %vm522_vm6, %v6223_v51, 0.0  ;;  %5133 = vrcp.f32 %v970_v43 }
 0x478   :  { %v6228_v52 = vpop.eup %5127  ;;  %981 = vadd.xlane.f32.xlu1 %v980_v37  ;;  %5135 = vpow2.f32 %v956_v48 }
 0x479   :  { %v992_v2 = vsel %vm522_vm6, %v6228_v52, 0.0 }
 0x47a   :  { %993 = vadd.xlane.f32.xlu2 %v992_v2 }
 0x47b   :  { %v5130_v55 = vpop.eup %5129 }
 0x47c   :  { %v6232_v12 = vpop.eup %5131  ;;  %v916_v61 = vpop.xlane.xlu0 %915  ;;  %v1011_v41 = vmul.f32 %v5130_v55, %v6146_v62 }
 0x47d   :  { %v934_v26 = vsub.f32 %v6156_v5, %v916_v61  ;;  %v983_v23 = vsel %vm522_vm6, %v6232_v12, 0.0  ;;  %v5134_v31 = vpop.eup %5133 }
 0x47e   :  { %4729 = vmatmul.msk.f32.gmra.mxu0 %vm522_vm6, %v1011_v41  ;;  %v6239_v50 = vpop.eup %5135  ;;  %v1012_v32 = vmul.f32 %v5134_v31, %v6115_v40  ;;  %v979_v63 = vpop.xlane.xlu1 %978 }
 0x47f   :  { %v954_v28 = vmul.f32 1.442695, %v934_v26  ;;  %v989_v5 = vsel %vm522_vm6, %v6239_v50, 0.0 }
 0x480   :  { %984 = vadd.xlane.f32.xlu1 %v983_v23 }
 0x481   :  { %5137 = vpow2.f32 %v954_v28 }
 0x484   :  { %v615_v29 = vpop.xlane.xlu0 %614 }
 0x485   :  { %5139 = vrcp.f32 %v615_v29 }
 0x486   :  { %4730 = vmatmul.msk.f32.gmra.mxu0 %vm522_vm6, %v1012_v32 }
 0x487   :  { %v6243_v62 = vpop.eup %5137 }
 0x488   :  { %990 = vadd.xlane.f32.xlu1 %v989_v5  ;;  %v986_v33 = vsel %vm522_vm6, %v6243_v62, 0.0 }
 0x489   :  { %987 = vadd.xlane.f32.xlu0 %v986_v33  ;;  %v157_v33 = vld [vmem:[%s8183_s9 + $0x8] sm:$0xff] }
 0x48b   :  { %v5140_v15 = vpop.eup %5139 }
 0x48c   :  { %v976_v43 = vpop.xlane.xlu0 %975  ;;  %v649_v45 = vmul.f32 %v5140_v15, %v6166_v20  ;;  %v156_v15 = vld [vmem:[%s8183_s9] sm:$0xff] }
 0x48e   :  { %4707 = vmatmul.msk.f32.gmra.mxu3 %vm522_vm6, %v649_v45 }
 0x491   :  { %v973_v40 = vpop.xlane.xlu2 %972 }
 0x492   :  { %5141 = vrcp.f32 %v973_v40 }
 0x494   :  { %v618_v24 = vpop.xlane.xlu0 %617 }
 0x495   :  { %5143 = vrcp.f32 %v618_v24 }
 0x496   :  { %5145 = vrcp.f32 %v976_v43 }
 0x497   :  { %5147 = vrcp.f32 %v621_v3 }
 0x498   :  { %v5142_v38 = vpop.eup %5141  ;;  %5149 = vrcp.f32 %v979_v63 }
 0x499   :  { %v1013_v6 = vmul.f32 %v5142_v38, %v6175_v19 }
 0x49b   :  { %v5144_v36 = vpop.eup %5143  ;;  %4731 = vmatmul.msk.f32.gmra.mxu0 %vm522_vm6, %v1013_v6 }
 0x49c   :  { %v925_v58 = vpop.xlane.xlu0 %924  ;;  %v650_v0 = vmul.f32 %v5144_v36, %v6177_v46  ;;  %v5146_v47 = vpop.eup %5145 }
 0x49d   :  { %v937_v20 = vsub.f32 %v6185_v59, %v925_v58  ;;  %v5148_v13 = vpop.eup %5147  ;;  %v1014_v39 = vmul.f32 %v5146_v47, %v6171_v56 }
 0x49e   :  { %4708 = vmatmul.msk.f32.gmra.mxu3 %vm522_vm6, %v650_v0  ;;  %v651_v57 = vmul.f32 %v5148_v13, %v6148_v53  ;;  %v5150_v11 = vpop.eup %5149 }
 0x49f   :  { %v960_v4 = vmul.f32 1.442695, %v937_v20  ;;  %v1015_v8 = vmul.f32 %v5150_v11, %v6158_v49 }
 0x4a1   :  { %5151 = vpow2.f32 %v960_v4 }
 0x4a3   :  { %4732 = vmatmul.msk.f32.gmra.mxu0 %vm522_vm6, %v1014_v39 }
 0x4a4   :  { %v624_v19 = vpop.xlane.xlu0 %623 }
 0x4a5   :  { %5153 = vrcp.f32 %v624_v19 }
 0x4a6   :  { %4709 = vmatmul.msk.f32.gmra.mxu3 %vm522_vm6, %v651_v57 }
 0x4a7   :  { %v5152_v46 = vpop.eup %5151 }
 0x4a8   :  { %v995_v59 = vsel %vm522_vm6, %v5152_v46, 0.0  ;;  %v630_v53 = vpop.xlane.xlu2 %629 }
 0x4a9   :  { %996 = vadd.xlane.f32.xlu0 %v995_v59 }
 0x4ab   :  { %v5154_v44 = vpop.eup %5153  ;;  %4733 = vmatmul.msk.f32.gmra.mxu0 %vm522_vm6, %v1015_v8 }
 0x4ac   :  { %v627_v10 = vpop.xlane.xlu0 %626  ;;  %v652_v56 = vmul.f32 %v5154_v44, %v6191_v7 }
 0x4ad   :  { %5155 = vrcp.f32 %v627_v10 }
 0x4ae   :  { %4710 = vmatmul.msk.f32.gmra.mxu3 %vm522_vm6, %v652_v56  ;;  %5157 = vrcp.f32 %v630_v53 }
 0x4b3   :  { %v5156_v21 = vpop.eup %5155 }
 0x4b4   :  { %v653_v60 = vmul.f32 %v5156_v21, %v6201_v35  ;;  %v5158_v16 = vpop.eup %5157 }
 0x4b5   :  { %v654_v37 = vmul.f32 %v5158_v16, %v6197_v54 }
 0x4b6   :  { %4711 = vmatmul.msk.f32.gmra.mxu3 %vm522_vm6, %v653_v60 }
 0x4be   :  { %4712 = vmatmul.msk.f32.gmra.mxu3 %vm522_vm6, %v654_v37 }
 0x4c1   :  { %v717_v40 = vpop.f32.mrf.mxu0 }
 0x4c2   :  { %v753_v58 = vmul.f32 %v5880_v1, %v717_v40 }
 0x4c9   :  { %v720_v6 = vpop.f32.mrf.mxu0 }
 0x4ca   :  { %v754_v57 = vmul.f32 %v5880_v1, %v720_v6 }
 0x4d1   :  { %v723_v47 = vpop.f32.mrf.mxu0 }
 0x4d2   :  { %v755_v21 = vmul.f32 %v5880_v1, %v723_v47  ;;  %v5037_v47 = vld [vmem:[%s8184_s10] ss:$0 sm:$0xff] }
 0x4d5   :  { %v726_v41 = vpop.f32.mrf.mxu3 }
 0x4db   :  { %v1084_v10 = vpop.f32.mrf.mxu0 }
 0x4dd   :  { %v729_v31 = vpop.f32.mrf.mxu3 }
 0x4de   :  { %v757_v39 = vmul.f32 %v5897_v9, %v729_v31 }
 0x4ea   :  { %v732_v5 = vpop.f32.mrf.mxu3 }
 0x4eb   :  { %v982_v49 = vpop.xlane.xlu1 %981  ;;  %v758_v56 = vmul.f32 %v5897_v9, %v732_v5 }
 0x4ec   :  { %5159 = vrcp.f32 %v982_v49 }
 0x4ed   :  { %v994_v23 = vpop.xlane.xlu2 %993  ;;  %v761_v16 = vadd.f32 %v758_v56, %v755_v21 }
 0x4f2   :  { %v5160_v2 = vpop.eup %5159 }
 0x4f3   :  { %v985_v48 = vpop.xlane.xlu1 %984  ;;  %v1016_v7 = vmul.f32 %v5160_v2, %v6223_v51 }
 0x4f4   :  { %5161 = vrcp.f32 %v985_v48 }
 0x4f5   :  { %4734 = vmatmul.msk.f32.gmra.mxu0 %vm522_vm6, %v1016_v7 }
 0x4fa   :  { %v5162_v55 = vpop.eup %5161 }
 0x4fb   :  { %v1017_v61 = vmul.f32 %v5162_v55, %v6232_v12  ;;  %v991_v54 = vpop.xlane.xlu1 %990  ;;  %v159_v12 = vld [vmem:[%s8183_s9 + $0x18] sm:$0xff]  ;;  %v1087_v48 = vpop.f32.mrf.mxu0 }
 0x4fc   :  { %v988_v35 = vpop.xlane.xlu0 %987  ;;  %1171 = vmatpush.msrb.mxu3 %v159_v12 }
 0x4fd   :  { %5163 = vrcp.f32 %v988_v35  ;;  %4735 = vmatmul.msk.f32.gmra.mxu0 %vm522_vm6, %v1017_v61 }
 0x4fe   :  { %5165 = vrcp.f32 %v991_v54 }
 0x4ff   :  { %5167 = vrcp.f32 %v994_v23  ;;  %v5497_v23 = vld [vmem:[%s8212_s23] ss:$0 sm:$0xff] }
 0x503   :  { %v5164_v26 = vpop.eup %5163  ;;  %v1090_v55 = vpop.f32.mrf.mxu0 }
 0x504   :  { %v1018_v28 = vmul.f32 %v5164_v26, %v6243_v62  ;;  %v5166_v51 = vpop.eup %5165  ;;  %v158_v62 = vld [vmem:[%s8183_s9 + $0x10] sm:$0xff]  ;;  %v1122_v6 = vmul.f32 %v5497_v23, %v1090_v55 }
 0x505   :  { %v1019_v29 = vmul.f32 %v5166_v51, %v6239_v50  ;;  %v5168_v32 = vpop.eup %5167  ;;  %1172 = vmatpush.msrb.mxu3 %v158_v62  ;;  %v1120_v51 = vmul.f32 %v5497_v23, %v1084_v10  ;;  %v5498_v62 = vld [vmem:[%s8212_s23 + $0x1] ss:$0 sm:$0xff] }
 0x506   :  { %4736 = vmatmul.msk.f32.gmra.mxu0 %vm522_vm6, %v1018_v28  ;;  %v1020_v50 = vmul.f32 %v5168_v32, %v6228_v52  ;;  %v756_v52 = vmul.f32 %v5897_v9, %v726_v41 }
 0x507   :  { %1173 = vmatpush.msrb.mxu3 %v157_v33 }
 0x508   :  { %v759_v63 = vadd.f32 %v756_v52, %v753_v58 }
 0x509   :  { %1174 = vmatpush.msrb.mxu3 %v156_v15  ;;  %v1121_v15 = vmul.f32 %v5497_v23, %v1087_v48 }
 0x50e   :  { %4737 = vmatmul.msk.f32.gmra.mxu0 %vm522_vm6, %v1019_v29 }
 0x511   :  { %v735_v43 = vpop.f32.mrf.mxu3 }
 0x512   :  { %v762_v0 = vmul.f32 %v5921_v17, %v735_v43 }
 0x514   :  { %v765_v4 = vadd.f32 %v762_v0, %v759_v63 }
 0x516   :  { %4738 = vmatmul.msk.f32.gmra.mxu0 %vm522_vm6, %v1020_v50 }
 0x518   :  { %v1093_v61 = vpop.f32.mrf.mxu0 }
 0x519   :  { %v1123_v28 = vmul.f32 %v5897_v9, %v1093_v61 }
 0x51b   :  { %v1126_v29 = vadd.f32 %v1123_v28, %v1120_v51 }
 0x51c   :  { %v997_v45 = vpop.xlane.xlu0 %996 }
 0x51d   :  { %5169 = vrcp.f32 %v997_v45 }
 0x520   :  { %v1096_v35 = vpop.f32.mrf.mxu0 }
 0x521   :  { %v738_v3 = vpop.f32.mrf.mxu3  ;;  %v1124_v33 = vmul.f32 %v5498_v62, %v1096_v35 }
 0x522   :  { %v763_v11 = vmul.f32 %v5921_v17, %v738_v3 }
 0x523   :  { %v5170_v24 = vpop.eup %5169  ;;  %v1127_v43 = vadd.f32 %v1124_v33, %v1121_v15 }
 0x524   :  { %v1021_v38 = vmul.f32 %v5170_v24, %v5152_v46  ;;  %v760_v46 = vadd.f32 %v757_v39, %v754_v57 }
 0x526   :  { %4739 = vmatmul.msk.f32.gmra.mxu0 %vm522_vm6, %v1021_v38  ;;  %v766_v8 = vadd.f32 %v763_v11, %v760_v46 }
 0x528   :  { %v1099_v41 = vpop.f32.mrf.mxu0 }
 0x529   :  { %v741_v36 = vpop.f32.mrf.mxu3  ;;  %v1125_v38 = vmul.f32 %v5498_v62, %v1099_v41 }
 0x52a   :  { %v764_v60 = vmul.f32 %v5921_v17, %v741_v36  ;;  %v5499_v36 = vld [vmem:[%s8212_s23 + $0x2] ss:$0 sm:$0xff] }
 0x52b   :  { %v1128_v58 = vadd.f32 %v1125_v38, %v1122_v6  ;;  %v164_v6 = vld [vmem:[%s8187_s13 + $0x8] sm:$0xff] }
 0x52c   :  { %v767_v49 = vadd.f32 %v764_v60, %v761_v16 }
 0x531   :  { %v744_v20 = vpop.f32.mrf.mxu3 }
 0x532   :  { %v768_v13 = vmul.f32 %v5944_v27, %v744_v20 }
 0x534   :  { %v771_v19 = vadd.f32 %v768_v13, %v765_v4 }
 0x536   :  { %4740 = vmatmul.msk.f32.vlgmr.msrb.gmra.mxu3 %vm177_vm1, %v771_v19 }
 0x539   :  { %v747_v59 = vpop.f32.mrf.mxu3 }
 0x53a   :  { %v769_v44 = vmul.f32 %v5944_v27, %v747_v59 }
 0x53c   :  { %v772_v53 = vadd.f32 %v769_v44, %v766_v8 }
 0x53e   :  { %4741 = vmatmul.msk.f32.gmra.mxu3 %vm177_vm1, %v772_v53 }
 0x541   :  { %v750_v37 = vpop.f32.mrf.mxu3 }
 0x542   :  { %v770_v2 = vmul.f32 %v5944_v27, %v750_v37 }
 0x544   :  { %v773_v7 = vadd.f32 %v770_v2, %v767_v49 }
 0x546   :  { %4742 = vmatmul.msk.f32.gmra.mxu3 %vm177_vm1, %v773_v7 }
 0x572   :  { %v1102_v54 = vpop.f32.mrf.mxu0 }
 0x573   :  { %v1129_v31 = vmul.f32 %v5921_v17, %v1102_v54 }
 0x575   :  { %v1132_v32 = vadd.f32 %v1129_v31, %v1126_v29 }
 0x57a   :  { %v1105_v26 = vpop.f32.mrf.mxu0 }
 0x57b   :  { %v1130_v9 = vmul.f32 %v5921_v17, %v1105_v26 }
 0x57d   :  { %v1133_v40 = vadd.f32 %v1130_v9, %v1127_v43 }
 0x583   :  { %v1108_v1 = vpop.f32.mrf.mxu0 }
 0x584   :  { %v1131_v52 = vmul.f32 %v5499_v36, %v1108_v1 }
 0x586   :  { %v1134_v17 = vadd.f32 %v1131_v52, %v1128_v58  ;;  %v163_v52 = vld [vmem:[%s8187_s13] sm:$0xff] }
 0x58b   :  { %v1111_v12 = vpop.f32.mrf.mxu0 }
 0x58c   :  { %v1135_v5 = vmul.f32 %v5944_v27, %v1111_v12 }
 0x58e   :  { %v1138_v50 = vadd.f32 %v1135_v5, %v1132_v32 }
 0x590   :  { %4743 = vmatmul.msk.f32.gmra.mxu3 %vm177_vm1, %v1138_v50 }
 0x593   :  { %v1114_v45 = vpop.f32.mrf.mxu0 }
 0x594   :  { %v1136_v3 = vmul.f32 %v5944_v27, %v1114_v45  ;;  %v166_v45 = vld [vmem:[%s8187_s13 + $0x18] sm:$0xff] }
 0x595   :  { %1392 = vmatpush.msra.mxu2 %v166_v45 }
 0x596   :  { %v1139_v24 = vadd.f32 %v1136_v3, %v1133_v40 }
 0x598   :  { %4744 = vmatmul.msk.f32.gmra.mxu3 %vm177_vm1, %v1139_v24  ;;  %v165_v24 = vld [vmem:[%s8187_s13 + $0x10] sm:$0xff] }
 0x599   :  { %1393 = vmatpush.msra.mxu2 %v165_v24 }
 0x59b   :  { %1394 = vmatpush.msra.mxu2 %v164_v6 }
 0x59d   :  { %1395 = vmatpush.msra.mxu2 %v163_v52 }
 0x5a3   :  { %v1117_v0 = vpop.f32.mrf.mxu0 }
 0x5a4   :  { %v1137_v63 = vmul.f32 %v5944_v27, %v1117_v0 }
 0x5a6   :  { %v1140_v20 = vadd.f32 %v1137_v63, %v1134_v17 }
 0x5a8   :  { %4745 = vmatmul.msk.f32.gmra.mxu3 %vm177_vm1, %v1140_v20 }
 0x5b9   :  { %v1176_v4 = vpop.f32.mrf.mxu3 }
 0x5ba   :  { %v1194_v13 = vadd.f32 %v1176_v4, %v5702_v14 }
 0x5bc   :  { %v6329_v39 = vadd.f32 %v5037_v47, %v1194_v13 }
 0x5be   :  { %v1209_v19 = vsel %vm177_vm1, %v6329_v39, 0.0 }
 0x5bf   :  { %1210 = vadd.xlane.f32.xlu1 %v1209_v19 }
 0x5c1   :  { %v1179_v57 = vpop.f32.mrf.mxu3 }
 0x5c2   :  { %v1195_v11 = vadd.f32 %v1179_v57, %v5709_v18 }
 0x5c4   :  { %v6334_v27 = vadd.f32 %v5037_v47, %v1195_v11 }
 0x5c6   :  { %v1212_v46 = vsel %vm177_vm1, %v6334_v27, 0.0 }
 0x5c7   :  { %1213 = vadd.xlane.f32.xlu2 %v1212_v46 }
 0x5c9   :  { %v1182_v59 = vpop.f32.mrf.mxu3 }
 0x5ca   :  { %v1196_v8 = vadd.f32 %v1182_v59, %v5721_v25 }
 0x5cc   :  { %v6339_v44 = vadd.f32 %v5037_v47, %v1196_v8 }
 0x5ce   :  { %v1215_v14 = vsel %vm177_vm1, %v6339_v44, 0.0 }
 0x5cf   :  { %1216 = vadd.xlane.f32.xlu0 %v1215_v14 }
 0x613   :  { %v1185_v10 = vpop.f32.mrf.mxu3 }
 0x614   :  { %v1197_v56 = vadd.f32 %v1185_v10, %v5730_v30 }
 0x616   :  { %v6344_v53 = vadd.f32 %v5037_v47, %v1197_v56 }
 0x618   :  { %v1218_v18 = vsel %vm177_vm1, %v6344_v53, 0.0 }
 0x619   :  { %1219 = vadd.xlane.f32.xlu1 %v1218_v18 }
 0x61b   :  { %v1188_v21 = vpop.f32.mrf.mxu3 }
 0x61c   :  { %v1198_v60 = vadd.f32 %v1188_v21, %v5737_v34  ;;  %v6418_v21 = vld [vmem:[%s8185_s11] ss:$0 sm:$0xff] }
 0x61e   :  { %v6349_v16 = vadd.f32 %v5037_v47, %v1198_v60 }
 0x620   :  { %v1221_v25 = vsel %vm177_vm1, %v6349_v16, 0.0 }
 0x621   :  { %1222 = vadd.xlane.f32.xlu2 %v1221_v25 }
 0x62b   :  { %v1191_v37 = vpop.f32.mrf.mxu3 }
 0x62c   :  { %v1199_v49 = vadd.f32 %v1191_v37, %v5716_v22 }
 0x62e   :  { %v6354_v2 = vadd.f32 %v5037_v47, %v1199_v49  ;;  %v6424_v49 = vld [vmem:[%s8186_s12] ss:$0 sm:$0xff] }
 0x630   :  { %v1224_v30 = vsel %vm177_vm1, %v6354_v2, 0.0 }
 0x631   :  { %1225 = vadd.xlane.f32.xlu0 %v1224_v30 }
 0x632   :  { %v1211_v48 = vpop.xlane.xlu1 %1210 }
 0x633   :  { %v1227_v7 = vmul.f32 %v1211_v48, %v5741_v42 }
 0x635   :  { %v6360_v34 = vsub.f32 %v6329_v39, %v1227_v7 }
 0x637   :  { %v1239_v55 = vmul.f32 %v6360_v34, %v6360_v34 }
 0x639   :  { %v1245_v61 = vsel %vm177_vm1, %v1239_v55, 0.0 }
 0x63a   :  { %v1214_v35 = vpop.xlane.xlu2 %1213  ;;  %1246 = vadd.xlane.f32.xlu1 %v1245_v61 }
 0x63b   :  { %v1228_v22 = vmul.f32 %v1214_v35, %v5741_v42 }
 0x63d   :  { %v6367_v41 = vsub.f32 %v6334_v27, %v1228_v22 }
 0x63f   :  { %v1240_v54 = vmul.f32 %v6367_v41, %v6367_v41 }
 0x641   :  { %v1248_v26 = vsel %vm177_vm1, %v1240_v54, 0.0 }
 0x642   :  { %v1217_v1 = vpop.xlane.xlu0 %1216  ;;  %1249 = vadd.xlane.f32.xlu2 %v1248_v26 }
 0x643   :  { %v1229_v28 = vmul.f32 %v1217_v1, %v5741_v42 }
 0x645   :  { %v6374_v23 = vsub.f32 %v6339_v44, %v1229_v28 }
 0x647   :  { %v1241_v51 = vmul.f32 %v6374_v23, %v6374_v23 }
 0x649   :  { %v1251_v31 = vsel %vm177_vm1, %v1241_v51, 0.0 }
 0x64a   :  { %1252 = vadd.xlane.f32.xlu0 %v1251_v31 }
 0x68c   :  { %v1220_v29 = vpop.xlane.xlu1 %1219 }
 0x68d   :  { %v1230_v12 = vmul.f32 %v1220_v29, %v5741_v42 }
 0x68f   :  { %v6381_v32 = vsub.f32 %v6344_v53, %v1230_v12 }
 0x691   :  { %v1242_v5 = vmul.f32 %v6381_v32, %v6381_v32 }
 0x693   :  { %v1254_v62 = vsel %vm177_vm1, %v1242_v5, 0.0 }
 0x694   :  { %1255 = vadd.xlane.f32.xlu1 %v1254_v62  ;;  %v1223_v33 = vpop.xlane.xlu2 %1222 }
 0x695   :  { %v1231_v50 = vmul.f32 %v1223_v33, %v5741_v42 }
 0x697   :  { %v6388_v15 = vsub.f32 %v6349_v16, %v1231_v50 }
 0x699   :  { %v1243_v9 = vmul.f32 %v6388_v15, %v6388_v15 }
 0x69b   :  { %v1257_v43 = vsel %vm177_vm1, %v1243_v9, 0.0 }
 0x69c   :  { %1258 = vadd.xlane.f32.xlu2 %v1257_v43 }
 0x6a4   :  { %v1226_v40 = vpop.xlane.xlu0 %1225 }
 0x6a5   :  { %v1232_v3 = vmul.f32 %v1226_v40, %v5741_v42 }
 0x6a7   :  { %v6401_v38 = vsub.f32 %v6354_v2, %v1232_v3 }
 0x6a9   :  { %v1244_v36 = vmul.f32 %v6401_v38, %v6401_v38 }
 0x6ab   :  { %v1260_v58 = vsel %vm177_vm1, %v1244_v36, 0.0 }
 0x6ac   :  { %1261 = vadd.xlane.f32.xlu0 %v1260_v58 }
 0x6ad   :  { %v1247_v0 = vpop.xlane.xlu1 %1246 }
 0x6ae   :  { %v1263_v17 = vmul.f32 %v1247_v0, %v5741_v42 }
 0x6b0   :  { %v1269_v63 = vadd.f32 1e-05, %v1263_v17 }
 0x6b2   :  { %5171 = vrsqrt.f32 %v1269_v63  ;;  %vm1281_vm8 = vweird.f32 %v1269_v63 }
 0x6b5   :  { %v1250_v20 = vpop.xlane.xlu2 %1249 }
 0x6b6   :  { %v1264_v47 = vmul.f32 %v1250_v20, %v5741_v42 }
 0x6b8   :  { %v5172_v4 = vpop.eup %5171  ;;  %v1270_v13 = vadd.f32 1e-05, %v1264_v47 }
 0x6b9   :  { %v1276_v19 = vmul.f32 %v5172_v4, %v1269_v63  ;;  %vm1282_vm7 = vweird.f32 %v5172_v4 }
 0x6ba   :  { %5173 = vrsqrt.f32 %v1270_v13  ;;  %vm1283_vm9 = vmor %vm1281_vm8, %vm1282_vm7  ;;  %vm1291_vm11 = vweird.f32 %v1270_v13 }
 0x6bb   :  { %v1277_v57 = vmul.f32 %v5172_v4, %v1276_v19 }
 0x6bd   :  { %v1278_v11 = vmul.f32 0.5, %v1277_v57  ;;  %v1253_v46 = vpop.xlane.xlu0 %1252 }
 0x6be   :  { %v1265_v59 = vmul.f32 %v1253_v46, %v5741_v42 }
 0x6bf   :  { %v1279_v8 = vsub.f32 1.5, %v1278_v11 }
 0x6c0   :  { %v5174_v14 = vpop.eup %5173  ;;  %v1271_v10 = vadd.f32 1e-05, %v1265_v59 }
 0x6c1   :  { %v1280_v56 = vmul.f32 %v5172_v4, %v1279_v8  ;;  %v1286_v18 = vmul.f32 %v5174_v14, %v1270_v13  ;;  %vm1292_vm10 = vweird.f32 %v5174_v14 }
 0x6c2   :  { %5175 = vrsqrt.f32 %v1271_v10  ;;  %vm1293_vm12 = vmor %vm1291_vm11, %vm1292_vm10  ;;  %vm1301_vm14 = vweird.f32 %v1271_v10 }
 0x6c3   :  { %v1284_v60 = vsel %vm1283_vm9, %v5172_v4, %v1280_v56  ;;  %v1287_v25 = vmul.f32 %v5174_v14, %v1286_v18 }
 0x6c4   :  { %v1335_v37 = vmul.f32 %v1284_v60, %v6360_v34 }
 0x6c5   :  { %v1288_v30 = vmul.f32 0.5, %v1287_v25 }
 0x6c6   :  { %v1344_v48 = vmul.f32 %v6418_v21, %v1335_v37 }
 0x6c7   :  { %v1289_v7 = vsub.f32 1.5, %v1288_v30 }
 0x6c8   :  { %v5176_v55 = vpop.eup %5175  ;;  %v1353_v61 = vadd.f32 %v6424_v49, %v1344_v48 }
 0x6c9   :  { %v1290_v35 = vmul.f32 %v5174_v14, %v1289_v7  ;;  %v1296_v22 = vmul.f32 %v5176_v55, %v1271_v10  ;;  %vm1302_vm13 = vweird.f32 %v5176_v55 }
 0x6ca   :  { %4746 = vmatmul.msk.f32.vlgmr.msra.gmra.mxu2 %vm177_vm1, %v1353_v61  ;;  %vm1303_vm15 = vmor %vm1301_vm14, %vm1302_vm13  ;;  %v6455_v61 = vld [vmem:[%s8188_s14] ss:$0 sm:$0xff] }
 0x6cb   :  { %v1297_v34 = vmul.f32 %v5176_v55, %v1296_v22  ;;  %v1294_v54 = vsel %vm1293_vm12, %v5174_v14, %v1290_v35  ;;  %v175_v22 = vld [vmem:[%s8189_s15 + $0x38] sm:$0xff]  ;;  %vm1571_vm12 = vcmask 523264  }
 0x6cc   :  { %v1336_v26 = vmul.f32 %v1294_v54, %v6367_v41  ;;  %1598 = vmatpush.msra.mxu3 %v175_v22 }
 0x6cd   :  { %v1298_v1 = vmul.f32 0.5, %v1297_v34 }
 0x6ce   :  { %v1345_v28 = vmul.f32 %v6418_v21, %v1336_v26  ;;  %v172_v26 = vld [vmem:[%s8189_s15 + $0x20] sm:$0xff] }
 0x6cf   :  { %v1299_v51 = vsub.f32 1.5, %v1298_v1 }
 0x6d0   :  { %v1354_v31 = vadd.f32 %v6424_v49, %v1345_v28 }
 0x6d1   :  { %v1300_v29 = vmul.f32 %v5176_v55, %v1299_v51  ;;  %v171_v51 = vld [vmem:[%s8189_s15 + $0x18] sm:$0xff] }
 0x6d2   :  { %4747 = vmatmul.msk.f32.gmra.mxu2 %vm177_vm1, %v1354_v31 }
 0x6d3   :  { %v1304_v12 = vsel %vm1303_vm15, %v5176_v55, %v1300_v29 }
 0x6d4   :  { %v1337_v5 = vmul.f32 %v1304_v12, %v6374_v23  ;;  %v170_v12 = vld [vmem:[%s8189_s15 + $0x10] sm:$0xff] }
 0x6d6   :  { %v1346_v62 = vmul.f32 %v6418_v21, %v1337_v5 }
 0x6d8   :  { %v1355_v33 = vadd.f32 %v6424_v49, %v1346_v62  ;;  %v169_v62 = vld [vmem:[%s8189_s15 + $0x8] sm:$0xff] }
 0x6da   :  { %4748 = vmatmul.msk.f32.gmra.mxu2 %vm177_vm1, %v1355_v33 }
 0x707   :  { %v1256_v41 = vpop.xlane.xlu1 %1255 }
 0x708   :  { %v1266_v50 = vmul.f32 %v1256_v41, %v5741_v42  ;;  %v168_v41 = vld [vmem:[%s8189_s15] sm:$0xff] }
 0x70a   :  { %v1272_v9 = vadd.f32 1e-05, %v1266_v50 }
 0x70c   :  { %5177 = vrsqrt.f32 %v1272_v9  ;;  %vm1311_vm2 = vweird.f32 %v1272_v9 }
 0x70f   :  { %v1259_v43 = vpop.xlane.xlu2 %1258 }
 0x710   :  { %v1267_v45 = vmul.f32 %v1259_v43, %v5741_v42 }
 0x712   :  { %v5178_v40 = vpop.eup %5177  ;;  %v1273_v3 = vadd.f32 1e-05, %v1267_v45 }
 0x713   :  { %v1306_v24 = vmul.f32 %v5178_v40, %v1272_v9  ;;  %vm1312_vm0 = vweird.f32 %v5178_v40 }
 0x714   :  { %5179 = vrsqrt.f32 %v1273_v3  ;;  %vm1313_vm3 = vmor %vm1311_vm2, %vm1312_vm0  ;;  %vm1321_vm5 = vweird.f32 %v1273_v3 }
 0x715   :  { %v1307_v6 = vmul.f32 %v5178_v40, %v1306_v24 }
 0x717   :  { %v1308_v23 = vmul.f32 0.5, %v1307_v6 }
 0x719   :  { %v1309_v36 = vsub.f32 1.5, %v1308_v23 }
 0x71a   :  { %v5180_v52 = vpop.eup %5179 }
 0x71b   :  { %v1310_v58 = vmul.f32 %v5178_v40, %v1309_v36  ;;  %v1316_v0 = vmul.f32 %v5180_v52, %v1273_v3  ;;  %vm1322_vm4 = vweird.f32 %v5180_v52 }
 0x71c   :  { %vm1323_vm7 = vmor %vm1321_vm5, %vm1322_vm4 }
 0x71d   :  { %v1317_v17 = vmul.f32 %v5180_v52, %v1316_v0  ;;  %v1314_v63 = vsel %vm1313_vm3, %v5178_v40, %v1310_v58 }
 0x71e   :  { %v1338_v20 = vmul.f32 %v1314_v63, %v6381_v32 }
 0x71f   :  { %v1318_v47 = vmul.f32 0.5, %v1317_v17  ;;  %v1262_v4 = vpop.xlane.xlu0 %1261 }
 0x720   :  { %v1268_v13 = vmul.f32 %v1262_v4, %v5741_v42  ;;  %v1347_v19 = vmul.f32 %v6418_v21, %v1338_v20 }
 0x721   :  { %v1319_v57 = vsub.f32 1.5, %v1318_v47 }
 0x722   :  { %v1274_v11 = vadd.f32 1e-05, %v1268_v13  ;;  %v1356_v46 = vadd.f32 %v6424_v49, %v1347_v19 }
 0x723   :  { %v1320_v59 = vmul.f32 %v5180_v52, %v1319_v57 }
 0x724   :  { %5181 = vrsqrt.f32 %v1274_v11  ;;  %4749 = vmatmul.msk.f32.gmra.mxu2 %vm177_vm1, %v1356_v46  ;;  %vm1331_vm9 = vweird.f32 %v1274_v11 }
 0x725   :  { %v1324_v8 = vsel %vm1323_vm7, %v5180_v52, %v1320_v59 }
 0x726   :  { %v1339_v32 = vmul.f32 %v1324_v8, %v6388_v15 }
 0x728   :  { %v1348_v14 = vmul.f32 %v6418_v21, %v1339_v32 }
 0x72a   :  { %v5182_v10 = vpop.eup %5181  ;;  %v1357_v56 = vadd.f32 %v6424_v49, %v1348_v14 }
 0x72b   :  { %v1326_v18 = vmul.f32 %v5182_v10, %v1274_v11  ;;  %vm1332_vm8 = vweird.f32 %v5182_v10 }
 0x72c   :  { %4750 = vmatmul.msk.f32.gmra.mxu2 %vm177_vm1, %v1357_v56  ;;  %vm1333_vm10 = vmor %vm1331_vm9, %vm1332_vm8 }
 0x72d   :  { %v1327_v60 = vmul.f32 %v5182_v10, %v1326_v18 }
 0x72f   :  { %v1328_v25 = vmul.f32 0.5, %v1327_v60 }
 0x731   :  { %v1329_v37 = vsub.f32 1.5, %v1328_v25 }
 0x733   :  { %v1330_v30 = vmul.f32 %v5182_v10, %v1329_v37 }
 0x735   :  { %v1334_v48 = vsel %vm1333_vm10, %v5182_v10, %v1330_v30 }
 0x736   :  { %v1340_v7 = vmul.f32 %v1334_v48, %v6401_v38  ;;  %v174_v38 = vld [vmem:[%s8189_s15 + $0x30] sm:$0xff] }
 0x737   :  { %1599 = vmatpush.msra.mxu3 %v174_v38 }
 0x738   :  { %v1349_v15 = vmul.f32 %v6418_v21, %v1340_v7 }
 0x73a   :  { %v1358_v55 = vadd.f32 %v6424_v49, %v1349_v15  ;;  %v173_v49 = vld [vmem:[%s8189_s15 + $0x28] sm:$0xff] }
 0x73b   :  { %1600 = vmatpush.msra.mxu3 %v173_v49 }
 0x73c   :  { %4751 = vmatmul.msk.f32.gmra.mxu2 %vm177_vm1, %v1358_v55 }
 0x73d   :  { %1601 = vmatpush.msra.mxu3 %v172_v26 }
 0x73f   :  { %1602 = vmatpush.msra.mxu3 %v171_v51 }
 0x741   :  { %1603 = vmatpush.msra.mxu3 %v170_v12 }
 0x743   :  { %1604 = vmatpush.msra.mxu3 %v169_v62 }
 0x745   :  { %1605 = vmatpush.msra.mxu3 %v168_v41 }
 0x74d   :  { %v1397_v35 = vpop.f32.mrf.mxu2 }
 0x74e   :  { %v6461_v34 = vadd.f32 %v6455_v61, %v1397_v35 }
 0x750   :  { %v6467_v21 = vmul.f32 0.70710677, %v6461_v34  ;;  %v1415_v62 = vmul.f32 0.5, %v6461_v34 }
 0x752   :  { %v1427_v54 = vand.u32 2147483647, %v6467_v21  ;;  %vm1541_vm11 = vcmp.ge.f32.partialorder %v6467_v21, 0.0 }
 0x754   :  { %v1433_v1 = vmul.f32 0.3275911, %v1427_v54  ;;  %v1505_v45 = vsub.f32 0.0, %v1427_v54 }
 0x755   :  { %v1400_v28 = vpop.f32.mrf.mxu2 }
 0x756   :  { %v1439_v31 = vadd.f32 1.0, %v1433_v1  ;;  %v6480_v29 = vadd.f32 %v6455_v61, %v1400_v28  ;;  %v1511_v36 = vmul.f32 %v1505_v45, %v1427_v54 }
 0x758   :  { %5183 = vrcp.f32 %v1439_v31  ;;  %v6486_v5 = vmul.f32 0.70710677, %v6480_v29  ;;  %v1517_v20 = vmul.f32 1.442695, %v1511_v36 }
 0x75a   :  { %v1428_v33 = vand.u32 2147483647, %v6486_v5  ;;  %vm1542_vm13 = vcmp.ge.f32.partialorder %v6486_v5, 0.0 }
 0x75c   :  { %v1434_v50 = vmul.f32 0.3275911, %v1428_v33  ;;  %v1506_v47 = vsub.f32 0.0, %v1428_v33 }
 0x75d   :  { %v1403_v9 = vpop.f32.mrf.mxu2 }
 0x75e   :  { %v5184_v43 = vpop.eup %5183  ;;  %v1440_v40 = vadd.f32 1.0, %v1434_v50  ;;  %v6496_v3 = vadd.f32 %v6455_v61, %v1403_v9  ;;  %v1512_v46 = vmul.f32 %v1506_v47, %v1428_v33 }
 0x75f   :  { %v1451_v24 = vmul.f32 1.0614054, %v5184_v43 }
 0x760   :  { %5185 = vrcp.f32 %v1440_v40  ;;  %v6499_v6 = vmul.f32 0.70710677, %v6496_v3  ;;  %v1519_v56 = vmul.f32 1.442695, %v1512_v46  ;;  %v1417_v47 = vmul.f32 0.5, %v6496_v3 }
 0x761   :  { %v1457_v23 = vadd.f32 -1.4531521, %v1451_v24 }
 0x762   :  { %v1429_v52 = vand.u32 2147483647, %v6499_v6  ;;  %vm1543_vm14 = vcmp.ge.f32.partialorder %v6499_v6, 0.0 }
 0x763   :  { %v1463_v58 = vmul.f32 %v5184_v43, %v1457_v23 }
 0x764   :  { %v1435_v0 = vmul.f32 0.3275911, %v1429_v52  ;;  %v1507_v18 = vsub.f32 0.0, %v1429_v52 }
 0x765   :  { %v1469_v17 = vadd.f32 1.4214138, %v1463_v58 }
 0x766   :  { %v5186_v63 = vpop.eup %5185  ;;  %v1441_v4 = vadd.f32 1.0, %v1435_v0  ;;  %v1513_v55 = vmul.f32 %v1507_v18, %v1429_v52  ;;  %v1416_v52 = vmul.f32 0.5, %v6480_v29 }
 0x767   :  { %v1475_v13 = vmul.f32 %v5184_v43, %v1469_v17  ;;  %v1452_v19 = vmul.f32 1.0614054, %v5186_v63 }
 0x768   :  { %5187 = vrcp.f32 %v1441_v4  ;;  %v1521_v1 = vmul.f32 1.442695, %v1513_v55 }
 0x769   :  { %v1481_v57 = vadd.f32 -0.28449672, %v1475_v13  ;;  %v1458_v11 = vadd.f32 -1.4531521, %v1452_v19  ;;  %5189 = vpow2.f32 %v1517_v20 }
 0x76a   :  { %5191 = vpow2.f32 %v1519_v56 }
 0x76b   :  { %v1487_v59 = vmul.f32 %v5184_v43, %v1481_v57  ;;  %v1464_v8 = vmul.f32 %v5186_v63, %v1458_v11  ;;  %5193 = vpow2.f32 %v1521_v1 }
 0x76d   :  { %v1493_v32 = vadd.f32 0.2548296, %v1487_v59  ;;  %v1470_v14 = vadd.f32 1.4214138, %v1464_v8 }
 0x76e   :  { %v5188_v10 = vpop.eup %5187 }
 0x76f   :  { %v1499_v60 = vmul.f32 %v5184_v43, %v1493_v32  ;;  %v1476_v25 = vmul.f32 %v5186_v63, %v1470_v14  ;;  %v1453_v37 = vmul.f32 1.0614054, %v5188_v10  ;;  %v5190_v30 = vpop.eup %5189 }
 0x770   :  { %v5192_v12 = vpop.eup %5191 }
 0x771   :  { %v1529_v48 = vmul.f32 %v5190_v30, %v1499_v60  ;;  %v1482_v7 = vadd.f32 -0.28449672, %v1476_v25  ;;  %v1459_v15 = vadd.f32 -1.4531521, %v1453_v37  ;;  %v5194_v36 = vpop.eup %5193 }
 0x773   :  { %v1535_v35 = vsub.f32 1.0, %v1529_v48  ;;  %v1488_v22 = vmul.f32 %v5186_v63, %v1482_v7  ;;  %v1465_v38 = vmul.f32 %v5188_v10, %v1459_v15 }
 0x775   :  { %v1547_v49 = vsub.f32 0.0, %v1535_v35  ;;  %v1494_v54 = vadd.f32 0.2548296, %v1488_v22  ;;  %v1471_v26 = vadd.f32 1.4214138, %v1465_v38 }
 0x777   :  { %v1553_v28 = vsel %vm1541_vm11, %v1535_v35, %v1547_v49  ;;  %v1500_v51 = vmul.f32 %v5186_v63, %v1494_v54  ;;  %v1477_v31 = vmul.f32 %v5188_v10, %v1471_v26 }
 0x778   :  { %v1559_v33 = vadd.f32 1.0, %v1553_v28 }
 0x779   :  { %v1530_v41 = vmul.f32 %v5192_v12, %v1500_v51  ;;  %v1483_v50 = vadd.f32 -0.28449672, %v1477_v31 }
 0x77a   :  { %v1565_v9 = vmul.f32 %v1559_v33, %v1415_v62 }
 0x77b   :  { %v1536_v43 = vsub.f32 1.0, %v1530_v41  ;;  %v1489_v45 = vmul.f32 %v5188_v10, %v1483_v50 }
 0x77c   :  { %4752 = vmatmul.msk.f32.vlgmr.msra.gmra.mxu3 %vm1571_vm12, %v1565_v9 }
 0x77d   :  { %v1548_v40 = vsub.f32 0.0, %v1536_v43  ;;  %v1495_v24 = vadd.f32 0.2548296, %v1489_v45 }
 0x77f   :  { %v1554_v21 = vsel %vm1542_vm13, %v1536_v43, %v1548_v40  ;;  %v1501_v23 = vmul.f32 %v5188_v10, %v1495_v24 }
 0x780   :  { %v1560_v34 = vadd.f32 1.0, %v1554_v21 }
 0x781   :  { %v1531_v58 = vmul.f32 %v5194_v36, %v1501_v23 }
 0x782   :  { %v1566_v0 = vmul.f32 %v1560_v34, %v1416_v52 }
 0x783   :  { %v1537_v17 = vsub.f32 1.0, %v1531_v58 }
 0x784   :  { %4753 = vmatmul.msk.f32.gmra.mxu3 %vm1571_vm12, %v1566_v0 }
 0x785   :  { %v1549_v63 = vsub.f32 0.0, %v1537_v17 }
 0x787   :  { %v1555_v20 = vsel %vm1543_vm14, %v1537_v17, %v1549_v63 }
 0x788   :  { %v1561_v4 = vadd.f32 1.0, %v1555_v20 }
 0x78a   :  { %v1567_v13 = vmul.f32 %v1561_v4, %v1417_v47 }
 0x78c   :  { %4754 = vmatmul.msk.f32.gmra.mxu3 %vm1571_vm12, %v1567_v13 }
 0x7a7   :  { %v1406_v5 = vpop.f32.mrf.mxu2 }
 0x7a8   :  { %v1407_v19 = vadd.f32 %v6455_v61, %v1406_v5 }
 0x7aa   :  { %v1424_v29 = vmul.f32 0.70710677, %v1407_v19  ;;  %v1418_v20 = vmul.f32 0.5, %v1407_v19 }
 0x7ac   :  { %v1430_v57 = vand.u32 2147483647, %v1424_v29  ;;  %vm1544_vm15 = vcmp.ge.f32.partialorder %v1424_v29, 0.0 }
 0x7ae   :  { %v1436_v11 = vmul.f32 0.3275911, %v1430_v57  ;;  %v1508_v10 = vsub.f32 0.0, %v1430_v57 }
 0x7af   :  { %v1409_v46 = vpop.f32.mrf.mxu2 }
 0x7b0   :  { %v1442_v59 = vadd.f32 1.0, %v1436_v11  ;;  %v6513_v8 = vadd.f32 %v6455_v61, %v1409_v46  ;;  %v1514_v25 = vmul.f32 %v1508_v10, %v1430_v57 }
 0x7b2   :  { %5195 = vrcp.f32 %v1442_v59  ;;  %v6516_v6 = vmul.f32 0.70710677, %v6513_v8  ;;  %v1523_v15 = vmul.f32 1.442695, %v1514_v25  ;;  %v1419_v10 = vmul.f32 0.5, %v6513_v8 }
 0x7b3   :  { %v5041_v8 = vld [vmem:[%s8190_s16] ss:$0 sm:$0xff] }
 0x7b4   :  { %v1431_v3 = vand.u32 2147483647, %v6516_v6  ;;  %vm1545_vm0 = vcmp.ge.f32.partialorder %v6516_v6, 0.0 }
 0x7b6   :  { %v1437_v32 = vmul.f32 0.3275911, %v1431_v3  ;;  %v1509_v55 = vsub.f32 0.0, %v1431_v3 }
 0x7b8   :  { %v5196_v14 = vpop.eup %5195  ;;  %v1443_v56 = vadd.f32 1.0, %v1437_v32  ;;  %v1515_v1 = vmul.f32 %v1509_v55, %v1431_v3 }
 0x7b9   :  { %v1454_v18 = vmul.f32 1.0614054, %v5196_v14 }
 0x7ba   :  { %5197 = vrcp.f32 %v1443_v56  ;;  %v1525_v41 = vmul.f32 1.442695, %v1515_v1 }
 0x7bb   :  { %v1460_v60 = vadd.f32 -1.4531521, %v1454_v18  ;;  %5199 = vpow2.f32 %v1523_v15 }
 0x7bd   :  { %v1466_v37 = vmul.f32 %v5196_v14, %v1460_v60 }
 0x7bf   :  { %v1412_v30 = vpop.f32.mrf.mxu2  ;;  %v1472_v48 = vadd.f32 1.4214138, %v1466_v37 }
 0x7c0   :  { %v5198_v7 = vpop.eup %5197  ;;  %v6520_v35 = vadd.f32 %v6455_v61, %v1412_v30 }
 0x7c1   :  { %v1478_v22 = vmul.f32 %v5196_v14, %v1472_v48  ;;  %v1455_v38 = vmul.f32 1.0614054, %v5198_v7  ;;  %v5200_v61 = vpop.eup %5199 }
 0x7c2   :  { %v1426_v49 = vmul.f32 0.70710677, %v6520_v35  ;;  %v1420_v55 = vmul.f32 0.5, %v6520_v35 }
 0x7c3   :  { %v1484_v54 = vadd.f32 -0.28449672, %v1478_v22  ;;  %v1461_v26 = vadd.f32 -1.4531521, %v1455_v38 }
 0x7c4   :  { %v1432_v28 = vand.u32 2147483647, %v1426_v49  ;;  %vm1546_vm2 = vcmp.ge.f32.partialorder %v1426_v49, 0.0 }
 0x7c5   :  { %v1490_v51 = vmul.f32 %v5196_v14, %v1484_v54  ;;  %v1467_v31 = vmul.f32 %v5198_v7, %v1461_v26 }
 0x7c6   :  { %v1438_v12 = vmul.f32 0.3275911, %v1432_v28  ;;  %v1510_v34 = vsub.f32 0.0, %v1432_v28 }
 0x7c7   :  { %v1496_v62 = vadd.f32 0.2548296, %v1490_v51  ;;  %v1473_v33 = vadd.f32 1.4214138, %v1467_v31 }
 0x7c8   :  { %v1444_v50 = vadd.f32 1.0, %v1438_v12  ;;  %v1516_v5 = vmul.f32 %v1510_v34, %v1432_v28 }
 0x7c9   :  { %v1502_v9 = vmul.f32 %v5196_v14, %v1496_v62  ;;  %v1479_v43 = vmul.f32 %v5198_v7, %v1473_v33 }
 0x7ca   :  { %5201 = vrcp.f32 %v1444_v50  ;;  %v1527_v29 = vmul.f32 1.442695, %v1516_v5 }
 0x7cb   :  { %v1532_v45 = vmul.f32 %v5200_v61, %v1502_v9  ;;  %v1485_v40 = vadd.f32 -0.28449672, %v1479_v43  ;;  %5203 = vpow2.f32 %v1525_v41 }
 0x7cc   :  { %5205 = vpow2.f32 %v1527_v29 }
 0x7cd   :  { %v1538_v24 = vsub.f32 1.0, %v1532_v45  ;;  %v1491_v21 = vmul.f32 %v5198_v7, %v1485_v40 }
 0x7cf   :  { %v1550_v23 = vsub.f32 0.0, %v1538_v24  ;;  %v1497_v36 = vadd.f32 0.2548296, %v1491_v21 }
 0x7d0   :  { %v5202_v52 = vpop.eup %5201 }
 0x7d1   :  { %v1556_v58 = vsel %vm1544_vm15, %v1538_v24, %v1550_v23  ;;  %v1503_v0 = vmul.f32 %v5198_v7, %v1497_v36  ;;  %v1456_v17 = vmul.f32 1.0614054, %v5202_v52  ;;  %v5204_v63 = vpop.eup %5203 }
 0x7d2   :  { %v1562_v47 = vadd.f32 1.0, %v1556_v58  ;;  %v5206_v30 = vpop.eup %5205 }
 0x7d3   :  { %v1533_v4 = vmul.f32 %v5204_v63, %v1503_v0  ;;  %v1462_v13 = vadd.f32 -1.4531521, %v1456_v17 }
 0x7d4   :  { %v1568_v57 = vmul.f32 %v1562_v47, %v1418_v20 }
 0x7d5   :  { %v1539_v11 = vsub.f32 1.0, %v1533_v4  ;;  %v1468_v46 = vmul.f32 %v5202_v52, %v1462_v13 }
 0x7d6   :  { %4755 = vmatmul.msk.f32.gmra.mxu3 %vm1571_vm12, %v1568_v57 }
 0x7d7   :  { %v1551_v59 = vsub.f32 0.0, %v1539_v11  ;;  %v1474_v3 = vadd.f32 1.4214138, %v1468_v46 }
 0x7d9   :  { %v1557_v32 = vsel %vm1545_vm0, %v1539_v11, %v1551_v59  ;;  %v1480_v14 = vmul.f32 %v5202_v52, %v1474_v3 }
 0x7da   :  { %v1563_v56 = vadd.f32 1.0, %v1557_v32 }
 0x7db   :  { %v1486_v19 = vadd.f32 -0.28449672, %v1480_v14 }
 0x7dc   :  { %v1569_v18 = vmul.f32 %v1563_v56, %v1419_v10 }
 0x7dd   :  { %v1492_v60 = vmul.f32 %v5202_v52, %v1486_v19  ;;  %v4763_v19 = vld [vmem:[%s8181_s7 + $0x38] sm:$0xff] }
 0x7de   :  { %4756 = vmatmul.msk.f32.gmra.mxu3 %vm1571_vm12, %v1569_v18  ;;  %1863 = vmatpush.msra.mxu1 %v4763_v19 }
 0x7df   :  { %v1498_v25 = vadd.f32 0.2548296, %v1492_v60 }
 0x7e1   :  { %v1504_v37 = vmul.f32 %v5202_v52, %v1498_v25  ;;  %v4762_v25 = vld [vmem:[%s8181_s7 + $0x30] sm:$0xff] }
 0x7e2   :  { %1864 = vmatpush.msra.mxu1 %v4762_v25 }
 0x7e3   :  { %v1534_v48 = vmul.f32 %v5206_v30, %v1504_v37  ;;  %v4761_v30 = vld [vmem:[%s8181_s7 + $0x28] sm:$0xff] }
 0x7e4   :  { %1865 = vmatpush.msra.mxu1 %v4761_v30 }
 0x7e5   :  { %v1540_v7 = vsub.f32 1.0, %v1534_v48 }
 0x7e7   :  { %v1552_v15 = vsub.f32 0.0, %v1540_v7 }
 0x7e9   :  { %v1558_v6 = vsel %vm1546_vm2, %v1540_v7, %v1552_v15  ;;  %v4760_v7 = vld [vmem:[%s8181_s7 + $0x20] sm:$0xff] }
 0x7ea   :  { %v1564_v22 = vadd.f32 1.0, %v1558_v6  ;;  %1866 = vmatpush.msra.mxu1 %v4760_v7 }
 0x7ec   :  { %v1570_v38 = vmul.f32 %v1564_v22, %v1420_v55 }
 0x7ee   :  { %4757 = vmatmul.msk.f32.gmra.mxu3 %vm1571_vm12, %v1570_v38 }
 0x7ff   :  { %v1607_v54 = vpop.f32.mrf.mxu3 }
 0x800   :  { %v1625_v26 = vadd.f32 %v1607_v54, %v6329_v39 }
 0x802   :  { %v6533_v1 = vadd.f32 %v5041_v8, %v1625_v26 }
 0x804   :  { %v1680_v28 = vsel %vm177_vm1, %v6533_v1, 0.0 }
 0x805   :  { %1681 = vadd.xlane.f32.xlu1 %v1680_v28 }
 0x807   :  { %v1610_v49 = vpop.f32.mrf.mxu3 }
 0x808   :  { %v1626_v35 = vadd.f32 %v1610_v49, %v6334_v27 }
 0x80a   :  { %v6538_v51 = vadd.f32 %v5041_v8, %v1626_v35 }
 0x80c   :  { %v1683_v31 = vsel %vm177_vm1, %v6538_v51, 0.0 }
 0x80d   :  { %1684 = vadd.xlane.f32.xlu2 %v1683_v31 }
 0x80f   :  { %v1613_v12 = vpop.f32.mrf.mxu3 }
 0x810   :  { %v1627_v62 = vadd.f32 %v1613_v12, %v6339_v44 }
 0x812   :  { %v6543_v33 = vadd.f32 %v5041_v8, %v1627_v62 }
 0x814   :  { %v1686_v39 = vsel %vm177_vm1, %v6543_v33, 0.0 }
 0x815   :  { %1687 = vadd.xlane.f32.xlu0 %v1686_v39 }
 0x859   :  { %v1616_v41 = vpop.f32.mrf.mxu3 }
 0x85a   :  { %v1628_v50 = vadd.f32 %v1616_v41, %v6344_v53 }
 0x85c   :  { %v6548_v9 = vadd.f32 %v5041_v8, %v1628_v50 }
 0x85e   :  { %v1689_v27 = vsel %vm177_vm1, %v6548_v9, 0.0 }
 0x85f   :  { %1690 = vadd.xlane.f32.xlu1 %v1689_v27 }
 0x861   :  { %v1619_v43 = vpop.f32.mrf.mxu3 }
 0x862   :  { %v1629_v61 = vadd.f32 %v1619_v43, %v6349_v16  ;;  %v6622_v43 = vld [vmem:[%s8211_s3 + $0x1] ss:$0 sm:$0xff] }
 0x864   :  { %v6553_v45 = vadd.f32 %v5041_v8, %v1629_v61 }
 0x866   :  { %v1692_v44 = vsel %vm177_vm1, %v6553_v45, 0.0 }
 0x867   :  { %1693 = vadd.xlane.f32.xlu2 %v1692_v44 }
 0x871   :  { %v1622_v40 = vpop.f32.mrf.mxu3 }
 0x872   :  { %v1630_v24 = vadd.f32 %v1622_v40, %v6354_v2 }
 0x874   :  { %v6558_v21 = vadd.f32 %v5041_v8, %v1630_v24  ;;  %v6628_v24 = vld [vmem:[%s8180_s6 + $0x1] ss:$0 sm:$0xff] }
 0x876   :  { %v1695_v53 = vsel %vm177_vm1, %v6558_v21, 0.0 }
 0x877   :  { %1696 = vadd.xlane.f32.xlu0 %v1695_v53 }
 0x878   :  { %v1682_v23 = vpop.xlane.xlu1 %1681 }
 0x879   :  { %v1698_v36 = vmul.f32 %v1682_v23, %v5741_v42 }
 0x87b   :  { %v6564_v16 = vsub.f32 %v6533_v1, %v1698_v36 }
 0x87d   :  { %v1710_v52 = vmul.f32 %v6564_v16, %v6564_v16 }
 0x87f   :  { %v1716_v34 = vsel %vm177_vm1, %v1710_v52, 0.0 }
 0x880   :  { %v1685_v58 = vpop.xlane.xlu2 %1684  ;;  %1717 = vadd.xlane.f32.xlu1 %v1716_v34 }
 0x881   :  { %v1699_v2 = vmul.f32 %v1685_v58, %v5741_v42 }
 0x883   :  { %v6571_v0 = vsub.f32 %v6538_v51, %v1699_v2 }
 0x885   :  { %v1711_v17 = vmul.f32 %v6571_v0, %v6571_v0 }
 0x887   :  { %v1719_v63 = vsel %vm177_vm1, %v1711_v17, 0.0 }
 0x888   :  { %1720 = vadd.xlane.f32.xlu2 %v1719_v63  ;;  %v1688_v20 = vpop.xlane.xlu0 %1687 }
 0x889   :  { %v1700_v47 = vmul.f32 %v1688_v20, %v5741_v42 }
 0x88b   :  { %v6578_v4 = vsub.f32 %v6543_v33, %v1700_v47 }
 0x88d   :  { %v1712_v13 = vmul.f32 %v6578_v4, %v6578_v4 }
 0x88f   :  { %v1722_v5 = vsel %vm177_vm1, %v1712_v13, 0.0 }
 0x890   :  { %1723 = vadd.xlane.f32.xlu0 %v1722_v5 }
 0x8d2   :  { %v1691_v57 = vpop.xlane.xlu1 %1690 }
 0x8d3   :  { %v1701_v11 = vmul.f32 %v1691_v57, %v5741_v42 }
 0x8d5   :  { %v6585_v46 = vsub.f32 %v6548_v9, %v1701_v11 }
 0x8d7   :  { %v1713_v59 = vmul.f32 %v6585_v46, %v6585_v46 }
 0x8d9   :  { %v1725_v3 = vsel %vm177_vm1, %v1713_v59, 0.0 }
 0x8da   :  { %1726 = vadd.xlane.f32.xlu1 %v1725_v3  ;;  %v1694_v29 = vpop.xlane.xlu2 %1693 }
 0x8db   :  { %v1702_v32 = vmul.f32 %v1694_v29, %v5741_v42 }
 0x8dd   :  { %v6592_v14 = vsub.f32 %v6553_v45, %v1702_v32 }
 0x8df   :  { %v1714_v10 = vmul.f32 %v6592_v14, %v6592_v14 }
 0x8e1   :  { %v1728_v56 = vsel %vm177_vm1, %v1714_v10, 0.0 }
 0x8e2   :  { %1729 = vadd.xlane.f32.xlu2 %v1728_v56 }
 0x8ea   :  { %v1697_v18 = vpop.xlane.xlu0 %1696 }
 0x8eb   :  { %v1703_v60 = vmul.f32 %v1697_v18, %v5741_v42 }
 0x8ed   :  { %v6605_v37 = vsub.f32 %v6558_v21, %v1703_v60 }
 0x8ef   :  { %v1715_v48 = vmul.f32 %v6605_v37, %v6605_v37 }
 0x8f1   :  { %v1731_v15 = vsel %vm177_vm1, %v1715_v48, 0.0 }
 0x8f2   :  { %1732 = vadd.xlane.f32.xlu0 %v1731_v15 }
 0x8f3   :  { %v1718_v6 = vpop.xlane.xlu1 %1717 }
 0x8f4   :  { %v1734_v55 = vmul.f32 %v1718_v6, %v5741_v42 }
 0x8f6   :  { %v1740_v22 = vadd.f32 1e-05, %v1734_v55 }
 0x8f8   :  { %5207 = vrsqrt.f32 %v1740_v22  ;;  %vm1752_vm4 = vweird.f32 %v1740_v22 }
 0x8fb   :  { %v1721_v38 = vpop.xlane.xlu2 %1720 }
 0x8fc   :  { %v1735_v8 = vmul.f32 %v1721_v38, %v5741_v42 }
 0x8fe   :  { %v5208_v54 = vpop.eup %5207  ;;  %v1741_v26 = vadd.f32 1e-05, %v1735_v8 }
 0x8ff   :  { %v1747_v28 = vmul.f32 %v5208_v54, %v1740_v22  ;;  %vm1753_vm3 = vweird.f32 %v5208_v54 }
 0x900   :  { %5209 = vrsqrt.f32 %v1741_v26  ;;  %vm1754_vm5 = vmor %vm1752_vm4, %vm1753_vm3  ;;  %vm1762_vm8 = vweird.f32 %v1741_v26 }
 0x901   :  { %v1748_v49 = vmul.f32 %v5208_v54, %v1747_v28 }
 0x903   :  { %v1749_v35 = vmul.f32 0.5, %v1748_v49  ;;  %v1724_v31 = vpop.xlane.xlu0 %1723 }
 0x904   :  { %v1736_v12 = vmul.f32 %v1724_v31, %v5741_v42 }
 0x905   :  { %v1750_v62 = vsub.f32 1.5, %v1749_v35 }
 0x906   :  { %v5210_v39 = vpop.eup %5209  ;;  %v1742_v41 = vadd.f32 1e-05, %v1736_v12 }
 0x907   :  { %v1751_v50 = vmul.f32 %v5208_v54, %v1750_v62  ;;  %v1757_v27 = vmul.f32 %v5210_v39, %v1741_v26  ;;  %vm1763_vm7 = vweird.f32 %v5210_v39 }
 0x908   :  { %5211 = vrsqrt.f32 %v1742_v41  ;;  %vm1764_vm9 = vmor %vm1762_vm8, %vm1763_vm7  ;;  %vm1772_vm11 = vweird.f32 %v1742_v41 }
 0x909   :  { %v1755_v61 = vsel %vm1754_vm5, %v5208_v54, %v1751_v50  ;;  %v1758_v44 = vmul.f32 %v5210_v39, %v1757_v27 }
 0x90a   :  { %v1806_v40 = vmul.f32 %v1755_v61, %v6564_v16 }
 0x90b   :  { %v1759_v53 = vmul.f32 0.5, %v1758_v44 }
 0x90c   :  { %v1815_v23 = vmul.f32 %v6622_v43, %v1806_v40 }
 0x90d   :  { %v1760_v36 = vsub.f32 1.5, %v1759_v53 }
 0x90e   :  { %v5212_v52 = vpop.eup %5211  ;;  %v1824_v34 = vadd.f32 %v6628_v24, %v1815_v23 }
 0x90f   :  { %v1761_v58 = vmul.f32 %v5210_v39, %v1760_v36  ;;  %v1767_v2 = vmul.f32 %v5212_v52, %v1742_v41  ;;  %vm1773_vm10 = vweird.f32 %v5212_v52 }
 0x910   :  { %4786 = vmatmul.msk.f32.vlgmr.msra.gmra.mxu1 %vm177_vm1, %v1824_v34  ;;  %vm1774_vm13 = vmor %vm1772_vm11, %vm1773_vm10  ;;  %v5044_v34 = vld [vmem:[%s8182_s8 + $0x1] ss:$0 sm:$0xff] }
 0x911   :  { %v1768_v16 = vmul.f32 %v5212_v52, %v1767_v2  ;;  %v1765_v17 = vsel %vm1764_vm9, %v5210_v39, %v1761_v58 }
 0x912   :  { %v1807_v63 = vmul.f32 %v1765_v17, %v6571_v0 }
 0x913   :  { %v1769_v20 = vmul.f32 0.5, %v1768_v16 }
 0x914   :  { %v1816_v47 = vmul.f32 %v6622_v43, %v1807_v63 }
 0x915   :  { %v1770_v13 = vsub.f32 1.5, %v1769_v20 }
 0x916   :  { %v1825_v5 = vadd.f32 %v6628_v24, %v1816_v47 }
 0x917   :  { %v1771_v57 = vmul.f32 %v5212_v52, %v1770_v13 }
 0x918   :  { %4787 = vmatmul.msk.f32.gmra.mxu1 %vm177_vm1, %v1825_v5 }
 0x919   :  { %v1775_v11 = vsel %vm1774_vm13, %v5212_v52, %v1771_v57 }
 0x91a   :  { %v1808_v59 = vmul.f32 %v1775_v11, %v6578_v4 }
 0x91c   :  { %v1817_v3 = vmul.f32 %v6622_v43, %v1808_v59 }
 0x91e   :  { %v1826_v29 = vadd.f32 %v6628_v24, %v1817_v3 }
 0x920   :  { %4788 = vmatmul.msk.f32.gmra.mxu1 %vm177_vm1, %v1826_v29 }
 0x94d   :  { %v1727_v0 = vpop.xlane.xlu1 %1726 }
 0x94e   :  { %v1737_v32 = vmul.f32 %v1727_v0, %v5741_v42  ;;  %v6693_v0 = vld [vmem:[%s8212_s23] ss:$0 sm:$0xff] }
 0x950   :  { %v1743_v10 = vadd.f32 1e-05, %v1737_v32 }
 0x952   :  { %5213 = vrsqrt.f32 %v1743_v10  ;;  %vm1782_vm15 = vweird.f32 %v1743_v10 }
 0x955   :  { %v1730_v56 = vpop.xlane.xlu2 %1729 }
 0x956   :  { %v1738_v19 = vmul.f32 %v1730_v56, %v5741_v42 }
 0x958   :  { %v5214_v18 = vpop.eup %5213  ;;  %v1744_v60 = vadd.f32 1e-05, %v1738_v19  ;;  %v6707_v19 = vld [vmem:[%s8212_s23 + $0x1] ss:$0 sm:$0xff] }
 0x959   :  { %v1777_v25 = vmul.f32 %v5214_v18, %v1743_v10  ;;  %vm1783_vm14 = vweird.f32 %v5214_v18 }
 0x95a   :  { %5215 = vrsqrt.f32 %v1744_v60  ;;  %vm1784_vm0 = vmor %vm1782_vm15, %vm1783_vm14  ;;  %vm1792_vm3 = vweird.f32 %v1744_v60 }
 0x95b   :  { %v1778_v30 = vmul.f32 %v5214_v18, %v1777_v25 }
 0x95d   :  { %v1779_v4 = vmul.f32 0.5, %v1778_v30  ;;  %v6721_v30 = vld [vmem:[%s8212_s23 + $0x2] ss:$0 sm:$0xff] }
 0x95f   :  { %v1780_v48 = vsub.f32 1.5, %v1779_v4 }
 0x960   :  { %v5216_v7 = vpop.eup %5215 }
 0x961   :  { %v1781_v15 = vmul.f32 %v5214_v18, %v1780_v48  ;;  %v1787_v6 = vmul.f32 %v5216_v7, %v1744_v60  ;;  %vm1793_vm2 = vweird.f32 %v5216_v7 }
 0x962   :  { %vm1794_vm4 = vmor %vm1792_vm3, %vm1793_vm2 }
 0x963   :  { %v1788_v55 = vmul.f32 %v5216_v7, %v1787_v6  ;;  %v1785_v22 = vsel %vm1784_vm0, %v5214_v18, %v1781_v15  ;;  %v6735_v15 = vld [vmem:[%s8212_s23 + $0x3] ss:$0 sm:$0xff] }
 0x964   :  { %v1809_v38 = vmul.f32 %v1785_v22, %v6585_v46 }
 0x965   :  { %v1789_v8 = vmul.f32 0.5, %v1788_v55  ;;  %v1733_v54 = vpop.xlane.xlu0 %1732 }
 0x966   :  { %v1739_v26 = vmul.f32 %v1733_v54, %v5741_v42  ;;  %v1818_v28 = vmul.f32 %v6622_v43, %v1809_v38 }
 0x967   :  { %v1790_v49 = vsub.f32 1.5, %v1789_v8 }
 0x968   :  { %v1745_v35 = vadd.f32 1e-05, %v1739_v26  ;;  %v1827_v31 = vadd.f32 %v6628_v24, %v1818_v28 }
 0x969   :  { %v1791_v12 = vmul.f32 %v5216_v7, %v1790_v49 }
 0x96a   :  { %5217 = vrsqrt.f32 %v1745_v35  ;;  %4789 = vmatmul.msk.f32.gmra.mxu1 %vm177_vm1, %v1827_v31  ;;  %vm1802_vm7 = vweird.f32 %v1745_v35 }
 0x96b   :  { %v1795_v62 = vsel %vm1794_vm4, %v5216_v7, %v1791_v12  ;;  %v6764_v12 = vld [vmem:[%s8213_s0] ss:$0 sm:$0xff] }
 0x96c   :  { %v1810_v46 = vmul.f32 %v1795_v62, %v6592_v14 }
 0x96e   :  { %v1819_v39 = vmul.f32 %v6622_v43, %v1810_v46 }
 0x970   :  { %v5218_v41 = vpop.eup %5217  ;;  %v1828_v50 = vadd.f32 %v6628_v24, %v1819_v39 }
 0x971   :  { %v1797_v27 = vmul.f32 %v5218_v41, %v1745_v35  ;;  %vm1803_vm5 = vweird.f32 %v5218_v41 }
 0x972   :  { %4790 = vmatmul.msk.f32.gmra.mxu1 %vm177_vm1, %v1828_v50  ;;  %vm1804_vm8 = vmor %vm1802_vm7, %vm1803_vm5 }
 0x973   :  { %v1798_v61 = vmul.f32 %v5218_v41, %v1797_v27 }
 0x975   :  { %v1799_v44 = vmul.f32 0.5, %v1798_v61 }
 0x977   :  { %v1800_v40 = vsub.f32 1.5, %v1799_v44 }
 0x979   :  { %v1801_v53 = vmul.f32 %v5218_v41, %v1800_v40 }
 0x97b   :  { %v1805_v23 = vsel %vm1804_vm8, %v5218_v41, %v1801_v53 }
 0x97c   :  { %v1811_v36 = vmul.f32 %v1805_v23, %v6605_v37 }
 0x97e   :  { %v1820_v14 = vmul.f32 %v6622_v43, %v1811_v36 }
 0x980   :  { %v1829_v52 = vadd.f32 %v6628_v24, %v1820_v14 }
 0x982   :  { %4791 = vmatmul.msk.f32.gmra.mxu1 %vm177_vm1, %v1829_v52 }
 0x98d   :  { %v1868_v58 = vpop.f32.mrf.mxu1 }
 0x98e   :  { %v6659_v2 = vadd.f32 %v5044_v34, %v1868_v58 }
 0x990   :  { %1901 = vrot.lane.b32.xlu0 %v6659_v2, %s5544_s30  ;;  %v1886_v32 = vmul.f32 %v6693_v0, %v6659_v2  ;;  %v1889_v18 = vmul.f32 %v6707_v19, %v6659_v2  ;;  %v1892_v4 = vmul.f32 %v6721_v30, %v6659_v2  ;;  %v1895_v6 = vmul.f32 %v6735_v15, %v6659_v2 }
 0x995   :  { %v1871_v16 = vpop.f32.mrf.mxu1 }
 0x996   :  { %v6663_v17 = vadd.f32 %v5044_v34, %v1871_v16 }
 0x998   :  { %1903 = vrot.lane.b32.xlu2 %v6663_v17, %s5544_s30  ;;  %v1887_v10 = vmul.f32 %v6693_v0, %v6663_v17  ;;  %v1890_v60 = vmul.f32 %v6707_v19, %v6663_v17  ;;  %v1893_v48 = vmul.f32 %v6721_v30, %v6663_v17  ;;  %v1896_v55 = vmul.f32 %v6735_v15, %v6663_v17 }
 0x99d   :  { %v1874_v37 = vpop.f32.mrf.mxu1 }
 0x99e   :  { %v6667_v43 = vadd.f32 %v5044_v34, %v1874_v37 }
 0x9a0   :  { %1905 = vrot.lane.b32.xlu1 %v6667_v43, %s5544_s30  ;;  %v4999_v24 = vpack.i.bf16 %v6663_v17, %v6667_v43  ;;  %v1888_v56 = vmul.f32 %v6693_v0, %v6667_v43  ;;  %v1891_v25 = vmul.f32 %v6707_v19, %v6667_v43  ;;  %v1894_v7 = vmul.f32 %v6721_v30, %v6667_v43 }
 0x9a1   :  { %v1897_v38 = vmul.f32 %v6735_v15, %v6667_v43 }
 0x9e7   :  { %v1877_v63 = vpop.f32.mrf.mxu1 }
 0x9e8   :  { %v6673_v20 = vadd.f32 %v5044_v34, %v1877_v63 }
 0x9ea   :  { %2268 = vrot.lane.b32.xlu2 %v6673_v20, %s5544_s30  ;;  %v2253_v26 = vmul.f32 %v6693_v0, %v6673_v20  ;;  %v2256_v35 = vmul.f32 %v6707_v19, %v6673_v20  ;;  %v2259_v23 = vmul.f32 %v6721_v30, %v6673_v20 }
 0x9ef   :  { %v1880_v47 = vpop.f32.mrf.mxu1 }
 0x9f0   :  { %v6677_v13 = vadd.f32 %v5044_v34, %v1880_v47  ;;  %v2262_v47 = vmul.f32 %v6735_v15, %v6673_v20 }
 0x9f2   :  { %2270 = vrot.lane.b32.xlu0 %v6677_v13, %s5544_s30  ;;  %v5009_v5 = vpack.i.bf16 %v6673_v20, %v6677_v13  ;;  %v1904_v3 = vpop.permute.xlu2 %1903  ;;  %v2254_v28 = vmul.f32 %v6693_v0, %v6677_v13  ;;  %v2257_v39 = vmul.f32 %v6707_v19, %v6677_v13 }
 0x9ff   :  { %v1883_v57 = vpop.f32.mrf.mxu1 }
 0xa00   :  { %v6683_v11 = vadd.f32 %v5044_v34, %v1883_v57  ;;  %v2260_v34 = vmul.f32 %v6721_v30, %v6677_v13  ;;  %v2263_v57 = vmul.f32 %v6735_v15, %v6677_v13 }
 0xa02   :  { %2272 = vrot.lane.b32.xlu1 %v6683_v11, %s5544_s30  ;;  %v1902_v29 = vpop.permute.xlu0 %1901  ;;  %v2255_v49 = vmul.f32 %v6693_v0, %v6683_v11  ;;  %v2258_v61 = vmul.f32 %v6707_v19, %v6683_v11  ;;  %v2261_v63 = vmul.f32 %v6721_v30, %v6683_v11 }
 0xa12   :  { %v1906_v59 = vpop.permute.xlu1 %1905 }
 0xa13   :  { %4792 = vmatpush.xpose.msk.msrb.mxu0 %vm177_vm1, %v1906_v59  ;;  %v2264_v59 = vmul.f32 %v6735_v15, %v6683_v11 }
 0xa17   :  { %4793 = vmatpush.xpose.msk.msrb.mxu0 %vm177_vm1, %v1904_v3 }
 0xa1b   :  { %4794 = vmatpush.xpose.msk.msrb.mxu0 %vm177_vm1, %v1902_v29 }
 0xa1e   :  { %4795 = vmatmul.msk.f32.vlgmr.msrb.gmra.mxu0 %vm177_vm1, %v1886_v32 }
 0xa26   :  { %4796 = vmatmul.msk.f32.gmra.mxu0 %vm177_vm1, %v1887_v10 }
 0xa2e   :  { %4797 = vmatmul.msk.f32.gmra.mxu0 %vm177_vm1, %v1888_v56 }
 0xa36   :  { %4798 = vmatmul.msk.f32.gmra.mxu0 %vm177_vm1, %v1889_v18 }
 0xa3e   :  { %4799 = vmatmul.msk.f32.gmra.mxu0 %vm177_vm1, %v1890_v60 }
 0xa44   :  { %v2269_v54 = vpop.permute.xlu2 %2268 }
 0xa46   :  { %4800 = vmatmul.msk.f32.gmra.mxu0 %vm177_vm1, %v1891_v25 }
 0xa4e   :  { %4801 = vmatmul.msk.f32.gmra.mxu0 %vm177_vm1, %v1892_v4 }
 0xa56   :  { %4802 = vmatmul.msk.f32.gmra.mxu0 %vm177_vm1, %v1893_v48 }
 0xa5e   :  { %4803 = vmatmul.msk.f32.gmra.mxu0 %vm177_vm1, %v1894_v7 }
 0xa64   :  { %v2271_v8 = vpop.permute.xlu0 %2270 }
 0xa66   :  { %4804 = vmatmul.msk.f32.gmra.mxu0 %vm177_vm1, %v1895_v6 }
 0xa6e   :  { %4805 = vmatmul.msk.f32.gmra.mxu0 %vm177_vm1, %v1896_v55 }
 0xa74   :  { %v2273_v22 = vpop.permute.xlu1 %2272 }
 0xa75   :  { %4819 = vmatpush.xpose.msk.msrb.mxu3 %vm177_vm1, %v2273_v22 }
 0xa76   :  { %4806 = vmatmul.msk.f32.gmra.mxu0 %vm177_vm1, %v1897_v38 }
 0xa79   :  { %4820 = vmatpush.xpose.msk.msrb.mxu3 %vm177_vm1, %v2271_v8 }
 0xa7d   :  { %4821 = vmatpush.xpose.msk.msrb.mxu3 %vm177_vm1, %v2269_v54 }
 0xa80   :  { %4822 = vmatmul.msk.f32.vlgmr.msrb.gmra.mxu3 %vm177_vm1, %v2253_v26 }
 0xa88   :  { %4823 = vmatmul.msk.f32.gmra.mxu3 %vm177_vm1, %v2254_v28 }
 0xa90   :  { %4824 = vmatmul.msk.f32.gmra.mxu3 %vm177_vm1, %v2255_v49 }
 0xa98   :  { %4825 = vmatmul.msk.f32.gmra.mxu3 %vm177_vm1, %v2256_v35 }
 0xa9b   :  { %v1966_v31 = vpop.f32.mrf.mxu0 }
 0xa9c   :  { %v6767_v62 = vadd.f32 %v6764_v12, %v1966_v31 }
 0xa9e   :  { %v2002_v46 = vsel %vm522_vm6, %v6767_v62, -inf }
 0xa9f   :  { %2003 = vmax.xlane.f32.xlu1 %v2002_v46 }
 0xaa0   :  { %4826 = vmatmul.msk.f32.gmra.mxu3 %vm177_vm1, %v2257_v39 }
 0xaa3   :  { %v1969_v41 = vpop.f32.mrf.mxu0 }
 0xaa4   :  { %v6775_v50 = vadd.f32 %v6764_v12, %v1969_v41 }
 0xaa6   :  { %v2005_v27 = vsel %vm522_vm6, %v6775_v50, -inf }
 0xaa7   :  { %2006 = vmax.xlane.f32.xlu0 %v2005_v27 }
 0xaa8   :  { %4827 = vmatmul.msk.f32.gmra.mxu3 %vm177_vm1, %v2258_v61 }
 0xaab   :  { %v1972_v44 = vpop.f32.mrf.mxu0 }
 0xaac   :  { %v6783_v40 = vadd.f32 %v6764_v12, %v1972_v44 }
 0xaae   :  { %v2008_v53 = vsel %vm522_vm6, %v6783_v40, -inf }
 0xaaf   :  { %2009 = vmax.xlane.f32.xlu2 %v2008_v53 }
 0xab0   :  { %4828 = vmatmul.msk.f32.gmra.mxu3 %vm177_vm1, %v2259_v23 }
 0xab3   :  { %v1975_v36 = vpop.f32.mrf.mxu0 }
 0xab4   :  { %v6791_v14 = vadd.f32 %v6764_v12, %v1975_v36 }
 0xab6   :  { %v2011_v52 = vsel %vm522_vm6, %v6791_v14, -inf }
 0xab7   :  { %2012 = vmax.xlane.f32.xlu1 %v2011_v52 }
 0xab8   :  { %4829 = vmatmul.msk.f32.gmra.mxu3 %vm177_vm1, %v2260_v34 }
 0xabb   :  { %v1978_v58 = vpop.f32.mrf.mxu0 }
 0xabc   :  { %v6799_v16 = vadd.f32 %v6764_v12, %v1978_v58 }
 0xabe   :  { %v2014_v37 = vsel %vm522_vm6, %v6799_v16, -inf }
 0xabf   :  { %2015 = vmax.xlane.f32.xlu2 %v2014_v37 }
 0xac0   :  { %4830 = vmatmul.msk.f32.gmra.mxu3 %vm177_vm1, %v2261_v63 }
 0xac3   :  { %v1981_v3 = vpop.f32.mrf.mxu0 }
 0xac4   :  { %v6821_v56 = vadd.f32 %v6764_v12, %v1981_v3 }
 0xac6   :  { %v2017_v48 = vsel %vm522_vm6, %v6821_v56, -inf }
 0xac8   :  { %4831 = vmatmul.msk.f32.gmra.mxu3 %vm177_vm1, %v2262_v47 }
 0xacb   :  { %v1984_v25 = vpop.f32.mrf.mxu0 }
 0xacc   :  { %v6831_v7 = vadd.f32 %v6764_v12, %v1984_v25 }
 0xace   :  { %v2020_v38 = vsel %vm522_vm6, %v6831_v7, -inf }
 0xad0   :  { %4832 = vmatmul.msk.f32.gmra.mxu3 %vm177_vm1, %v2263_v57 }
 0xad3   :  { %v1987_v8 = vpop.f32.mrf.mxu0 }
 0xad4   :  { %v6841_v54 = vadd.f32 %v6764_v12, %v1987_v8 }
 0xad6   :  { %v2023_v35 = vsel %vm522_vm6, %v6841_v54, -inf }
 0xad8   :  { %4833 = vmatmul.msk.f32.gmra.mxu3 %vm177_vm1, %v2264_v59 }
 0xadb   :  { %v1990_v41 = vpop.f32.mrf.mxu0 }
 0xadc   :  { %v6860_v27 = vadd.f32 %v6764_v12, %v1990_v41 }
 0xade   :  { %v2026_v44 = vsel %vm522_vm6, %v6860_v27, -inf }
 0xae3   :  { %v1993_v17 = vpop.f32.mrf.mxu0 }
 0xaeb   :  { %v1996_v37 = vpop.f32.mrf.mxu0 }
 0xaec   :  { %v6879_v47 = vadd.f32 %v6764_v12, %v1996_v37 }
 0xaee   :  { %v2032_v57 = vsel %vm522_vm6, %v6879_v47, -inf }
 0xb03   :  { %v2333_v29 = vpop.f32.mrf.mxu3 }
 0xb04   :  { %v6816_v32 = vadd.f32 %v6764_v12, %v2333_v29 }
 0xb06   :  { %v2369_v10 = vsel %vm522_vm6, %v6816_v32, -inf }
 0xb07   :  { %2370 = vmax.xlane.f32.xlu0 %v2369_v10 }
 0xb0b   :  { %v2336_v18 = vpop.f32.mrf.mxu3 }
 0xb0c   :  { %v6824_v60 = vadd.f32 %v6764_v12, %v2336_v18 }
 0xb0e   :  { %v2372_v4 = vsel %vm522_vm6, %v6824_v60, -inf }
 0xb0f   :  { %2373 = vmax.xlane.f32.xlu1 %v2372_v4  ;;  %2018 = vmax.xlane.f32.xlu0 %v2017_v48  ;;  %v1999_v48 = vpop.f32.mrf.mxu0 }
 0xb12   :  { %v2004_v36 = vpop.xlane.xlu1 %2003 }
 0xb13   :  { %v2339_v6 = vpop.f32.mrf.mxu3  ;;  %v2038_v34 = vsub.f32 %v6767_v62, %v2004_v36 }
 0xb14   :  { %v6834_v55 = vadd.f32 %v6764_v12, %v2339_v6 }
 0xb15   :  { %v2050_v63 = vmul.f32 1.442695, %v2038_v34 }
 0xb16   :  { %v2375_v22 = vsel %vm522_vm6, %v6834_v55, -inf }
 0xb17   :  { %2376 = vmax.xlane.f32.xlu2 %v2375_v22  ;;  %2021 = vmax.xlane.f32.xlu1 %v2020_v38  ;;  %5219 = vpow2.f32 %v2050_v63  ;;  %v6896_v38 = vadd.f32 %v6764_v12, %v1999_v48 }
 0xb1b   :  { %v2342_v26 = vpop.f32.mrf.mxu3 }
 0xb1c   :  { %v6844_v28 = vadd.f32 %v6764_v12, %v2342_v26 }
 0xb1d   :  { %v6884_v62 = vpop.eup %5219 }
 0xb1e   :  { %v2378_v49 = vsel %vm522_vm6, %v6844_v28, -inf  ;;  %v2074_v4 = vsel %vm522_vm6, %v6884_v62, 0.0 }
 0xb1f   :  { %2379 = vmax.xlane.f32.xlu2 %v2378_v49  ;;  %2024 = vmax.xlane.f32.xlu1 %v2023_v35  ;;  %v2035_v49 = vsel %vm522_vm6, %v6896_v38, -inf }
 0xb22   :  { %v2010_v3 = vpop.xlane.xlu2 %2009 }
 0xb23   :  { %v2345_v31 = vpop.f32.mrf.mxu3  ;;  %5000 = vrot.lane.b32.xlu0 %v4999_v24, %s5545_s4  ;;  %v5004_v24 = vpack.i.bf16 %v6683_v11, %v6659_v2  ;;  %v2007_v2 = vpop.xlane.xlu0 %2006  ;;  %v2040_v25 = vsub.f32 %v6783_v40, %v2010_v3 }
 0xb24   :  { %v6855_v46 = vadd.f32 %v6764_v12, %v2345_v31  ;;  %v2039_v11 = vsub.f32 %v6775_v50, %v2007_v2 }
 0xb25   :  { %v2054_v22 = vmul.f32 1.442695, %v2040_v25 }
 0xb26   :  { %v2381_v39 = vsel %vm522_vm6, %v6855_v46, -inf  ;;  %v2052_v29 = vmul.f32 1.442695, %v2039_v11 }
 0xb27   :  { %2382 = vmax.xlane.f32.xlu2 %v2381_v39 }
 0xb28   :  { %5221 = vpow2.f32 %v2052_v29 }
 0xb29   :  { %5223 = vpow2.f32 %v2054_v22 }
 0xb2a   :  { %v2013_v10 = vpop.xlane.xlu1 %2012 }
 0xb2b   :  { %v2348_v61 = vpop.f32.mrf.mxu3  ;;  %v2041_v50 = vsub.f32 %v6791_v14, %v2013_v10 }
 0xb2c   :  { %v6865_v53 = vadd.f32 %v6764_v12, %v2348_v61 }
 0xb2d   :  { %v2056_v8 = vmul.f32 1.442695, %v2041_v50 }
 0xb2e   :  { %v2384_v43 = vsel %vm522_vm6, %v6865_v53, -inf  ;;  %v6898_v26 = vpop.eup %5221 }
 0xb2f   :  { %2027 = vmax.xlane.f32.xlu2 %v2026_v44  ;;  %5225 = vpow2.f32 %v2056_v8  ;;  %v2077_v14 = vsel %vm522_vm6, %v6898_v26, 0.0  ;;  %v6904_v31 = vpop.eup %5223  ;;  %v6912_v44 = vadd.f32 %v6764_v12, %v1993_v17 }
 0xb30   :  { %v2080_v61 = vsel %vm522_vm6, %v6904_v31, 0.0 }
 0xb31   :  { %v2029_v34 = vsel %vm522_vm6, %v6912_v44, -inf }
 0xb32   :  { %v2016_v35 = vpop.xlane.xlu2 %2015 }
 0xb33   :  { %v2351_v23 = vpop.f32.mrf.mxu3  ;;  %v2042_v41 = vsub.f32 %v6799_v16, %v2016_v35 }
 0xb34   :  { %v6873_v52 = vadd.f32 %v6764_v12, %v2351_v23 }
 0xb35   :  { %v6906_v39 = vpop.eup %5225  ;;  %v2058_v23 = vmul.f32 1.442695, %v2042_v41 }
 0xb36   :  { %v2387_v58 = vsel %vm522_vm6, %v6873_v52, -inf }
 0xb37   :  { %2385 = vmax.xlane.f32.xlu2 %v2384_v43  ;;  %5227 = vpow2.f32 %v2058_v23 }
 0xb38   :  { %5005 = vrot.lane.b32.xlu1 %v5004_v24, %s5545_s4  ;;  %v2083_v24 = vsel %vm522_vm6, %v6906_v39, 0.0 }
 0xb3b   :  { %v2354_v59 = vpop.f32.mrf.mxu3 }
 0xb3c   :  { %v6887_v18 = vadd.f32 %v6764_v12, %v2354_v59 }
 0xb3e   :  { %v2390_v6 = vsel %vm522_vm6, %v6887_v18, -inf }
 0xb3f   :  { %2388 = vmax.xlane.f32.xlu2 %v2387_v58  ;;  %v6926_v58 = vpop.eup %5227 }
 0xb40   :  { %v2086_v63 = vsel %vm522_vm6, %v6926_v58, 0.0 }
 0xb43   :  { %v2357_v40 = vpop.f32.mrf.mxu3 }
 0xb44   :  { %v6924_v17 = vadd.f32 %v6764_v12, %v2357_v40 }
 0xb46   :  { %v2393_v37 = vsel %vm522_vm6, %v6924_v17, -inf }
 0xb47   :  { %2033 = vmax.xlane.f32.xlu2 %v2032_v57 }
 0xb4b   :  { %v2360_v43 = vpop.f32.mrf.mxu3 }
 0xb4c   :  { %v6917_v36 = vadd.f32 %v6764_v12, %v2360_v43 }
 0xb4d   :  { %2075 = vadd.xlane.f32.xlu0 %v2074_v4 }
 0xb4e   :  { %v2396_v16 = vsel %vm522_vm6, %v6917_v36, -inf }
 0xb4f   :  { %2391 = vmax.xlane.f32.xlu2 %v2390_v6 }
 0xb55   :  { %2036 = vmax.xlane.f32.xlu0 %v2035_v49 }
 0xb57   :  { %2078 = vadd.xlane.f32.xlu2 %v2077_v14 }
 0xb5d   :  { %2081 = vadd.xlane.f32.xlu0 %v2080_v61 }
 0xb5f   :  { %2084 = vadd.xlane.f32.xlu2 %v2083_v24 }
 0xb62   :  { %2030 = vmax.xlane.f32.xlu1 %v2029_v34 }
 0xb65   :  { %2397 = vmax.xlane.f32.xlu0 %v2396_v16 }
 0xb6a   :  { %2394 = vmax.xlane.f32.xlu1 %v2393_v37 }
 0xb6d   :  { %2087 = vadd.xlane.f32.xlu0 %v2086_v63  ;;  %v2363_v63 = vpop.f32.mrf.mxu3 }
 0xb7a   :  { %v2371_v2 = vpop.xlane.xlu0 %2370 }
 0xb7b   :  { %v2405_v11 = vsub.f32 %v6816_v32, %v2371_v2 }
 0xb7d   :  { %v2417_v57 = vmul.f32 1.442695, %v2405_v11  ;;  %v6959_v11 = vadd.f32 %v6764_v12, %v2363_v63 }
 0xb7f   :  { %5229 = vpow2.f32 %v2417_v57 }
 0xb82   :  { %v2374_v59 = vpop.xlane.xlu1 %2373  ;;  %v2019_v3 = vpop.xlane.xlu0 %2018 }
 0xb83   :  { %v2406_v29 = vsub.f32 %v6824_v60, %v2374_v59  ;;  %v2043_v10 = vsub.f32 %v6821_v56, %v2019_v3 }
 0xb85   :  { %v6935_v25 = vpop.eup %5229  ;;  %v2419_v4 = vmul.f32 1.442695, %v2406_v29  ;;  %v2060_v48 = vmul.f32 1.442695, %v2043_v10  ;;  %v2399_v10 = vsel %vm522_vm6, %v6959_v11, -inf }
 0xb86   :  { %v2441_v50 = vsel %vm522_vm6, %v6935_v25, 0.0 }
 0xb87   :  { %5231 = vpow2.f32 %v2419_v4  ;;  %2442 = vadd.xlane.f32.xlu2 %v2441_v50 }
 0xb88   :  { %5233 = vpow2.f32 %v2060_v48 }
 0xb8a   :  { %v2377_v6 = vpop.xlane.xlu2 %2376  ;;  %v2022_v32 = vpop.xlane.xlu1 %2021 }
 0xb8b   :  { %v2407_v22 = vsub.f32 %v6834_v55, %v2377_v6  ;;  %v2044_v8 = vsub.f32 %v6831_v7, %v2022_v32  ;;  %v2366_v32 = vpop.f32.mrf.mxu3 }
 0xb8c   :  { %v6978_v13 = vadd.f32 %v6764_v12, %v2366_v32 }
 0xb8d   :  { %v6941_v40 = vpop.eup %5231  ;;  %v2421_v60 = vmul.f32 1.442695, %v2407_v22  ;;  %v2062_v56 = vmul.f32 1.442695, %v2044_v8 }
 0xb8e   :  { %v6943_v49 = vpop.eup %5233  ;;  %v2444_v14 = vsel %vm522_vm6, %v6941_v40, 0.0 }
 0xb8f   :  { %5235 = vpow2.f32 %v2421_v60  ;;  %2445 = vadd.xlane.f32.xlu1 %v2444_v14  ;;  %v2089_v35 = vsel %vm522_vm6, %v6943_v49, 0.0 }
 0xb90   :  { %5237 = vpow2.f32 %v2062_v56  ;;  %2090 = vadd.xlane.f32.xlu0 %v2089_v35  ;;  %v2402_v35 = vsel %vm522_vm6, %v6978_v13, -inf }
 0xb92   :  { %v2380_v41 = vpop.xlane.xlu2 %2379  ;;  %v2025_v55 = vpop.xlane.xlu1 %2024 }
 0xb93   :  { %v2045_v7 = vsub.f32 %v6841_v54, %v2025_v55 }
 0xb95   :  { %v6950_v61 = vpop.eup %5235  ;;  %v2064_v43 = vmul.f32 1.442695, %v2045_v7  ;;  %v5001_v24 = vpop.permute.xlu0 %5000 }
 0xb96   :  { %v6952_v23 = vpop.eup %5237  ;;  %v5002_v34 = vunpack.i.l.bf16 %v5001_v24  ;;  %v2447_v16 = vsel %vm522_vm6, %v6950_v61, 0.0  ;;  %v5003_v2 = vunpack.i.h.bf16 %v5001_v24 }
 0xb97   :  { %v2092_v37 = vsel %vm522_vm6, %v6952_v23, 0.0  ;;  %5239 = vpow2.f32 %v2064_v43  ;;  %v2408_v43 = vsub.f32 %v6844_v28, %v2380_v41 }
 0xb98   :  { %2093 = vadd.xlane.f32.xlu1 %v2092_v37  ;;  %2448 = vadd.xlane.f32.xlu0 %v2447_v16 }
 0xb99   :  { %2192 = vmatpush.msrb.mxu2 %v5002_v34  ;;  %v2423_v34 = vmul.f32 1.442695, %v2408_v43 }
 0xb9a   :  { %v2383_v54 = vpop.xlane.xlu2 %2382 }
 0xb9b   :  { %v2409_v57 = vsub.f32 %v6855_v46, %v2383_v54  ;;  %2193 = vmatpush.msrb.mxu2 %v5003_v2 }
 0xb9d   :  { %v2425_v59 = vmul.f32 1.442695, %v2409_v57  ;;  %v6962_v3 = vpop.eup %5239 }
 0xb9e   :  { %v2095_v29 = vsel %vm522_vm6, %v6962_v3, 0.0 }
 0xb9f   :  { %5241 = vpow2.f32 %v2425_v59  ;;  %5010 = vrot.lane.b32.xlu2 %v5009_v5, %s5545_s4 }
 0xba0   :  { %2096 = vadd.xlane.f32.xlu1 %v2095_v29  ;;  %2400 = vmax.xlane.f32.xlu0 %v2399_v10 }
 0xba2   :  { %v2028_v4 = vpop.xlane.xlu2 %2027 }
 0xba3   :  { %v2046_v46 = vsub.f32 %v6860_v27, %v2028_v4 }
 0xba5   :  { %v6973_v48 = vpop.eup %5241  ;;  %v2066_v50 = vmul.f32 1.442695, %v2046_v46 }
 0xba6   :  { %v2453_v6 = vsel %vm522_vm6, %v6973_v48, 0.0 }
 0xba7   :  { %5243 = vpow2.f32 %v2066_v50 }
 0xba8   :  { %2454 = vadd.xlane.f32.xlu1 %v2453_v6 }
 0xbaa   :  { %v2386_v22 = vpop.xlane.xlu2 %2385  ;;  %v5006_v20 = vpop.permute.xlu1 %5005 }
 0xbab   :  { %v2410_v5 = vsub.f32 %v6865_v53, %v2386_v22  ;;  %v5008_v8 = vunpack.i.h.bf16 %v5006_v20  ;;  %v5007_v60 = vunpack.i.l.bf16 %v5006_v20 }
 0xbad   :  { %v6981_v56 = vpop.eup %5243  ;;  %v2427_v27 = vmul.f32 1.442695, %v2410_v5  ;;  %2194 = vmatpush.msrb.mxu2 %v5007_v60  ;;  %2559 = vmatpush.msrb.mxu1 %v5008_v8 }
 0xbae   :  { %v2098_v14 = vsel %vm522_vm6, %v6981_v56, 0.0 }
 0xbaf   :  { %5245 = vpow2.f32 %v2427_v27  ;;  %2099 = vadd.xlane.f32.xlu0 %v2098_v14 }
 0xbb0   :  { %2403 = vmax.xlane.f32.xlu1 %v2402_v35 }
 0xbb2   :  { %v2389_v12 = vpop.xlane.xlu2 %2388 }
 0xbb3   :  { %v2411_v55 = vsub.f32 %v6873_v52, %v2389_v12 }
 0xbb5   :  { %v6988_v53 = vpop.eup %5245  ;;  %v2429_v7 = vmul.f32 1.442695, %v2411_v55 }
 0xbb6   :  { %v2456_v24 = vsel %vm522_vm6, %v6988_v53, 0.0 }
 0xbb7   :  { %5247 = vpow2.f32 %v2429_v7  ;;  %2457 = vadd.xlane.f32.xlu0 %v2456_v24 }
 0xbb8   :  { %5249 = vpow2.f32 %v2423_v34 }
 0xbba   :  { %v2034_v16 = vpop.xlane.xlu2 %2033 }
 0xbbb   :  { %v2048_v8 = vsub.f32 %v6879_v47, %v2034_v16 }
 0xbbd   :  { %v6993_v37 = vpop.eup %5247  ;;  %v2070_v55 = vmul.f32 1.442695, %v2048_v8 }
 0xbbe   :  { %v2459_v63 = vsel %vm522_vm6, %v6993_v37, 0.0  ;;  %v6998_v28 = vpop.eup %5249 }
 0xbbf   :  { %2460 = vadd.xlane.f32.xlu0 %v2459_v63  ;;  %v2450_v59 = vsel %vm522_vm6, %v6998_v28, 0.0 }
 0xbc0   :  { %v2076_v52 = vpop.xlane.xlu0 %2075 }
 0xbc1   :  { %5251 = vrcp.f32 %v2076_v52 }
 0xbc2   :  { %v2392_v2 = vpop.xlane.xlu2 %2391 }
 0xbc3   :  { %v2412_v54 = vsub.f32 %v6887_v18, %v2392_v2 }
 0xbc5   :  { %v2431_v41 = vmul.f32 1.442695, %v2412_v54 }
 0xbc7   :  { %v5252_v57 = vpop.eup %5251  ;;  %5253 = vpow2.f32 %v2431_v41 }
 0xbc8   :  { %v2122_v29 = vmul.f32 %v5252_v57, %v6884_v62  ;;  %2451 = vadd.xlane.f32.xlu2 %v2450_v59  ;;  %v2037_v10 = vpop.xlane.xlu0 %2036 }
 0xbc9   :  { %v2049_v47 = vsub.f32 %v6896_v38, %v2037_v10 }
 0xbca   :  { %v2079_v4 = vpop.xlane.xlu2 %2078  ;;  %4807 = vmatmul.msk.f32.vlgmr.msrb.gmra.mxu2 %vm522_vm6, %v2122_v29 }
 0xbcb   :  { %5255 = vrcp.f32 %v2079_v4  ;;  %v2072_v63 = vmul.f32 1.442695, %v2049_v47 }
 0xbcd   :  { %v7004_v46 = vpop.eup %5253 }
 0xbce   :  { %v2462_v18 = vsel %vm522_vm6, %v7004_v46, 0.0 }
 0xbcf   :  { %2463 = vadd.xlane.f32.xlu0 %v2462_v18 }
 0xbd0   :  { %v2082_v50 = vpop.xlane.xlu0 %2081 }
 0xbd1   :  { %v5256_v6 = vpop.eup %5255  ;;  %5257 = vrcp.f32 %v2082_v50 }
 0xbd2   :  { %v2123_v32 = vmul.f32 %v5256_v6, %v6898_v26  ;;  %v2085_v22 = vpop.xlane.xlu2 %2084 }
 0xbd3   :  { %5259 = vrcp.f32 %v2085_v22 }
 0xbd4   :  { %4808 = vmatmul.msk.f32.gmra.mxu2 %vm522_vm6, %v2123_v32 }
 0xbd5   :  { %v2031_v62 = vpop.xlane.xlu1 %2030 }
 0xbd6   :  { %v2047_v20 = vsub.f32 %v6912_v44, %v2031_v62 }
 0xbd7   :  { %v5258_v5 = vpop.eup %5257 }
 0xbd8   :  { %v2068_v60 = vmul.f32 1.442695, %v2047_v20  ;;  %v2398_v27 = vpop.xlane.xlu0 %2397  ;;  %v2124_v35 = vmul.f32 %v5258_v5, %v6904_v31 }
 0xbd9   :  { %v2414_v14 = vsub.f32 %v6917_v36, %v2398_v27  ;;  %v5260_v44 = vpop.eup %5259 }
 0xbda   :  { %5261 = vpow2.f32 %v2068_v60  ;;  %v2125_v36 = vmul.f32 %v5260_v44, %v6906_v39 }
 0xbdb   :  { %v2435_v12 = vmul.f32 1.442695, %v2414_v14 }
 0xbdc   :  { %4809 = vmatmul.msk.f32.gmra.mxu2 %vm522_vm6, %v2124_v35 }
 0xbdd   :  { %5263 = vpow2.f32 %v2435_v12  ;;  %v2395_v26 = vpop.xlane.xlu1 %2394 }
 0xbde   :  { %v2413_v7 = vsub.f32 %v6924_v17, %v2395_v26  ;;  %5265 = vpow2.f32 %v2070_v55 }
 0xbe0   :  { %v7016_v43 = vpop.eup %5261  ;;  %v2433_v24 = vmul.f32 1.442695, %v2413_v7  ;;  %v2088_v34 = vpop.xlane.xlu0 %2087 }
 0xbe1   :  { %5267 = vrcp.f32 %v2088_v34  ;;  %v2101_v31 = vsel %vm522_vm6, %v7016_v43, 0.0 }
 0xbe2   :  { %5269 = vpow2.f32 %v2433_v24  ;;  %2102 = vadd.xlane.f32.xlu1 %v2101_v31 }
 0xbe3   :  { %v7022_v16 = vpop.eup %5263  ;;  %5271 = vpow2.f32 %v2072_v63 }
 0xbe4   :  { %4810 = vmatmul.msk.f32.gmra.mxu2 %vm522_vm6, %v2125_v36  ;;  %v2468_v17 = vsel %vm522_vm6, %v7022_v16, 0.0  ;;  %v7027_v38 = vpop.eup %5265 }
 0xbe5   :  { %2469 = vadd.xlane.f32.xlu0 %v2468_v17  ;;  %v2104_v54 = vsel %vm522_vm6, %v7027_v38, 0.0 }
 0xbe7   :  { %v5268_v52 = vpop.eup %5267 }
 0xbe8   :  { %v7029_v2 = vpop.eup %5269  ;;  %v2126_v41 = vmul.f32 %v5268_v52, %v6926_v58 }
 0xbe9   :  { %v2465_v39 = vsel %vm522_vm6, %v7029_v2, 0.0  ;;  %v7037_v57 = vpop.eup %5271 }
 0xbea   :  { %2105 = vadd.xlane.f32.xlu1 %v2104_v54  ;;  %2466 = vadd.xlane.f32.xlu2 %v2465_v39  ;;  %v2107_v59 = vsel %vm522_vm6, %v7037_v57, 0.0 }
 0xbec   :  { %4811 = vmatmul.msk.f32.gmra.mxu2 %vm522_vm6, %v2126_v41 }
 0xbf2   :  { %2108 = vadd.xlane.f32.xlu1 %v2107_v59 }
 0xbfa   :  { %v2443_v29 = vpop.xlane.xlu2 %2442 }
 0xbfb   :  { %5273 = vrcp.f32 %v2443_v29 }
 0xc01   :  { %v5274_v18 = vpop.eup %5273 }
 0xc02   :  { %v2446_v10 = vpop.xlane.xlu1 %2445  ;;  %v5011_v4 = vpop.permute.xlu2 %5010  ;;  %v2489_v58 = vmul.f32 %v5274_v18, %v6935_v25 }
 0xc03   :  { %v5012_v50 = vunpack.i.l.bf16 %v5011_v4  ;;  %v2091_v6 = vpop.xlane.xlu0 %2090  ;;  %v5013_v32 = vunpack.i.h.bf16 %v5011_v4 }
 0xc04   :  { %5275 = vrcp.f32 %v2091_v6 }
 0xc05   :  { %5277 = vrcp.f32 %v2446_v10  ;;  %2560 = vmatpush.msrb.mxu1 %v5012_v50 }
 0xc07   :  { %2561 = vmatpush.msrb.mxu1 %v5013_v32 }
 0xc08   :  { %4834 = vmatmul.msk.f32.vlgmr.msrb.gmra.mxu1 %vm522_vm6, %v2489_v58 }
 0xc0a   :  { %v5276_v62 = vpop.eup %5275 }
 0xc0b   :  { %v5278_v22 = vpop.eup %5277  ;;  %v2094_v20 = vpop.xlane.xlu1 %2093  ;;  %v2127_v8 = vmul.f32 %v5276_v62, %v6943_v49 }
 0xc0c   :  { %v2449_v5 = vpop.xlane.xlu0 %2448  ;;  %5279 = vrcp.f32 %v2094_v20  ;;  %v2490_v60 = vmul.f32 %v5278_v22, %v6941_v40 }
 0xc0d   :  { %5281 = vrcp.f32 %v2449_v5  ;;  %4812 = vmatmul.msk.f32.gmra.mxu2 %vm522_vm6, %v2127_v8 }
 0xc10   :  { %4835 = vmatmul.msk.f32.gmra.mxu1 %vm522_vm6, %v2490_v60 }
 0xc12   :  { %v5280_v27 = vpop.eup %5279 }
 0xc13   :  { %v5282_v14 = vpop.eup %5281  ;;  %v2097_v25 = vpop.xlane.xlu1 %2096  ;;  %v2128_v12 = vmul.f32 %v5280_v27, %v6952_v23 }
 0xc14   :  { %v2401_v35 = vpop.xlane.xlu0 %2400  ;;  %5283 = vrcp.f32 %v2097_v25  ;;  %v2491_v26 = vmul.f32 %v5282_v14, %v6950_v61 }
 0xc15   :  { %v2415_v55 = vsub.f32 %v6959_v11, %v2401_v35  ;;  %4813 = vmatmul.msk.f32.gmra.mxu2 %vm522_vm6, %v2128_v12 }
 0xc17   :  { %v2437_v49 = vmul.f32 1.442695, %v2415_v55 }
 0xc18   :  { %4836 = vmatmul.msk.f32.gmra.mxu1 %vm522_vm6, %v2491_v26 }
 0xc19   :  { %5285 = vpow2.f32 %v2437_v49 }
 0xc1a   :  { %v5284_v40 = vpop.eup %5283 }
 0xc1b   :  { %v2455_v7 = vpop.xlane.xlu1 %2454  ;;  %v2129_v44 = vmul.f32 %v5284_v40, %v6962_v3 }
 0xc1d   :  { %4814 = vmatmul.msk.f32.gmra.mxu2 %vm522_vm6, %v2129_v44 }
 0xc1f   :  { %v7054_v47 = vpop.eup %5285 }
 0xc20   :  { %v2471_v23 = vsel %vm522_vm6, %v7054_v47, 0.0 }
 0xc21   :  { %2472 = vadd.xlane.f32.xlu1 %v2471_v23 }
 0xc22   :  { %v2100_v11 = vpop.xlane.xlu0 %2099 }
 0xc23   :  { %v2404_v24 = vpop.xlane.xlu1 %2403  ;;  %5287 = vrcp.f32 %v2100_v11 }
 0xc24   :  { %v2416_v61 = vsub.f32 %v6978_v13, %v2404_v24  ;;  %v4767_v24 = vld [vmem:[%s8183_s9 + $0x30] sm:$0xff] }
 0xc26   :  { %v2439_v34 = vmul.f32 1.442695, %v2416_v61  ;;  %v4766_v61 = vld [vmem:[%s8183_s9 + $0x28] sm:$0xff] }
 0xc28   :  { %5289 = vpow2.f32 %v2439_v34  ;;  %v4765_v34 = vld [vmem:[%s8183_s9 + $0x20] sm:$0xff] }
 0xc29   :  { %v5288_v31 = vpop.eup %5287 }
 0xc2a   :  { %v2130_v36 = vmul.f32 %v5288_v31, %v6981_v56  ;;  %v2458_v13 = vpop.xlane.xlu0 %2457 }
 0xc2c   :  { %4815 = vmatmul.msk.f32.gmra.mxu2 %vm522_vm6, %v2130_v36 }
 0xc2e   :  { %v7061_v3 = vpop.eup %5289 }
 0xc2f   :  { %v2474_v63 = vsel %vm522_vm6, %v7061_v3, 0.0 }
 0xc30   :  { %2475 = vadd.xlane.f32.xlu2 %v2474_v63 }
 0xc32   :  { %v2461_v41 = vpop.xlane.xlu0 %2460 }
 0xc3b   :  { %v2452_v17 = vpop.xlane.xlu2 %2451 }
 0xc3c   :  { %5291 = vrcp.f32 %v2452_v17 }
 0xc3d   :  { %5293 = vrcp.f32 %v2455_v7 }
 0xc3e   :  { %5295 = vrcp.f32 %v2458_v13 }
 0xc3f   :  { %5297 = vrcp.f32 %v2461_v41 }
 0xc42   :  { %v5292_v52 = vpop.eup %5291  ;;  %v2464_v4 = vpop.xlane.xlu0 %2463 }
 0xc43   :  { %v2492_v54 = vmul.f32 %v5292_v52, %v6998_v28  ;;  %v5294_v39 = vpop.eup %5293 }
 0xc44   :  { %v2493_v56 = vmul.f32 %v5294_v39, %v6973_v48  ;;  %v5296_v59 = vpop.eup %5295 }
 0xc45   :  { %4837 = vmatmul.msk.f32.gmra.mxu1 %vm522_vm6, %v2492_v54  ;;  %v2494_v29 = vmul.f32 %v5296_v59, %v6988_v53  ;;  %v5298_v28 = vpop.eup %5297 }
 0xc46   :  { %v2495_v18 = vmul.f32 %v5298_v28, %v6993_v37 }
 0xc4d   :  { %4838 = vmatmul.msk.f32.gmra.mxu1 %vm522_vm6, %v2493_v56 }
 0xc55   :  { %v2103_v10 = vpop.xlane.xlu1 %2102  ;;  %4839 = vmatmul.msk.f32.gmra.mxu1 %vm522_vm6, %v2494_v29 }
 0xc56   :  { %5299 = vrcp.f32 %v2103_v10 }
 0xc57   :  { %5301 = vrcp.f32 %v2464_v4 }
 0xc58   :  { %v2470_v20 = vpop.xlane.xlu0 %2469 }
 0xc5c   :  { %v5300_v50 = vpop.eup %5299 }
 0xc5d   :  { %v2106_v6 = vpop.xlane.xlu1 %2105  ;;  %4840 = vmatmul.msk.f32.gmra.mxu1 %vm522_vm6, %v2495_v18  ;;  %v2131_v48 = vmul.f32 %v5300_v50, %v7016_v43  ;;  %v2467_v32 = vpop.xlane.xlu2 %2466 }
 0xc5e   :  { %5303 = vrcp.f32 %v2106_v6  ;;  %v5302_v53 = vpop.eup %5301 }
 0xc5f   :  { %4816 = vmatmul.msk.f32.gmra.mxu2 %vm522_vm6, %v2131_v48  ;;  %5305 = vrcp.f32 %v2467_v32  ;;  %v2496_v58 = vmul.f32 %v5302_v53, %v7004_v46 }
 0xc64   :  { %v5304_v62 = vpop.eup %5303 }
 0xc65   :  { %v2109_v22 = vpop.xlane.xlu1 %2108  ;;  %4841 = vmatmul.msk.f32.gmra.mxu1 %vm522_vm6, %v2496_v58  ;;  %v2132_v37 = vmul.f32 %v5304_v62, %v7027_v38  ;;  %v5306_v5 = vpop.eup %5305 }
 0xc66   :  { %5307 = vrcp.f32 %v2109_v22  ;;  %v2497_v43 = vmul.f32 %v5306_v5, %v7029_v2  ;;  %v2196_v38 = vpop.f32.mrf.mxu2 }
 0xc67   :  { %4817 = vmatmul.msk.f32.gmra.mxu2 %vm522_vm6, %v2132_v37  ;;  %5309 = vrcp.f32 %v2470_v20  ;;  %v2232_v13 = vmul.f32 %v6693_v0, %v2196_v38 }
 0xc6c   :  { %v5308_v8 = vpop.eup %5307 }
 0xc6d   :  { %4842 = vmatmul.msk.f32.gmra.mxu1 %vm522_vm6, %v2497_v43  ;;  %v2133_v60 = vmul.f32 %v5308_v8, %v7037_v57  ;;  %v5310_v46 = vpop.eup %5309 }
 0xc6e   :  { %v2498_v27 = vmul.f32 %v5310_v46, %v7022_v16  ;;  %v2199_v25 = vpop.f32.mrf.mxu2  ;;  %v4768_v16 = vld [vmem:[%s8183_s9 + $0x38] sm:$0xff] }
 0xc6f   :  { %4818 = vmatmul.msk.f32.gmra.mxu2 %vm522_vm6, %v2133_v60  ;;  %2650 = vmatpush.msra.mxu0 %v4768_v16  ;;  %v2233_v18 = vmul.f32 %v6693_v0, %v2199_v25 }
 0xc71   :  { %2651 = vmatpush.msra.mxu0 %v4767_v24 }
 0xc73   :  { %2652 = vmatpush.msra.mxu0 %v4766_v61 }
 0xc75   :  { %4843 = vmatmul.msk.f32.gmra.mxu1 %vm522_vm6, %v2498_v27  ;;  %2653 = vmatpush.msra.mxu0 %v4765_v34  ;;  %v5507_v34 = vld [vmem:[%s8212_s23 + $0x2] ss:$0 sm:$0xff] }
 0xc76   :  { %v2202_v2 = vpop.f32.mrf.mxu2 }
 0xc77   :  { %v2234_v37 = vmul.f32 %v6693_v0, %v2202_v2 }
 0xc7e   :  { %v2205_v40 = vpop.f32.mrf.mxu2 }
 0xc7f   :  { %v2235_v54 = vmul.f32 %v6707_v19, %v2205_v40 }
 0xc81   :  { %v2238_v56 = vadd.f32 %v2235_v54, %v2232_v13 }
 0xc85   :  { %v2563_v57 = vpop.f32.mrf.mxu1 }
 0xc86   :  { %v2208_v44 = vpop.f32.mrf.mxu2 }
 0xc87   :  { %v2236_v4 = vmul.f32 %v6707_v19, %v2208_v44 }
 0xc89   :  { %v2239_v6 = vadd.f32 %v2236_v4, %v2233_v18 }
 0xc8d   :  { %v2566_v7 = vpop.f32.mrf.mxu1 }
 0xc90   :  { %v2211_v23 = vpop.f32.mrf.mxu2 }
 0xc91   :  { %v2237_v62 = vmul.f32 %v6707_v19, %v2211_v23 }
 0xc93   :  { %v2240_v5 = vadd.f32 %v2237_v62, %v2234_v37 }
 0xc94   :  { %v2473_v14 = vpop.xlane.xlu1 %2472 }
 0xc95   :  { %5311 = vrcp.f32 %v2473_v14  ;;  %v2599_v14 = vmul.f32 %v6693_v0, %v2563_v57  ;;  %v5506_v0 = vld [vmem:[%s8212_s23] ss:$0 sm:$0xff] }
 0xc96   :  { %v2600_v57 = vmul.f32 %v5506_v0, %v2566_v7 }
 0xc98   :  { %v2214_v31 = vpop.f32.mrf.mxu2 }
 0xc99   :  { %v2241_v39 = vmul.f32 %v6721_v30, %v2214_v31 }
 0xc9b   :  { %v5312_v35 = vpop.eup %5311  ;;  %v2244_v29 = vadd.f32 %v2241_v39, %v2238_v56 }
 0xc9c   :  { %v2499_v12 = vmul.f32 %v5312_v35, %v7054_v47  ;;  %v7092_v47 = vpop.f32.mrf.mxu1 }
 0xc9d   :  { %v2601_v61 = vmul.f32 %v5506_v0, %v7092_v47  ;;  %v5045_v47 = vld [vmem:[%s8184_s10 + $0x1] ss:$0 sm:$0xff] }
 0xc9e   :  { %4844 = vmatmul.msk.f32.gmra.mxu1 %vm522_vm6, %v2499_v12 }
 0xca3   :  { %v2476_v55 = vpop.xlane.xlu2 %2475 }
 0xca4   :  { %5313 = vrcp.f32 %v2476_v55 }
 0xcaa   :  { %v5314_v49 = vpop.eup %5313 }
 0xcab   :  { %v2500_v26 = vmul.f32 %v5314_v49, %v7061_v3  ;;  %v2217_v3 = vpop.f32.mrf.mxu2  ;;  %v5505_v49 = vld [vmem:[%s8212_s23 + $0x1] ss:$0 sm:$0xff] }
 0xcac   :  { %v2242_v50 = vmul.f32 %v6721_v30, %v2217_v3 }
 0xcad   :  { %4845 = vmatmul.msk.f32.gmra.mxu1 %vm522_vm6, %v2500_v26 }
 0xcae   :  { %v2245_v32 = vadd.f32 %v2242_v50, %v2239_v6 }
 0xcb3   :  { %v2220_v17 = vpop.f32.mrf.mxu2 }
 0xcb4   :  { %v2243_v20 = vmul.f32 %v6721_v30, %v2220_v17 }
 0xcb6   :  { %v2246_v8 = vadd.f32 %v2243_v20, %v2240_v5 }
 0xcc2   :  { %v2572_v11 = vpop.f32.mrf.mxu1 }
 0xcc3   :  { %v2602_v46 = vmul.f32 %v6707_v19, %v2572_v11 }
 0xcc5   :  { %v2605_v35 = vadd.f32 %v2602_v46, %v2599_v14 }
 0xcca   :  { %v2575_v36 = vpop.f32.mrf.mxu1 }
 0xccb   :  { %v2603_v19 = vmul.f32 %v5505_v49, %v2575_v36 }
 0xccd   :  { %v2606_v40 = vadd.f32 %v2603_v19, %v2600_v57 }
 0xcd2   :  { %v2578_v63 = vpop.f32.mrf.mxu1 }
 0xcd3   :  { %v2604_v24 = vmul.f32 %v5505_v49, %v2578_v63 }
 0xcd5   :  { %v2607_v36 = vadd.f32 %v2604_v24, %v2601_v61 }
 0xcda   :  { %v2581_v52 = vpop.f32.mrf.mxu1 }
 0xcdb   :  { %v2608_v25 = vmul.f32 %v6721_v30, %v2581_v52 }
 0xcdd   :  { %v2611_v2 = vadd.f32 %v2608_v25, %v2605_v35 }
 0xce2   :  { %v2223_v41 = vpop.f32.mrf.mxu2  ;;  %v2584_v59 = vpop.f32.mrf.mxu1 }
 0xce3   :  { %v2247_v10 = vmul.f32 %v6735_v15, %v2223_v41  ;;  %v2609_v26 = vmul.f32 %v6721_v30, %v2584_v59  ;;  %v5508_v30 = vld [vmem:[%s8212_s23 + $0x3] ss:$0 sm:$0xff] }
 0xce5   :  { %v2250_v28 = vadd.f32 %v2247_v10, %v2244_v29  ;;  %v2612_v44 = vadd.f32 %v2609_v26, %v2606_v40 }
 0xce7   :  { %4846 = vmatmul.msk.f32.vlgmr.msra.gmra.mxu0 %vm177_vm1, %v2250_v28 }
 0xcea   :  { %v2226_v48 = vpop.f32.mrf.mxu2  ;;  %v2587_v58 = vpop.f32.mrf.mxu1 }
 0xceb   :  { %v2248_v53 = vmul.f32 %v6735_v15, %v2226_v48  ;;  %v2610_v31 = vmul.f32 %v5507_v34, %v2587_v58  ;;  %v4775_v34 = vld [vmem:[%s8187_s13 + $0x38] sm:$0xff] }
 0xcec   :  { %2871 = vmatpush.msra.mxu2 %v4775_v34 }
 0xced   :  { %v2251_v22 = vadd.f32 %v2248_v53, %v2245_v32  ;;  %v2613_v3 = vadd.f32 %v2610_v31, %v2607_v36  ;;  %v4774_v31 = vld [vmem:[%s8187_s13 + $0x30] sm:$0xff]  ;;  %v4773_v36 = vld [vmem:[%s8187_s13 + $0x28] sm:$0xff] }
 0xcee   :  { %2872 = vmatpush.msra.mxu2 %v4774_v31 }
 0xcef   :  { %4847 = vmatmul.msk.f32.gmra.mxu0 %vm177_vm1, %v2251_v22 }
 0xcf0   :  { %2873 = vmatpush.msra.mxu2 %v4773_v36 }
 0xcf2   :  { %v2229_v43 = vpop.f32.mrf.mxu2  ;;  %v2590_v38 = vpop.f32.mrf.mxu1 }
 0xcf3   :  { %v2249_v60 = vmul.f32 %v6735_v15, %v2229_v43  ;;  %v2614_v12 = vmul.f32 %v6735_v15, %v2590_v38 }
 0xcf5   :  { %v2252_v27 = vadd.f32 %v2249_v60, %v2246_v8  ;;  %v2617_v55 = vadd.f32 %v2614_v12, %v2611_v2 }
 0xcf7   :  { %4848 = vmatmul.msk.f32.gmra.mxu0 %vm177_vm1, %v2252_v27 }
 0xcff   :  { %4849 = vmatmul.msk.f32.gmra.mxu0 %vm177_vm1, %v2617_v55 }
 0xd1b   :  { %v2593_v16 = vpop.f32.mrf.mxu1 }
 0xd1c   :  { %v2615_v23 = vmul.f32 %v6735_v15, %v2593_v16 }
 0xd1e   :  { %v2618_v11 = vadd.f32 %v2615_v23, %v2612_v44 }
 0xd20   :  { %4850 = vmatmul.msk.f32.gmra.mxu0 %vm177_vm1, %v2618_v11 }
 0xd2a   :  { %v2596_v7 = vpop.f32.mrf.mxu1 }
 0xd2b   :  { %v2616_v17 = vmul.f32 %v5508_v30, %v2596_v7  ;;  %v4772_v7 = vld [vmem:[%s8187_s13 + $0x20] sm:$0xff] }
 0xd2c   :  { %2874 = vmatpush.msra.mxu2 %v4772_v7 }
 0xd2d   :  { %v2619_v15 = vadd.f32 %v2616_v17, %v2613_v3 }
 0xd2f   :  { %4851 = vmatmul.msk.f32.gmra.mxu0 %vm177_vm1, %v2619_v15 }
 0xd64   :  { %v2655_v63 = vpop.f32.mrf.mxu0 }
 0xd65   :  { %v2673_v52 = vadd.f32 %v2655_v63, %v6533_v1 }
 0xd67   :  { %v7144_v54 = vadd.f32 %v5045_v47, %v2673_v52 }
 0xd69   :  { %v2688_v13 = vsel %vm177_vm1, %v7144_v54, 0.0 }
 0xd6a   :  { %2689 = vadd.xlane.f32.xlu0 %v2688_v13 }
 0xd6c   :  { %v2658_v39 = vpop.f32.mrf.mxu0 }
 0xd6d   :  { %v2674_v56 = vadd.f32 %v2658_v39, %v6538_v51 }
 0xd6f   :  { %v7149_v41 = vadd.f32 %v5045_v47, %v2674_v56 }
 0xd71   :  { %v2691_v59 = vsel %vm177_vm1, %v7149_v41, 0.0 }
 0xd72   :  { %2692 = vadd.xlane.f32.xlu1 %v2691_v59 }
 0xd74   :  { %v2661_v29 = vpop.f32.mrf.mxu0 }
 0xd75   :  { %v2675_v10 = vadd.f32 %v2661_v29, %v6543_v33 }
 0xd77   :  { %v7154_v4 = vadd.f32 %v5045_v47, %v2675_v10 }
 0xd79   :  { %v2694_v1 = vsel %vm177_vm1, %v7154_v4, 0.0 }
 0xd7a   :  { %2695 = vadd.xlane.f32.xlu2 %v2694_v1 }
 0xd7c   :  { %v2664_v28 = vpop.f32.mrf.mxu0 }
 0xd7d   :  { %v2676_v18 = vadd.f32 %v2664_v28, %v6548_v9 }
 0xd7f   :  { %v7159_v50 = vadd.f32 %v5045_v47, %v2676_v18 }
 0xd81   :  { %v2697_v51 = vsel %vm177_vm1, %v7159_v50, 0.0 }
 0xd82   :  { %2698 = vadd.xlane.f32.xlu0 %v2697_v51 }
 0xd9d   :  { %v2667_v6 = vpop.f32.mrf.mxu0 }
 0xd9e   :  { %v2677_v48 = vadd.f32 %v2667_v6, %v6553_v45  ;;  %v7233_v6 = vld [vmem:[%s8185_s11 + $0x1] ss:$0 sm:$0xff] }
 0xda0   :  { %v7164_v32 = vadd.f32 %v5045_v47, %v2677_v48 }
 0xda2   :  { %v2700_v33 = vsel %vm177_vm1, %v7164_v32, 0.0 }
 0xda3   :  { %2701 = vadd.xlane.f32.xlu1 %v2700_v33 }
 0xdac   :  { %v2670_v53 = vpop.f32.mrf.mxu0 }
 0xdad   :  { %v2678_v58 = vadd.f32 %v2670_v53, %v6558_v21  ;;  %v7238_v53 = vld [vmem:[%s8186_s12 + $0x1] ss:$0 sm:$0xff] }
 0xdaf   :  { %v7169_v62 = vadd.f32 %v5045_v47, %v2678_v58 }
 0xdb1   :  { %v2703_v9 = vsel %vm177_vm1, %v7169_v62, 0.0 }
 0xdb2   :  { %2704 = vadd.xlane.f32.xlu2 %v2703_v9 }
 0xddd   :  { %v2690_v22 = vpop.xlane.xlu0 %2689 }
 0xdde   :  { %v2706_v37 = vmul.f32 %v2690_v22, %v5741_v42 }
 0xde0   :  { %v7175_v45 = vsub.f32 %v7144_v54, %v2706_v37 }
 0xde2   :  { %v2718_v20 = vmul.f32 %v7175_v45, %v7175_v45 }
 0xde4   :  { %v2724_v5 = vsel %vm177_vm1, %v2718_v20, 0.0 }
 0xde5   :  { %v2693_v43 = vpop.xlane.xlu1 %2692  ;;  %2725 = vadd.xlane.f32.xlu0 %v2724_v5 }
 0xde6   :  { %v2707_v21 = vmul.f32 %v2693_v43, %v5741_v42 }
 0xde8   :  { %v7182_v8 = vsub.f32 %v7149_v41, %v2707_v21 }
 0xdea   :  { %v2719_v60 = vmul.f32 %v7182_v8, %v7182_v8 }
 0xdec   :  { %v2727_v46 = vsel %vm177_vm1, %v2719_v60, 0.0 }
 0xded   :  { %v2696_v27 = vpop.xlane.xlu2 %2695  ;;  %2728 = vadd.xlane.f32.xlu1 %v2727_v46 }
 0xdee   :  { %v2708_v38 = vmul.f32 %v2696_v27, %v5741_v42 }
 0xdf0   :  { %v7189_v14 = vsub.f32 %v7154_v4, %v2708_v38 }
 0xdf2   :  { %v2720_v25 = vmul.f32 %v7189_v14, %v7189_v14 }
 0xdf4   :  { %v2730_v35 = vsel %vm177_vm1, %v2720_v25, 0.0 }
 0xdf5   :  { %v2699_v12 = vpop.xlane.xlu0 %2698  ;;  %2731 = vadd.xlane.f32.xlu2 %v2730_v35 }
 0xdf6   :  { %v2709_v2 = vmul.f32 %v2699_v12, %v5741_v42 }
 0xdf8   :  { %v7196_v55 = vsub.f32 %v7159_v50, %v2709_v2 }
 0xdfa   :  { %v2721_v49 = vmul.f32 %v7196_v55, %v7196_v55 }
 0xdfc   :  { %v2733_v19 = vsel %vm177_vm1, %v2721_v49, 0.0 }
 0xdfd   :  { %2734 = vadd.xlane.f32.xlu0 %v2733_v19 }
 0xe16   :  { %v2702_v0 = vpop.xlane.xlu1 %2701 }
 0xe17   :  { %v2710_v57 = vmul.f32 %v2702_v0, %v5741_v42 }
 0xe19   :  { %v7203_v26 = vsub.f32 %v7164_v32, %v2710_v57 }
 0xe1b   :  { %v2722_v40 = vmul.f32 %v7203_v26, %v7203_v26 }
 0xe1d   :  { %v2736_v16 = vsel %vm177_vm1, %v2722_v40, 0.0 }
 0xe1e   :  { %2737 = vadd.xlane.f32.xlu1 %v2736_v16 }
 0xe25   :  { %v2705_v44 = vpop.xlane.xlu2 %2704 }
 0xe26   :  { %v2711_v23 = vmul.f32 %v2705_v44, %v5741_v42 }
 0xe28   :  { %v7210_v11 = vsub.f32 %v7169_v62, %v2711_v23 }
 0xe2a   :  { %v2723_v24 = vmul.f32 %v7210_v11, %v7210_v11 }
 0xe2c   :  { %v2739_v61 = vsel %vm177_vm1, %v2723_v24, 0.0 }
 0xe2d   :  { %2740 = vadd.xlane.f32.xlu2 %v2739_v61 }
 0xe58   :  { %v2726_v3 = vpop.xlane.xlu0 %2725 }
 0xe59   :  { %v2742_v30 = vmul.f32 %v2726_v3, %v5741_v42 }
 0xe5b   :  { %v2748_v17 = vadd.f32 1e-05, %v2742_v30 }
 0xe5d   :  { %5315 = vrsqrt.f32 %v2748_v17  ;;  %vm2760_vm10 = vweird.f32 %v2748_v17 }
 0xe60   :  { %v2729_v15 = vpop.xlane.xlu1 %2728 }
 0xe61   :  { %v2743_v47 = vmul.f32 %v2729_v15, %v5741_v42 }
 0xe63   :  { %v5316_v63 = vpop.eup %5315  ;;  %v2749_v52 = vadd.f32 1e-05, %v2743_v47 }
 0xe64   :  { %v2755_v13 = vmul.f32 %v5316_v63, %v2748_v17  ;;  %vm2761_vm9 = vweird.f32 %v5316_v63 }
 0xe65   :  { %5317 = vrsqrt.f32 %v2749_v52  ;;  %vm2762_vm11 = vmor %vm2760_vm10, %vm2761_vm9  ;;  %vm2770_vm14 = vweird.f32 %v2749_v52 }
 0xe66   :  { %v2756_v39 = vmul.f32 %v5316_v63, %v2755_v13 }
 0xe68   :  { %v2757_v56 = vmul.f32 0.5, %v2756_v39  ;;  %v2732_v59 = vpop.xlane.xlu2 %2731 }
 0xe69   :  { %v2744_v29 = vmul.f32 %v2732_v59, %v5741_v42 }
 0xe6a   :  { %v2758_v10 = vsub.f32 1.5, %v2757_v56 }
 0xe6b   :  { %v5318_v1 = vpop.eup %5317  ;;  %v2750_v28 = vadd.f32 1e-05, %v2744_v29 }
 0xe6c   :  { %v2759_v18 = vmul.f32 %v5316_v63, %v2758_v10  ;;  %v2765_v51 = vmul.f32 %v5318_v1, %v2749_v52  ;;  %vm2771_vm13 = vweird.f32 %v5318_v1 }
 0xe6d   :  { %5319 = vrsqrt.f32 %v2750_v28  ;;  %vm2772_vm15 = vmor %vm2770_vm14, %vm2771_vm13  ;;  %vm2780_vm2 = vweird.f32 %v2750_v28 }
 0xe6e   :  { %v2763_v48 = vsel %vm2762_vm11, %v5316_v63, %v2759_v18  ;;  %v2766_v33 = vmul.f32 %v5318_v1, %v2765_v51 }
 0xe6f   :  { %v2814_v58 = vmul.f32 %v2763_v48, %v7175_v45 }
 0xe70   :  { %v2767_v9 = vmul.f32 0.5, %v2766_v33  ;;  %v2735_v22 = vpop.xlane.xlu0 %2734 }
 0xe71   :  { %v2823_v37 = vmul.f32 %v7233_v6, %v2814_v58  ;;  %v2745_v20 = vmul.f32 %v2735_v22, %v5741_v42 }
 0xe72   :  { %v2768_v5 = vsub.f32 1.5, %v2767_v9 }
 0xe73   :  { %v5320_v43 = vpop.eup %5319  ;;  %v2832_v21 = vadd.f32 %v7238_v53, %v2823_v37  ;;  %v2751_v60 = vadd.f32 1e-05, %v2745_v20 }
 0xe74   :  { %v2769_v46 = vmul.f32 %v5318_v1, %v2768_v5  ;;  %v2775_v27 = vmul.f32 %v5320_v43, %v2750_v28  ;;  %vm2781_vm0 = vweird.f32 %v5320_v43  ;;  %v7270_v5 = vld [vmem:[%s8188_s14 + $0x1] ss:$0 sm:$0xff] }
 0xe75   :  { %5321 = vrsqrt.f32 %v2751_v60  ;;  %4852 = vmatmul.msk.f32.vlgmr.msra.gmra.mxu2 %vm177_vm1, %v2832_v21  ;;  %vm2782_vm3 = vmor %vm2780_vm2, %vm2781_vm0  ;;  %vm2790_vm5 = vweird.f32 %v2751_v60 }
 0xe76   :  { %v2773_v45 = vsel %vm2772_vm15, %v5318_v1, %v2769_v46  ;;  %v2776_v38 = vmul.f32 %v5320_v43, %v2775_v27  ;;  %v4782_v46 = vld [vmem:[%s8189_s15 + $0x68] sm:$0xff] }
 0xe77   :  { %v2815_v25 = vmul.f32 %v2773_v45, %v7182_v8  ;;  %v4781_v45 = vld [vmem:[%s8189_s15 + $0x60] sm:$0xff] }
 0xe78   :  { %v2777_v35 = vmul.f32 0.5, %v2776_v38 }
 0xe79   :  { %v2824_v12 = vmul.f32 %v7233_v6, %v2815_v25 }
 0xe7a   :  { %v2778_v2 = vsub.f32 1.5, %v2777_v35 }
 0xe7b   :  { %v5322_v49 = vpop.eup %5321  ;;  %v2833_v19 = vadd.f32 %v7238_v53, %v2824_v12  ;;  %v4780_v12 = vld [vmem:[%s8189_s15 + $0x58] sm:$0xff] }
 0xe7c   :  { %v2779_v0 = vmul.f32 %v5320_v43, %v2778_v2  ;;  %v2785_v57 = vmul.f32 %v5322_v49, %v2751_v60  ;;  %vm2791_vm4 = vweird.f32 %v5322_v49  ;;  %v4784_v60 = vld [vmem:[%s8189_s15 + $0x78] sm:$0xff] }
 0xe7d   :  { %4853 = vmatmul.msk.f32.gmra.mxu2 %vm177_vm1, %v2833_v19  ;;  %vm2792_vm7 = vmor %vm2790_vm5, %vm2791_vm4  ;;  %3076 = vmatpush.msra.mxu3 %v4784_v60 }
 0xe7e   :  { %v2783_v40 = vsel %vm2782_vm3, %v5320_v43, %v2779_v0  ;;  %v2786_v16 = vmul.f32 %v5322_v49, %v2785_v57  ;;  %v4778_v0 = vld [vmem:[%s8189_s15 + $0x48] sm:$0xff] }
 0xe7f   :  { %v2816_v44 = vmul.f32 %v2783_v40, %v7189_v14  ;;  %v4777_v40 = vld [vmem:[%s8189_s15 + $0x40] sm:$0xff] }
 0xe80   :  { %v2787_v23 = vmul.f32 0.5, %v2786_v16 }
 0xe81   :  { %v2825_v8 = vmul.f32 %v7233_v6, %v2816_v44 }
 0xe82   :  { %v2788_v24 = vsub.f32 1.5, %v2787_v23 }
 0xe83   :  { %v2834_v61 = vadd.f32 %v7238_v53, %v2825_v8 }
 0xe84   :  { %v2789_v34 = vmul.f32 %v5322_v49, %v2788_v24 }
 0xe85   :  { %4854 = vmatmul.msk.f32.gmra.mxu2 %vm177_vm1, %v2834_v61 }
 0xe86   :  { %v2793_v31 = vsel %vm2792_vm7, %v5322_v49, %v2789_v34  ;;  %v4779_v49 = vld [vmem:[%s8189_s15 + $0x50] sm:$0xff] }
 0xe87   :  { %v2817_v36 = vmul.f32 %v2793_v31, %v7196_v55 }
 0xe89   :  { %v2826_v7 = vmul.f32 %v7233_v6, %v2817_v36 }
 0xe8b   :  { %v2835_v3 = vadd.f32 %v7238_v53, %v2826_v7 }
 0xe8d   :  { %4855 = vmatmul.msk.f32.gmra.mxu2 %vm177_vm1, %v2835_v3 }
 0xe91   :  { %v2738_v14 = vpop.xlane.xlu1 %2737 }
 0xe92   :  { %v2746_v30 = vmul.f32 %v2738_v14, %v5741_v42 }
 0xe94   :  { %v2752_v17 = vadd.f32 1e-05, %v2746_v30 }
 0xe96   :  { %5323 = vrsqrt.f32 %v2752_v17  ;;  %vm2800_vm9 = vweird.f32 %v2752_v17 }
 0xe9c   :  { %v5324_v15 = vpop.eup %5323 }
 0xe9d   :  { %v2795_v47 = vmul.f32 %v5324_v15, %v2752_v17  ;;  %vm2801_vm8 = vweird.f32 %v5324_v15 }
 0xe9e   :  { %vm2802_vm10 = vmor %vm2800_vm9, %vm2801_vm8 }
 0xe9f   :  { %v2796_v63 = vmul.f32 %v5324_v15, %v2795_v47 }
 0xea0   :  { %v2741_v13 = vpop.xlane.xlu2 %2740 }
 0xea1   :  { %v2797_v52 = vmul.f32 0.5, %v2796_v63  ;;  %v2747_v39 = vmul.f32 %v2741_v13, %v5741_v42 }
 0xea3   :  { %v2798_v56 = vsub.f32 1.5, %v2797_v52  ;;  %v2753_v55 = vadd.f32 1e-05, %v2747_v39 }
 0xea5   :  { %v2799_v59 = vmul.f32 %v5324_v15, %v2798_v56  ;;  %5325 = vrsqrt.f32 %v2753_v55  ;;  %vm2810_vm13 = vweird.f32 %v2753_v55 }
 0xea7   :  { %v2803_v29 = vsel %vm2802_vm10, %v5324_v15, %v2799_v59 }
 0xea8   :  { %v2818_v10 = vmul.f32 %v2803_v29, %v7203_v26 }
 0xeaa   :  { %v2827_v1 = vmul.f32 %v7233_v6, %v2818_v10 }
 0xeab   :  { %v5326_v28 = vpop.eup %5325 }
 0xeac   :  { %v2836_v18 = vadd.f32 %v7238_v53, %v2827_v1  ;;  %v2805_v51 = vmul.f32 %v5326_v28, %v2753_v55  ;;  %vm2811_vm11 = vweird.f32 %v5326_v28 }
 0xead   :  { %vm2812_vm14 = vmor %vm2810_vm13, %vm2811_vm11 }
 0xeae   :  { %4856 = vmatmul.msk.f32.gmra.mxu2 %vm177_vm1, %v2836_v18  ;;  %v2806_v48 = vmul.f32 %v5326_v28, %v2805_v51 }
 0xeb0   :  { %v2807_v33 = vmul.f32 0.5, %v2806_v48 }
 0xeb2   :  { %v2808_v58 = vsub.f32 1.5, %v2807_v33 }
 0xeb4   :  { %v2809_v9 = vmul.f32 %v5326_v28, %v2808_v58 }
 0xeb6   :  { %v2813_v22 = vsel %vm2812_vm14, %v5326_v28, %v2809_v9 }
 0xeb7   :  { %v2819_v37 = vmul.f32 %v2813_v22, %v7210_v11 }
 0xeb9   :  { %v2828_v26 = vmul.f32 %v7233_v6, %v2819_v37  ;;  %v4783_v6 = vld [vmem:[%s8189_s15 + $0x70] sm:$0xff] }
 0xeba   :  { %3077 = vmatpush.msra.mxu3 %v4783_v6 }
 0xebb   :  { %v2837_v20 = vadd.f32 %v7238_v53, %v2828_v26 }
 0xebc   :  { %3078 = vmatpush.msra.mxu3 %v4782_v46 }
 0xebd   :  { %4857 = vmatmul.msk.f32.gmra.mxu2 %vm177_vm1, %v2837_v20 }
 0xebe   :  { %3079 = vmatpush.msra.mxu3 %v4781_v45 }
 0xec0   :  { %3080 = vmatpush.msra.mxu3 %v4780_v12 }
 0xec2   :  { %3081 = vmatpush.msra.mxu3 %v4779_v49 }
 0xec4   :  { %3082 = vmatpush.msra.mxu3 %v4778_v0 }
 0xec6   :  { %3083 = vmatpush.msra.mxu3 %v4777_v40 }
 0xef8   :  { %v2876_v43 = vpop.f32.mrf.mxu2 }
 0xef9   :  { %v7273_v21 = vadd.f32 %v7270_v5, %v2876_v43 }
 0xefb   :  { %v7279_v11 = vmul.f32 0.70710677, %v7273_v21 }
 0xefd   :  { %v2906_v53 = vand.u32 2147483647, %v7279_v11  ;;  %vm3020_vm15 = vcmp.ge.f32.partialorder %v7279_v11, 0.0 }
 0xeff   :  { %v2912_v27 = vmul.f32 0.3275911, %v2906_v53  ;;  %v2984_v23 = vsub.f32 0.0, %v2906_v53 }
 0xf00   :  { %v2879_v38 = vpop.f32.mrf.mxu2 }
 0xf01   :  { %v2918_v25 = vadd.f32 1.0, %v2912_v27  ;;  %v7292_v35 = vadd.f32 %v7270_v5, %v2879_v38  ;;  %v2990_v36 = vmul.f32 %v2984_v23, %v2906_v53 }
 0xf03   :  { %5327 = vrcp.f32 %v2918_v25  ;;  %v7298_v2 = vmul.f32 0.70710677, %v7292_v35  ;;  %v2996_v47 = vmul.f32 1.442695, %v2990_v36 }
 0xf05   :  { %v2907_v19 = vand.u32 2147483647, %v7298_v2  ;;  %vm3021_vm0 = vcmp.ge.f32.partialorder %v7298_v2, 0.0 }
 0xf07   :  { %v2913_v57 = vmul.f32 0.3275911, %v2907_v19  ;;  %v2985_v63 = vsub.f32 0.0, %v2907_v19 }
 0xf08   :  { %v2882_v16 = vpop.f32.mrf.mxu2 }
 0xf09   :  { %v5328_v44 = vpop.eup %5327  ;;  %v2919_v8 = vadd.f32 1.0, %v2913_v57  ;;  %v7311_v24 = vadd.f32 %v7270_v5, %v2882_v16  ;;  %v2991_v10 = vmul.f32 %v2985_v63, %v2907_v19 }
 0xf0a   :  { %v2930_v61 = vmul.f32 1.0614054, %v5328_v44 }
 0xf0b   :  { %5329 = vrcp.f32 %v2919_v8  ;;  %v7314_v34 = vmul.f32 0.70710677, %v7311_v24  ;;  %v2998_v9 = vmul.f32 1.442695, %v2991_v10 }
 0xf0c   :  { %v2936_v31 = vadd.f32 -1.4531521, %v2930_v61 }
 0xf0d   :  { %v2908_v7 = vand.u32 2147483647, %v7314_v34  ;;  %vm3022_vm2 = vcmp.ge.f32.partialorder %v7314_v34, 0.0 }
 0xf0e   :  { %v2942_v3 = vmul.f32 %v5328_v44, %v2936_v31  ;;  %v2894_v31 = vmul.f32 0.5, %v7273_v21 }
 0xf0f   :  { %v2914_v14 = vmul.f32 0.3275911, %v2908_v7  ;;  %v2986_v22 = vsub.f32 0.0, %v2908_v7 }
 0xf10   :  { %v2948_v30 = vadd.f32 1.4214138, %v2942_v3  ;;  %v2885_v17 = vpop.f32.mrf.mxu2 }
 0xf11   :  { %v5330_v15 = vpop.eup %5329  ;;  %v2920_v52 = vadd.f32 1.0, %v2914_v14  ;;  %v7318_v13 = vadd.f32 %v7270_v5, %v2885_v17  ;;  %v2992_v27 = vmul.f32 %v2986_v22, %v2908_v7 }
 0xf12   :  { %v2954_v39 = vmul.f32 %v5328_v44, %v2948_v30  ;;  %v2931_v56 = vmul.f32 1.0614054, %v5330_v15 }
 0xf13   :  { %5331 = vrcp.f32 %v2920_v52  ;;  %v7321_v55 = vmul.f32 0.70710677, %v7318_v13  ;;  %v3000_v57 = vmul.f32 1.442695, %v2992_v27 }
 0xf14   :  { %v2960_v59 = vadd.f32 -0.28449672, %v2954_v39  ;;  %v2937_v29 = vadd.f32 -1.4531521, %v2931_v56  ;;  %5333 = vpow2.f32 %v2996_v47 }
 0xf15   :  { %v2909_v1 = vand.u32 2147483647, %v7321_v55  ;;  %vm3023_vm3 = vcmp.ge.f32.partialorder %v7321_v55, 0.0 }
 0xf16   :  { %v2966_v28 = vmul.f32 %v5328_v44, %v2960_v59  ;;  %v2943_v18 = vmul.f32 %v5330_v15, %v2937_v29 }
 0xf17   :  { %v2915_v51 = vmul.f32 0.3275911, %v2909_v1  ;;  %v2987_v40 = vsub.f32 0.0, %v2909_v1 }
 0xf18   :  { %v2972_v48 = vadd.f32 0.2548296, %v2966_v28  ;;  %v2949_v33 = vadd.f32 1.4214138, %v2943_v18  ;;  %v2895_v28 = vmul.f32 0.5, %v7292_v35  ;;  %v2896_v35 = vmul.f32 0.5, %v7311_v24 }
 0xf19   :  { %v5332_v58 = vpop.eup %5331  ;;  %v2921_v37 = vadd.f32 1.0, %v2915_v51  ;;  %v2993_v17 = vmul.f32 %v2987_v40, %v2909_v1 }
 0xf1a   :  { %v2978_v26 = vmul.f32 %v5328_v44, %v2972_v48  ;;  %v2955_v20 = vmul.f32 %v5330_v15, %v2949_v33  ;;  %v2932_v43 = vmul.f32 1.0614054, %v5332_v58  ;;  %v5334_v60 = vpop.eup %5333 }
 0xf1b   :  { %5335 = vrcp.f32 %v2921_v37  ;;  %v3002_v56 = vmul.f32 1.442695, %v2993_v17 }
 0xf1c   :  { %v3008_v6 = vmul.f32 %v5334_v60, %v2978_v26  ;;  %v2961_v53 = vadd.f32 -0.28449672, %v2955_v20  ;;  %v2938_v46 = vadd.f32 -1.4531521, %v2932_v43  ;;  %5337 = vpow2.f32 %v2998_v9 }
 0xf1d   :  { %5339 = vpow2.f32 %v3000_v57 }
 0xf1e   :  { %v3014_v45 = vsub.f32 1.0, %v3008_v6  ;;  %v2967_v38 = vmul.f32 %v5330_v15, %v2961_v53  ;;  %v2944_v25 = vmul.f32 %v5332_v58, %v2938_v46  ;;  %5341 = vpow2.f32 %v3002_v56 }
 0xf20   :  { %v3026_v12 = vsub.f32 0.0, %v3014_v45  ;;  %v2973_v49 = vadd.f32 0.2548296, %v2967_v38  ;;  %v2950_v19 = vadd.f32 1.4214138, %v2944_v25 }
 0xf21   :  { %v5336_v0 = vpop.eup %5335 }
 0xf22   :  { %v3032_v16 = vsel %vm3020_vm15, %v3014_v45, %v3026_v12  ;;  %v2979_v44 = vmul.f32 %v5330_v15, %v2973_v49  ;;  %v2956_v23 = vmul.f32 %v5332_v58, %v2950_v19  ;;  %v2933_v8 = vmul.f32 1.0614054, %v5336_v0  ;;  %v5338_v61 = vpop.eup %5337 }
 0xf23   :  { %v3038_v36 = vadd.f32 1.0, %v3032_v16  ;;  %v5340_v10 = vpop.eup %5339  ;;  %v2897_v49 = vmul.f32 0.5, %v7318_v13 }
 0xf24   :  { %v3009_v7 = vmul.f32 %v5338_v61, %v2979_v44  ;;  %v2962_v3 = vadd.f32 -0.28449672, %v2956_v23  ;;  %v2939_v14 = vadd.f32 -1.4531521, %v2933_v8  ;;  %v5342_v43 = vpop.eup %5341 }
 0xf25   :  { %v3044_v30 = vmul.f32 %v3038_v36, %v2894_v31 }
 0xf26   :  { %v3015_v47 = vsub.f32 1.0, %v3009_v7  ;;  %v2968_v63 = vmul.f32 %v5332_v58, %v2962_v3  ;;  %v2945_v52 = vmul.f32 %v5336_v0, %v2939_v14 }
 0xf27   :  { %4858 = vmatmul.msk.f32.vlgmr.msra.gmra.mxu3 %vm1571_vm12, %v3044_v30 }
 0xf28   :  { %v3027_v11 = vsub.f32 0.0, %v3015_v47  ;;  %v2974_v39 = vadd.f32 0.2548296, %v2968_v63  ;;  %v2951_v15 = vadd.f32 1.4214138, %v2945_v52 }
 0xf2a   :  { %v3033_v59 = vsel %vm3021_vm0, %v3015_v47, %v3027_v11  ;;  %v2980_v21 = vmul.f32 %v5332_v58, %v2974_v39  ;;  %v2957_v29 = vmul.f32 %v5336_v0, %v2951_v15 }
 0xf2b   :  { %v3039_v18 = vadd.f32 1.0, %v3033_v59 }
 0xf2c   :  { %v3010_v51 = vmul.f32 %v5340_v10, %v2980_v21  ;;  %v2963_v1 = vadd.f32 -0.28449672, %v2957_v29 }
 0xf2d   :  { %v3045_v48 = vmul.f32 %v3039_v18, %v2895_v28 }
 0xf2e   :  { %v3016_v33 = vsub.f32 1.0, %v3010_v51  ;;  %v2969_v9 = vmul.f32 %v5336_v0, %v2963_v1 }
 0xf2f   :  { %4859 = vmatmul.msk.f32.gmra.mxu3 %vm1571_vm12, %v3045_v48 }
 0xf30   :  { %v3028_v22 = vsub.f32 0.0, %v3016_v33  ;;  %v2975_v37 = vadd.f32 0.2548296, %v2969_v9 }
 0xf31   :  { %v2888_v26 = vpop.f32.mrf.mxu2 }
 0xf32   :  { %v2889_v2 = vadd.f32 %v7270_v5, %v2888_v26  ;;  %v3034_v58 = vsel %vm3022_vm2, %v3016_v33, %v3028_v22  ;;  %v2981_v20 = vmul.f32 %v5336_v0, %v2975_v37 }
 0xf33   :  { %v3040_v60 = vadd.f32 1.0, %v3034_v58 }
 0xf34   :  { %v2904_v6 = vmul.f32 0.70710677, %v2889_v2  ;;  %v3011_v53 = vmul.f32 %v5342_v43, %v2981_v20  ;;  %v2898_v48 = vmul.f32 0.5, %v2889_v2  ;;  %v5049_v2 = vld [vmem:[%s8190_s16 + $0x1] ss:$0 sm:$0xff] }
 0xf35   :  { %v3046_v46 = vmul.f32 %v3040_v60, %v2896_v35 }
 0xf36   :  { %v2910_v27 = vand.u32 2147483647, %v2904_v6  ;;  %v3017_v45 = vsub.f32 1.0, %v3011_v53  ;;  %vm3024_vm4 = vcmp.ge.f32.partialorder %v2904_v6, 0.0 }
 0xf37   :  { %4860 = vmatmul.msk.f32.gmra.mxu3 %vm1571_vm12, %v3046_v46 }
 0xf38   :  { %v2916_v38 = vmul.f32 0.3275911, %v2910_v27  ;;  %v3029_v25 = vsub.f32 0.0, %v3017_v45  ;;  %v2988_v40 = vsub.f32 0.0, %v2910_v27 }
 0xf3a   :  { %v2922_v34 = vadd.f32 1.0, %v2916_v38  ;;  %v3035_v12 = vsel %vm3023_vm3, %v3017_v45, %v3029_v25  ;;  %v2994_v61 = vmul.f32 %v2988_v40, %v2910_v27 }
 0xf3b   :  { %v3041_v19 = vadd.f32 1.0, %v3035_v12 }
 0xf3c   :  { %5343 = vrcp.f32 %v2922_v34  ;;  %v3004_v3 = vmul.f32 1.442695, %v2994_v61 }
 0xf3d   :  { %v3047_v0 = vmul.f32 %v3041_v19, %v2897_v49 }
 0xf3f   :  { %4861 = vmatmul.msk.f32.gmra.mxu3 %vm1571_vm12, %v3047_v0 }
 0xf40   :  { %v2891_v24 = vpop.f32.mrf.mxu2 }
 0xf41   :  { %v2892_v16 = vadd.f32 %v7270_v5, %v2891_v24 }
 0xf42   :  { %v5344_v57 = vpop.eup %5343 }
 0xf43   :  { %v2934_v44 = vmul.f32 1.0614054, %v5344_v57  ;;  %v2905_v23 = vmul.f32 0.70710677, %v2892_v16  ;;  %v2899_v6 = vmul.f32 0.5, %v2892_v16 }
 0xf45   :  { %v2940_v8 = vadd.f32 -1.4531521, %v2934_v44  ;;  %v2911_v31 = vand.u32 2147483647, %v2905_v23  ;;  %vm3025_vm5 = vcmp.ge.f32.partialorder %v2905_v23, 0.0 }
 0xf47   :  { %v2946_v55 = vmul.f32 %v5344_v57, %v2940_v8  ;;  %v2917_v36 = vmul.f32 0.3275911, %v2911_v31  ;;  %v2989_v52 = vsub.f32 0.0, %v2911_v31 }
 0xf49   :  { %v2952_v7 = vadd.f32 1.4214138, %v2946_v55  ;;  %v2923_v13 = vadd.f32 1.0, %v2917_v36  ;;  %v2995_v59 = vmul.f32 %v2989_v52, %v2911_v31 }
 0xf4b   :  { %v2958_v14 = vmul.f32 %v5344_v57, %v2952_v7  ;;  %5345 = vrcp.f32 %v2923_v13  ;;  %v3006_v18 = vmul.f32 1.442695, %v2995_v59 }
 0xf4c   :  { %5347 = vpow2.f32 %v3004_v3 }
 0xf4d   :  { %v2964_v30 = vadd.f32 -0.28449672, %v2958_v14  ;;  %5349 = vpow2.f32 %v3006_v18 }
 0xf4f   :  { %v2970_v17 = vmul.f32 %v5344_v57, %v2964_v30 }
 0xf51   :  { %v2976_v47 = vadd.f32 0.2548296, %v2970_v17  ;;  %v5346_v63 = vpop.eup %5345 }
 0xf52   :  { %v2935_v5 = vmul.f32 1.0614054, %v5346_v63  ;;  %v5348_v39 = vpop.eup %5347 }
 0xf53   :  { %v2982_v11 = vmul.f32 %v5344_v57, %v2976_v47  ;;  %v5350_v20 = vpop.eup %5349 }
 0xf54   :  { %v2941_v56 = vadd.f32 -1.4531521, %v2935_v5 }
 0xf55   :  { %v3012_v15 = vmul.f32 %v5348_v39, %v2982_v11 }
 0xf56   :  { %v2947_v29 = vmul.f32 %v5346_v63, %v2941_v56 }
 0xf57   :  { %v3018_v21 = vsub.f32 1.0, %v3012_v15 }
 0xf58   :  { %v2953_v28 = vadd.f32 1.4214138, %v2947_v29 }
 0xf59   :  { %v3030_v10 = vsub.f32 0.0, %v3018_v21 }
 0xf5a   :  { %v2959_v1 = vmul.f32 %v5346_v63, %v2953_v28 }
 0xf5b   :  { %v3036_v51 = vsel %vm3024_vm4, %v3018_v21, %v3030_v10 }
 0xf5c   :  { %v3042_v33 = vadd.f32 1.0, %v3036_v51  ;;  %v2965_v9 = vadd.f32 -0.28449672, %v2959_v1 }
 0xf5e   :  { %v3048_v22 = vmul.f32 %v3042_v33, %v2898_v48  ;;  %v2971_v37 = vmul.f32 %v5346_v63, %v2965_v9 }
 0xf60   :  { %4862 = vmatmul.msk.f32.gmra.mxu3 %vm1571_vm12, %v3048_v22  ;;  %v2977_v26 = vadd.f32 0.2548296, %v2971_v37 }
 0xf62   :  { %v2983_v58 = vmul.f32 %v5346_v63, %v2977_v26 }
 0xf64   :  { %v3013_v43 = vmul.f32 %v5350_v20, %v2983_v58  ;;  %v4869_v20 = vld [vmem:[%s8181_s7 + $0x58] sm:$0xff] }
 0xf65   :  { %3341 = vmatpush.msra.mxu1 %v4869_v20 }
 0xf66   :  { %v3019_v35 = vsub.f32 1.0, %v3013_v43  ;;  %v4868_v43 = vld [vmem:[%s8181_s7 + $0x50] sm:$0xff] }
 0xf67   :  { %3342 = vmatpush.msra.mxu1 %v4868_v43 }
 0xf68   :  { %v3031_v60 = vsub.f32 0.0, %v3019_v35 }
 0xf6a   :  { %v3037_v53 = vsel %vm3025_vm5, %v3019_v35, %v3031_v60  ;;  %v4867_v35 = vld [vmem:[%s8181_s7 + $0x48] sm:$0xff]  ;;  %v4866_v60 = vld [vmem:[%s8181_s7 + $0x40] sm:$0xff] }
 0xf6b   :  { %v3043_v46 = vadd.f32 1.0, %v3037_v53  ;;  %3343 = vmatpush.msra.mxu1 %v4867_v35 }
 0xf6d   :  { %v3049_v27 = vmul.f32 %v3043_v46, %v2899_v6  ;;  %3344 = vmatpush.msra.mxu1 %v4866_v60 }
 0xf6f   :  { %4863 = vmatmul.msk.f32.gmra.mxu3 %vm1571_vm12, %v3049_v27 }
 0xfaa   :  { %v3085_v45 = vpop.f32.mrf.mxu3 }
 0xfab   :  { %v3103_v38 = vadd.f32 %v3085_v45, %v7144_v54 }
 0xfad   :  { %v7344_v25 = vadd.f32 %v5049_v2, %v3103_v38 }
 0xfaf   :  { %v3158_v34 = vsel %vm177_vm1, %v7344_v25, 0.0 }
 0xfb0   :  { %3159 = vadd.xlane.f32.xlu0 %v3158_v34 }
 0xfb2   :  { %v3088_v12 = vpop.f32.mrf.mxu3 }
 0xfb3   :  { %v3104_v49 = vadd.f32 %v3088_v12, %v7149_v41 }
 0xfb5   :  { %v7349_v19 = vadd.f32 %v5049_v2, %v3104_v49 }
 0xfb7   :  { %v3161_v0 = vsel %vm177_vm1, %v7349_v19, 0.0 }
 0xfb8   :  { %3162 = vadd.xlane.f32.xlu1 %v3161_v0 }
 0xfba   :  { %v3091_v24 = vpop.f32.mrf.mxu3 }
 0xfbb   :  { %v3105_v57 = vadd.f32 %v3091_v24, %v7154_v4 }
 0xfbd   :  { %v7354_v40 = vadd.f32 %v5049_v2, %v3105_v57 }
 0xfbf   :  { %v3164_v54 = vsel %vm177_vm1, %v7354_v40, 0.0 }
 0xfc0   :  { %3165 = vadd.xlane.f32.xlu2 %v3164_v54 }
 0xfc2   :  { %v3094_v16 = vpop.f32.mrf.mxu3 }
 0xfc3   :  { %v3106_v44 = vadd.f32 %v3094_v16, %v7159_v50 }
 0xfc5   :  { %v7359_v23 = vadd.f32 %v5049_v2, %v3106_v44 }
 0xfc7   :  { %v3167_v41 = vsel %vm177_vm1, %v7359_v23, 0.0 }
 0xfc8   :  { %3168 = vadd.xlane.f32.xlu0 %v3167_v41 }
 0xfe3   :  { %v3097_v8 = vpop.f32.mrf.mxu3 }
 0xfe4   :  { %v3107_v61 = vadd.f32 %v3097_v8, %v7164_v32  ;;  %v7433_v8 = vld [vmem:[%s8211_s3 + $0x2] ss:$0 sm:$0xff] }
 0xfe6   :  { %v7364_v31 = vadd.f32 %v5049_v2, %v3107_v61 }
 0xfe8   :  { %v3170_v4 = vsel %vm177_vm1, %v7364_v31, 0.0 }
 0xfe9   :  { %3171 = vadd.xlane.f32.xlu1 %v3170_v4 }
 0xff2   :  { %v3100_v55 = vpop.f32.mrf.mxu3 }
 0xff3   :  { %v3108_v36 = vadd.f32 %v3100_v55, %v7169_v62  ;;  %v7438_v55 = vld [vmem:[%s8180_s6 + $0x2] ss:$0 sm:$0xff] }
 0xff5   :  { %v7369_v7 = vadd.f32 %v5049_v2, %v3108_v36 }
 0xff7   :  { %v3173_v50 = vsel %vm177_vm1, %v7369_v7, 0.0 }
 0xff8   :  { %3174 = vadd.xlane.f32.xlu2 %v3173_v50 }
0x1023   :  { %v3160_v3 = vpop.xlane.xlu0 %3159 }
0x1024   :  { %v3176_v13 = vmul.f32 %v3160_v3, %v5741_v42 }
0x1026   :  { %v7375_v32 = vsub.f32 %v7344_v25, %v3176_v13 }
0x1028   :  { %v3188_v14 = vmul.f32 %v7375_v32, %v7375_v32 }
0x102a   :  { %v3194_v30 = vsel %vm177_vm1, %v3188_v14, 0.0 }
0x102b   :  { %v3163_v17 = vpop.xlane.xlu1 %3162  ;;  %3195 = vadd.xlane.f32.xlu0 %v3194_v30 }
0x102c   :  { %v3177_v62 = vmul.f32 %v3163_v17, %v5741_v42 }
0x102e   :  { %v7382_v47 = vsub.f32 %v7349_v19, %v3177_v62 }
0x1030   :  { %v3189_v63 = vmul.f32 %v7382_v47, %v7382_v47 }
0x1032   :  { %v3197_v52 = vsel %vm177_vm1, %v3189_v63, 0.0 }
0x1033   :  { %3198 = vadd.xlane.f32.xlu1 %v3197_v52  ;;  %v3166_v11 = vpop.xlane.xlu2 %3165 }
0x1034   :  { %v3178_v5 = vmul.f32 %v3166_v11, %v5741_v42 }
0x1036   :  { %v7389_v39 = vsub.f32 %v7354_v40, %v3178_v5 }
0x1038   :  { %v3190_v15 = vmul.f32 %v7389_v39, %v7389_v39 }
0x103a   :  { %v3200_v56 = vsel %vm177_vm1, %v3190_v15, 0.0 }
0x103b   :  { %v3169_v59 = vpop.xlane.xlu0 %3168  ;;  %3201 = vadd.xlane.f32.xlu2 %v3200_v56 }
0x103c   :  { %v3179_v21 = vmul.f32 %v3169_v59, %v5741_v42 }
0x103e   :  { %v7396_v29 = vsub.f32 %v7359_v23, %v3179_v21 }
0x1040   :  { %v3191_v10 = vmul.f32 %v7396_v29, %v7396_v29 }
0x1042   :  { %v3203_v28 = vsel %vm177_vm1, %v3191_v10, 0.0 }
0x1043   :  { %3204 = vadd.xlane.f32.xlu0 %v3203_v28 }
0x105c   :  { %v3172_v18 = vpop.xlane.xlu1 %3171 }
0x105d   :  { %v3180_v51 = vmul.f32 %v3172_v18, %v5741_v42 }
0x105f   :  { %v7403_v1 = vsub.f32 %v7364_v31, %v3180_v51 }
0x1061   :  { %v3192_v48 = vmul.f32 %v7403_v1, %v7403_v1 }
0x1063   :  { %v3206_v33 = vsel %vm177_vm1, %v3192_v48, 0.0 }
0x1064   :  { %3207 = vadd.xlane.f32.xlu1 %v3206_v33 }
0x106b   :  { %v3175_v9 = vpop.xlane.xlu2 %3174 }
0x106c   :  { %v3181_v22 = vmul.f32 %v3175_v9, %v5741_v42 }
0x106e   :  { %v7410_v37 = vsub.f32 %v7369_v7, %v3181_v22 }
0x1070   :  { %v3193_v26 = vmul.f32 %v7410_v37, %v7410_v37 }
0x1072   :  { %v3209_v58 = vsel %vm177_vm1, %v3193_v26, 0.0 }
0x1073   :  { %3210 = vadd.xlane.f32.xlu2 %v3209_v58 }
0x109e   :  { %v3196_v53 = vpop.xlane.xlu0 %3195 }
0x109f   :  { %v3212_v6 = vmul.f32 %v3196_v53, %v5741_v42 }
0x10a1   :  { %v3218_v46 = vadd.f32 1e-05, %v3212_v6 }
0x10a3   :  { %5351 = vrsqrt.f32 %v3218_v46  ;;  %vm3230_vm8 = vweird.f32 %v3218_v46 }
0x10a6   :  { %v3199_v27 = vpop.xlane.xlu1 %3198 }
0x10a7   :  { %v3213_v2 = vmul.f32 %v3199_v27, %v5741_v42 }
0x10a9   :  { %v5352_v45 = vpop.eup %5351  ;;  %v3219_v38 = vadd.f32 1e-05, %v3213_v2 }
0x10aa   :  { %v3225_v34 = vmul.f32 %v5352_v45, %v3218_v46  ;;  %vm3231_vm7 = vweird.f32 %v5352_v45 }
0x10ab   :  { %5353 = vrsqrt.f32 %v3219_v38  ;;  %vm3232_vm9 = vmor %vm3230_vm8, %vm3231_vm7  ;;  %vm3240_vm11 = vweird.f32 %v3219_v38 }
0x10ac   :  { %v3226_v12 = vmul.f32 %v5352_v45, %v3225_v34 }
0x10ae   :  { %v3227_v49 = vmul.f32 0.5, %v3226_v12  ;;  %v3202_v0 = vpop.xlane.xlu2 %3201 }
0x10af   :  { %v3214_v24 = vmul.f32 %v3202_v0, %v5741_v42 }
0x10b0   :  { %v3228_v57 = vsub.f32 1.5, %v3227_v49 }
0x10b1   :  { %v5354_v54 = vpop.eup %5353  ;;  %v3220_v16 = vadd.f32 1e-05, %v3214_v24 }
0x10b2   :  { %v3229_v44 = vmul.f32 %v5352_v45, %v3228_v57  ;;  %v3235_v41 = vmul.f32 %v5354_v54, %v3219_v38  ;;  %vm3241_vm10 = vweird.f32 %v5354_v54 }
0x10b3   :  { %5355 = vrsqrt.f32 %v3220_v16  ;;  %vm3242_vm13 = vmor %vm3240_vm11, %vm3241_vm10  ;;  %vm3250_vm15 = vweird.f32 %v3220_v16 }
0x10b4   :  { %v3233_v61 = vsel %vm3232_vm9, %v5352_v45, %v3229_v44  ;;  %v3236_v4 = vmul.f32 %v5354_v54, %v3235_v41 }
0x10b5   :  { %v3284_v36 = vmul.f32 %v3233_v61, %v7375_v32 }
0x10b6   :  { %v3237_v50 = vmul.f32 0.5, %v3236_v4  ;;  %v3205_v3 = vpop.xlane.xlu0 %3204 }
0x10b7   :  { %v3293_v13 = vmul.f32 %v7433_v8, %v3284_v36  ;;  %v3215_v14 = vmul.f32 %v3205_v3, %v5741_v42 }
0x10b8   :  { %v3238_v30 = vsub.f32 1.5, %v3237_v50 }
0x10b9   :  { %v5356_v17 = vpop.eup %5355  ;;  %v3302_v62 = vadd.f32 %v7438_v55, %v3293_v13  ;;  %v3221_v63 = vadd.f32 1e-05, %v3215_v14 }
0x10ba   :  { %v3239_v52 = vmul.f32 %v5354_v54, %v3238_v30  ;;  %v3245_v11 = vmul.f32 %v5356_v17, %v3220_v16  ;;  %vm3251_vm14 = vweird.f32 %v5356_v17  ;;  %v5052_v30 = vld [vmem:[%s8182_s8 + $0x2] ss:$0 sm:$0xff] }
0x10bb   :  { %5357 = vrsqrt.f32 %v3221_v63  ;;  %4892 = vmatmul.msk.f32.vlgmr.msra.gmra.mxu1 %vm177_vm1, %v3302_v62  ;;  %vm3252_vm0 = vmor %vm3250_vm15, %vm3251_vm14  ;;  %vm3260_vm3 = vweird.f32 %v3221_v63 }
0x10bc   :  { %v3243_v32 = vsel %vm3242_vm13, %v5354_v54, %v3239_v52  ;;  %v3246_v5 = vmul.f32 %v5356_v17, %v3245_v11 }
0x10bd   :  { %v3285_v15 = vmul.f32 %v3243_v32, %v7382_v47 }
0x10be   :  { %v3247_v56 = vmul.f32 0.5, %v3246_v5 }
0x10bf   :  { %v3294_v59 = vmul.f32 %v7433_v8, %v3285_v15 }
0x10c0   :  { %v3248_v21 = vsub.f32 1.5, %v3247_v56 }
0x10c1   :  { %v5358_v10 = vpop.eup %5357  ;;  %v3303_v28 = vadd.f32 %v7438_v55, %v3294_v59 }
0x10c2   :  { %v3249_v18 = vmul.f32 %v5356_v17, %v3248_v21  ;;  %v3255_v51 = vmul.f32 %v5358_v10, %v3221_v63  ;;  %vm3261_vm2 = vweird.f32 %v5358_v10 }
0x10c3   :  { %4893 = vmatmul.msk.f32.gmra.mxu1 %vm177_vm1, %v3303_v28  ;;  %vm3262_vm4 = vmor %vm3260_vm3, %vm3261_vm2 }
0x10c4   :  { %v3253_v48 = vsel %vm3252_vm0, %v5356_v17, %v3249_v18  ;;  %v3256_v33 = vmul.f32 %v5358_v10, %v3255_v51  ;;  %v7504_v51 = vld [vmem:[%s8212_s23] ss:$0 sm:$0xff] }
0x10c5   :  { %v3286_v9 = vmul.f32 %v3253_v48, %v7389_v39 }
0x10c6   :  { %v3257_v22 = vmul.f32 0.5, %v3256_v33 }
0x10c7   :  { %v3295_v47 = vmul.f32 %v7433_v8, %v3286_v9 }
0x10c8   :  { %v3258_v26 = vsub.f32 1.5, %v3257_v22  ;;  %v7518_v22 = vld [vmem:[%s8212_s23 + $0x1] ss:$0 sm:$0xff] }
0x10c9   :  { %v3304_v58 = vadd.f32 %v7438_v55, %v3295_v47 }
0x10ca   :  { %v3259_v20 = vmul.f32 %v5358_v10, %v3258_v26 }
0x10cb   :  { %4894 = vmatmul.msk.f32.gmra.mxu1 %vm177_vm1, %v3304_v58 }
0x10cc   :  { %v3263_v43 = vsel %vm3262_vm4, %v5358_v10, %v3259_v20 }
0x10cd   :  { %v3287_v35 = vmul.f32 %v3263_v43, %v7396_v29  ;;  %v7533_v43 = vld [vmem:[%s8212_s23 + $0x2] ss:$0 sm:$0xff] }
0x10cf   :  { %v3296_v60 = vmul.f32 %v7433_v8, %v3287_v35 }
0x10d1   :  { %v3305_v53 = vadd.f32 %v7438_v55, %v3296_v60 }
0x10d3   :  { %4895 = vmatmul.msk.f32.gmra.mxu1 %vm177_vm1, %v3305_v53 }
0x10d7   :  { %v3208_v39 = vpop.xlane.xlu1 %3207 }
0x10d8   :  { %v3216_v6 = vmul.f32 %v3208_v39, %v5741_v42 }
0x10da   :  { %v3222_v46 = vadd.f32 1e-05, %v3216_v6 }
0x10dc   :  { %5359 = vrsqrt.f32 %v3222_v46  ;;  %vm3270_vm7 = vweird.f32 %v3222_v46 }
0x10e2   :  { %v5360_v27 = vpop.eup %5359 }
0x10e3   :  { %v3265_v2 = vmul.f32 %v5360_v27, %v3222_v46  ;;  %vm3271_vm5 = vweird.f32 %v5360_v27 }
0x10e4   :  { %vm3272_vm8 = vmor %vm3270_vm7, %vm3271_vm5 }
0x10e5   :  { %v3266_v45 = vmul.f32 %v5360_v27, %v3265_v2  ;;  %v7555_v2 = vld [vmem:[%s8212_s23 + $0x3] ss:$0 sm:$0xff] }
0x10e6   :  { %v3211_v34 = vpop.xlane.xlu2 %3210 }
0x10e7   :  { %v3267_v38 = vmul.f32 0.5, %v3266_v45  ;;  %v3217_v12 = vmul.f32 %v3211_v34, %v5741_v42 }
0x10e9   :  { %v3268_v49 = vsub.f32 1.5, %v3267_v38  ;;  %v3223_v29 = vadd.f32 1e-05, %v3217_v12 }
0x10eb   :  { %v3269_v0 = vmul.f32 %v5360_v27, %v3268_v49  ;;  %5361 = vrsqrt.f32 %v3223_v29  ;;  %vm3280_vm10 = vweird.f32 %v3223_v29 }
0x10ed   :  { %v3273_v24 = vsel %vm3272_vm8, %v5360_v27, %v3269_v0 }
0x10ee   :  { %v3288_v57 = vmul.f32 %v3273_v24, %v7403_v1 }
0x10f0   :  { %v3297_v54 = vmul.f32 %v7433_v8, %v3288_v57 }
0x10f1   :  { %v5362_v16 = vpop.eup %5361 }
0x10f2   :  { %v3306_v44 = vadd.f32 %v7438_v55, %v3297_v54  ;;  %v3275_v41 = vmul.f32 %v5362_v16, %v3223_v29  ;;  %vm3281_vm9 = vweird.f32 %v5362_v16 }
0x10f3   :  { %vm3282_vm11 = vmor %vm3280_vm10, %vm3281_vm9 }
0x10f4   :  { %4896 = vmatmul.msk.f32.gmra.mxu1 %vm177_vm1, %v3306_v44  ;;  %v3276_v61 = vmul.f32 %v5362_v16, %v3275_v41  ;;  %v7590_v44 = vld [vmem:[%s8213_s0] ss:$0 sm:$0xff] }
0x10f6   :  { %v3277_v4 = vmul.f32 0.5, %v3276_v61 }
0x10f8   :  { %v3278_v36 = vsub.f32 1.5, %v3277_v4 }
0x10fa   :  { %v3279_v50 = vmul.f32 %v5362_v16, %v3278_v36 }
0x10fc   :  { %v3283_v3 = vsel %vm3282_vm11, %v5362_v16, %v3279_v50 }
0x10fd   :  { %v3289_v13 = vmul.f32 %v3283_v3, %v7410_v37 }
0x10ff   :  { %v3298_v1 = vmul.f32 %v7433_v8, %v3289_v13 }
0x1101   :  { %v3307_v14 = vadd.f32 %v7438_v55, %v3298_v1 }
0x1103   :  { %4897 = vmatmul.msk.f32.gmra.mxu1 %vm177_vm1, %v3307_v14 }
0x1138   :  { %v3346_v17 = vpop.f32.mrf.mxu1 }
0x1139   :  { %v7470_v62 = vadd.f32 %v5052_v30, %v3346_v17 }
0x113b   :  { %3379 = vrot.lane.b32.xlu2 %v7470_v62, %s5544_s30  ;;  %v3364_v48 = vmul.f32 %v7504_v51, %v7470_v62  ;;  %v3367_v47 = vmul.f32 %v7518_v22, %v7470_v62  ;;  %v3370_v35 = vmul.f32 %v7533_v43, %v7470_v62  ;;  %v3373_v45 = vmul.f32 %v7555_v2, %v7470_v62 }
0x1140   :  { %v3349_v63 = vpop.f32.mrf.mxu1 }
0x1141   :  { %v7474_v52 = vadd.f32 %v5052_v30, %v3349_v63 }
0x1143   :  { %3381 = vrot.lane.b32.xlu1 %v7474_v52, %s5544_s30  ;;  %v3365_v33 = vmul.f32 %v7504_v51, %v7474_v52  ;;  %v3368_v26 = vmul.f32 %v7518_v22, %v7474_v52  ;;  %v3371_v53 = vmul.f32 %v7533_v43, %v7474_v52  ;;  %v3374_v34 = vmul.f32 %v7555_v2, %v7474_v52 }
0x1148   :  { %v3352_v37 = vpop.f32.mrf.mxu1 }
0x1149   :  { %v7478_v8 = vadd.f32 %v5052_v30, %v3352_v37 }
0x114b   :  { %3383 = vrot.lane.b32.xlu0 %v7478_v8, %s5544_s30  ;;  %v5014_v55 = vpack.i.bf16 %v7474_v52, %v7478_v8  ;;  %v3366_v9 = vmul.f32 %v7504_v51, %v7478_v8  ;;  %v3369_v58 = vmul.f32 %v7518_v22, %v7478_v8  ;;  %v3372_v46 = vmul.f32 %v7533_v43, %v7478_v8 }
0x114c   :  { %v3375_v49 = vmul.f32 %v7555_v2, %v7478_v8 }
0x1150   :  { %v3355_v11 = vpop.f32.mrf.mxu1 }
0x1151   :  { %v7484_v32 = vadd.f32 %v5052_v30, %v3355_v11 }
0x1153   :  { %3746 = vrot.lane.b32.xlu2 %v7484_v32, %s5544_s30  ;;  %v3731_v6 = vmul.f32 %v7504_v51, %v7484_v32  ;;  %v3734_v12 = vmul.f32 %v7518_v22, %v7484_v32  ;;  %v3737_v24 = vmul.f32 %v7533_v43, %v7484_v32  ;;  %v3740_v4 = vmul.f32 %v7555_v2, %v7484_v32 }
0x1171   :  { %v3358_v5 = vpop.f32.mrf.mxu1 }
0x1172   :  { %v7488_v15 = vadd.f32 %v5052_v30, %v3358_v5 }
0x1174   :  { %v5024_v56 = vpack.i.bf16 %v7484_v32, %v7488_v15  ;;  %v3732_v27 = vmul.f32 %v7504_v51, %v7488_v15  ;;  %v3735_v29 = vmul.f32 %v7518_v22, %v7488_v15  ;;  %v3738_v57 = vmul.f32 %v7533_v43, %v7488_v15 }
0x1175   :  { %v3741_v13 = vmul.f32 %v7555_v2, %v7488_v15 }
0x1180   :  { %v3361_v59 = vpop.f32.mrf.mxu1 }
0x1181   :  { %v7492_v21 = vadd.f32 %v5052_v30, %v3361_v59 }
0x1183   :  { %3750 = vrot.lane.b32.xlu0 %v7492_v21, %s5544_s30  ;;  %v3733_v38 = vmul.f32 %v7504_v51, %v7492_v21  ;;  %v3736_v0 = vmul.f32 %v7518_v22, %v7492_v21  ;;  %v3739_v54 = vmul.f32 %v7533_v43, %v7492_v21  ;;  %v3742_v17 = vmul.f32 %v7555_v2, %v7492_v21 }
0x118b   :  { %3748 = vrot.lane.b32.xlu0 %v7488_v15, %s5544_s30 }
0x1195   :  { %v3380_v18 = vpop.permute.xlu2 %3379 }
0x11ad   :  { %v3747_v39 = vpop.permute.xlu2 %3746 }
0x11b5   :  { %v3382_v28 = vpop.permute.xlu1 %3381 }
0x11bd   :  { %v3384_v10 = vpop.permute.xlu0 %3383 }
0x11be   :  { %4898 = vmatpush.xpose.msk.msrb.mxu0 %vm177_vm1, %v3384_v10 }
0x11c2   :  { %4899 = vmatpush.xpose.msk.msrb.mxu0 %vm177_vm1, %v3382_v28 }
0x11c6   :  { %4900 = vmatpush.xpose.msk.msrb.mxu0 %vm177_vm1, %v3380_v18 }
0x11c9   :  { %4901 = vmatmul.msk.f32.vlgmr.msrb.gmra.mxu0 %vm177_vm1, %v3364_v48 }
0x11d1   :  { %4902 = vmatmul.msk.f32.gmra.mxu0 %vm177_vm1, %v3365_v33 }
0x11d9   :  { %4903 = vmatmul.msk.f32.gmra.mxu0 %vm177_vm1, %v3366_v9 }
0x11e1   :  { %4904 = vmatmul.msk.f32.gmra.mxu0 %vm177_vm1, %v3367_v47 }
0x11e9   :  { %4905 = vmatmul.msk.f32.gmra.mxu0 %vm177_vm1, %v3368_v26 }
0x11f1   :  { %4906 = vmatmul.msk.f32.gmra.mxu0 %vm177_vm1, %v3369_v58 }
0x11f5   :  { %v3751_v20 = vpop.permute.xlu0 %3750 }
0x11f6   :  { %4925 = vmatpush.xpose.msk.msrb.mxu3 %vm177_vm1, %v3751_v20 }
0x11f9   :  { %4907 = vmatmul.msk.f32.gmra.mxu0 %vm177_vm1, %v3370_v35 }
0x11fd   :  { %v3749_v60 = vpop.permute.xlu0 %3748 }
0x11fe   :  { %4926 = vmatpush.xpose.msk.msrb.mxu3 %vm177_vm1, %v3749_v60 }
0x1201   :  { %4908 = vmatmul.msk.f32.gmra.mxu0 %vm177_vm1, %v3371_v53 }
0x1202   :  { %4927 = vmatpush.xpose.msk.msrb.mxu3 %vm177_vm1, %v3747_v39 }
0x1205   :  { %4928 = vmatmul.msk.f32.vlgmr.msrb.gmra.mxu3 %vm177_vm1, %v3731_v6 }
0x1209   :  { %4909 = vmatmul.msk.f32.gmra.mxu0 %vm177_vm1, %v3372_v46 }
0x120d   :  { %4929 = vmatmul.msk.f32.gmra.mxu3 %vm177_vm1, %v3732_v27 }
0x1211   :  { %4910 = vmatmul.msk.f32.gmra.mxu0 %vm177_vm1, %v3373_v45 }
0x1215   :  { %4930 = vmatmul.msk.f32.gmra.mxu3 %vm177_vm1, %v3733_v38 }
0x1219   :  { %4911 = vmatmul.msk.f32.gmra.mxu0 %vm177_vm1, %v3374_v34 }
0x121d   :  { %4931 = vmatmul.msk.f32.gmra.mxu3 %vm177_vm1, %v3734_v12 }
0x1221   :  { %4912 = vmatmul.msk.f32.gmra.mxu0 %vm177_vm1, %v3375_v49 }
0x1225   :  { %4932 = vmatmul.msk.f32.gmra.mxu3 %vm177_vm1, %v3735_v29 }
0x122d   :  { %4933 = vmatmul.msk.f32.gmra.mxu3 %vm177_vm1, %v3736_v0 }
0x1235   :  { %4934 = vmatmul.msk.f32.gmra.mxu3 %vm177_vm1, %v3737_v24 }
0x123d   :  { %4935 = vmatmul.msk.f32.gmra.mxu3 %vm177_vm1, %v3738_v57 }
0x1245   :  { %4936 = vmatmul.msk.f32.gmra.mxu3 %vm177_vm1, %v3739_v54 }
0x1246   :  { %v3444_v16 = vpop.f32.mrf.mxu0 }
0x1247   :  { %v7593_v41 = vadd.f32 %v7590_v44, %v3444_v16 }
0x1249   :  { %v3480_v61 = vsel %vm522_vm6, %v7593_v41, -inf }
0x124a   :  { %3481 = vmax.xlane.f32.xlu1 %v3480_v61 }
0x124d   :  { %4937 = vmatmul.msk.f32.gmra.mxu3 %vm177_vm1, %v3740_v4 }
0x124e   :  { %v3447_v36 = vpop.f32.mrf.mxu0 }
0x124f   :  { %v7601_v50 = vadd.f32 %v7590_v44, %v3447_v36 }
0x1251   :  { %v3483_v3 = vsel %vm522_vm6, %v7601_v50, -inf }
0x1252   :  { %3484 = vmax.xlane.f32.xlu0 %v3483_v3 }
0x1255   :  { %4938 = vmatmul.msk.f32.gmra.mxu3 %vm177_vm1, %v3741_v13  ;;  %v5019_v13 = vpack.i.bf16 %v7492_v21, %v7470_v62 }
0x1256   :  { %v3450_v1 = vpop.f32.mrf.mxu0 }
0x1257   :  { %v7609_v14 = vadd.f32 %v7590_v44, %v3450_v1 }
0x1259   :  { %v3486_v30 = vsel %vm522_vm6, %v7609_v14, -inf }
0x125a   :  { %3487 = vmax.xlane.f32.xlu2 %v3486_v30 }
0x125d   :  { %4939 = vmatmul.msk.f32.gmra.mxu3 %vm177_vm1, %v3742_v17 }
0x125e   :  { %v3453_v63 = vpop.f32.mrf.mxu0 }
0x125f   :  { %v7617_v37 = vadd.f32 %v7590_v44, %v3453_v63 }
0x1261   :  { %v3489_v11 = vsel %vm522_vm6, %v7617_v37, -inf }
0x1262   :  { %3490 = vmax.xlane.f32.xlu1 %v3489_v11 }
0x1266   :  { %v3456_v5 = vpop.f32.mrf.mxu0 }
0x1267   :  { %v7622_v59 = vadd.f32 %v7590_v44, %v3456_v5 }
0x1269   :  { %v3492_v10 = vsel %vm522_vm6, %v7622_v59, -inf }
0x126a   :  { %3493 = vmax.xlane.f32.xlu0 %v3492_v10 }
0x126e   :  { %v3459_v28 = vpop.f32.mrf.mxu0 }
0x126f   :  { %v7632_v9 = vadd.f32 %v7590_v44, %v3459_v28 }
0x1271   :  { %v3495_v35 = vsel %vm522_vm6, %v7632_v9, -inf }
0x1276   :  { %v3462_v58 = vpop.f32.mrf.mxu0 }
0x1277   :  { %v7642_v60 = vadd.f32 %v7590_v44, %v3462_v58 }
0x1279   :  { %v3498_v46 = vsel %vm522_vm6, %v7642_v60, -inf }
0x127e   :  { %v3465_v27 = vpop.f32.mrf.mxu0 }
0x127f   :  { %v7652_v45 = vadd.f32 %v7590_v44, %v3465_v27 }
0x1281   :  { %v3501_v49 = vsel %vm522_vm6, %v7652_v45, -inf }
0x1286   :  { %v3468_v57 = vpop.f32.mrf.mxu0 }
0x1287   :  { %v7671_v54 = vadd.f32 %v7590_v44, %v3468_v57 }
0x1288   :  { %v3811_v18 = vpop.f32.mrf.mxu3 }
0x1289   :  { %v7627_v48 = vadd.f32 %v7590_v44, %v3811_v18  ;;  %v3504_v61 = vsel %vm522_vm6, %v7671_v54, -inf }
0x128b   :  { %v3847_v33 = vsel %vm522_vm6, %v7627_v48, -inf }
0x128c   :  { %3848 = vmax.xlane.f32.xlu2 %v3847_v33 }
0x128e   :  { %v3471_v36 = vpop.f32.mrf.mxu0 }
0x1290   :  { %v3814_v47 = vpop.f32.mrf.mxu3 }
0x1291   :  { %v7635_v26 = vadd.f32 %v7590_v44, %v3814_v47 }
0x1293   :  { %v3850_v20 = vsel %vm522_vm6, %v7635_v26, -inf }
0x1294   :  { %3851 = vmax.xlane.f32.xlu1 %v3850_v20  ;;  %3496 = vmax.xlane.f32.xlu2 %v3495_v35 }
0x1296   :  { %v3474_v17 = vpop.f32.mrf.mxu0 }
0x1297   :  { %v7691_v62 = vadd.f32 %v7590_v44, %v3474_v17 }
0x1298   :  { %v3817_v53 = vpop.f32.mrf.mxu3 }
0x1299   :  { %v7645_v39 = vadd.f32 %v7590_v44, %v3817_v53  ;;  %v3510_v10 = vsel %vm522_vm6, %v7691_v62, -inf }
0x129b   :  { %v3853_v6 = vsel %vm522_vm6, %v7645_v39, -inf }
0x129c   :  { %3854 = vmax.xlane.f32.xlu0 %v3853_v6  ;;  %3499 = vmax.xlane.f32.xlu1 %v3498_v46 }
0x12a0   :  { %v3820_v38 = vpop.f32.mrf.mxu3 }
0x12a1   :  { %v7655_v34 = vadd.f32 %v7590_v44, %v3820_v38 }
0x12a3   :  { %v3856_v12 = vsel %vm522_vm6, %v7655_v34, -inf }
0x12a4   :  { %3857 = vmax.xlane.f32.xlu0 %v3856_v12  ;;  %3502 = vmax.xlane.f32.xlu1 %v3501_v49 }
0x12a8   :  { %v3823_v29 = vpop.f32.mrf.mxu3 }
0x12a9   :  { %v7662_v0 = vadd.f32 %v7590_v44, %v3823_v29 }
0x12ab   :  { %v3859_v24 = vsel %vm522_vm6, %v7662_v0, -inf }
0x12ac   :  { %3860 = vmax.xlane.f32.xlu0 %v3859_v24  ;;  %5015 = vrot.lane.b32.xlu2 %v5014_v55, %s5545_s4 }
0x12b0   :  { %v3826_v16 = vpop.f32.mrf.mxu3 }
0x12b1   :  { %v7676_v4 = vadd.f32 %v7590_v44, %v3826_v16  ;;  %v3477_v16 = vpop.f32.mrf.mxu0 }
0x12b3   :  { %v3862_v3 = vsel %vm522_vm6, %v7676_v4, -inf }
0x12b4   :  { %3505 = vmax.xlane.f32.xlu0 %v3504_v61 }
0x12b8   :  { %v3829_v52 = vpop.f32.mrf.mxu3 }
0x12b9   :  { %v7684_v8 = vadd.f32 %v7590_v44, %v3829_v52 }
0x12bb   :  { %v3865_v30 = vsel %vm522_vm6, %v7684_v8, -inf }
0x12bc   :  { %3863 = vmax.xlane.f32.xlu0 %v3862_v3  ;;  %v7729_v3 = vadd.f32 %v7590_v44, %v3477_v16 }
0x12bd   :  { %5020 = vrot.lane.b32.xlu1 %v5019_v13, %s5545_s4  ;;  %v3482_v55 = vpop.xlane.xlu1 %3481 }
0x12be   :  { %v3516_v1 = vsub.f32 %v7593_v41, %v3482_v55  ;;  %v3513_v13 = vsel %vm522_vm6, %v7729_v3, -inf }
0x12c0   :  { %v3528_v21 = vmul.f32 1.442695, %v3516_v1  ;;  %v3832_v33 = vpop.f32.mrf.mxu3 }
0x12c1   :  { %v7706_v6 = vadd.f32 %v7590_v44, %v3832_v33 }
0x12c3   :  { %v3868_v38 = vsel %vm522_vm6, %v7706_v6, -inf }
0x12c4   :  { %3866 = vmax.xlane.f32.xlu0 %v3865_v30 }
0x12c5   :  { %v3485_v63 = vpop.xlane.xlu0 %3484 }
0x12c6   :  { %v3517_v11 = vsub.f32 %v7601_v50, %v3485_v63 }
0x12c8   :  { %v3530_v5 = vmul.f32 1.442695, %v3517_v11  ;;  %v3835_v27 = vpop.f32.mrf.mxu3 }
0x12c9   :  { %v7726_v61 = vadd.f32 %v7590_v44, %v3835_v27 }
0x12ca   :  { %5363 = vpow2.f32 %v3530_v5 }
0x12cb   :  { %5365 = vpow2.f32 %v3528_v21 }
0x12cc   :  { %3511 = vmax.xlane.f32.xlu0 %v3510_v10 }
0x12cd   :  { %v3488_v28 = vpop.xlane.xlu2 %3487 }
0x12ce   :  { %v3518_v47 = vsub.f32 %v7609_v14, %v3488_v28 }
0x12d0   :  { %v7695_v41 = vpop.eup %5363  ;;  %v3532_v53 = vmul.f32 1.442695, %v3518_v47  ;;  %v7721_v24 = vpop.f32.mrf.mxu3 }
0x12d1   :  { %v7697_v18 = vpop.eup %5365  ;;  %v3555_v50 = vsel %vm522_vm6, %v7695_v41, 0.0 }
0x12d2   :  { %v3552_v58 = vsel %vm522_vm6, %v7697_v18, 0.0 }
0x12d4   :  { %3556 = vadd.xlane.f32.xlu0 %v3555_v50 }
0x12d5   :  { %3553 = vadd.xlane.f32.xlu2 %v3552_v58  ;;  %v3491_v20 = vpop.xlane.xlu1 %3490 }
0x12d6   :  { %v3519_v35 = vsub.f32 %v7617_v37, %v3491_v20  ;;  %v7717_v37 = vadd.f32 %v7590_v44, %v3471_v36  ;;  %v3871_v36 = vsel %vm522_vm6, %v7726_v61, -inf }
0x12d8   :  { %v3534_v46 = vmul.f32 1.442695, %v3519_v35  ;;  %v3507_v57 = vsel %vm522_vm6, %v7717_v37, -inf  ;;  %v3841_v52 = vpop.f32.mrf.mxu3 }
0x12d9   :  { %v7736_v55 = vadd.f32 %v7590_v44, %v3841_v52 }
0x12da   :  { %5367 = vpow2.f32 %v3534_v46 }
0x12db   :  { %5369 = vpow2.f32 %v3532_v53  ;;  %v3877_v1 = vsel %vm522_vm6, %v7736_v55, -inf }
0x12dd   :  { %3869 = vmax.xlane.f32.xlu2 %v3868_v38  ;;  %v3494_v30 = vpop.xlane.xlu0 %3493 }
0x12de   :  { %v3520_v11 = vsub.f32 %v7622_v59, %v3494_v30 }
0x12e0   :  { %v7710_v14 = vpop.eup %5367  ;;  %v3536_v5 = vmul.f32 1.442695, %v3520_v11 }
0x12e1   :  { %v7712_v12 = vpop.eup %5369  ;;  %v3561_v49 = vsel %vm522_vm6, %v7710_v14, 0.0 }
0x12e2   :  { %3562 = vadd.xlane.f32.xlu0 %v3561_v49  ;;  %v3558_v29 = vsel %vm522_vm6, %v7712_v12, 0.0 }
0x12e5   :  { %3559 = vadd.xlane.f32.xlu2 %v3558_v29 }
0x12e7   :  { %3508 = vmax.xlane.f32.xlu1 %v3507_v57 }
0x12ed   :  { %3872 = vmax.xlane.f32.xlu2 %v3871_v36 }
0x12ef   :  { %3514 = vmax.xlane.f32.xlu1 %v3513_v13 }
0x12f7   :  { %3878 = vmax.xlane.f32.xlu1 %v3877_v1 }
0x12ff   :  { %v3849_v17 = vpop.xlane.xlu2 %3848 }
0x1300   :  { %v3883_v63 = vsub.f32 %v7627_v48, %v3849_v17 }
0x1302   :  { %v3895_v21 = vmul.f32 1.442695, %v3883_v63 }
0x1304   :  { %5371 = vpow2.f32 %v3895_v21 }
0x1305   :  { %5373 = vpow2.f32 %v3536_v5 }
0x1307   :  { %v3852_v10 = vpop.xlane.xlu1 %3851  ;;  %v3497_v28 = vpop.xlane.xlu2 %3496 }
0x1308   :  { %v3884_v33 = vsub.f32 %v7635_v26, %v3852_v10  ;;  %v3521_v50 = vsub.f32 %v7632_v9, %v3497_v28 }
0x130a   :  { %v7744_v47 = vpop.eup %5371  ;;  %v3897_v58 = vmul.f32 1.442695, %v3884_v33  ;;  %v3538_v20 = vmul.f32 1.442695, %v3521_v50 }
0x130b   :  { %v3919_v35 = vsel %vm522_vm6, %v7744_v47, 0.0  ;;  %v7748_v53 = vpop.eup %5373 }
0x130c   :  { %5375 = vpow2.f32 %v3897_v58  ;;  %3920 = vadd.xlane.f32.xlu0 %v3919_v35  ;;  %v3564_v13 = vsel %vm522_vm6, %v7748_v53, 0.0 }
0x130d   :  { %5377 = vpow2.f32 %v3538_v20 }
0x130f   :  { %v3855_v59 = vpop.xlane.xlu0 %3854  ;;  %v3500_v48 = vpop.xlane.xlu1 %3499 }
0x1310   :  { %v3885_v46 = vsub.f32 %v7645_v39, %v3855_v59  ;;  %v3522_v26 = vsub.f32 %v7642_v60, %v3500_v48  ;;  %v5016_v9 = vpop.permute.xlu2 %5015 }
0x1311   :  { %v5017_v27 = vunpack.i.l.bf16 %v5016_v9  ;;  %v5018_v16 = vunpack.i.h.bf16 %v5016_v9 }
0x1312   :  { %v7752_v38 = vpop.eup %5375  ;;  %v3899_v49 = vmul.f32 1.442695, %v3885_v46  ;;  %v3540_v29 = vmul.f32 1.442695, %v3522_v26  ;;  %v3844_v26 = vpop.f32.mrf.mxu3 }
0x1313   :  { %v7754_v57 = vpop.eup %5377  ;;  %3670 = vmatpush.msrb.mxu2 %v5017_v27  ;;  %v3922_v36 = vsel %vm522_vm6, %v7752_v38, 0.0 }
0x1314   :  { %5379 = vpow2.f32 %v3899_v49  ;;  %3923 = vadd.xlane.f32.xlu2 %v3922_v36  ;;  %3565 = vadd.xlane.f32.xlu0 %v3564_v13  ;;  %v3567_v60 = vsel %vm522_vm6, %v7754_v57, 0.0  ;;  %v7791_v49 = vadd.f32 %v7590_v44, %v3844_v26 }
0x1315   :  { %5381 = vpow2.f32 %v3540_v29  ;;  %3568 = vadd.xlane.f32.xlu1 %v3567_v60  ;;  %3671 = vmatpush.msrb.mxu2 %v5018_v16 }
0x1316   :  { %v3880_v36 = vsel %vm522_vm6, %v7791_v49, -inf }
0x1317   :  { %v3858_v39 = vpop.xlane.xlu0 %3857  ;;  %v3503_v52 = vpop.xlane.xlu1 %3502 }
0x1318   :  { %v3886_v1 = vsub.f32 %v7655_v34, %v3858_v39  ;;  %v3523_v30 = vsub.f32 %v7652_v45, %v3503_v52 }
0x131a   :  { %v7764_v17 = vpop.eup %5379  ;;  %v3901_v63 = vmul.f32 1.442695, %v3886_v1  ;;  %v3542_v11 = vmul.f32 1.442695, %v3523_v30 }
0x131b   :  { %v7766_v21 = vpop.eup %5381  ;;  %v3925_v5 = vsel %vm522_vm6, %v7764_v17, 0.0 }
0x131c   :  { %5383 = vpow2.f32 %v3901_v63  ;;  %v3570_v10 = vsel %vm522_vm6, %v7766_v21, 0.0 }
0x131d   :  { %5385 = vpow2.f32 %v3542_v11  ;;  %3571 = vadd.xlane.f32.xlu2 %v3570_v10  ;;  %3926 = vadd.xlane.f32.xlu1 %v3925_v5 }
0x131f   :  { %v3861_v28 = vpop.xlane.xlu0 %3860 }
0x1320   :  { %v3887_v34 = vsub.f32 %v7662_v0, %v3861_v28 }
0x1322   :  { %v7773_v45 = vpop.eup %5383  ;;  %v3903_v33 = vmul.f32 1.442695, %v3887_v34 }
0x1323   :  { %v7775_v50 = vpop.eup %5385  ;;  %v3928_v58 = vsel %vm522_vm6, %v7773_v45, 0.0 }
0x1324   :  { %5387 = vpow2.f32 %v3903_v33  ;;  %v3573_v20 = vsel %vm522_vm6, %v7775_v50, 0.0 }
0x1325   :  { %3574 = vadd.xlane.f32.xlu2 %v3573_v20  ;;  %3929 = vadd.xlane.f32.xlu1 %v3928_v58 }
0x1327   :  { %v3506_v35 = vpop.xlane.xlu0 %3505 }
0x1328   :  { %v3524_v59 = vsub.f32 %v7671_v54, %v3506_v35  ;;  %5025 = vrot.lane.b32.xlu0 %v5024_v56, %s5545_s4 }
0x132a   :  { %v7786_v0 = vpop.eup %5387  ;;  %v3544_v48 = vmul.f32 1.442695, %v3524_v59 }
0x132b   :  { %v3931_v46 = vsel %vm522_vm6, %v7786_v0, 0.0 }
0x132c   :  { %5389 = vpow2.f32 %v3544_v48 }
0x132d   :  { %3932 = vadd.xlane.f32.xlu2 %v3931_v46 }
0x132f   :  { %v3864_v9 = vpop.xlane.xlu0 %3863  ;;  %v5021_v27 = vpop.permute.xlu1 %5020 }
0x1330   :  { %v3888_v54 = vsub.f32 %v7676_v4, %v3864_v9  ;;  %v5023_v29 = vunpack.i.h.bf16 %v5021_v27  ;;  %v5022_v16 = vunpack.i.l.bf16 %v5021_v27 }
0x1332   :  { %v7794_v32 = vpop.eup %5389  ;;  %v3905_v15 = vmul.f32 1.442695, %v3888_v54  ;;  %3672 = vmatpush.msrb.mxu2 %v5022_v16  ;;  %4037 = vmatpush.msrb.mxu1 %v5023_v29 }
0x1333   :  { %v3576_v56 = vsel %vm522_vm6, %v7794_v32, 0.0 }
0x1334   :  { %5391 = vpow2.f32 %v3905_v15  ;;  %3577 = vadd.xlane.f32.xlu1 %v3576_v56 }
0x1335   :  { %3881 = vmax.xlane.f32.xlu2 %v3880_v36 }
0x1337   :  { %v3867_v13 = vpop.xlane.xlu0 %3866 }
0x1338   :  { %v3889_v60 = vsub.f32 %v7684_v8, %v3867_v13  ;;  %v7811_v8 = vadd.f32 %v7590_v44, %v7721_v24 }
0x133a   :  { %v7801_v4 = vpop.eup %5391  ;;  %v3907_v39 = vmul.f32 1.442695, %v3889_v60  ;;  %v3874_v58 = vsel %vm522_vm6, %v7811_v8, -inf }
0x133b   :  { %v3934_v52 = vsel %vm522_vm6, %v7801_v4, 0.0 }
0x133c   :  { %5393 = vpow2.f32 %v3907_v39  ;;  %3935 = vadd.xlane.f32.xlu1 %v3934_v52 }
0x133f   :  { %v3512_v30 = vpop.xlane.xlu0 %3511 }
0x1340   :  { %v3526_v26 = vsub.f32 %v7691_v62, %v3512_v30 }
0x1342   :  { %v7805_v1 = vpop.eup %5393  ;;  %v3548_v54 = vmul.f32 1.442695, %v3526_v26 }
0x1343   :  { %v3937_v63 = vsel %vm522_vm6, %v7805_v1, 0.0 }
0x1344   :  { %3938 = vadd.xlane.f32.xlu1 %v3937_v63 }
0x1347   :  { %v3557_v5 = vpop.xlane.xlu0 %3556 }
0x1348   :  { %v3554_v11 = vpop.xlane.xlu2 %3553 }
0x1349   :  { %5395 = vrcp.f32 %v3554_v11 }
0x134a   :  { %5397 = vrcp.f32 %v3557_v5 }
0x134f   :  { %v5396_v10 = vpop.eup %5395 }
0x1350   :  { %v3600_v28 = vmul.f32 %v5396_v10, %v7697_v18  ;;  %v3870_v34 = vpop.xlane.xlu2 %3869  ;;  %v5398_v35 = vpop.eup %5397 }
0x1351   :  { %v3890_v33 = vsub.f32 %v7706_v6, %v3870_v34  ;;  %v3601_v44 = vmul.f32 %v5398_v35, %v7695_v41 }
0x1352   :  { %3875 = vmax.xlane.f32.xlu0 %v3874_v58  ;;  %4913 = vmatmul.msk.f32.vlgmr.msrb.gmra.mxu2 %vm522_vm6, %v3600_v28 }
0x1353   :  { %v3909_v20 = vmul.f32 1.442695, %v3890_v33 }
0x1355   :  { %5399 = vpow2.f32 %v3909_v20  ;;  %v3563_v48 = vpop.xlane.xlu0 %3562 }
0x1358   :  { %v3560_v59 = vpop.xlane.xlu2 %3559 }
0x1359   :  { %5401 = vrcp.f32 %v3560_v59 }
0x135a   :  { %v3509_v24 = vpop.xlane.xlu1 %3508  ;;  %4914 = vmatmul.msk.f32.gmra.mxu2 %vm522_vm6, %v3601_v44  ;;  %5403 = vrcp.f32 %v3563_v48 }
0x135b   :  { %v7820_v18 = vpop.eup %5399  ;;  %v3525_v6 = vsub.f32 %v7717_v37, %v3509_v24 }
0x135c   :  { %v3940_v46 = vsel %vm522_vm6, %v7820_v18, 0.0 }
0x135d   :  { %v3546_v9 = vmul.f32 1.442695, %v3525_v6  ;;  %3941 = vadd.xlane.f32.xlu1 %v3940_v46 }
0x135f   :  { %v5402_v27 = vpop.eup %5401  ;;  %5405 = vpow2.f32 %v3546_v9 }
0x1360   :  { %v3602_v41 = vmul.f32 %v5402_v27, %v7712_v12  ;;  %v3873_v29 = vpop.xlane.xlu2 %3872  ;;  %v5404_v37 = vpop.eup %5403  ;;  %5407 = vpow2.f32 %v3548_v54 }
0x1361   :  { %v3891_v62 = vsub.f32 %v7726_v61, %v3873_v29  ;;  %v3603_v12 = vmul.f32 %v5404_v37, %v7710_v14 }
0x1362   :  { %v3515_v16 = vpop.xlane.xlu1 %3514  ;;  %4915 = vmatmul.msk.f32.gmra.mxu2 %vm522_vm6, %v3602_v41 }
0x1363   :  { %v3527_v15 = vsub.f32 %v7729_v3, %v3515_v16  ;;  %v3911_v60 = vmul.f32 1.442695, %v3891_v62 }
0x1365   :  { %v7829_v56 = vpop.eup %5405  ;;  %v3550_v36 = vmul.f32 1.442695, %v3527_v15 }
0x1366   :  { %v3579_v13 = vsel %vm522_vm6, %v7829_v56, 0.0  ;;  %v7836_v52 = vpop.eup %5407 }
0x1367   :  { %5409 = vpow2.f32 %v3550_v36  ;;  %3580 = vadd.xlane.f32.xlu2 %v3579_v13  ;;  %v3582_v63 = vsel %vm522_vm6, %v7836_v52, 0.0 }
0x1368   :  { %5411 = vpow2.f32 %v3911_v60 }
0x136a   :  { %v3879_v39 = vpop.xlane.xlu1 %3878  ;;  %4916 = vmatmul.msk.f32.gmra.mxu2 %vm522_vm6, %v3603_v12 }
0x136b   :  { %v3893_v3 = vsub.f32 %v7736_v55, %v3879_v39 }
0x136d   :  { %v7839_v30 = vpop.eup %5409  ;;  %v3915_v61 = vmul.f32 1.442695, %v3893_v3 }
0x136e   :  { %v3585_v11 = vsel %vm522_vm6, %v7839_v30, 0.0  ;;  %v7845_v14 = vpop.eup %5411 }
0x136f   :  { %5413 = vpow2.f32 %v3915_v61  ;;  %3583 = vadd.xlane.f32.xlu2 %v3582_v63  ;;  %3586 = vadd.xlane.f32.xlu0 %v3585_v11  ;;  %v3943_v10 = vsel %vm522_vm6, %v7845_v14, 0.0 }
0x1375   :  { %v7847_v5 = vpop.eup %5413 }
0x1376   :  { %v3949_v55 = vsel %vm522_vm6, %v7847_v5, 0.0 }
0x1377   :  { %3950 = vadd.xlane.f32.xlu0 %v3949_v55  ;;  %3944 = vadd.xlane.f32.xlu2 %v3943_v10 }
0x137f   :  { %v3921_v28 = vpop.xlane.xlu0 %3920 }
0x1387   :  { %v3566_v34 = vpop.xlane.xlu0 %3565  ;;  %v3924_v33 = vpop.xlane.xlu2 %3923 }
0x1388   :  { %5415 = vrcp.f32 %v3566_v34  ;;  %v3569_v58 = vpop.xlane.xlu1 %3568 }
0x1389   :  { %5417 = vrcp.f32 %v3569_v58 }
0x138a   :  { %5419 = vrcp.f32 %v3921_v28 }
0x138e   :  { %v5416_v20 = vpop.eup %5415 }
0x138f   :  { %v3604_v35 = vmul.f32 %v5416_v20, %v7748_v53  ;;  %v5418_v44 = vpop.eup %5417 }
0x1390   :  { %v3572_v59 = vpop.xlane.xlu2 %3571  ;;  %v3927_v24 = vpop.xlane.xlu1 %3926  ;;  %v3605_v48 = vmul.f32 %v5418_v44, %v7754_v57 }
0x1391   :  { %4917 = vmatmul.msk.f32.gmra.mxu2 %vm522_vm6, %v3604_v35  ;;  %5421 = vrcp.f32 %v3572_v59  ;;  %v5420_v26 = vpop.eup %5419 }
0x1392   :  { %5423 = vrcp.f32 %v3924_v33  ;;  %v3967_v53 = vmul.f32 %v5420_v26, %v7744_v47 }
0x1397   :  { %v5422_v27 = vpop.eup %5421 }
0x1398   :  { %v3575_v6 = vpop.xlane.xlu2 %3574  ;;  %v3930_v54 = vpop.xlane.xlu1 %3929  ;;  %v3606_v29 = vmul.f32 %v5422_v27, %v7766_v21 }
0x1399   :  { %4918 = vmatmul.msk.f32.gmra.mxu2 %vm522_vm6, %v3605_v48  ;;  %5425 = vrcp.f32 %v3575_v6  ;;  %v5424_v57 = vpop.eup %5423 }
0x139a   :  { %v5026_v46 = vpop.permute.xlu0 %5025  ;;  %5427 = vrcp.f32 %v3927_v24  ;;  %v3968_v37 = vmul.f32 %v5424_v57, %v7752_v38 }
0x139b   :  { %v5027_v9 = vunpack.i.l.bf16 %v5026_v46  ;;  %v5028_v41 = vunpack.i.h.bf16 %v5026_v46 }
0x139d   :  { %4038 = vmatpush.msrb.mxu1 %v5027_v9 }
0x139f   :  { %4039 = vmatpush.msrb.mxu1 %v5028_v41  ;;  %v5426_v15 = vpop.eup %5425 }
0x13a0   :  { %v3933_v16 = vpop.xlane.xlu2 %3932  ;;  %4940 = vmatmul.msk.f32.vlgmr.msrb.gmra.mxu1 %vm522_vm6, %v3967_v53  ;;  %v3607_v36 = vmul.f32 %v5426_v15, %v7775_v50  ;;  %v5428_v21 = vpop.eup %5427 }
0x13a1   :  { %4919 = vmatmul.msk.f32.gmra.mxu2 %vm522_vm6, %v3606_v29  ;;  %v3969_v39 = vmul.f32 %v5428_v21, %v7764_v17 }
0x13a7   :  { %v3578_v62 = vpop.xlane.xlu1 %3577 }
0x13a8   :  { %5429 = vrcp.f32 %v3578_v62  ;;  %v3882_v47 = vpop.xlane.xlu2 %3881  ;;  %4941 = vmatmul.msk.f32.gmra.mxu1 %vm522_vm6, %v3968_v37  ;;  %v4872_v37 = vld [vmem:[%s8183_s9 + $0x48] sm:$0xff]  ;;  %v4871_v62 = vld [vmem:[%s8183_s9 + $0x40] sm:$0xff] }
0x13a9   :  { %v3894_v13 = vsub.f32 %v7791_v49, %v3882_v47  ;;  %4920 = vmatmul.msk.f32.gmra.mxu2 %vm522_vm6, %v3607_v36  ;;  %5431 = vrcp.f32 %v3930_v54 }
0x13ab   :  { %v3917_v12 = vmul.f32 1.442695, %v3894_v13 }
0x13ad   :  { %5433 = vpow2.f32 %v3917_v12 }
0x13ae   :  { %v5430_v60 = vpop.eup %5429  ;;  %5435 = vrcp.f32 %v3933_v16 }
0x13af   :  { %v3608_v38 = vmul.f32 %v5430_v60, %v7794_v32  ;;  %v5432_v50 = vpop.eup %5431  ;;  %v3936_v63 = vpop.xlane.xlu1 %3935 }
0x13b0   :  { %4942 = vmatmul.msk.f32.gmra.mxu1 %vm522_vm6, %v3969_v39  ;;  %v3970_v61 = vmul.f32 %v5432_v50, %v7773_v45  ;;  %5437 = vrcp.f32 %v3936_v63 }
0x13b1   :  { %4921 = vmatmul.msk.f32.gmra.mxu2 %vm522_vm6, %v3608_v38 }
0x13b3   :  { %v7870_v3 = vpop.eup %5433 }
0x13b4   :  { %v3952_v49 = vsel %vm522_vm6, %v7870_v3, 0.0  ;;  %v5436_v17 = vpop.eup %5435 }
0x13b5   :  { %3953 = vadd.xlane.f32.xlu2 %v3952_v49  ;;  %v3971_v32 = vmul.f32 %v5436_v17, %v7786_v0 }
0x13b6   :  { %v5438_v55 = vpop.eup %5437 }
0x13b7   :  { %v3939_v11 = vpop.xlane.xlu1 %3938  ;;  %v3972_v34 = vmul.f32 %v5438_v55, %v7801_v4 }
0x13b8   :  { %4943 = vmatmul.msk.f32.gmra.mxu1 %vm522_vm6, %v3970_v61  ;;  %5439 = vrcp.f32 %v3939_v11 }
0x13be   :  { %v5440_v45 = vpop.eup %5439 }
0x13bf   :  { %v3973_v58 = vmul.f32 %v5440_v45, %v7805_v1 }
0x13c0   :  { %4944 = vmatmul.msk.f32.gmra.mxu1 %vm522_vm6, %v3971_v32 }
0x13c5   :  { %v3876_v10 = vpop.xlane.xlu0 %3875 }
0x13c6   :  { %v3892_v28 = vsub.f32 %v7811_v8, %v3876_v10 }
0x13c8   :  { %v3913_v33 = vmul.f32 1.442695, %v3892_v28  ;;  %4945 = vmatmul.msk.f32.gmra.mxu1 %vm522_vm6, %v3972_v34 }
0x13ca   :  { %5441 = vpow2.f32 %v3913_v33 }
0x13d0   :  { %v5442_v20 = vpop.eup %5441  ;;  %v3942_v35 = vpop.xlane.xlu1 %3941  ;;  %4946 = vmatmul.msk.f32.gmra.mxu1 %vm522_vm6, %v3973_v58 }
0x13d1   :  { %5443 = vrcp.f32 %v3942_v35  ;;  %v3946_v0 = vsel %vm522_vm6, %v5442_v20, 0.0 }
0x13d2   :  { %3947 = vadd.xlane.f32.xlu1 %v3946_v0 }
0x13d7   :  { %v5444_v59 = vpop.eup %5443 }
0x13d8   :  { %v3974_v8 = vmul.f32 %v5444_v59, %v7820_v18 }
0x13da   :  { %4947 = vmatmul.msk.f32.gmra.mxu1 %vm522_vm6, %v3974_v8  ;;  %v3581_v4 = vpop.xlane.xlu2 %3580 }
0x13db   :  { %5445 = vrcp.f32 %v3581_v4 }
0x13e1   :  { %v5446_v44 = vpop.eup %5445 }
0x13e2   :  { %v3584_v24 = vpop.xlane.xlu2 %3583  ;;  %v3609_v48 = vmul.f32 %v5446_v44, %v7829_v56  ;;  %v3587_v1 = vpop.xlane.xlu0 %3586 }
0x13e3   :  { %5447 = vrcp.f32 %v3584_v24  ;;  %v3674_v56 = vpop.f32.mrf.mxu2 }
0x13e4   :  { %4922 = vmatmul.msk.f32.gmra.mxu2 %vm522_vm6, %v3609_v48  ;;  %5449 = vrcp.f32 %v3587_v1  ;;  %v3710_v63 = vmul.f32 %v7504_v51, %v3674_v56 }
0x13e9   :  { %v5448_v6 = vpop.eup %5447 }
0x13ea   :  { %v3945_v46 = vpop.xlane.xlu2 %3944  ;;  %v3610_v26 = vmul.f32 %v5448_v6, %v7836_v52  ;;  %v5450_v18 = vpop.eup %5449  ;;  %v4874_v52 = vld [vmem:[%s8183_s9 + $0x58] sm:$0xff] }
0x13eb   :  { %5451 = vrcp.f32 %v3945_v46  ;;  %v3611_v27 = vmul.f32 %v5450_v18, %v7839_v30  ;;  %v3677_v53 = vpop.f32.mrf.mxu2  ;;  %4128 = vmatpush.msra.mxu0 %v4874_v52  ;;  %v4873_v30 = vld [vmem:[%s8183_s9 + $0x50] sm:$0xff] }
0x13ec   :  { %4923 = vmatmul.msk.f32.gmra.mxu2 %vm522_vm6, %v3610_v26 }
0x13ed   :  { %4129 = vmatpush.msra.mxu0 %v4873_v30 }
0x13ef   :  { %4130 = vmatpush.msra.mxu0 %v4872_v37 }
0x13f1   :  { %v5452_v9 = vpop.eup %5451  ;;  %4131 = vmatpush.msra.mxu0 %v4871_v62  ;;  %v5514_v62 = vld [vmem:[%s8212_s23] ss:$0 sm:$0xff] }
0x13f2   :  { %v3975_v41 = vmul.f32 %v5452_v9, %v7845_v14  ;;  %v3951_v14 = vpop.xlane.xlu0 %3950 }
0x13f3   :  { %v3680_v54 = vpop.f32.mrf.mxu2 }
0x13f4   :  { %4924 = vmatmul.msk.f32.gmra.mxu2 %vm522_vm6, %v3611_v27  ;;  %4948 = vmatmul.msk.f32.gmra.mxu1 %vm522_vm6, %v3975_v41  ;;  %v3712_v59 = vmul.f32 %v7504_v51, %v3680_v54 }
0x13fb   :  { %v3683_v29 = vpop.f32.mrf.mxu2 }
0x13fc   :  { %v3713_v61 = vmul.f32 %v7518_v22, %v3683_v29 }
0x13fe   :  { %v3716_v32 = vadd.f32 %v3713_v61, %v3710_v63 }
0x1414   :  { %v3686_v16 = vpop.f32.mrf.mxu2 }
0x1415   :  { %v3714_v28 = vmul.f32 %v7518_v22, %v3686_v16 }
0x141c   :  { %v3689_v57 = vpop.f32.mrf.mxu2 }
0x141d   :  { %v3715_v35 = vmul.f32 %v7518_v22, %v3689_v57  ;;  %v4041_v44 = vpop.f32.mrf.mxu1 }
0x141e   :  { %v4077_v29 = vmul.f32 %v7504_v51, %v4041_v44 }
0x141f   :  { %v3718_v4 = vadd.f32 %v3715_v35, %v3712_v59 }
0x1424   :  { %v3692_v36 = vpop.f32.mrf.mxu2 }
0x1425   :  { %v3719_v17 = vmul.f32 %v7533_v43, %v3692_v36  ;;  %v4044_v46 = vpop.f32.mrf.mxu1 }
0x1426   :  { %v4078_v36 = vmul.f32 %v5514_v62, %v4044_v46 }
0x1427   :  { %v3722_v55 = vadd.f32 %v3719_v17, %v3716_v32 }
0x1428   :  { %v3954_v21 = vpop.xlane.xlu2 %3953 }
0x142c   :  { %v3695_v60 = vpop.f32.mrf.mxu2 }
0x142d   :  { %v3720_v34 = vmul.f32 %v7533_v43, %v3695_v60  ;;  %v4047_v26 = vpop.f32.mrf.mxu1  ;;  %v5515_v60 = vld [vmem:[%s8212_s23 + $0x1] ss:$0 sm:$0xff] }
0x1434   :  { %v3698_v49 = vpop.f32.mrf.mxu2 }
0x1435   :  { %v3721_v8 = vmul.f32 %v7533_v43, %v3698_v49  ;;  %v4050_v18 = vpop.f32.mrf.mxu1 }
0x1436   :  { %v4080_v54 = vmul.f32 %v7518_v22, %v4050_v18 }
0x1437   :  { %v3724_v48 = vadd.f32 %v3721_v8, %v3718_v4 }
0x1438   :  { %v4083_v52 = vadd.f32 %v4080_v54, %v4077_v29 }
0x143d   :  { %v4053_v9 = vpop.f32.mrf.mxu1 }
0x1445   :  { %v3948_v15 = vpop.xlane.xlu1 %3947  ;;  %v4056_v27 = vpop.f32.mrf.mxu1 }
0x1446   :  { %5453 = vrcp.f32 %v3948_v15 }
0x1447   :  { %5455 = vrcp.f32 %v3951_v14  ;;  %v4081_v14 = vmul.f32 %v7518_v22, %v4053_v9  ;;  %v4082_v22 = vmul.f32 %v5515_v60, %v4056_v27 }
0x1448   :  { %5457 = vrcp.f32 %v3954_v21 }
0x144c   :  { %v5454_v47 = vpop.eup %5453 }
0x144d   :  { %v3976_v13 = vmul.f32 %v5454_v47, %v5442_v20  ;;  %v5456_v12 = vpop.eup %5455  ;;  %v4059_v41 = vpop.f32.mrf.mxu1 }
0x144e   :  { %v3977_v39 = vmul.f32 %v5456_v12, %v7847_v5  ;;  %v5458_v38 = vpop.eup %5457  ;;  %v4086_v16 = vmul.f32 %v7533_v43, %v4059_v41 }
0x144f   :  { %4949 = vmatmul.msk.f32.gmra.mxu1 %vm522_vm6, %v3976_v13  ;;  %v3978_v50 = vmul.f32 %v5458_v38, %v7870_v3  ;;  %v3711_v3 = vmul.f32 %v7504_v51, %v3677_v53  ;;  %v4084_v51 = vadd.f32 %v4081_v14, %v4078_v36  ;;  %v4079_v38 = vmul.f32 %v5514_v62, %v4047_v26 }
0x1450   :  { %v4089_v15 = vadd.f32 %v4086_v16, %v4083_v52 }
0x1451   :  { %v3717_v33 = vadd.f32 %v3714_v28, %v3711_v3 }
0x1453   :  { %v3723_v58 = vadd.f32 %v3720_v34, %v3717_v33 }
0x1457   :  { %4950 = vmatmul.msk.f32.gmra.mxu1 %vm522_vm6, %v3977_v39  ;;  %v4062_v56 = vpop.f32.mrf.mxu1 }
0x1458   :  { %v4087_v47 = vmul.f32 %v7533_v43, %v4062_v56  ;;  %v4085_v43 = vadd.f32 %v4082_v22, %v4079_v38 }
0x145a   :  { %v4090_v21 = vadd.f32 %v4087_v47, %v4084_v51 }
0x145f   :  { %4951 = vmatmul.msk.f32.gmra.mxu1 %vm522_vm6, %v3978_v50  ;;  %v5516_v50 = vld [vmem:[%s8212_s23 + $0x2] ss:$0 sm:$0xff] }
0x1467   :  { %v3701_v11 = vpop.f32.mrf.mxu2 }
0x1468   :  { %v3725_v10 = vmul.f32 %v7555_v2, %v3701_v11  ;;  %v5053_v11 = vld [vmem:[%s8184_s10 + $0x2] ss:$0 sm:$0xff] }
0x146a   :  { %v3728_v5 = vadd.f32 %v3725_v10, %v3722_v55 }
0x146c   :  { %4952 = vmatmul.msk.f32.vlgmr.msra.gmra.mxu0 %vm177_vm1, %v3728_v5 }
0x146f   :  { %v3704_v45 = vpop.f32.mrf.mxu2 }
0x1470   :  { %v3726_v20 = vmul.f32 %v7555_v2, %v3704_v45 }
0x1471   :  { %v4065_v53 = vpop.f32.mrf.mxu1 }
0x1472   :  { %v3729_v0 = vadd.f32 %v3726_v20, %v3723_v58  ;;  %v4088_v49 = vmul.f32 %v5516_v50, %v4065_v53  ;;  %v4878_v50 = vld [vmem:[%s8187_s13 + $0x40] sm:$0xff] }
0x1474   :  { %4953 = vmatmul.msk.f32.gmra.mxu0 %vm177_vm1, %v3729_v0  ;;  %v4091_v63 = vadd.f32 %v4088_v49, %v4085_v43 }
0x1477   :  { %v3707_v24 = vpop.f32.mrf.mxu2 }
0x1478   :  { %v3727_v1 = vmul.f32 %v7555_v2, %v3707_v24 }
0x147a   :  { %v3730_v6 = vadd.f32 %v3727_v1, %v3724_v48 }
0x147c   :  { %4954 = vmatmul.msk.f32.gmra.mxu0 %vm177_vm1, %v3730_v6 }
0x14cc   :  { %v4068_v57 = vpop.f32.mrf.mxu1 }
0x14cd   :  { %v4092_v30 = vmul.f32 %v7555_v2, %v4068_v57 }
0x14cf   :  { %v4095_v37 = vadd.f32 %v4092_v30, %v4089_v15 }
0x14d1   :  { %4955 = vmatmul.msk.f32.gmra.mxu0 %vm177_vm1, %v4095_v37 }
0x14d4   :  { %v4071_v13 = vpop.f32.mrf.mxu1 }
0x14d5   :  { %v4093_v12 = vmul.f32 %v7555_v2, %v4071_v13  ;;  %v4881_v13 = vld [vmem:[%s8187_s13 + $0x58] sm:$0xff] }
0x14d6   :  { %4349 = vmatpush.msra.mxu2 %v4881_v13 }
0x14d7   :  { %v4096_v39 = vadd.f32 %v4093_v12, %v4090_v21  ;;  %v4880_v12 = vld [vmem:[%s8187_s13 + $0x50] sm:$0xff] }
0x14d8   :  { %4350 = vmatpush.msra.mxu2 %v4880_v12 }
0x14d9   :  { %4956 = vmatmul.msk.f32.gmra.mxu0 %vm177_vm1, %v4096_v39  ;;  %v4879_v39 = vld [vmem:[%s8187_s13 + $0x48] sm:$0xff] }
0x14da   :  { %4351 = vmatpush.msra.mxu2 %v4879_v39 }
0x14dc   :  { %v4074_v61 = vpop.f32.mrf.mxu1  ;;  %4352 = vmatpush.msra.mxu2 %v4878_v50 }
0x14dd   :  { %v4094_v17 = vmul.f32 %v7555_v2, %v4074_v61 }
0x14df   :  { %v4097_v32 = vadd.f32 %v4094_v17, %v4091_v63 }
0x14e1   :  { %4957 = vmatmul.msk.f32.gmra.mxu0 %vm177_vm1, %v4097_v32 }
0x14e9   :  { %v4133_v55 = vpop.f32.mrf.mxu0 }
0x14ea   :  { %v4151_v10 = vadd.f32 %v4133_v55, %v7344_v25 }
0x14ec   :  { %v4160_v5 = vadd.f32 %v5053_v11, %v4151_v10 }
0x14ee   :  { %v4166_v28 = vsel %vm177_vm1, %v4160_v5, 0.0 }
0x14ef   :  { %4167 = vadd.xlane.f32.xlu1 %v4166_v28 }
0x14f1   :  { %v4136_v3 = vpop.f32.mrf.mxu0 }
0x14f2   :  { %v4152_v34 = vadd.f32 %v4136_v3, %v7349_v19 }
0x14f4   :  { %v4161_v33 = vadd.f32 %v5053_v11, %v4152_v34 }
0x14f6   :  { %v4169_v2 = vsel %vm177_vm1, %v4161_v33, 0.0 }
0x14f7   :  { %4170 = vadd.xlane.f32.xlu0 %v4169_v2 }
0x14f9   :  { %v4139_v45 = vpop.f32.mrf.mxu0 }
0x14fa   :  { %v4153_v58 = vadd.f32 %v4139_v45, %v7354_v40 }
0x14fc   :  { %v7954_v20 = vadd.f32 %v5053_v11, %v4153_v58 }
0x14fe   :  { %v4172_v35 = vsel %vm177_vm1, %v7954_v20, 0.0 }
0x14ff   :  { %4173 = vadd.xlane.f32.xlu2 %v4172_v35 }
0x154e   :  { %v4142_v25 = vpop.f32.mrf.mxu0 }
0x154f   :  { %v4154_v0 = vadd.f32 %v4142_v25, %v7359_v23  ;;  %v8023_v25 = vld [vmem:[%s8185_s11 + $0x2] ss:$0 sm:$0xff] }
0x1551   :  { %v4163_v59 = vadd.f32 %v5053_v11, %v4154_v0 }
0x1553   :  { %v4175_v8 = vsel %vm177_vm1, %v4163_v59, 0.0 }
0x1554   :  { %4176 = vadd.xlane.f32.xlu1 %v4175_v8  ;;  %v8028_v8 = vld [vmem:[%s8186_s12 + $0x2] ss:$0 sm:$0xff] }
0x1556   :  { %v4145_v19 = vpop.f32.mrf.mxu0 }
0x1557   :  { %v4155_v4 = vadd.f32 %v4145_v19, %v7364_v31 }
0x1559   :  { %v4164_v44 = vadd.f32 %v5053_v11, %v4155_v4 }
0x155b   :  { %v4178_v24 = vsel %vm177_vm1, %v4164_v44, 0.0 }
0x155c   :  { %4179 = vadd.xlane.f32.xlu0 %v4178_v24 }
0x155e   :  { %v4148_v40 = vpop.f32.mrf.mxu0 }
0x155f   :  { %v4156_v48 = vadd.f32 %v4148_v40, %v7369_v7 }
0x1561   :  { %v7963_v1 = vadd.f32 %v5053_v11, %v4156_v48 }
0x1562   :  { %v4168_v6 = vpop.xlane.xlu1 %4167 }
0x1563   :  { %v4184_v46 = vmul.f32 %v4168_v6, %v5741_v42  ;;  %v4181_v23 = vsel %vm177_vm1, %v7963_v1, 0.0 }
0x1564   :  { %4182 = vadd.xlane.f32.xlu2 %v4181_v23 }
0x1565   :  { %v7968_v26 = vsub.f32 %v4160_v5, %v4184_v46 }
0x1567   :  { %v4196_v31 = vmul.f32 %v7968_v26, %v7968_v26 }
0x1569   :  { %v4202_v18 = vsel %vm177_vm1, %v4196_v31, 0.0 }
0x156a   :  { %4203 = vadd.xlane.f32.xlu1 %v4202_v18  ;;  %v4171_v9 = vpop.xlane.xlu0 %4170 }
0x156b   :  { %v4185_v7 = vmul.f32 %v4171_v9, %v5741_v42 }
0x156d   :  { %v7974_v27 = vsub.f32 %v4161_v33, %v4185_v7 }
0x156f   :  { %v4197_v41 = vmul.f32 %v7974_v27, %v7974_v27 }
0x1571   :  { %v4205_v56 = vsel %vm177_vm1, %v4197_v41, 0.0 }
0x1572   :  { %v4174_v53 = vpop.xlane.xlu2 %4173  ;;  %4206 = vadd.xlane.f32.xlu0 %v4205_v56 }
0x1573   :  { %v4186_v54 = vmul.f32 %v4174_v53, %v5741_v42 }
0x1575   :  { %v7981_v29 = vsub.f32 %v7954_v20, %v4186_v54 }
0x1577   :  { %v4198_v16 = vmul.f32 %v7981_v29, %v7981_v29 }
0x1579   :  { %v4208_v52 = vsel %vm177_vm1, %v4198_v16, 0.0 }
0x157a   :  { %4209 = vadd.xlane.f32.xlu2 %v4208_v52 }
0x15c7   :  { %v4177_v57 = vpop.xlane.xlu1 %4176 }
0x15c8   :  { %v4187_v15 = vmul.f32 %v4177_v57, %v5741_v42 }
0x15ca   :  { %v7987_v30 = vsub.f32 %v4163_v59, %v4187_v15 }
0x15cc   :  { %v4199_v14 = vmul.f32 %v7987_v30, %v7987_v30 }
0x15ce   :  { %v4211_v37 = vsel %vm177_vm1, %v4199_v14, 0.0 }
0x15cf   :  { %4212 = vadd.xlane.f32.xlu1 %v4211_v37  ;;  %v4180_v62 = vpop.xlane.xlu0 %4179 }
0x15d0   :  { %v4188_v36 = vmul.f32 %v4180_v62, %v5741_v42 }
0x15d2   :  { %v7993_v47 = vsub.f32 %v4164_v44, %v4188_v36 }
0x15d4   :  { %v4200_v51 = vmul.f32 %v7993_v47, %v7993_v47 }
0x15d6   :  { %v4214_v21 = vsel %vm177_vm1, %v4200_v51, 0.0 }
0x15d7   :  { %4215 = vadd.xlane.f32.xlu0 %v4214_v21  ;;  %v4183_v60 = vpop.xlane.xlu2 %4182 }
0x15d8   :  { %v4189_v22 = vmul.f32 %v4183_v60, %v5741_v42 }
0x15da   :  { %v8009_v38 = vsub.f32 %v7963_v1, %v4189_v22 }
0x15dc   :  { %v4201_v49 = vmul.f32 %v8009_v38, %v8009_v38 }
0x15dd   :  { %v4204_v43 = vpop.xlane.xlu1 %4203 }
0x15de   :  { %v4220_v61 = vmul.f32 %v4204_v43, %v5741_v42  ;;  %v4217_v63 = vsel %vm177_vm1, %v4201_v49, 0.0 }
0x15df   :  { %4218 = vadd.xlane.f32.xlu2 %v4217_v63 }
0x15e0   :  { %v4226_v17 = vadd.f32 1e-05, %v4220_v61 }
0x15e2   :  { %5459 = vrsqrt.f32 %v4226_v17  ;;  %vm4238_vm13 = vweird.f32 %v4226_v17 }
0x15e5   :  { %v4207_v32 = vpop.xlane.xlu0 %4206 }
0x15e6   :  { %v4221_v11 = vmul.f32 %v4207_v32, %v5741_v42 }
0x15e8   :  { %v5460_v55 = vpop.eup %5459  ;;  %v4227_v5 = vadd.f32 1e-05, %v4221_v11 }
0x15e9   :  { %v4233_v10 = vmul.f32 %v5460_v55, %v4226_v17  ;;  %vm4239_vm6 = vweird.f32 %v5460_v55 }
0x15ea   :  { %5461 = vrsqrt.f32 %v4227_v5  ;;  %vm4240_vm14 = vmor %vm4238_vm13, %vm4239_vm6  ;;  %vm4248_vm0 = vweird.f32 %v4227_v5 }
0x15eb   :  { %v4234_v28 = vmul.f32 %v5460_v55, %v4233_v10 }
0x15ed   :  { %v4235_v3 = vmul.f32 0.5, %v4234_v28  ;;  %v4210_v34 = vpop.xlane.xlu2 %4209 }
0x15ee   :  { %v4222_v2 = vmul.f32 %v4210_v34, %v5741_v42 }
0x15ef   :  { %v4236_v33 = vsub.f32 1.5, %v4235_v3 }
0x15f0   :  { %v5462_v45 = vpop.eup %5461  ;;  %v4228_v35 = vadd.f32 1e-05, %v4222_v2 }
0x15f1   :  { %v4237_v58 = vmul.f32 %v5460_v55, %v4236_v33  ;;  %v4243_v0 = vmul.f32 %v5462_v45, %v4227_v5  ;;  %vm4249_vm15 = vweird.f32 %v5462_v45 }
0x15f2   :  { %5463 = vrsqrt.f32 %v4228_v35  ;;  %vm4250_vm2 = vmor %vm4248_vm0, %vm4249_vm15  ;;  %vm4258_vm4 = vweird.f32 %v4228_v35 }
0x15f3   :  { %v4241_v59 = vsel %vm4240_vm14, %v5460_v55, %v4237_v58  ;;  %v4244_v4 = vmul.f32 %v5462_v45, %v4243_v0 }
0x15f4   :  { %v4292_v19 = vmul.f32 %v4241_v59, %v7968_v26 }
0x15f5   :  { %v4245_v24 = vmul.f32 0.5, %v4244_v4 }
0x15f6   :  { %v4301_v44 = vmul.f32 %v8023_v25, %v4292_v19 }
0x15f7   :  { %v4246_v48 = vsub.f32 1.5, %v4245_v24 }
0x15f8   :  { %v4310_v40 = vadd.f32 %v8028_v8, %v4301_v44  ;;  %v5464_v6 = vpop.eup %5463 }
0x15f9   :  { %v4247_v46 = vmul.f32 %v5462_v45, %v4246_v48  ;;  %v4253_v23 = vmul.f32 %v5464_v6, %v4228_v35  ;;  %vm4259_vm3 = vweird.f32 %v5464_v6  ;;  %v4890_v48 = vld [vmem:[%s8189_s15 + $0xb8] sm:$0xff] }
0x15fa   :  { %4958 = vmatmul.msk.f32.vlgmr.msra.gmra.mxu2 %vm177_vm1, %v4310_v40  ;;  %vm4260_vm5 = vmor %vm4258_vm4, %vm4259_vm3  ;;  %4554 = vmatpush.msra.mxu3 %v4890_v48 }
0x15fb   :  { %v4251_v31 = vsel %vm4250_vm2, %v5462_v45, %v4247_v46  ;;  %v4254_v18 = vmul.f32 %v5464_v6, %v4253_v23  ;;  %v4887_v23 = vld [vmem:[%s8189_s15 + $0xa0] sm:$0xff] }
0x15fc   :  { %v4293_v9 = vmul.f32 %v4251_v31, %v7974_v27 }
0x15fd   :  { %v4255_v26 = vmul.f32 0.5, %v4254_v18 }
0x15fe   :  { %v4302_v7 = vmul.f32 %v8023_v25, %v4293_v9  ;;  %v4886_v9 = vld [vmem:[%s8189_s15 + $0x98] sm:$0xff] }
0x15ff   :  { %v4256_v41 = vsub.f32 1.5, %v4255_v26 }
0x1600   :  { %v4311_v56 = vadd.f32 %v8028_v8, %v4302_v7  ;;  %v4885_v7 = vld [vmem:[%s8189_s15 + $0x90] sm:$0xff] }
0x1601   :  { %v4257_v53 = vmul.f32 %v5464_v6, %v4256_v41 }
0x1602   :  { %4959 = vmatmul.msk.f32.gmra.mxu2 %vm177_vm1, %v4311_v56  ;;  %v4884_v56 = vld [vmem:[%s8189_s15 + $0x88] sm:$0xff] }
0x1603   :  { %v4261_v54 = vsel %vm4260_vm5, %v5464_v6, %v4257_v53  ;;  %v4888_v6 = vld [vmem:[%s8189_s15 + $0xa8] sm:$0xff] }
0x1604   :  { %v4294_v16 = vmul.f32 %v4261_v54, %v7981_v29  ;;  %v4883_v54 = vld [vmem:[%s8189_s15 + $0x80] sm:$0xff] }
0x1606   :  { %v4303_v52 = vmul.f32 %v8023_v25, %v4294_v16 }
0x1608   :  { %v4312_v57 = vadd.f32 %v8028_v8, %v4303_v52 }
0x160a   :  { %4960 = vmatmul.msk.f32.gmra.mxu2 %vm177_vm1, %v4312_v57 }
0x1642   :  { %v4213_v27 = vpop.xlane.xlu1 %4212 }
0x1643   :  { %v4223_v15 = vmul.f32 %v4213_v27, %v5741_v42 }
0x1645   :  { %v4229_v14 = vadd.f32 1e-05, %v4223_v15 }
0x1647   :  { %5465 = vrsqrt.f32 %v4229_v14  ;;  %vm4268_vm8 = vweird.f32 %v4229_v14 }
0x164a   :  { %v4216_v37 = vpop.xlane.xlu0 %4215 }
0x164b   :  { %v4224_v62 = vmul.f32 %v4216_v37, %v5741_v42 }
0x164d   :  { %v5466_v36 = vpop.eup %5465  ;;  %v4230_v51 = vadd.f32 1e-05, %v4224_v62 }
0x164e   :  { %v4263_v13 = vmul.f32 %v5466_v36, %v4229_v14  ;;  %vm4269_vm7 = vweird.f32 %v5466_v36 }
0x164f   :  { %5467 = vrsqrt.f32 %v4230_v51  ;;  %vm4270_vm9 = vmor %vm4268_vm8, %vm4269_vm7  ;;  %vm4278_vm11 = vweird.f32 %v4230_v51  ;;  %vm4587_vm8 = vcmask 1040384  }
0x1650   :  { %v4264_v21 = vmul.f32 %v5466_v36, %v4263_v13 }
0x1652   :  { %v4265_v29 = vmul.f32 0.5, %v4264_v21  ;;  %v4219_v12 = vpop.xlane.xlu2 %4218 }
0x1653   :  { %v4225_v60 = vmul.f32 %v4219_v12, %v5741_v42 }
0x1654   :  { %v4266_v22 = vsub.f32 1.5, %v4265_v29 }
0x1655   :  { %v5468_v39 = vpop.eup %5467  ;;  %v4231_v50 = vadd.f32 1e-05, %v4225_v60 }
0x1656   :  { %v4267_v49 = vmul.f32 %v5466_v36, %v4266_v22  ;;  %v4273_v43 = vmul.f32 %v5468_v39, %v4230_v51  ;;  %vm4279_vm10 = vweird.f32 %v5468_v39 }
0x1657   :  { %5469 = vrsqrt.f32 %v4231_v50  ;;  %vm4280_vm6 = vmor %vm4278_vm11, %vm4279_vm10  ;;  %vm4288_vm14 = vweird.f32 %v4231_v50 }
0x1658   :  { %v4271_v61 = vsel %vm4270_vm9, %v5466_v36, %v4267_v49  ;;  %v4274_v63 = vmul.f32 %v5468_v39, %v4273_v43  ;;  %vm4591_vm9 = vcmask 254976  }
0x1659   :  { %v4295_v17 = vmul.f32 %v4271_v61, %v7987_v30 }
0x165a   :  { %v4275_v32 = vmul.f32 0.5, %v4274_v63 }
0x165b   :  { %v4304_v11 = vmul.f32 %v8023_v25, %v4295_v17 }
0x165c   :  { %v4276_v55 = vsub.f32 1.5, %v4275_v32 }
0x165d   :  { %v5470_v10 = vpop.eup %5469  ;;  %v4313_v5 = vadd.f32 %v8028_v8, %v4304_v11 }
0x165e   :  { %v4277_v28 = vmul.f32 %v5468_v39, %v4276_v55  ;;  %v4283_v3 = vmul.f32 %v5470_v10, %v4231_v50  ;;  %vm4289_vm13 = vweird.f32 %v5470_v10 }
0x165f   :  { %4961 = vmatmul.msk.f32.gmra.mxu2 %vm177_vm1, %v4313_v5  ;;  %vm4290_vm15 = vmor %vm4288_vm14, %vm4289_vm13 }
0x1660   :  { %v4281_v34 = vsel %vm4280_vm6, %v5468_v39, %v4277_v28  ;;  %v4284_v33 = vmul.f32 %v5470_v10, %v4283_v3  ;;  %vm4653_vm6 = vcmask 74752  }
0x1661   :  { %v4296_v2 = vmul.f32 %v4281_v34, %v7993_v47  ;;  %v8060_v47 = vld [vmem:[%s8188_s14 + $0x2] ss:$0 sm:$0xff] }
0x1662   :  { %v4285_v45 = vmul.f32 0.5, %v4284_v33 }
0x1663   :  { %v4305_v30 = vmul.f32 %v8023_v25, %v4296_v2 }
0x1664   :  { %v4286_v58 = vsub.f32 1.5, %v4285_v45 }
0x1665   :  { %v4314_v35 = vadd.f32 %v8028_v8, %v4305_v30 }
0x1666   :  { %v4287_v0 = vmul.f32 %v5470_v10, %v4286_v58 }
0x1667   :  { %4962 = vmatmul.msk.f32.gmra.mxu2 %vm177_vm1, %v4314_v35 }
0x1668   :  { %v4291_v59 = vsel %vm4290_vm15, %v5470_v10, %v4287_v0 }
0x1669   :  { %v4297_v19 = vmul.f32 %v4291_v59, %v8009_v38 }
0x166b   :  { %v4306_v4 = vmul.f32 %v8023_v25, %v4297_v19  ;;  %v4889_v25 = vld [vmem:[%s8189_s15 + $0xb0] sm:$0xff] }
0x166c   :  { %4555 = vmatpush.msra.mxu3 %v4889_v25 }
0x166d   :  { %v4315_v44 = vadd.f32 %v8028_v8, %v4306_v4 }
0x166e   :  { %4556 = vmatpush.msra.mxu3 %v4888_v6 }
0x166f   :  { %4963 = vmatmul.msk.f32.gmra.mxu2 %vm177_vm1, %v4315_v44 }
0x1670   :  { %4557 = vmatpush.msra.mxu3 %v4887_v23 }
0x1672   :  { %4558 = vmatpush.msra.mxu3 %v4886_v9 }
0x1674   :  { %4559 = vmatpush.msra.mxu3 %v4885_v7 }
0x1676   :  { %4560 = vmatpush.msra.mxu3 %v4884_v56 }
0x1678   :  { %4561 = vmatpush.msra.mxu3 %v4883_v54 }
0x167d   :  { %v4354_v24 = vpop.f32.mrf.mxu2 }
0x167e   :  { %v8063_v40 = vadd.f32 %v8060_v47, %v4354_v24 }
0x1680   :  { %v8069_v38 = vmul.f32 0.70710677, %v8063_v40 }
0x1682   :  { %v4384_v8 = vand.u32 2147483647, %v8069_v38  ;;  %vm4498_vm0 = vcmp.ge.f32.partialorder %v8069_v38, 0.0 }
0x1684   :  { %v4390_v46 = vmul.f32 0.3275911, %v4384_v8  ;;  %v4462_v16 = vsub.f32 0.0, %v4384_v8 }
0x1685   :  { %v4357_v18 = vpop.f32.mrf.mxu2 }
0x1686   :  { %v4396_v31 = vadd.f32 1.0, %v4390_v46  ;;  %v8085_v26 = vadd.f32 %v8060_v47, %v4357_v18  ;;  %v4468_v36 = vmul.f32 %v4462_v16, %v4384_v8  ;;  %v4372_v8 = vmul.f32 0.5, %v8063_v40 }
0x1688   :  { %5471 = vrcp.f32 %v4396_v31  ;;  %v8091_v41 = vmul.f32 0.70710677, %v8085_v26  ;;  %v4474_v12 = vmul.f32 1.442695, %v4468_v36  ;;  %v4373_v40 = vmul.f32 0.5, %v8085_v26 }
0x168a   :  { %v4385_v53 = vand.u32 2147483647, %v8091_v41  ;;  %vm4499_vm2 = vcmp.ge.f32.partialorder %v8091_v41, 0.0 }
0x168c   :  { %v4391_v52 = vmul.f32 0.3275911, %v4385_v53  ;;  %v4463_v50 = vsub.f32 0.0, %v4385_v53 }
0x168d   :  { %v4360_v27 = vpop.f32.mrf.mxu2 }
0x168e   :  { %v5472_v57 = vpop.eup %5471  ;;  %v4397_v14 = vadd.f32 1.0, %v4391_v52  ;;  %v8101_v37 = vadd.f32 %v8060_v47, %v4360_v27  ;;  %v4469_v32 = vmul.f32 %v4463_v50, %v4385_v53 }
0x168f   :  { %v4408_v15 = vmul.f32 1.0614054, %v5472_v57 }
0x1690   :  { %5473 = vrcp.f32 %v4397_v14  ;;  %v8104_v51 = vmul.f32 0.70710677, %v8101_v37  ;;  %v4476_v3 = vmul.f32 1.442695, %v4469_v32 }
0x1691   :  { %v4414_v62 = vadd.f32 -1.4531521, %v4408_v15  ;;  %5475 = vpow2.f32 %v4474_v12 }
0x1692   :  { %v4386_v21 = vand.u32 2147483647, %v8104_v51  ;;  %vm4500_vm3 = vcmp.ge.f32.partialorder %v8104_v51, 0.0 }
0x1693   :  { %v4420_v13 = vmul.f32 %v5472_v57, %v4414_v62 }
0x1694   :  { %v4392_v60 = vmul.f32 0.3275911, %v4386_v21  ;;  %v4464_v2 = vsub.f32 0.0, %v4386_v21 }
0x1695   :  { %v4426_v29 = vadd.f32 1.4214138, %v4420_v13 }
0x1696   :  { %v5474_v22 = vpop.eup %5473  ;;  %v4398_v43 = vadd.f32 1.0, %v4392_v60  ;;  %v4470_v19 = vmul.f32 %v4464_v2, %v4386_v21 }
0x1697   :  { %v4432_v39 = vmul.f32 %v5472_v57, %v4426_v29  ;;  %v4409_v49 = vmul.f32 1.0614054, %v5474_v22  ;;  %v5476_v5 = vpop.eup %5475  ;;  %v4374_v29 = vmul.f32 0.5, %v8101_v37 }
0x1698   :  { %5477 = vrcp.f32 %v4398_v43  ;;  %v4478_v23 = vmul.f32 1.442695, %v4470_v19 }
0x1699   :  { %v4438_v61 = vadd.f32 -0.28449672, %v4432_v39  ;;  %v4415_v63 = vadd.f32 -1.4531521, %v4409_v49  ;;  %5479 = vpow2.f32 %v4476_v3 }
0x169a   :  { %5481 = vpow2.f32 %v4478_v23 }
0x169b   :  { %v4444_v17 = vmul.f32 %v5472_v57, %v4438_v61  ;;  %v4421_v11 = vmul.f32 %v5474_v22, %v4415_v63 }
0x169d   :  { %v4450_v55 = vadd.f32 0.2548296, %v4444_v17  ;;  %v4427_v10 = vadd.f32 1.4214138, %v4421_v11 }
0x169e   :  { %v5478_v34 = vpop.eup %5477 }
0x169f   :  { %v4456_v28 = vmul.f32 %v5472_v57, %v4450_v55  ;;  %v4433_v33 = vmul.f32 %v5474_v22, %v4427_v10  ;;  %v4410_v30 = vmul.f32 1.0614054, %v5478_v34  ;;  %v5480_v31 = vpop.eup %5479 }
0x16a0   :  { %v5482_v15 = vpop.eup %5481 }
0x16a1   :  { %v4486_v45 = vmul.f32 %v5476_v5, %v4456_v28  ;;  %v4439_v58 = vadd.f32 -0.28449672, %v4433_v33  ;;  %v4416_v0 = vadd.f32 -1.4531521, %v4410_v30 }
0x16a3   :  { %v4492_v35 = vsub.f32 1.0, %v4486_v45  ;;  %v4445_v59 = vmul.f32 %v5474_v22, %v4439_v58  ;;  %v4422_v44 = vmul.f32 %v5478_v34, %v4416_v0 }
0x16a5   :  { %v4504_v4 = vsub.f32 0.0, %v4492_v35  ;;  %v4451_v24 = vadd.f32 0.2548296, %v4445_v59  ;;  %v4428_v25 = vadd.f32 1.4214138, %v4422_v44 }
0x16a7   :  { %v4510_v48 = vsel %vm4498_vm0, %v4492_v35, %v4504_v4  ;;  %v4457_v46 = vmul.f32 %v5474_v22, %v4451_v24  ;;  %v4434_v18 = vmul.f32 %v5478_v34, %v4428_v25 }
0x16a8   :  { %v4516_v6 = vadd.f32 1.0, %v4510_v48 }
0x16a9   :  { %v4487_v7 = vmul.f32 %v5480_v31, %v4457_v46  ;;  %v4440_v56 = vadd.f32 -0.28449672, %v4434_v18 }
0x16aa   :  { %v4522_v9 = vmul.f32 %v4516_v6, %v4372_v8 }
0x16ab   :  { %v4493_v53 = vsub.f32 1.0, %v4487_v7  ;;  %v4446_v54 = vmul.f32 %v5478_v34, %v4440_v56 }
0x16ac   :  { %4964 = vmatmul.msk.f32.vlgmr.msra.gmra.mxu3 %vm1571_vm12, %v4522_v9 }
0x16ad   :  { %v4505_v16 = vsub.f32 0.0, %v4493_v53  ;;  %v4452_v38 = vadd.f32 0.2548296, %v4446_v54 }
0x16af   :  { %v4511_v52 = vsel %vm4499_vm2, %v4493_v53, %v4505_v16  ;;  %v4458_v27 = vmul.f32 %v5478_v34, %v4452_v38 }
0x16b0   :  { %v4517_v57 = vadd.f32 1.0, %v4511_v52 }
0x16b1   :  { %v4488_v62 = vmul.f32 %v5482_v15, %v4458_v27 }
0x16b2   :  { %v4523_v14 = vmul.f32 %v4517_v57, %v4373_v40 }
0x16b3   :  { %v4494_v36 = vsub.f32 1.0, %v4488_v62 }
0x16b4   :  { %4965 = vmatmul.msk.f32.gmra.mxu3 %vm1571_vm12, %v4523_v14 }
0x16b5   :  { %v4506_v13 = vsub.f32 0.0, %v4494_v36 }
0x16b7   :  { %v4512_v21 = vsel %vm4500_vm3, %v4494_v36, %v4506_v13 }
0x16b8   :  { %v4518_v12 = vadd.f32 1.0, %v4512_v21 }
0x16ba   :  { %v4524_v41 = vmul.f32 %v4518_v12, %v4374_v29 }
0x16bc   :  { %4966 = vmatmul.msk.f32.gmra.mxu3 %vm1571_vm12, %v4524_v41 }
0x16e2   :  { %v4363_v60 = vpop.f32.mrf.mxu2 }
0x16e3   :  { %v8117_v26 = vadd.f32 %v8060_v47, %v4363_v60 }
0x16e5   :  { %v4381_v22 = vmul.f32 0.70710677, %v8117_v26  ;;  %v4375_v12 = vmul.f32 0.5, %v8117_v26 }
0x16e7   :  { %v4387_v39 = vand.u32 2147483647, %v4381_v22  ;;  %vm4501_vm4 = vcmp.ge.f32.partialorder %v4381_v22, 0.0 }
0x16e9   :  { %v4393_v50 = vmul.f32 0.3275911, %v4387_v39  ;;  %v4465_v11 = vsub.f32 0.0, %v4387_v39 }
0x16ea   :  { %v4366_v49 = vpop.f32.mrf.mxu2 }
0x16eb   :  { %v4399_v43 = vadd.f32 1.0, %v4393_v50  ;;  %v8121_v61 = vadd.f32 %v8060_v47, %v4366_v49  ;;  %v4471_v34 = vmul.f32 %v4465_v11, %v4387_v39 }
0x16ed   :  { %5483 = vrcp.f32 %v4399_v43  ;;  %v8124_v37 = vmul.f32 0.70710677, %v8121_v61  ;;  %v4480_v35 = vmul.f32 1.442695, %v4471_v34  ;;  %v4376_v11 = vmul.f32 0.5, %v8121_v61 }
0x16ef   :  { %v4388_v51 = vand.u32 2147483647, %v8124_v37  ;;  %vm4502_vm5 = vcmp.ge.f32.partialorder %v8124_v37, 0.0 }
0x16f1   :  { %v4394_v63 = vmul.f32 0.3275911, %v4388_v51  ;;  %v4466_v0 = vsub.f32 0.0, %v4388_v51 }
0x16f2   :  { %v4369_v17 = vpop.f32.mrf.mxu2 }
0x16f3   :  { %v5484_v32 = vpop.eup %5483  ;;  %v4400_v55 = vadd.f32 1.0, %v4394_v63  ;;  %v8128_v10 = vadd.f32 %v8060_v47, %v4369_v17  ;;  %v4472_v24 = vmul.f32 %v4466_v0, %v4388_v51 }
0x16f4   :  { %v4411_v5 = vmul.f32 1.0614054, %v5484_v32 }
0x16f5   :  { %5485 = vrcp.f32 %v4400_v55  ;;  %v8131_v28 = vmul.f32 0.70710677, %v8128_v10  ;;  %v4482_v23 = vmul.f32 1.442695, %v4472_v24 }
0x16f6   :  { %v4417_v3 = vadd.f32 -1.4531521, %v4411_v5 }
0x16f7   :  { %v4389_v33 = vand.u32 2147483647, %v8131_v28  ;;  %vm4503_vm7 = vcmp.ge.f32.partialorder %v8131_v28, 0.0 }
0x16f8   :  { %v4423_v2 = vmul.f32 %v5484_v32, %v4417_v3 }
0x16f9   :  { %v4395_v45 = vmul.f32 0.3275911, %v4389_v33  ;;  %v4467_v31 = vsub.f32 0.0, %v4389_v33 }
0x16fa   :  { %v4429_v30 = vadd.f32 1.4214138, %v4423_v2  ;;  %v4377_v2 = vmul.f32 0.5, %v8128_v10 }
0x16fb   :  { %v5486_v58 = vpop.eup %5485  ;;  %v4401_v59 = vadd.f32 1.0, %v4395_v45  ;;  %v4473_v38 = vmul.f32 %v4467_v31, %v4389_v33  ;;  %v4623_v31 = vld [vmem:[%s8193_s19 + $0x8] sm:$0xff] }
0x16fc   :  { %v4435_v19 = vmul.f32 %v5484_v32, %v4429_v30  ;;  %v4412_v4 = vmul.f32 1.0614054, %v5486_v58 }
0x16fd   :  { %5487 = vrcp.f32 %v4401_v59  ;;  %v4484_v62 = vmul.f32 1.442695, %v4473_v38 }
0x16fe   :  { %v4441_v47 = vadd.f32 -0.28449672, %v4435_v19  ;;  %v4418_v44 = vadd.f32 -1.4531521, %v4412_v4  ;;  %5489 = vpow2.f32 %v4480_v35  ;;  %v5057_v4 = vld [vmem:[%s8190_s16 + $0x2] ss:$0 sm:$0xff] }
0x16ff   :  { %5491 = vpow2.f32 %v4482_v23 }
0x1700   :  { %v4447_v48 = vmul.f32 %v5484_v32, %v4441_v47  ;;  %v4424_v25 = vmul.f32 %v5486_v58, %v4418_v44  ;;  %5493 = vpow2.f32 %v4484_v62 }
0x1702   :  { %v4453_v8 = vadd.f32 0.2548296, %v4447_v48  ;;  %v4430_v6 = vadd.f32 1.4214138, %v4424_v25  ;;  %v4625_v25 = vld [vmem:[%s8193_s19 + $0x18] sm:$0xff] }
0x1703   :  { %v5488_v46 = vpop.eup %5487  ;;  %4645 = vmatpush.msra.mxu1 %v4625_v25 }
0x1704   :  { %v4459_v18 = vmul.f32 %v5484_v32, %v4453_v8  ;;  %v4436_v9 = vmul.f32 %v5486_v58, %v4430_v6  ;;  %v4413_v7 = vmul.f32 1.0614054, %v5488_v46  ;;  %v5490_v56 = vpop.eup %5489 }
0x1705   :  { %v5492_v29 = vpop.eup %5491 }
0x1706   :  { %v4489_v53 = vmul.f32 %v5490_v56, %v4459_v18  ;;  %v4442_v54 = vadd.f32 -0.28449672, %v4436_v9  ;;  %v4419_v16 = vadd.f32 -1.4531521, %v4413_v7  ;;  %v5494_v32 = vpop.eup %5493  ;;  %v4622_v18 = vld [vmem:[%s8193_s19] sm:$0xff] }
0x1708   :  { %v4495_v52 = vsub.f32 1.0, %v4489_v53  ;;  %v4448_v40 = vmul.f32 %v5486_v58, %v4442_v54  ;;  %v4425_v57 = vmul.f32 %v5488_v46, %v4419_v16 }
0x170a   :  { %v4507_v27 = vsub.f32 0.0, %v4495_v52  ;;  %v4454_v15 = vadd.f32 0.2548296, %v4448_v40  ;;  %v4431_v14 = vadd.f32 1.4214138, %v4425_v57 }
0x170b   :  { %v5058_v57 = vld [vmem:[%s8191_s17] ss:$0 sm:$0xff]  ;;  %s4662_s17 = sshll.u32 %s8195_s21, 4  ;;  %s4663_s17 = int_to_ptr.hbm [resolvable:$true] %s4662_s17 }
0x170c   :  { %v4513_v36 = vsel %vm4501_vm4, %v4495_v52, %v4507_v27  ;;  %v4460_v13 = vmul.f32 %v5486_v58, %v4454_v15  ;;  %v4437_v21 = vmul.f32 %v5488_v46, %v4431_v14 }
0x170d   :  { %v4519_v41 = vadd.f32 1.0, %v4513_v36  ;;  %v5060_v36 = vld [vmem:[%s8194_s20] ss:$0 sm:$0xff] }
0x170e   :  { %v4490_v60 = vmul.f32 %v5492_v29, %v4460_v13  ;;  %v4443_v39 = vadd.f32 -0.28449672, %v4437_v21 }
0x170f   :  { %v4525_v50 = vmul.f32 %v4519_v41, %v4375_v12 }
0x1710   :  { %v4496_v49 = vsub.f32 1.0, %v4490_v60  ;;  %v4449_v43 = vmul.f32 %v5488_v46, %v4443_v39 }
0x1711   :  { %4967 = vmatmul.msk.f32.gmra.mxu3 %vm1571_vm12, %v4525_v50 }
0x1712   :  { %v4508_v51 = vsub.f32 0.0, %v4496_v49  ;;  %v4455_v63 = vadd.f32 0.2548296, %v4449_v43 }
0x1714   :  { %v4514_v22 = vsel %vm4502_vm5, %v4496_v49, %v4508_v51  ;;  %v4461_v17 = vmul.f32 %v5488_v46, %v4455_v63 }
0x1715   :  { %v4520_v55 = vadd.f32 1.0, %v4514_v22 }
0x1716   :  { %v4491_v26 = vmul.f32 %v5494_v32, %v4461_v17 }
0x1717   :  { %v4526_v5 = vmul.f32 %v4520_v55, %v4376_v11 }
0x1718   :  { %v4497_v3 = vsub.f32 1.0, %v4491_v26 }
0x1719   :  { %4968 = vmatmul.msk.f32.gmra.mxu3 %vm1571_vm12, %v4526_v5 }
0x171a   :  { %v4509_v34 = vsub.f32 0.0, %v4497_v3 }
0x171c   :  { %v4515_v33 = vsel %vm4503_vm7, %v4497_v3, %v4509_v34 }
0x171d   :  { %v4521_v45 = vadd.f32 1.0, %v4515_v33 }
0x171f   :  { %v4527_v30 = vmul.f32 %v4521_v45, %v4377_v2 }
0x1721   :  { %4969 = vmatmul.msk.f32.gmra.mxu3 %vm1571_vm12, %v4527_v30 }
0x172f   :  { %v4563_v37 = vpop.f32.mrf.mxu3 }
0x1737   :  { %v4565_v58 = vpop.f32.mrf.mxu3 }
0x173f   :  { %v4567_v35 = vpop.f32.mrf.mxu3 }
0x1740   :  { %v4577_v19 = vadd.f32 %v4567_v35, %v7954_v20  ;;  %v4624_v20 = vld [vmem:[%s8193_s19 + $0x10] sm:$0xff] }
0x1741   :  { %4646 = vmatpush.msra.mxu1 %v4624_v20 }
0x1742   :  { %v4582_v10 = vadd.f32 %v5057_v4, %v4577_v19 }
0x1743   :  { %4647 = vmatpush.msra.mxu1 %v4623_v31 }
0x1745   :  { %4648 = vmatpush.msra.mxu1 %v4622_v18 }
0x1794   :  { %v4570_v61 = vpop.f32.mrf.mxu3 }
0x179c   :  { %v4572_v0 = vpop.f32.mrf.mxu3 }
0x17a4   :  { %v4574_v59 = vpop.f32.mrf.mxu3 }
0x17a5   :  { %v4578_v28 = vadd.f32 %v4574_v59, %v7963_v1 }
0x17a7   :  { %v4583_v47 = vadd.f32 %v5057_v4, %v4578_v28 }
0x17a9   :  { %v4585_v44 = vrot.slane %v4583_v47, 7 }
0x17ab   :  { %v4588_v24 = vsel %vm4587_vm8, %v4582_v10, %v4585_v44 }
0x17ac   :  { %v4592_v48 = vsel %vm4591_vm9, %v4588_v24, 0.0 }
0x17ad   :  { %4593 = vadd.xlane.f32.xlu1 %v4592_v48 }
0x1820   :  { %v4594_v8 = vpop.xlane.xlu1 %4593 }
0x1821   :  { %v4595_v1 = vmul.f32 %v4594_v8, %v5741_v42 }
0x1823   :  { %v4596_v6 = vsub.f32 %v4588_v24, %v4595_v1 }
0x1825   :  { %v4597_v46 = vmul.f32 %v4596_v6, %v4596_v6 }
0x1827   :  { %v4598_v23 = vsel %vm4591_vm9, %v4597_v46, 0.0 }
0x1828   :  { %4599 = vadd.xlane.f32.xlu0 %v4598_v23 }
0x189b   :  { %v4600_v9 = vpop.xlane.xlu0 %4599 }
0x189c   :  { %v4601_v7 = vmul.f32 %v4600_v9, %v5741_v42  ;;  %v5059_v42 = vld [vmem:[%s8192_s18] ss:$0 sm:$0xff] }
0x189e   :  { %v4602_v56 = vadd.f32 1e-05, %v4601_v7 }
0x18a0   :  { %5495 = vrsqrt.f32 %v4602_v56  ;;  %vm4609_vm10 = vweird.f32 %v4602_v56 }
0x18a6   :  { %v5496_v53 = vpop.eup %5495 }
0x18a7   :  { %v4604_v54 = vmul.f32 %v5496_v53, %v4602_v56  ;;  %vm4610_vm12 = vweird.f32 %v5496_v53 }
0x18a8   :  { %vm4611_vm11 = vmor %vm4609_vm10, %vm4610_vm12 }
0x18a9   :  { %v4605_v16 = vmul.f32 %v5496_v53, %v4604_v54 }
0x18ab   :  { %v4606_v38 = vmul.f32 0.5, %v4605_v16 }
0x18ad   :  { %v4607_v52 = vsub.f32 1.5, %v4606_v38 }
0x18af   :  { %v4608_v40 = vmul.f32 %v5496_v53, %v4607_v52 }
0x18b1   :  { %v4612_v27 = vsel %vm4611_vm11, %v5496_v53, %v4608_v40 }
0x18b2   :  { %v4613_v15 = vmul.f32 %v4612_v27, %v4596_v6 }
0x18b4   :  { %v4617_v14 = vmul.f32 %v5058_v57, %v4613_v15 }
0x18b6   :  { %v4621_v62 = vadd.f32 %v5059_v42, %v4617_v14 }
0x18b8   :  { %4970 = vmatmul.msk.f32.vlgmr.msra.gmra.mxu1 %vm177_vm1, %v4621_v62 }
0x1935   :  { %v4650_v13 = vpop.f32.mrf.mxu1 }
0x1936   :  { %v4651_v21 = vadd.f32 %v5060_v36, %v4650_v13 }
0x1938   :  { %4654 = vst.msk [vmem:[#allocation2] sm:$0x3] %vm4653_vm6, %v4651_v21 }
0x1939   :  { %4665 = dma.vmem_to_hbm [thread:$0]  %s4661_s2, 32, %s4663_s17, [#allocation3]  }
0x193a   :  { %5541 = dma.done.wait [#allocation3], 32  }
0x193b   :  { %5542 = vsyncadd [#allocation3], 4294967264 }
0x193c   :  { %4670 = vsyncpa [#allocation3], 1 }

</bundles_post_ra>
